<compile_context>
chip_gen: v7x
topology: tpu7x:2x2x1
jax: 0.10.0
libtpu: 0.0.40
codegen_flags: <defaults>
</compile_context>

<pallas_src>
import math
import jax
import jax.numpy as jnp
from jax.experimental import pallas as pl
from jax.experimental.pallas import tpu as pltpu

LEAKY_SLOPE = 0.2
BN_EPS = 1e-5
INV_SQRT2 = 1.0 / math.sqrt(2.0)
FINAL_COUT = 321
FINAL_COUT_PAD = 384          # next multiple of 128 -> lane-dense final store
_PAD_SUB = 8                  # sublane-aligned zero halo (>= (K-1)//2 for K <= 17)
_TARGET_ROWS = 512            # target MXU M rows per grid step


def _batch_tile(B, T, target_rows=_TARGET_ROWS):
    """Batches folded per grid step so the MXU M-dim (Bt*T rows) is well filled."""
    bt = 1
    for d in range(1, B + 1):
        if B % d == 0 and d * T <= target_rows:
            bt = d
    return bt


def _im2col_same(x_bf, K, T):
    """'same'-conv im2col built entirely in bf16.

    x_bf: (Bt, T, Cin) bf16, already pre-activated if the conv has a preceding
    activation (LeakyReLU(0)=0, so the zero halo matches PyTorch zero padding).
    Each batch gets its own time halo.  Returns (Bt*T, K*Cin) bf16.
    """
    Bt, _, Cin = x_bf.shape
    if K == 1:
        return x_bf.reshape(Bt * T, Cin)
    P = (K - 1) // 2
    z = jnp.zeros((Bt, _PAD_SUB, Cin), jnp.bfloat16)
    xp = jnp.concatenate([z, x_bf, z], axis=1)            # (Bt, T + 16, Cin)
    base = _PAD_SUB - P
    cols = jnp.concatenate(
        [xp[:, base + k: base + k + T, :] for k in range(K)], axis=-1)
    return cols.reshape(Bt * T, K * Cin)
    # TODO(synk): for v7x at large T, replace this materialized im2col with
    # per-tap accumulation (pltpu.roll + edge masking, f32 accumulator) so the
    # activation slab is never blown up by K.


def _conv1d_same(x_bf, w_ref, b_ref, K, T):
    """'same' 1-D conv (stride 1) as ONE MXU matmul. Returns (Bt, T, Cout) f32."""
    Bt = x_bf.shape[0]
    cols = _im2col_same(x_bf, K, T)
    y = jnp.dot(cols, w_ref[...], preferred_element_type=jnp.float32)
    y = y.reshape(Bt, T, -1)
    if b_ref is not None:
        y = y + b_ref[...].astype(jnp.float32)
    return y


# ---------------------------------------------------------------------------
# Kernel 1: conv0 + per-grid-step BatchNorm partial statistics
# ---------------------------------------------------------------------------
def _make_conv0_kernel(Bt, T, K, Cin, Cin_pad):
    def kernel(x_ref, w_ref, b_ref, y_ref, mean_ref, m2_ref):
        x = x_ref[...].astype(jnp.bfloat16)               # (Bt, T, 80)
        if Cin_pad > Cin:
            # channel zero-pad 80 -> 128 in VMEM (weight rows 80..127 are zero)
            x = jnp.concatenate(
                [x, jnp.zeros((Bt, T, Cin_pad - Cin), jnp.bfloat16)], axis=-1)
        y = _conv1d_same(x, w_ref, b_ref, K, T)           # (Bt, T, 128) f32
        y_ref[...] = y.astype(y_ref.dtype)                # bf16 inter-kernel slab

        # Per-step BN partials: block mean + centred sum-of-squares (avoids the
        # E[y^2]-E[y]^2 cancellation); combined with Chan's formula outside.
        yf = y.reshape(Bt * T, -1)
        mu = jnp.mean(yf, axis=0, keepdims=True)          # (1, 128)
        d = yf - mu
        mean_ref[...] = mu
        m2_ref[...] = jnp.sum(d * d, axis=0, keepdims=True)
    return kernel


def conv0_with_stats(x, w2d, b2d, *, Bt):
    """x: (B,T,80) f32; w2d: (7*128,128) bf16 (rows 80..127 zero); b2d: (1,128) f32."""
    B, T, Cin = x.shape
    KC, Cout = w2d.shape
    Cin_pad = 128
    K = KC // Cin_pad
    G = B // Bt
    return pl.pallas_call(
        _make_conv0_kernel(Bt, T, K, Cin, Cin_pad),
        out_shape=(jax.ShapeDtypeStruct((B, T, Cout), jnp.bfloat16),
                   jax.ShapeDtypeStruct((G, 1, Cout), jnp.float32),
                   jax.ShapeDtypeStruct((G, 1, Cout), jnp.float32)),
        grid=(G,),
        in_specs=[
            pl.BlockSpec((Bt, T, Cin), lambda g: (g, 0, 0)),
            pl.BlockSpec((KC, Cout), lambda g: (0, 0)),
            pl.BlockSpec((1, Cout), lambda g: (0, 0)),
        ],
        out_specs=(
            pl.BlockSpec((Bt, T, Cout), lambda g: (g, 0, 0)),
            pl.BlockSpec((None, 1, Cout), lambda g: (g, 0, 0)),
            pl.BlockSpec((None, 1, Cout), lambda g: (g, 0, 0)),
        ),
        compiler_params=pltpu.CompilerParams(
            dimension_semantics=("parallel",)),
    )(x, w2d, b2d)


# ---------------------------------------------------------------------------
# Kernel 2: fused BN+LeakyReLU -> 3x ResBlk1D -> final 1x1 conv
# ---------------------------------------------------------------------------
def _make_trunk_kernel(Bt, T, K):
    def leaky(x):
        return jnp.where(x >= 0, x, LEAKY_SLOPE * x)

    def leaky_bf(x):                                       # LeakyReLU -> bf16
        return leaky(x).astype(jnp.bfloat16)

    def kernel(h_ref, scale_ref, shift_ref,
               r1w1, r1b1, r1w2, r1b2, r1sc,
               r2w1, r2b1, r2w2, r2b2,
               r3w1, r3b1, r3w2, r3b2,
               wfin, o_ref):
        # Sequential: BatchNorm1d(128) (batch stats folded) + LeakyReLU(0.2)
        h = h_ref[...].astype(jnp.float32)                 # (Bt, T, 128)
        x = leaky(h * scale_ref[...] + shift_ref[...])

        # --- ResBlk1D(128, 256): learned 1x1 shortcut; _residual re-applies actv ---
        sc = jnp.dot(x.astype(jnp.bfloat16).reshape(Bt * T, -1), r1sc[...],
                     preferred_element_type=jnp.float32).reshape(Bt, T, -1)
        r = _conv1d_same(leaky_bf(x), r1w1, r1b1, K, T)    # (Bt, T, 128)
        r = _conv1d_same(leaky_bf(r), r1w2, r1b2, K, T)    # (Bt, T, 256)
        out = (sc + r) * INV_SQRT2

        # --- ResBlk1D(256, 256): identity shortcut ---
        r = _conv1d_same(leaky_bf(out), r2w1, r2b1, K, T)
        r = _conv1d_same(leaky_bf(r), r2w2, r2b2, K, T)
        out = (out + r) * INV_SQRT2

        # --- ResBlk1D(256, 256): identity shortcut; its 1/sqrt(2) folded into wfin ---
        r = _conv1d_same(leaky_bf(out), r3w1, r3b1, K, T)
        r = _conv1d_same(leaky_bf(r), r3w2, r3b2, K, T)
        pre = out + r

        # --- final Conv1d(256, 321, 1, bias=False), lane-padded 321 -> 384 ---
        y = jnp.dot(pre.astype(jnp.bfloat16).reshape(Bt * T, -1), wfin[...],
                    preferred_element_type=jnp.float32)
        o_ref[...] = y.reshape(Bt, T, -1).astype(o_ref.dtype)
    return kernel


def trunk_fused(h, bn_scale, bn_shift, q, *, Bt, K=5):
    """One pallas_call for BN+LeakyReLU + ResBlk1D x3 + final 1x1 conv.
    h: (B, T, 128) bf16.  Returns (B, T, 384) f32."""
    B, T, Cin = h.shape
    G = B // Bt
    weights = [q["r1_w1"], q["r1_b1"], q["r1_w2"], q["r1_b2"], q["r1_sc"],
               q["r2_w1"], q["r2_b1"], q["r2_w2"], q["r2_b2"],
               q["r3_w1"], q["r3_b1"], q["r3_w2"], q["r3_b2"],
               q["wfin"]]
    # TODO(synk): for v7x / long sequences, add a halo'd time-tile grid axis and
    # single-buffer these grid-invariant weight specs (pipeline_mode=pl.Buffered(1))
    # so the per-step footprint stays inside the 64 MiB VMEM budget.
    in_specs = ([pl.BlockSpec((Bt, T, Cin), lambda g: (g, 0, 0)),
                 pl.BlockSpec((1, Cin), lambda g: (0, 0)),
                 pl.BlockSpec((1, Cin), lambda g: (0, 0))]
                + [pl.BlockSpec(w.shape, lambda g: (0, 0)) for w in weights])
    return pl.pallas_call(
        _make_trunk_kernel(Bt, T, K),
        out_shape=jax.ShapeDtypeStruct((B, T, FINAL_COUT_PAD), jnp.float32),
        grid=(G,),
        in_specs=in_specs,
        out_specs=pl.BlockSpec((Bt, T, FINAL_COUT_PAD), lambda g: (g, 0, 0)),
        compiler_params=pltpu.CompilerParams(
            dimension_semantics=("parallel",)),
    )(h, bn_scale, bn_shift, *weights)


# ---------------------------------------------------------------------------
# Postnet parameters (deterministic synthetic weights) + one-time kernel prep
# ---------------------------------------------------------------------------
def init_params(key):
    ks = jax.random.split(key, 18)
    w = lambda k, shape, s=0.05: (s * jax.random.normal(k, shape)).astype(jnp.float32)
    p = {}
    p["conv0_w"] = w(ks[0], (7, 80, 128)); p["conv0_b"] = w(ks[1], (128,))
    p["bn_g"] = (1.0 + 0.1 * jax.random.normal(ks[2], (128,))).astype(jnp.float32)
    p["bn_b"] = (0.1 * jax.random.normal(ks[3], (128,))).astype(jnp.float32)
    p["r1_c1_w"] = w(ks[4], (5, 128, 128)); p["r1_c1_b"] = w(ks[5], (128,))
    p["r1_c2_w"] = w(ks[6], (5, 128, 256)); p["r1_c2_b"] = w(ks[7], (256,))
    p["r1_sc_w"] = w(ks[8], (1, 128, 256))
    p["r2_c1_w"] = w(ks[9], (5, 256, 256)); p["r2_c1_b"] = w(ks[10], (256,))
    p["r2_c2_w"] = w(ks[11], (5, 256, 256)); p["r2_c2_b"] = w(ks[12], (256,))
    p["r3_c1_w"] = w(ks[13], (5, 256, 256)); p["r3_c1_b"] = w(ks[14], (256,))
    p["r3_c2_w"] = w(ks[15], (5, 256, 256)); p["r3_c2_b"] = w(ks[16], (256,))
    p["final_w"] = w(ks[17], (1, 256, 321))
    return p


def prepare_params(p):
    """One-time weight prep (runs OUTSIDE the jitted forward): tap-major
    (K*Cin, Cout) bf16 conv weights, (1, C) f32 biases, conv0 weight channel pad
    80->128, final weight lane pad 321->384 with ResBlk3's 1/sqrt(2) folded in."""
    bf = jnp.bfloat16

    def conv_w(w):
        K, Cin, Cout = w.shape
        return w.reshape(K * Cin, Cout).astype(bf)

    def bias(b):
        return b.reshape(1, -1).astype(jnp.float32)

    q = {}
    q["w0"] = conv_w(jnp.pad(p["conv0_w"], ((0, 0), (0, 128 - 80), (0, 0))))
    q["b0"] = bias(p["conv0_b"])
    q["bn_g"], q["bn_b"] = bias(p["bn_g"]), bias(p["bn_b"])
    q["r1_w1"], q["r1_b1"] = conv_w(p["r1_c1_w"]), bias(p["r1_c1_b"])
    q["r1_w2"], q["r1_b2"] = conv_w(p["r1_c2_w"]), bias(p["r1_c2_b"])
    q["r1_sc"] = conv_w(p["r1_sc_w"])                      # (128, 256)
    q["r2_w1"], q["r2_b1"] = conv_w(p["r2_c1_w"]), bias(p["r2_c1_b"])
    q["r2_w2"], q["r2_b2"] = conv_w(p["r2_c2_w"]), bias(p["r2_c2_b"])
    q["r3_w1"], q["r3_b1"] = conv_w(p["r3_c1_w"]), bias(p["r3_c1_b"])
    q["r3_w2"], q["r3_b2"] = conv_w(p["r3_c2_w"]), bias(p["r3_c2_b"])
    wf = p["final_w"].reshape(256, FINAL_COUT) * INV_SQRT2
    q["wfin"] = jnp.pad(wf, ((0, 0), (0, FINAL_COUT_PAD - FINAL_COUT))).astype(bf)
    return q


def postnet_forward(x, q):
    # x: (B, 1, 80, T)  (PyTorch layout for Postnet.forward); q = prepare_params(p)
    x = jnp.squeeze(x, axis=1)                 # (B, 80, T)
    x = jnp.transpose(x, (0, 2, 1))            # (B, T, 80): time sublanes, channels lanes
    B, T, _ = x.shape
    assert T % 8 == 0, "time length must be sublane-aligned"
    Bt = _batch_tile(B, T)                     # batches folded per grid step (fills MXU M)

    # 1) Conv1d(80,128,7,1,3) + per-step BatchNorm partial stats (bf16 output slab)
    h, mu, m2 = conv0_with_stats(x, q["w0"], q["b0"], Bt=Bt)

    # Combine per-step stats (Chan combine; equal-sized blocks) and fold training-mode
    # BatchNorm1d (biased variance over (B,T)) into per-channel scale/shift.
    # TODO(synk): eval()-mode running-stat BatchNorm (module buffer state) not modeled.
    n_blk = float(Bt * T)
    mean = jnp.mean(mu, axis=0)                                        # (1, 128)
    m2_tot = jnp.sum(m2, axis=0) + n_blk * jnp.sum((mu - mean[None]) ** 2, axis=0)
    var = m2_tot / float(B * T)
    bn_scale = q["bn_g"] * jax.lax.rsqrt(var + BN_EPS)
    bn_shift = q["bn_b"] - mean * bn_scale

    # 2) BN + LeakyReLU + ResBlk1D(128,256) + ResBlk1D(256,256) + ResBlk1D(256,256)
    #    + final Conv1d(256,321,1,bias=False), all fused in ONE kernel
    y = trunk_fused(h, bn_scale, bn_shift, q, Bt=Bt)                   # (B, T, 384) f32

    y = y[..., :FINAL_COUT]                    # drop lane padding (384 -> 321)
    y = jnp.transpose(y, (0, 2, 1))            # (B, 321, T)
    # TODO(synk): for T >= 128, fuse this transpose into the trunk epilogue (XLU) and
    # store lane-dense (C, T) tiles directly, saving one HBM pass over the output.
    return y[:, None, :, :]                    # (B, 1, 321, T)


if __name__ == "__main__":
    key = jax.random.PRNGKey(0)
    k_param, k_input = jax.random.split(key)
    params = init_params(k_param)
    prepped = prepare_params(params)           # hoisted: runs once, not per forward call

    B, T = 2, 16
    x = jax.random.normal(k_input, (B, 1, 80, T), dtype=jnp.float32)

    fwd = jax.jit(postnet_forward)
    out = jax.block_until_ready(fwd(x, prepped))

    assert out.shape == (B, 1, 321, T), out.shape
    assert bool(jnp.all(jnp.isfinite(out)))
    print("KERNEL_OK")
</pallas_src>

<mosaic_0001>
module attributes {stable_mosaic.version = 11 : i64} {
  func.func @kernel(%arg0: i32, %arg1: memref<2x16x80xf32, #tpu.memory_space<vmem>>, %arg2: memref<896x128xbf16, #tpu.memory_space<vmem>>, %arg3: memref<1x128xf32, #tpu.memory_space<vmem>>, %arg4: memref<2x16x128xbf16, #tpu.memory_space<vmem>>, %arg5: memref<1x1x128xf32, #tpu.memory_space<vmem>>, %arg6: memref<1x1x128xf32, #tpu.memory_space<vmem>>) attributes {dimension_semantics = [#tpu.dimension_semantics<parallel>], iteration_bounds = array<i64: 1>, scalar_prefetch = 0 : i64, scratch_operands = 0 : i64, tpu.core_type = #tpu.core_type<tc>, window_params = [{transform_indices = @transform_0, window_bounds = array<i64: 2, 16, 80>}, {pipeline_mode = #tpu.pipeline_mode<synchronous>, transform_indices = @transform_1, window_bounds = array<i64: 896, 128>}, {pipeline_mode = #tpu.pipeline_mode<synchronous>, transform_indices = @transform_2, window_bounds = array<i64: 1, 128>}, {transform_indices = @transform_3, window_bounds = array<i64: 2, 16, 128>}, {transform_indices = @transform_4, window_bounds = array<i64: 1, 1, 128>}, {transform_indices = @transform_5, window_bounds = array<i64: 1, 1, 128>}]} {
    %c0 = arith.constant 0 : index
    %c0_0 = arith.constant 0 : index
    %c0_1 = arith.constant 0 : index
    %0 = vector.load %arg1[%c0, %c0_0, %c0_1] : memref<2x16x80xf32, #tpu.memory_space<vmem>>, vector<2x16x80xf32>
    %1 = arith.truncf %0 : vector<2x16x80xf32> to vector<2x16x80xbf16>
    %cst = arith.constant 0.000000e+00 : bf16
    %2 = vector.broadcast %cst : bf16 to vector<2x16x48xbf16>
    %3 = tpu.concatenate %1, %2 in 2 : vector<2x16x80xbf16>, vector<2x16x48xbf16> -> vector<2x16x128xbf16>
    %cst_2 = arith.constant 0.000000e+00 : bf16
    %4 = vector.broadcast %cst_2 : bf16 to vector<2x8x128xbf16>
    %5 = tpu.concatenate %4, %3, %4 in 1 : vector<2x8x128xbf16>, vector<2x16x128xbf16>, vector<2x8x128xbf16> -> vector<2x32x128xbf16>
    %6 = vector.extract_strided_slice %5 {offsets = [0, 5, 0], sizes = [2, 16, 128], strides = [1, 1, 1]} : vector<2x32x128xbf16> to vector<2x16x128xbf16>
    %7 = vector.extract_strided_slice %5 {offsets = [0, 6, 0], sizes = [2, 16, 128], strides = [1, 1, 1]} : vector<2x32x128xbf16> to vector<2x16x128xbf16>
    %8 = vector.extract_strided_slice %5 {offsets = [0, 7, 0], sizes = [2, 16, 128], strides = [1, 1, 1]} : vector<2x32x128xbf16> to vector<2x16x128xbf16>
    %9 = vector.extract_strided_slice %5 {offsets = [0, 8, 0], sizes = [2, 16, 128], strides = [1, 1, 1]} : vector<2x32x128xbf16> to vector<2x16x128xbf16>
    %10 = vector.extract_strided_slice %5 {offsets = [0, 9, 0], sizes = [2, 16, 128], strides = [1, 1, 1]} : vector<2x32x128xbf16> to vector<2x16x128xbf16>
    %11 = vector.extract_strided_slice %5 {offsets = [0, 10, 0], sizes = [2, 16, 128], strides = [1, 1, 1]} : vector<2x32x128xbf16> to vector<2x16x128xbf16>
    %12 = vector.extract_strided_slice %5 {offsets = [0, 11, 0], sizes = [2, 16, 128], strides = [1, 1, 1]} : vector<2x32x128xbf16> to vector<2x16x128xbf16>
    %13 = tpu.concatenate %6, %7, %8, %9, %10, %11, %12 in 2 : vector<2x16x128xbf16>, vector<2x16x128xbf16>, vector<2x16x128xbf16>, vector<2x16x128xbf16>, vector<2x16x128xbf16>, vector<2x16x128xbf16>, vector<2x16x128xbf16> -> vector<2x16x896xbf16>
    %14 = vector.shape_cast %13 : vector<2x16x896xbf16> to vector<32x896xbf16>
    %c0_3 = arith.constant 0 : index
    %c0_4 = arith.constant 0 : index
    %15 = vector.load %arg2[%c0_3, %c0_4] : memref<896x128xbf16, #tpu.memory_space<vmem>>, vector<896x128xbf16>
    %cst_5 = arith.constant dense<0.000000e+00> : vector<32x128xf32>
    %16 = tpu.matmul %14, %15, %cst_5 {dimension_numbers = #tpu.dot_dimension_numbers<[1], [0], [0], [1], [0, 0, 1, 1], [], []>} : vector<32x896xbf16>, vector<896x128xbf16>, vector<32x128xf32> -> vector<32x128xf32>
    %17 = vector.shape_cast %16 : vector<32x128xf32> to vector<2x16x128xf32>
    %c0_6 = arith.constant 0 : index
    %c0_7 = arith.constant 0 : index
    %18 = vector.load %arg3[%c0_6, %c0_7] : memref<1x128xf32, #tpu.memory_space<vmem>>, vector<1x128xf32>
    %19 = vector.shape_cast %18 : vector<1x128xf32> to vector<1x1x128xf32>
    %20 = vector.broadcast %19 : vector<1x1x128xf32> to vector<2x16x128xf32>
    %21 = arith.addf %17, %20 : vector<2x16x128xf32>
    %22 = arith.truncf %21 : vector<2x16x128xf32> to vector<2x16x128xbf16>
    %c0_8 = arith.constant 0 : index
    %c0_9 = arith.constant 0 : index
    %c0_10 = arith.constant 0 : index
    %23 = vector.load %arg4[%c0_8, %c0_9, %c0_10] : memref<2x16x128xbf16, #tpu.memory_space<vmem>>, vector<2x16x128xbf16>
    tpu.vector_store %arg4[%c0_8, %c0_9, %c0_10], %22 {strides = array<i32>} : memref<2x16x128xbf16, #tpu.memory_space<vmem>>, vector<2x16x128xbf16>,
    %24 = vector.shape_cast %21 : vector<2x16x128xf32> to vector<32x128xf32>
    %cst_11 = arith.constant dense<0.000000e+00> : vector<128xf32>
    %25 = vector.multi_reduction <add>, %24, %cst_11 [0] : vector<32x128xf32> to vector<128xf32>
    %26 = vector.shape_cast %25 : vector<128xf32> to vector<1x128xf32>
    %cst_12 = arith.constant 3.200000e+01 : f32
    %27 = vector.broadcast %cst_12 : f32 to vector<1x128xf32>
    %28 = arith.divf %26, %27 : vector<1x128xf32>
    %29 = vector.broadcast %28 : vector<1x128xf32> to vector<32x128xf32>
    %30 = arith.subf %24, %29 : vector<32x128xf32>
    %c0_13 = arith.constant 0 : index
    %c0_14 = arith.constant 0 : index
    %c0_15 = arith.constant 0 : index
    %31 = vector.load %arg5[%c0_13, %c0_14, %c0_15] : memref<1x1x128xf32, #tpu.memory_space<vmem>>, vector<1x1x128xf32>
    %32 = vector.shape_cast %31 : vector<1x1x128xf32> to vector<1x128xf32>
    %33 = vector.shape_cast %28 : vector<1x128xf32> to vector<1x1x128xf32>
    tpu.vector_store %arg5[%c0_13, %c0_14, %c0_15], %33 {strides = array<i32>} : memref<1x1x128xf32, #tpu.memory_space<vmem>>, vector<1x1x128xf32>,
    %34 = arith.mulf %30, %30 : vector<32x128xf32>
    %cst_16 = arith.constant dense<0.000000e+00> : vector<128xf32>
    %35 = vector.multi_reduction <add>, %34, %cst_16 [0] : vector<32x128xf32> to vector<128xf32>
    %36 = vector.shape_cast %35 : vector<128xf32> to vector<1x128xf32>
    %c0_17 = arith.constant 0 : index
    %c0_18 = arith.constant 0 : index
    %c0_19 = arith.constant 0 : index
    %37 = vector.load %arg6[%c0_17, %c0_18, %c0_19] : memref<1x1x128xf32, #tpu.memory_space<vmem>>, vector<1x1x128xf32>
    %38 = vector.shape_cast %37 : vector<1x1x128xf32> to vector<1x128xf32>
    %39 = vector.shape_cast %36 : vector<1x128xf32> to vector<1x1x128xf32>
    tpu.vector_store %arg6[%c0_17, %c0_18, %c0_19], %39 {strides = array<i32>} : memref<1x1x128xf32, #tpu.memory_space<vmem>>, vector<1x1x128xf32>,
    return
  }
  func.func @transform_0(%arg0: i32) -> (i32, i32, i32) {
    %c0_i32 = arith.constant 0 : i32
    %c0_i32_0 = arith.constant 0 : i32
    %c0_i32_1 = arith.constant 0 : i32
    return %arg0, %c0_i32, %c0_i32_0 : i32, i32, i32
  }
  func.func @transform_1(%arg0: i32) -> (i32, i32) {
    %c0_i32 = arith.constant 0 : i32
    %c0_i32_0 = arith.constant 0 : i32
    %c0_i32_1 = arith.constant 0 : i32
    return %c0_i32, %c0_i32_0 : i32, i32
  }
  func.func @transform_2(%arg0: i32) -> (i32, i32) {
    %c0_i32 = arith.constant 0 : i32
    %c0_i32_0 = arith.constant 0 : i32
    %c0_i32_1 = arith.constant 0 : i32
    return %c0_i32, %c0_i32_0 : i32, i32
  }
  func.func @transform_3(%arg0: i32) -> (i32, i32, i32) {
    %c0_i32 = arith.constant 0 : i32
    %c0_i32_0 = arith.constant 0 : i32
    %c0_i32_1 = arith.constant 0 : i32
    return %arg0, %c0_i32, %c0_i32_0 : i32, i32, i32
  }
  func.func @transform_4(%arg0: i32) -> (i32, i32, i32) {
    %c0_i32 = arith.constant 0 : i32
    %c0_i32_0 = arith.constant 0 : i32
    %c0_i32_1 = arith.constant 0 : i32
    return %arg0, %c0_i32, %c0_i32_0 : i32, i32, i32
  }
  func.func @transform_5(%arg0: i32) -> (i32, i32, i32) {
    %c0_i32 = arith.constant 0 : i32
    %c0_i32_0 = arith.constant 0 : i32
    %c0_i32_1 = arith.constant 0 : i32
    return %arg0, %c0_i32, %c0_i32_0 : i32, i32, i32
  }
}

module attributes {stable_mosaic.version = 11 : i64} {
  func.func @kernel(%arg0: i32, %arg1: memref<2x16x128xbf16, #tpu.memory_space<vmem>>, %arg2: memref<1x128xf32, #tpu.memory_space<vmem>>, %arg3: memref<1x128xf32, #tpu.memory_space<vmem>>, %arg4: memref<640x128xbf16, #tpu.memory_space<vmem>>, %arg5: memref<1x128xf32, #tpu.memory_space<vmem>>, %arg6: memref<640x256xbf16, #tpu.memory_space<vmem>>, %arg7: memref<1x256xf32, #tpu.memory_space<vmem>>, %arg8: memref<128x256xbf16, #tpu.memory_space<vmem>>, %arg9: memref<1280x256xbf16, #tpu.memory_space<vmem>>, %arg10: memref<1x256xf32, #tpu.memory_space<vmem>>, %arg11: memref<1280x256xbf16, #tpu.memory_space<vmem>>, %arg12: memref<1x256xf32, #tpu.memory_space<vmem>>, %arg13: memref<1280x256xbf16, #tpu.memory_space<vmem>>, %arg14: memref<1x256xf32, #tpu.memory_space<vmem>>, %arg15: memref<1280x256xbf16, #tpu.memory_space<vmem>>, %arg16: memref<1x256xf32, #tpu.memory_space<vmem>>, %arg17: memref<256x384xbf16, #tpu.memory_space<vmem>>, %arg18: memref<2x16x384xf32, #tpu.memory_space<vmem>>) attributes {dimension_semantics = [#tpu.dimension_semantics<parallel>], iteration_bounds = array<i64: 1>, scalar_prefetch = 0 : i64, scratch_operands = 0 : i64, tpu.core_type = #tpu.core_type<tc>, window_params = [{transform_indices = @transform_0, window_bounds = array<i64: 2, 16, 128>}, {pipeline_mode = #tpu.pipeline_mode<synchronous>, transform_indices = @transform_1, window_bounds = array<i64: 1, 128>}, {pipeline_mode = #tpu.pipeline_mode<synchronous>, transform_indices = @transform_2, window_bounds = array<i64: 1, 128>}, {pipeline_mode = #tpu.pipeline_mode<synchronous>, transform_indices = @transform_3, window_bounds = array<i64: 640, 128>}, {pipeline_mode = #tpu.pipeline_mode<synchronous>, transform_indices = @transform_4, window_bounds = array<i64: 1, 128>}, {pipeline_mode = #tpu.pipeline_mode<synchronous>, transform_indices = @transform_5, window_bounds = array<i64: 640, 256>}, {pipeline_mode = #tpu.pipeline_mode<synchronous>, transform_indices = @transform_6, window_bounds = array<i64: 1, 256>}, {pipeline_mode = #tpu.pipeline_mode<synchronous>, transform_indices = @transform_7, window_bounds = array<i64: 128, 256>}, {pipeline_mode = #tpu.pipeline_mode<synchronous>, transform_indices = @transform_8, window_bounds = array<i64: 1280, 256>}, {pipeline_mode = #tpu.pipeline_mode<synchronous>, transform_indices = @transform_9, window_bounds = array<i64: 1, 256>}, {pipeline_mode = #tpu.pipeline_mode<synchronous>, transform_indices = @transform_10, window_bounds = array<i64: 1280, 256>}, {pipeline_mode = #tpu.pipeline_mode<synchronous>, transform_indices = @transform_11, window_bounds = array<i64: 1, 256>}, {pipeline_mode = #tpu.pipeline_mode<synchronous>, transform_indices = @transform_12, window_bounds = array<i64: 1280, 256>}, {pipeline_mode = #tpu.pipeline_mode<synchronous>, transform_indices = @transform_13, window_bounds = array<i64: 1, 256>}, {pipeline_mode = #tpu.pipeline_mode<synchronous>, transform_indices = @transform_14, window_bounds = array<i64: 1280, 256>}, {pipeline_mode = #tpu.pipeline_mode<synchronous>, transform_indices = @transform_15, window_bounds = array<i64: 1, 256>}, {pipeline_mode = #tpu.pipeline_mode<synchronous>, transform_indices = @transform_16, window_bounds = array<i64: 256, 384>}, {transform_indices = @transform_17, window_bounds = array<i64: 2, 16, 384>}]} {
    %c0 = arith.constant 0 : index
    %c0_0 = arith.constant 0 : index
    %c0_1 = arith.constant 0 : index
    %0 = vector.load %arg1[%c0, %c0_0, %c0_1] : memref<2x16x128xbf16, #tpu.memory_space<vmem>>, vector<2x16x128xbf16>
    %1 = arith.extf %0 : vector<2x16x128xbf16> to vector<2x16x128xf32>
    %c0_2 = arith.constant 0 : index
    %c0_3 = arith.constant 0 : index
    %2 = vector.load %arg2[%c0_2, %c0_3] : memref<1x128xf32, #tpu.memory_space<vmem>>, vector<1x128xf32>
    %3 = vector.shape_cast %2 : vector<1x128xf32> to vector<1x1x128xf32>
    %4 = vector.broadcast %3 : vector<1x1x128xf32> to vector<2x16x128xf32>
    %5 = arith.mulf %1, %4 : vector<2x16x128xf32>
    %c0_4 = arith.constant 0 : index
    %c0_5 = arith.constant 0 : index
    %6 = vector.load %arg3[%c0_4, %c0_5] : memref<1x128xf32, #tpu.memory_space<vmem>>, vector<1x128xf32>
    %7 = vector.shape_cast %6 : vector<1x128xf32> to vector<1x1x128xf32>
    %8 = vector.broadcast %7 : vector<1x1x128xf32> to vector<2x16x128xf32>
    %9 = arith.addf %5, %8 : vector<2x16x128xf32>
    %cst = arith.constant 0.000000e+00 : f32
    %10 = vector.broadcast %cst : f32 to vector<2x16x128xf32>
    %11 = arith.cmpf oge, %9, %10 : vector<2x16x128xf32>
    %cst_6 = arith.constant 2.000000e-01 : f32
    %12 = vector.broadcast %cst_6 : f32 to vector<2x16x128xf32>
    %13 = arith.mulf %12, %9 : vector<2x16x128xf32>
    %14 = arith.select %11, %9, %13 : vector<2x16x128xi1>, vector<2x16x128xf32>
    %15 = arith.truncf %14 : vector<2x16x128xf32> to vector<2x16x128xbf16>
    %16 = vector.shape_cast %15 : vector<2x16x128xbf16> to vector<32x128xbf16>
    %c0_7 = arith.constant 0 : index
    %c0_8 = arith.constant 0 : index
    %17 = vector.load %arg8[%c0_7, %c0_8] : memref<128x256xbf16, #tpu.memory_space<vmem>>, vector<128x256xbf16>
    %cst_9 = arith.constant dense<0.000000e+00> : vector<32x256xf32>
    %18 = tpu.matmul %16, %17, %cst_9 {dimension_numbers = #tpu.dot_dimension_numbers<[1], [0], [0], [1], [0, 0, 1, 1], [], []>} : vector<32x128xbf16>, vector<128x256xbf16>, vector<32x256xf32> -> vector<32x256xf32>
    %19 = vector.shape_cast %18 : vector<32x256xf32> to vector<2x16x256xf32>
    %cst_10 = arith.constant 0.000000e+00 : f32
    %20 = vector.broadcast %cst_10 : f32 to vector<2x16x128xf32>
    %21 = arith.cmpf oge, %14, %20 : vector<2x16x128xf32>
    %cst_11 = arith.constant 2.000000e-01 : f32
    %22 = vector.broadcast %cst_11 : f32 to vector<2x16x128xf32>
    %23 = arith.mulf %22, %14 : vector<2x16x128xf32>
    %24 = arith.select %21, %14, %23 : vector<2x16x128xi1>, vector<2x16x128xf32>
    %25 = arith.truncf %24 : vector<2x16x128xf32> to vector<2x16x128xbf16>
    %cst_12 = arith.constant 0.000000e+00 : bf16
    %26 = vector.broadcast %cst_12 : bf16 to vector<2x8x128xbf16>
    %27 = tpu.concatenate %26, %25, %26 in 1 : vector<2x8x128xbf16>, vector<2x16x128xbf16>, vector<2x8x128xbf16> -> vector<2x32x128xbf16>
    %28 = vector.extract_strided_slice %27 {offsets = [0, 6, 0], sizes = [2, 16, 128], strides = [1, 1, 1]} : vector<2x32x128xbf16> to vector<2x16x128xbf16>
    %29 = vector.extract_strided_slice %27 {offsets = [0, 7, 0], sizes = [2, 16, 128], strides = [1, 1, 1]} : vector<2x32x128xbf16> to vector<2x16x128xbf16>
    %30 = vector.extract_strided_slice %27 {offsets = [0, 8, 0], sizes = [2, 16, 128], strides = [1, 1, 1]} : vector<2x32x128xbf16> to vector<2x16x128xbf16>
    %31 = vector.extract_strided_slice %27 {offsets = [0, 9, 0], sizes = [2, 16, 128], strides = [1, 1, 1]} : vector<2x32x128xbf16> to vector<2x16x128xbf16>
    %32 = vector.extract_strided_slice %27 {offsets = [0, 10, 0], sizes = [2, 16, 128], strides = [1, 1, 1]} : vector<2x32x128xbf16> to vector<2x16x128xbf16>
    %33 = tpu.concatenate %28, %29, %30, %31, %32 in 2 : vector<2x16x128xbf16>, vector<2x16x128xbf16>, vector<2x16x128xbf16>, vector<2x16x128xbf16>, vector<2x16x128xbf16> -> vector<2x16x640xbf16>
    %34 = vector.shape_cast %33 : vector<2x16x640xbf16> to vector<32x640xbf16>
    %c0_13 = arith.constant 0 : index
    %c0_14 = arith.constant 0 : index
    %35 = vector.load %arg4[%c0_13, %c0_14] : memref<640x128xbf16, #tpu.memory_space<vmem>>, vector<640x128xbf16>
    %cst_15 = arith.constant dense<0.000000e+00> : vector<32x128xf32>
    %36 = tpu.matmul %34, %35, %cst_15 {dimension_numbers = #tpu.dot_dimension_numbers<[1], [0], [0], [1], [0, 0, 1, 1], [], []>} : vector<32x640xbf16>, vector<640x128xbf16>, vector<32x128xf32> -> vector<32x128xf32>
    %37 = vector.shape_cast %36 : vector<32x128xf32> to vector<2x16x128xf32>
    %c0_16 = arith.constant 0 : index
    %c0_17 = arith.constant 0 : index
    %38 = vector.load %arg5[%c0_16, %c0_17] : memref<1x128xf32, #tpu.memory_space<vmem>>, vector<1x128xf32>
    %39 = vector.shape_cast %38 : vector<1x128xf32> to vector<1x1x128xf32>
    %40 = vector.broadcast %39 : vector<1x1x128xf32> to vector<2x16x128xf32>
    %41 = arith.addf %37, %40 : vector<2x16x128xf32>
    %cst_18 = arith.constant 0.000000e+00 : f32
    %42 = vector.broadcast %cst_18 : f32 to vector<2x16x128xf32>
    %43 = arith.cmpf oge, %41, %42 : vector<2x16x128xf32>
    %cst_19 = arith.constant 2.000000e-01 : f32
    %44 = vector.broadcast %cst_19 : f32 to vector<2x16x128xf32>
    %45 = arith.mulf %44, %41 : vector<2x16x128xf32>
    %46 = arith.select %43, %41, %45 : vector<2x16x128xi1>, vector<2x16x128xf32>
    %47 = arith.truncf %46 : vector<2x16x128xf32> to vector<2x16x128xbf16>
    %cst_20 = arith.constant 0.000000e+00 : bf16
    %48 = vector.broadcast %cst_20 : bf16 to vector<2x8x128xbf16>
    %49 = tpu.concatenate %48, %47, %48 in 1 : vector<2x8x128xbf16>, vector<2x16x128xbf16>, vector<2x8x128xbf16> -> vector<2x32x128xbf16>
    %50 = vector.extract_strided_slice %49 {offsets = [0, 6, 0], sizes = [2, 16, 128], strides = [1, 1, 1]} : vector<2x32x128xbf16> to vector<2x16x128xbf16>
    %51 = vector.extract_strided_slice %49 {offsets = [0, 7, 0], sizes = [2, 16, 128], strides = [1, 1, 1]} : vector<2x32x128xbf16> to vector<2x16x128xbf16>
    %52 = vector.extract_strided_slice %49 {offsets = [0, 8, 0], sizes = [2, 16, 128], strides = [1, 1, 1]} : vector<2x32x128xbf16> to vector<2x16x128xbf16>
    %53 = vector.extract_strided_slice %49 {offsets = [0, 9, 0], sizes = [2, 16, 128], strides = [1, 1, 1]} : vector<2x32x128xbf16> to vector<2x16x128xbf16>
    %54 = vector.extract_strided_slice %49 {offsets = [0, 10, 0], sizes = [2, 16, 128], strides = [1, 1, 1]} : vector<2x32x128xbf16> to vector<2x16x128xbf16>
    %55 = tpu.concatenate %50, %51, %52, %53, %54 in 2 : vector<2x16x128xbf16>, vector<2x16x128xbf16>, vector<2x16x128xbf16>, vector<2x16x128xbf16>, vector<2x16x128xbf16> -> vector<2x16x640xbf16>
    %56 = vector.shape_cast %55 : vector<2x16x640xbf16> to vector<32x640xbf16>
    %c0_21 = arith.constant 0 : index
    %c0_22 = arith.constant 0 : index
    %57 = vector.load %arg6[%c0_21, %c0_22] : memref<640x256xbf16, #tpu.memory_space<vmem>>, vector<640x256xbf16>
    %cst_23 = arith.constant dense<0.000000e+00> : vector<32x256xf32>
    %58 = tpu.matmul %56, %57, %cst_23 {dimension_numbers = #tpu.dot_dimension_numbers<[1], [0], [0], [1], [0, 0, 1, 1], [], []>} : vector<32x640xbf16>, vector<640x256xbf16>, vector<32x256xf32> -> vector<32x256xf32>
    %59 = vector.shape_cast %58 : vector<32x256xf32> to vector<2x16x256xf32>
    %c0_24 = arith.constant 0 : index
    %c0_25 = arith.constant 0 : index
    %60 = vector.load %arg7[%c0_24, %c0_25] : memref<1x256xf32, #tpu.memory_space<vmem>>, vector<1x256xf32>
    %61 = vector.shape_cast %60 : vector<1x256xf32> to vector<1x1x256xf32>
    %62 = vector.broadcast %61 : vector<1x1x256xf32> to vector<2x16x256xf32>
    %63 = arith.addf %59, %62 : vector<2x16x256xf32>
    %64 = arith.addf %19, %63 : vector<2x16x256xf32>
    %cst_26 = arith.constant 0.707106769 : f32
    %65 = vector.broadcast %cst_26 : f32 to vector<2x16x256xf32>
    %66 = arith.mulf %64, %65 : vector<2x16x256xf32>
    %cst_27 = arith.constant 0.000000e+00 : f32
    %67 = vector.broadcast %cst_27 : f32 to vector<2x16x256xf32>
    %68 = arith.cmpf oge, %66, %67 : vector<2x16x256xf32>
    %cst_28 = arith.constant 2.000000e-01 : f32
    %69 = vector.broadcast %cst_28 : f32 to vector<2x16x256xf32>
    %70 = arith.mulf %69, %66 : vector<2x16x256xf32>
    %71 = arith.select %68, %66, %70 : vector<2x16x256xi1>, vector<2x16x256xf32>
    %72 = arith.truncf %71 : vector<2x16x256xf32> to vector<2x16x256xbf16>
    %cst_29 = arith.constant 0.000000e+00 : bf16
    %73 = vector.broadcast %cst_29 : bf16 to vector<2x8x256xbf16>
    %74 = tpu.concatenate %73, %72, %73 in 1 : vector<2x8x256xbf16>, vector<2x16x256xbf16>, vector<2x8x256xbf16> -> vector<2x32x256xbf16>
    %75 = vector.extract_strided_slice %74 {offsets = [0, 6, 0], sizes = [2, 16, 256], strides = [1, 1, 1]} : vector<2x32x256xbf16> to vector<2x16x256xbf16>
    %76 = vector.extract_strided_slice %74 {offsets = [0, 7, 0], sizes = [2, 16, 256], strides = [1, 1, 1]} : vector<2x32x256xbf16> to vector<2x16x256xbf16>
    %77 = vector.extract_strided_slice %74 {offsets = [0, 8, 0], sizes = [2, 16, 256], strides = [1, 1, 1]} : vector<2x32x256xbf16> to vector<2x16x256xbf16>
    %78 = vector.extract_strided_slice %74 {offsets = [0, 9, 0], sizes = [2, 16, 256], strides = [1, 1, 1]} : vector<2x32x256xbf16> to vector<2x16x256xbf16>
    %79 = vector.extract_strided_slice %74 {offsets = [0, 10, 0], sizes = [2, 16, 256], strides = [1, 1, 1]} : vector<2x32x256xbf16> to vector<2x16x256xbf16>
    %80 = tpu.concatenate %75, %76, %77, %78, %79 in 2 : vector<2x16x256xbf16>, vector<2x16x256xbf16>, vector<2x16x256xbf16>, vector<2x16x256xbf16>, vector<2x16x256xbf16> -> vector<2x16x1280xbf16>
    %81 = vector.shape_cast %80 : vector<2x16x1280xbf16> to vector<32x1280xbf16>
    %c0_30 = arith.constant 0 : index
    %c0_31 = arith.constant 0 : index
    %82 = vector.load %arg9[%c0_30, %c0_31] : memref<1280x256xbf16, #tpu.memory_space<vmem>>, vector<1280x256xbf16>
    %cst_32 = arith.constant dense<0.000000e+00> : vector<32x256xf32>
    %83 = tpu.matmul %81, %82, %cst_32 {dimension_numbers = #tpu.dot_dimension_numbers<[1], [0], [0], [1], [0, 0, 1, 1], [], []>} : vector<32x1280xbf16>, vector<1280x256xbf16>, vector<32x256xf32> -> vector<32x256xf32>
    %84 = vector.shape_cast %83 : vector<32x256xf32> to vector<2x16x256xf32>
    %c0_33 = arith.constant 0 : index
    %c0_34 = arith.constant 0 : index
    %85 = vector.load %arg10[%c0_33, %c0_34] : memref<1x256xf32, #tpu.memory_space<vmem>>, vector<1x256xf32>
    %86 = vector.shape_cast %85 : vector<1x256xf32> to vector<1x1x256xf32>
    %87 = vector.broadcast %86 : vector<1x1x256xf32> to vector<2x16x256xf32>
    %88 = arith.addf %84, %87 : vector<2x16x256xf32>
    %cst_35 = arith.constant 0.000000e+00 : f32
    %89 = vector.broadcast %cst_35 : f32 to vector<2x16x256xf32>
    %90 = arith.cmpf oge, %88, %89 : vector<2x16x256xf32>
    %cst_36 = arith.constant 2.000000e-01 : f32
    %91 = vector.broadcast %cst_36 : f32 to vector<2x16x256xf32>
    %92 = arith.mulf %91, %88 : vector<2x16x256xf32>
    %93 = arith.select %90, %88, %92 : vector<2x16x256xi1>, vector<2x16x256xf32>
    %94 = arith.truncf %93 : vector<2x16x256xf32> to vector<2x16x256xbf16>
    %cst_37 = arith.constant 0.000000e+00 : bf16
    %95 = vector.broadcast %cst_37 : bf16 to vector<2x8x256xbf16>
    %96 = tpu.concatenate %95, %94, %95 in 1 : vector<2x8x256xbf16>, vector<2x16x256xbf16>, vector<2x8x256xbf16> -> vector<2x32x256xbf16>
    %97 = vector.extract_strided_slice %96 {offsets = [0, 6, 0], sizes = [2, 16, 256], strides = [1, 1, 1]} : vector<2x32x256xbf16> to vector<2x16x256xbf16>
    %98 = vector.extract_strided_slice %96 {offsets = [0, 7, 0], sizes = [2, 16, 256], strides = [1, 1, 1]} : vector<2x32x256xbf16> to vector<2x16x256xbf16>
    %99 = vector.extract_strided_slice %96 {offsets = [0, 8, 0], sizes = [2, 16, 256], strides = [1, 1, 1]} : vector<2x32x256xbf16> to vector<2x16x256xbf16>
    %100 = vector.extract_strided_slice %96 {offsets = [0, 9, 0], sizes = [2, 16, 256], strides = [1, 1, 1]} : vector<2x32x256xbf16> to vector<2x16x256xbf16>
    %101 = vector.extract_strided_slice %96 {offsets = [0, 10, 0], sizes = [2, 16, 256], strides = [1, 1, 1]} : vector<2x32x256xbf16> to vector<2x16x256xbf16>
    %102 = tpu.concatenate %97, %98, %99, %100, %101 in 2 : vector<2x16x256xbf16>, vector<2x16x256xbf16>, vector<2x16x256xbf16>, vector<2x16x256xbf16>, vector<2x16x256xbf16> -> vector<2x16x1280xbf16>
    %103 = vector.shape_cast %102 : vector<2x16x1280xbf16> to vector<32x1280xbf16>
    %c0_38 = arith.constant 0 : index
    %c0_39 = arith.constant 0 : index
    %104 = vector.load %arg11[%c0_38, %c0_39] : memref<1280x256xbf16, #tpu.memory_space<vmem>>, vector<1280x256xbf16>
    %cst_40 = arith.constant dense<0.000000e+00> : vector<32x256xf32>
    %105 = tpu.matmul %103, %104, %cst_40 {dimension_numbers = #tpu.dot_dimension_numbers<[1], [0], [0], [1], [0, 0, 1, 1], [], []>} : vector<32x1280xbf16>, vector<1280x256xbf16>, vector<32x256xf32> -> vector<32x256xf32>
    %106 = vector.shape_cast %105 : vector<32x256xf32> to vector<2x16x256xf32>
    %c0_41 = arith.constant 0 : index
    %c0_42 = arith.constant 0 : index
    %107 = vector.load %arg12[%c0_41, %c0_42] : memref<1x256xf32, #tpu.memory_space<vmem>>, vector<1x256xf32>
    %108 = vector.shape_cast %107 : vector<1x256xf32> to vector<1x1x256xf32>
    %109 = vector.broadcast %108 : vector<1x1x256xf32> to vector<2x16x256xf32>
    %110 = arith.addf %106, %109 : vector<2x16x256xf32>
    %111 = arith.addf %66, %110 : vector<2x16x256xf32>
    %cst_43 = arith.constant 0.707106769 : f32
    %112 = vector.broadcast %cst_43 : f32 to vector<2x16x256xf32>
    %113 = arith.mulf %111, %112 : vector<2x16x256xf32>
    %cst_44 = arith.constant 0.000000e+00 : f32
    %114 = vector.broadcast %cst_44 : f32 to vector<2x16x256xf32>
    %115 = arith.cmpf oge, %113, %114 : vector<2x16x256xf32>
    %cst_45 = arith.constant 2.000000e-01 : f32
    %116 = vector.broadcast %cst_45 : f32 to vector<2x16x256xf32>
    %117 = arith.mulf %116, %113 : vector<2x16x256xf32>
    %118 = arith.select %115, %113, %117 : vector<2x16x256xi1>, vector<2x16x256xf32>
    %119 = arith.truncf %118 : vector<2x16x256xf32> to vector<2x16x256xbf16>
    %cst_46 = arith.constant 0.000000e+00 : bf16
    %120 = vector.broadcast %cst_46 : bf16 to vector<2x8x256xbf16>
    %121 = tpu.concatenate %120, %119, %120 in 1 : vector<2x8x256xbf16>, vector<2x16x256xbf16>, vector<2x8x256xbf16> -> vector<2x32x256xbf16>
    %122 = vector.extract_strided_slice %121 {offsets = [0, 6, 0], sizes = [2, 16, 256], strides = [1, 1, 1]} : vector<2x32x256xbf16> to vector<2x16x256xbf16>
    %123 = vector.extract_strided_slice %121 {offsets = [0, 7, 0], sizes = [2, 16, 256], strides = [1, 1, 1]} : vector<2x32x256xbf16> to vector<2x16x256xbf16>
    %124 = vector.extract_strided_slice %121 {offsets = [0, 8, 0], sizes = [2, 16, 256], strides = [1, 1, 1]} : vector<2x32x256xbf16> to vector<2x16x256xbf16>
    %125 = vector.extract_strided_slice %121 {offsets = [0, 9, 0], sizes = [2, 16, 256], strides = [1, 1, 1]} : vector<2x32x256xbf16> to vector<2x16x256xbf16>
    %126 = vector.extract_strided_slice %121 {offsets = [0, 10, 0], sizes = [2, 16, 256], strides = [1, 1, 1]} : vector<2x32x256xbf16> to vector<2x16x256xbf16>
    %127 = tpu.concatenate %122, %123, %124, %125, %126 in 2 : vector<2x16x256xbf16>, vector<2x16x256xbf16>, vector<2x16x256xbf16>, vector<2x16x256xbf16>, vector<2x16x256xbf16> -> vector<2x16x1280xbf16>
    %128 = vector.shape_cast %127 : vector<2x16x1280xbf16> to vector<32x1280xbf16>
    %c0_47 = arith.constant 0 : index
    %c0_48 = arith.constant 0 : index
    %129 = vector.load %arg13[%c0_47, %c0_48] : memref<1280x256xbf16, #tpu.memory_space<vmem>>, vector<1280x256xbf16>
    %cst_49 = arith.constant dense<0.000000e+00> : vector<32x256xf32>
    %130 = tpu.matmul %128, %129, %cst_49 {dimension_numbers = #tpu.dot_dimension_numbers<[1], [0], [0], [1], [0, 0, 1, 1], [], []>} : vector<32x1280xbf16>, vector<1280x256xbf16>, vector<32x256xf32> -> vector<32x256xf32>
    %131 = vector.shape_cast %130 : vector<32x256xf32> to vector<2x16x256xf32>
    %c0_50 = arith.constant 0 : index
    %c0_51 = arith.constant 0 : index
    %132 = vector.load %arg14[%c0_50, %c0_51] : memref<1x256xf32, #tpu.memory_space<vmem>>, vector<1x256xf32>
    %133 = vector.shape_cast %132 : vector<1x256xf32> to vector<1x1x256xf32>
    %134 = vector.broadcast %133 : vector<1x1x256xf32> to vector<2x16x256xf32>
    %135 = arith.addf %131, %134 : vector<2x16x256xf32>
    %cst_52 = arith.constant 0.000000e+00 : f32
    %136 = vector.broadcast %cst_52 : f32 to vector<2x16x256xf32>
    %137 = arith.cmpf oge, %135, %136 : vector<2x16x256xf32>
    %cst_53 = arith.constant 2.000000e-01 : f32
    %138 = vector.broadcast %cst_53 : f32 to vector<2x16x256xf32>
    %139 = arith.mulf %138, %135 : vector<2x16x256xf32>
    %140 = arith.select %137, %135, %139 : vector<2x16x256xi1>, vector<2x16x256xf32>
    %141 = arith.truncf %140 : vector<2x16x256xf32> to vector<2x16x256xbf16>
    %cst_54 = arith.constant 0.000000e+00 : bf16
    %142 = vector.broadcast %cst_54 : bf16 to vector<2x8x256xbf16>
    %143 = tpu.concatenate %142, %141, %142 in 1 : vector<2x8x256xbf16>, vector<2x16x256xbf16>, vector<2x8x256xbf16> -> vector<2x32x256xbf16>
    %144 = vector.extract_strided_slice %143 {offsets = [0, 6, 0], sizes = [2, 16, 256], strides = [1, 1, 1]} : vector<2x32x256xbf16> to vector<2x16x256xbf16>
    %145 = vector.extract_strided_slice %143 {offsets = [0, 7, 0], sizes = [2, 16, 256], strides = [1, 1, 1]} : vector<2x32x256xbf16> to vector<2x16x256xbf16>
    %146 = vector.extract_strided_slice %143 {offsets = [0, 8, 0], sizes = [2, 16, 256], strides = [1, 1, 1]} : vector<2x32x256xbf16> to vector<2x16x256xbf16>
    %147 = vector.extract_strided_slice %143 {offsets = [0, 9, 0], sizes = [2, 16, 256], strides = [1, 1, 1]} : vector<2x32x256xbf16> to vector<2x16x256xbf16>
    %148 = vector.extract_strided_slice %143 {offsets = [0, 10, 0], sizes = [2, 16, 256], strides = [1, 1, 1]} : vector<2x32x256xbf16> to vector<2x16x256xbf16>
    %149 = tpu.concatenate %144, %145, %146, %147, %148 in 2 : vector<2x16x256xbf16>, vector<2x16x256xbf16>, vector<2x16x256xbf16>, vector<2x16x256xbf16>, vector<2x16x256xbf16> -> vector<2x16x1280xbf16>
    %150 = vector.shape_cast %149 : vector<2x16x1280xbf16> to vector<32x1280xbf16>
    %c0_55 = arith.constant 0 : index
    %c0_56 = arith.constant 0 : index
    %151 = vector.load %arg15[%c0_55, %c0_56] : memref<1280x256xbf16, #tpu.memory_space<vmem>>, vector<1280x256xbf16>
    %cst_57 = arith.constant dense<0.000000e+00> : vector<32x256xf32>
    %152 = tpu.matmul %150, %151, %cst_57 {dimension_numbers = #tpu.dot_dimension_numbers<[1], [0], [0], [1], [0, 0, 1, 1], [], []>} : vector<32x1280xbf16>, vector<1280x256xbf16>, vector<32x256xf32> -> vector<32x256xf32>
    %153 = vector.shape_cast %152 : vector<32x256xf32> to vector<2x16x256xf32>
    %c0_58 = arith.constant 0 : index
    %c0_59 = arith.constant 0 : index
    %154 = vector.load %arg16[%c0_58, %c0_59] : memref<1x256xf32, #tpu.memory_space<vmem>>, vector<1x256xf32>
    %155 = vector.shape_cast %154 : vector<1x256xf32> to vector<1x1x256xf32>
    %156 = vector.broadcast %155 : vector<1x1x256xf32> to vector<2x16x256xf32>
    %157 = arith.addf %153, %156 : vector<2x16x256xf32>
    %158 = arith.addf %113, %157 : vector<2x16x256xf32>
    %159 = arith.truncf %158 : vector<2x16x256xf32> to vector<2x16x256xbf16>
    %160 = vector.shape_cast %159 : vector<2x16x256xbf16> to vector<32x256xbf16>
    %c0_60 = arith.constant 0 : index
    %c0_61 = arith.constant 0 : index
    %161 = vector.load %arg17[%c0_60, %c0_61] : memref<256x384xbf16, #tpu.memory_space<vmem>>, vector<256x384xbf16>
    %cst_62 = arith.constant dense<0.000000e+00> : vector<32x384xf32>
    %162 = tpu.matmul %160, %161, %cst_62 {dimension_numbers = #tpu.dot_dimension_numbers<[1], [0], [0], [1], [0, 0, 1, 1], [], []>} : vector<32x256xbf16>, vector<256x384xbf16>, vector<32x384xf32> -> vector<32x384xf32>
    %163 = vector.shape_cast %162 : vector<32x384xf32> to vector<2x16x384xf32>
    %c0_63 = arith.constant 0 : index
    %c0_64 = arith.constant 0 : index
    %c0_65 = arith.constant 0 : index
    %164 = vector.load %arg18[%c0_63, %c0_64, %c0_65] : memref<2x16x384xf32, #tpu.memory_space<vmem>>, vector<2x16x384xf32>
    tpu.vector_store %arg18[%c0_63, %c0_64, %c0_65], %163 {strides = array<i32>} : memref<2x16x384xf32, #tpu.memory_space<vmem>>, vector<2x16x384xf32>,
    return
  }
  func.func @transform_0(%arg0: i32) -> (i32, i32, i32) {
    %c0_i32 = arith.constant 0 : i32
    %c0_i32_0 = arith.constant 0 : i32
    %c0_i32_1 = arith.constant 0 : i32
    return %arg0, %c0_i32, %c0_i32_0 : i32, i32, i32
  }
  func.func @transform_1(%arg0: i32) -> (i32, i32) {
    %c0_i32 = arith.constant 0 : i32
    %c0_i32_0 = arith.constant 0 : i32
    %c0_i32_1 = arith.constant 0 : i32
    return %c0_i32, %c0_i32_0 : i32, i32
  }
  func.func @transform_2(%arg0: i32) -> (i32, i32) {
    %c0_i32 = arith.constant 0 : i32
    %c0_i32_0 = arith.constant 0 : i32
    %c0_i32_1 = arith.constant 0 : i32
    return %c0_i32, %c0_i32_0 : i32, i32
  }
  func.func @transform_3(%arg0: i32) -> (i32, i32) {
    %c0_i32 = arith.constant 0 : i32
    %c0_i32_0 = arith.constant 0 : i32
    %c0_i32_1 = arith.constant 0 : i32
    return %c0_i32, %c0_i32_0 : i32, i32
  }
  func.func @transform_4(%arg0: i32) -> (i32, i32) {
    %c0_i32 = arith.constant 0 : i32
    %c0_i32_0 = arith.constant 0 : i32
    %c0_i32_1 = arith.constant 0 : i32
    return %c0_i32, %c0_i32_0 : i32, i32
  }
  func.func @transform_5(%arg0: i32) -> (i32, i32) {
    %c0_i32 = arith.constant 0 : i32
    %c0_i32_0 = arith.constant 0 : i32
    %c0_i32_1 = arith.constant 0 : i32
    return %c0_i32, %c0_i32_0 : i32, i32
  }
  func.func @transform_6(%arg0: i32) -> (i32, i32) {
    %c0_i32 = arith.constant 0 : i32
    %c0_i32_0 = arith.constant 0 : i32
    %c0_i32_1 = arith.constant 0 : i32
    return %c0_i32, %c0_i32_0 : i32, i32
  }
  func.func @transform_7(%arg0: i32) -> (i32, i32) {
    %c0_i32 = arith.constant 0 : i32
    %c0_i32_0 = arith.constant 0 : i32
    %c0_i32_1 = arith.constant 0 : i32
    return %c0_i32, %c0_i32_0 : i32, i32
  }
  func.func @transform_8(%arg0: i32) -> (i32, i32) {
    %c0_i32 = arith.constant 0 : i32
    %c0_i32_0 = arith.constant 0 : i32
    %c0_i32_1 = arith.constant 0 : i32
    return %c0_i32, %c0_i32_0 : i32, i32
  }
  func.func @transform_9(%arg0: i32) -> (i32, i32) {
    %c0_i32 = arith.constant 0 : i32
    %c0_i32_0 = arith.constant 0 : i32
    %c0_i32_1 = arith.constant 0 : i32
    return %c0_i32, %c0_i32_0 : i32, i32
  }
  func.func @transform_10(%arg0: i32) -> (i32, i32) {
    %c0_i32 = arith.constant 0 : i32
    %c0_i32_0 = arith.constant 0 : i32
    %c0_i32_1 = arith.constant 0 : i32
    return %c0_i32, %c0_i32_0 : i32, i32
  }
  func.func @transform_11(%arg0: i32) -> (i32, i32) {
    %c0_i32 = arith.constant 0 : i32
    %c0_i32_0 = arith.constant 0 : i32
    %c0_i32_1 = arith.constant 0 : i32
    return %c0_i32, %c0_i32_0 : i32, i32
  }
  func.func @transform_12(%arg0: i32) -> (i32, i32) {
    %c0_i32 = arith.constant 0 : i32
    %c0_i32_0 = arith.constant 0 : i32
    %c0_i32_1 = arith.constant 0 : i32
    return %c0_i32, %c0_i32_0 : i32, i32
  }
  func.func @transform_13(%arg0: i32) -> (i32, i32) {
    %c0_i32 = arith.constant 0 : i32
    %c0_i32_0 = arith.constant 0 : i32
    %c0_i32_1 = arith.constant 0 : i32
    return %c0_i32, %c0_i32_0 : i32, i32
  }
  func.func @transform_14(%arg0: i32) -> (i32, i32) {
    %c0_i32 = arith.constant 0 : i32
    %c0_i32_0 = arith.constant 0 : i32
    %c0_i32_1 = arith.constant 0 : i32
    return %c0_i32, %c0_i32_0 : i32, i32
  }
  func.func @transform_15(%arg0: i32) -> (i32, i32) {
    %c0_i32 = arith.constant 0 : i32
    %c0_i32_0 = arith.constant 0 : i32
    %c0_i32_1 = arith.constant 0 : i32
    return %c0_i32, %c0_i32_0 : i32, i32
  }
  func.func @transform_16(%arg0: i32) -> (i32, i32) {
    %c0_i32 = arith.constant 0 : i32
    %c0_i32_0 = arith.constant 0 : i32
    %c0_i32_1 = arith.constant 0 : i32
    return %c0_i32, %c0_i32_0 : i32, i32
  }
  func.func @transform_17(%arg0: i32) -> (i32, i32, i32) {
    %c0_i32 = arith.constant 0 : i32
    %c0_i32_0 = arith.constant 0 : i32
    %c0_i32_1 = arith.constant 0 : i32
    return %arg0, %c0_i32, %c0_i32_0 : i32, i32, i32
  }
}

</mosaic_0001>

<bundles_post_ra>
// kernel: postnet_forward.2
= control target key start
LH: loop header
LB: loop body
LE: loop exit
PB: predicated region body
PF: predicated region fallthrough
CT: control target
= control target key end

     0   :  { %11 = vsyncpa [#allocation3], 0  ;;  %s1596_s0 = inlined_call_operand.hbm [shape: f32[2,16,80], index: 0, kind: input, shape index: {}]   ;;  %s1597_s1 = inlined_call_operand.hbm [shape: bf16[896,128], index: 1, kind: input, shape index: {}]   ;;  %s1598_s2 = inlined_call_operand.hbm [shape: f32[1,128], index: 2, kind: input, shape index: {}]   ;;  %s1599_s3 = inlined_call_operand.vmem [shape: bf16[2,16,128], index: 3, kind: output, shape index: {0}]   ;;  %s1600_s4 = inlined_call_operand.vmem [shape: f32[1,1,128], index: 4, kind: output, shape index: {1}]   ;;  %s1601_s5 = inlined_call_operand.vmem [shape: f32[1,1,128], index: 5, kind: output, shape index: {2}]  }
   0x1   :  { %12 = vsyncpa [#allocation5], 0  ;;  %s1422_s18 = smov [#allocation4]   ;;  %s1352_s22 = scalar_lea.hbm %s1597_s1, 7168 }
   0x2   :  { %s30_s19 = sshll.u32 %s1422_s18, 4  ;;  %p1353_p0 = scmp.ne.s32.totalorder %s1597_s1, %s1352_s22  ;;  %s31_s19 = int_to_ptr.vmem [resolvable:$true] %s30_s19 }
   0x3   :  { %p1356_p1 = scmp.lt.u32.totalorder %s1352_s22, %s1597_s1 }
   0x5   :  { %p1358_p2 = pnand %p1356_p1, %p1353_p0 }
   0x7   :  { %1361 = shalt.err (!%p1358_p2)
}
   0x8   :  { %s1362_s27 = scalar_lea.vmem %s31_s19, 7168  ;;  %p1367_p4 = scmp.lt.s32.totalorder %s31_s19, %s31_s19 }
   0x9   :  { %p1363_p3 = scmp.ne.s32.totalorder %s31_s19, %s1362_s27  ;;  %p1368_p5 = scmp.lt.s32.totalorder %s1362_s27, %s1362_s27 }
   0xb   :  { %p1369_p6 = por %p1368_p5, %p1367_p4 }
   0xd   :  { %p1370_p7 = pnand %p1369_p6, %p1363_p3 }
   0xf   :  { %1373 = shalt.err (!%p1370_p7)
}
  0x10   :  { %s1423_s28 = smov 64   ;;  %s1424_s29 = smov 4  }
  0x11   :  { %36 = dma.hbm_to_vmem [thread:$0]  %s1597_s1, 7168, %s31_s19, [#allocation5], %s1423_s28, %s1423_s28, %s1424_s29  }
  0x12   :  { %s1425_s7 = smov [#allocation2]   ;;  %s1374_s11 = scalar_lea.hbm %s1596_s0, 512 }
  0x13   :  { %s18_s8 = sshll.u32 %s1425_s7, 4  ;;  %p1375_p8 = scmp.ne.s32.totalorder %s1596_s0, %s1374_s11  ;;  %s19_s8 = int_to_ptr.vmem [resolvable:$true] %s18_s8 }
  0x14   :  { %p1378_p9 = scmp.lt.u32.totalorder %s1374_s11, %s1596_s0 }
  0x16   :  { %p1380_p10 = pnand %p1378_p9, %p1375_p8 }
  0x18   :  { %1383 = shalt.err (!%p1380_p10)
}
  0x19   :  { %s1384_s16 = scalar_lea.vmem %s19_s8, 512  ;;  %p1389_p12 = scmp.lt.s32.totalorder %s19_s8, %s19_s8 }
  0x1a   :  { %p1385_p11 = scmp.ne.s32.totalorder %s19_s8, %s1384_s16  ;;  %p1390_p13 = scmp.lt.s32.totalorder %s1384_s16, %s1384_s16 }
  0x1c   :  { %p1391_p0 = por %p1390_p13, %p1389_p12 }
  0x1e   :  { %p1392_p1 = pnand %p1391_p0, %p1385_p11 }
  0x20   :  { %1395 = shalt.err (!%p1392_p1)
}
  0x21   :  { %s1426_s1 = smov 128   ;;  %s1427_s17 = smov 8  }
  0x22   :  { %24 = dma.hbm_to_vmem [thread:$0]  %s1596_s0, 512, %s19_s8, [#allocation3], %s1426_s1, %s1426_s1, %s1427_s17  }
  0x23   :  { %s1428_s20 = smov [#allocation6]   ;;  %s1396_s24 = scalar_lea.hbm %s1598_s2, 16 }
  0x24   :  { %s43_s21 = sshll.u32 %s1428_s20, 4  ;;  %p1397_p2 = scmp.ne.s32.totalorder %s1598_s2, %s1396_s24  ;;  %s44_s21 = int_to_ptr.vmem [resolvable:$true] %s43_s21 }
  0x25   :  { %p1400_p3 = scmp.lt.u32.totalorder %s1396_s24, %s1598_s2 }
  0x27   :  { %p1402_p4 = pnand %p1400_p3, %p1397_p2 }
  0x29   :  { %1405 = shalt.err (!%p1402_p4)
}
  0x2a   :  { %s1406_s29 = scalar_lea.vmem %s44_s21, 16  ;;  %s1410_s0 = scalar_lea.vmem %s44_s21, 32 }
  0x2b   :  { %p1407_p5 = scmp.ne.s32.totalorder %s44_s21, %s1406_s29  ;;  %p1411_p6 = scmp.lt.s32.totalorder %s44_s21, %s44_s21 }
  0x2c   :  { %p1412_p7 = scmp.lt.s32.totalorder %s1410_s0, %s1406_s29 }
  0x2e   :  { %p1413_p8 = por %p1412_p7, %p1411_p6 }
  0x30   :  { %p1414_p9 = pnand %p1413_p8, %p1407_p5 }
  0x32   :  { %1417 = shalt.err (!%p1414_p9)
}
  0x33   :  { %46 = dma.hbm_to_vmem [thread:$0]  %s1598_s2, 16, %s44_s21, [#allocation5]  }
  0x34   :  { %1418 = dma.done.wait [#allocation3], 512  }
  0x35   :  { %1419 = vsyncadd [#allocation3], 4294966784 }
  0x36   :  { %1420 = dma.done.wait [#allocation5], 7184  }
  0x37   :  { %1421 = vsyncadd [#allocation5], 4294960112  ;;  %v1296_v0 = vld [vmem:[#allocation4 + $0x40] sm:$0xff]   ;;  %v1300_v4 = vld [vmem:[#allocation4 + $0x48] sm:$0xff]   ;;  %vm63_vm0 = vcmask 654336   ;;  %vm73_vm2 = vcmask 1043456  }
  0x38   :  { %v1297_v1 = vld [vmem:[#allocation4 + $0xc0] sm:$0xff]   ;;  %1175 = vmatprep.subr.bf16.mxu0 %v1296_v0  ;;  %v1301_v5 = vld [vmem:[#allocation4 + $0xc8] sm:$0xff]   ;;  %v1304_v8 = vld [vmem:[#allocation4 + $0x50] sm:$0xff]   ;;  %vm80_vm1 = vsmask.f32 7424  ;;  %vm111_vm4 = vcmask 1046528  }
  0x39   :  { %v1298_v2 = vld [vmem:[#allocation4] sm:$0xff]   ;;  %1203 = vmatprep.subr.bf16.mxu1 %v1297_v1  ;;  %v1302_v6 = vld [vmem:[#allocation4 + $0x8] sm:$0xff]   ;;  %v1305_v9 = vld [vmem:[#allocation4 + $0xd0] sm:$0xff]   ;;  %vm118_vm3 = vsmask.f32 6400  ;;  %vm133_vm6 = vcmask 1045504  }
  0x3a   :  { %v1299_v3 = vld [vmem:[#allocation4 + $0x80] sm:$0xff]   ;;  %1176 = vmatpush3.bf16.msra.mxu0 %v1298_v2  ;;  %v1303_v7 = vld [vmem:[#allocation4 + $0x88] sm:$0xff]   ;;  %v1306_v10 = vld [vmem:[#allocation4 + $0x10] sm:$0xff]   ;;  %vm140_vm5 = vsmask.f32 5376  ;;  %vm155_vm7 = vcmask 1044480  }
  0x3b   :  { %1204 = vmatpush3.bf16.msra.mxu1 %v1299_v3  ;;  %1177 = vmatprep.subr.bf16.mxu0 %v1300_v4  ;;  %v1307_v11 = vld [vmem:[#allocation4 + $0x90] sm:$0xff]   ;;  %v1308_v12 = vld [vmem:[#allocation4 + $0x58] sm:$0xff]   ;;  %v1312_v16 = vld [vmem:[#allocation4 + $0x60] sm:$0xff]  }
  0x3c   :  { %1205 = vmatprep.subr.bf16.mxu1 %v1301_v5  ;;  %v1309_v13 = vld [vmem:[#allocation4 + $0xd8] sm:$0xff]   ;;  %v1313_v17 = vld [vmem:[#allocation4 + $0xe0] sm:$0xff]   ;;  %v1316_v20 = vld [vmem:[#allocation4 + $0x68] sm:$0xff]  }
  0x3d   :  { %v1310_v14 = vld [vmem:[#allocation4 + $0x18] sm:$0xff]   ;;  %v1314_v18 = vld [vmem:[#allocation4 + $0x20] sm:$0xff]   ;;  %v1317_v21 = vld [vmem:[#allocation4 + $0xe8] sm:$0xff]  }
  0x3e   :  { %1178 = vmatpush3.bf16.msra.mxu0 %v1302_v6  ;;  %v1311_v15 = vld [vmem:[#allocation4 + $0x98] sm:$0xff]   ;;  %v1315_v19 = vld [vmem:[#allocation4 + $0xa0] sm:$0xff]   ;;  %v1318_v22 = vld [vmem:[#allocation4 + $0x28] sm:$0xff]  }
  0x3f   :  { %1206 = vmatpush3.bf16.msra.mxu1 %v1303_v7  ;;  %1179 = vmatprep.subr.bf16.mxu0 %v1304_v8  ;;  %v1319_v23 = vld [vmem:[#allocation4 + $0xa8] sm:$0xff]   ;;  %v1320_v24 = vld [vmem:[#allocation4 + $0x70] sm:$0xff]   ;;  %v1324_v28 = vld [vmem:[#allocation4 + $0x78] sm:$0xff]  }
  0x40   :  { %1207 = vmatprep.subr.bf16.mxu1 %v1305_v9  ;;  %v1321_v25 = vld [vmem:[#allocation4 + $0xf0] sm:$0xff]   ;;  %v1325_v29 = vld [vmem:[#allocation4 + $0xf8] sm:$0xff]   ;;  %v57_v32 = vld [vmem:[#allocation2] sm:$0xff] }
  0x41   :  { %v1322_v26 = vld [vmem:[#allocation4 + $0x30] sm:$0xff]   ;;  %v1326_v30 = vld [vmem:[#allocation4 + $0x38] sm:$0xff]   ;;  %v58_v33 = vld [vmem:[#allocation2 + $0x8] sm:$0xff] }
  0x42   :  { %1180 = vmatpush3.bf16.msra.mxu0 %v1306_v10  ;;  %v1323_v27 = vld [vmem:[#allocation4 + $0xb0] sm:$0xff]   ;;  %v1327_v31 = vld [vmem:[#allocation4 + $0xb8] sm:$0xff]   ;;  %v61_v34 = vpack.c.bf16 %v58_v33, %v57_v32  ;;  %v1328_v35 = vld [vmem:[#allocation4 + $0x140] sm:$0xff]  }
  0x43   :  { %1208 = vmatpush3.bf16.msra.mxu1 %v1307_v11  ;;  %1181 = vmatprep.subr.bf16.mxu0 %v1308_v12  ;;  %v1496_v38 = vld [vmem:[#allocation4 + $0x180] sm:$0xff]   ;;  %v1330_v32 = vld [vmem:[#allocation4 + $0x148] sm:$0xff]  }
  0x44   :  { %1209 = vmatprep.subr.bf16.mxu1 %v1309_v13  ;;  %v66_v36 = vsel %vm63_vm0, %v61_v34, 0 }
  0x45   :  { %v71_v37 = vrot.slane %v66_v36, 4 }
  0x46   :  { %1182 = vmatpush3.bf16.msra.mxu0 %v1310_v14 }
  0x47   :  { %1210 = vmatpush3.bf16.msra.mxu1 %v1311_v15  ;;  %1183 = vmatprep.subr.bf16.mxu0 %v1312_v16  ;;  %v1499_v39 = vsel %vm73_vm2, 0, %v71_v37  ;;  %v1502_v40 = vsel %vm73_vm2, %v71_v37, 0 }
  0x48   :  { %1211 = vmatprep.subr.bf16.mxu1 %v1313_v17  ;;  %v81_v41 = vshrl.u32 %v1499_v39, 16  ;;  %v83_v42 = vshll.u32 %v1499_v39, 16  ;;  %v87_v43 = vshll.u32 %v1502_v40, 16  ;;  %v91_v44 = vshrl.u32 %v1502_v40, 16 }
  0x49   :  { %v112_v45 = vrot.slane %v1499_v39, 1  ;;  %v113_v46 = vrot.slane %v1502_v40, 1 }
  0x4a   :  { %1184 = vmatpush3.bf16.msra.mxu0 %v1314_v18  ;;  %v85_v47 = vrot.slane %v83_v42, 1  ;;  %v89_v48 = vrot.slane %v87_v43, 1  ;;  %v119_v49 = vrot.slane %v81_v41, 1  ;;  %v120_v50 = vrot.slane %v83_v42, 2 }
  0x4b   :  { %1212 = vmatpush3.bf16.msra.mxu1 %v1315_v19  ;;  %1185 = vmatprep.subr.bf16.mxu0 %v1316_v20  ;;  %v122_v51 = vrot.slane %v91_v44, 1  ;;  %v123_v52 = vrot.slane %v87_v43, 2  ;;  %v141_v53 = vrot.slane %v81_v41, 2  ;;  %v142_v54 = vrot.slane %v83_v42, 3 }
  0x4c   :  { %1213 = vmatprep.subr.bf16.mxu1 %v1317_v21  ;;  %v86_v55 = vor.u32 %v85_v47, %v81_v41  ;;  %v93_v56 = vor.u32 %v91_v44, %v89_v48  ;;  %v121_v57 = vor.u32 %v120_v50, %v119_v49  ;;  %v144_v58 = vrot.slane %v91_v44, 2 }
  0x4d   :  { %v124_v59 = vor.u32 %v123_v52, %v122_v51  ;;  %v143_v60 = vor.u32 %v142_v54, %v141_v53  ;;  %v145_v61 = vrot.slane %v87_v43, 3  ;;  %v114_v62 = vsel %vm111_vm4, %v112_v45, %v113_v46  ;;  %v1332_v43 = vld [vmem:[#allocation4 + $0x108] sm:$0xff]   ;;  %v1335_v51 = vld [vmem:[#allocation4 + $0x110] sm:$0xff]   ;;  %v1336_v54 = vld [vmem:[#allocation4 + $0x158] sm:$0xff]  }
  0x4e   :  { %1186 = vmatpush3.bf16.msra.mxu0 %v1318_v22  ;;  %v90_v63 = vsel %vm80_vm1, %v86_v55, %v89_v48  ;;  %v171_v0 = vshrl.u32 %v93_v56, 16  ;;  %v174_v1 = vshll.u32 %v93_v56, 16  ;;  %v180_v2 = vshrl.u32 %v114_v62, 16  ;;  %v1334_v48 = vld [vmem:[#allocation4 + $0x188] sm:$0xff]   ;;  %v1337_v55 = vld [vmem:[#allocation4 + $0x190] sm:$0xff]  }
  0x4f   :  { %1214 = vmatpush3.bf16.msra.mxu1 %v1319_v23  ;;  %1187 = vmatprep.subr.bf16.mxu0 %v1320_v24  ;;  %v163_v3 = vshrl.u32 %v90_v63, 16  ;;  %v166_v4 = vshll.u32 %v90_v63, 16  ;;  %v125_v5 = vsel %vm118_vm3, %v121_v57, %v124_v59  ;;  %v205_v6 = vshrl.u32 %v124_v59, 16  ;;  %v1329_v23 = vld [vmem:[#allocation4 + $0x100] sm:$0xff]  }
  0x50   :  { %1215 = vmatprep.subr.bf16.mxu1 %v1321_v25  ;;  %v173_v7 = vrot.slane %v171_v0, 2  ;;  %v176_v8 = vrot.slane %v174_v1, 3  ;;  %v197_v9 = vshrl.u32 %v125_v5, 16  ;;  %v200_v10 = vshll.u32 %v125_v5, 16 }
  0x51   :  { %v165_v11 = vrot.slane %v163_v3, 2  ;;  %v168_v12 = vrot.slane %v166_v4, 3  ;;  %v207_v13 = vrot.slane %v205_v6, 2  ;;  %v208_v14 = vshll.u32 %v124_v59, 16 }
  0x52   :  { %1188 = vmatpush3.bf16.msra.mxu0 %v1322_v26  ;;  %v177_v15 = vor.u32 %v176_v8, %v173_v7  ;;  %v199_v16 = vrot.slane %v197_v9, 2  ;;  %v202_v17 = vrot.slane %v200_v10, 3  ;;  %v1514_v18 = vor.u32 %v145_v61, %v144_v58  ;;  %v1339_v8 = vld [vmem:[#allocation4 + $0x160] sm:$0xff]  }
  0x53   :  { %1216 = vmatpush3.bf16.msra.mxu1 %v1323_v27  ;;  %1189 = vmatprep.subr.bf16.mxu0 %v1324_v28  ;;  %v169_v19 = vor.u32 %v168_v12, %v165_v11  ;;  %v210_v20 = vrot.slane %v208_v14, 3  ;;  %v182_v21 = vrot.slane %v180_v2, 2  ;;  %v183_v22 = vshll.u32 %v114_v62, 16  ;;  %v59_v28 = vld [vmem:[#allocation2 + $0x10] sm:$0xff] }
  0x54   :  { %1217 = vmatprep.subr.bf16.mxu1 %v1325_v29  ;;  %v203_v24 = vor.u32 %v202_v17, %v199_v16  ;;  %v147_v25 = vsel %vm140_vm5, %v143_v60, %v1514_v18  ;;  %v188_v26 = vshrl.u32 %v113_v46, 16  ;;  %v191_v27 = vshll.u32 %v113_v46, 16  ;;  %v60_v29 = vld [vmem:[#allocation2 + $0x18] sm:$0xff]  ;;  %v1333_v46 = vld [vmem:[#allocation4 + $0x150] sm:$0xff]  }
  0x55   :  { %v185_v33 = vrot.slane %v183_v22, 3  ;;  %v62_v36 = vpack.c.bf16 %v60_v29, %v59_v28  ;;  %v231_v41 = vshrl.u32 %v147_v25, 16  ;;  %v234_v42 = vshll.u32 %v147_v25, 16 }
  0x56   :  { %1190 = vmatpush3.bf16.msra.mxu0 %v1326_v30  ;;  %v178_v30 = vsel %vm140_vm5, %v169_v19, %v177_v15  ;;  %v190_v34 = vrot.slane %v188_v26, 2 }
  0x57   :  { %1218 = vmatpush3.bf16.msra.mxu1 %v1327_v31  ;;  %1231 = vmatprep.subr.bf16.mxu0 %v1328_v35  ;;  %v211_v31 = vor.u32 %v210_v20, %v207_v13  ;;  %v193_v35 = vrot.slane %v191_v27, 3  ;;  %v186_v44 = vor.u32 %v185_v33, %v182_v21  ;;  %v68_v47 = vsel %vm63_vm0, %v62_v36, 0  ;;  %v1340_v13 = vld [vmem:[#allocation4 + $0x198] sm:$0xff]   ;;  %v1341_v27 = vld [vmem:[#allocation4 + $0x120] sm:$0xff]   ;;  %v1342_v36 = vld [vmem:[#allocation4 + $0x168] sm:$0xff]  }
  0x58   :  { %1269 = vmatprep.subr.bf16.mxu1 %v1496_v38  ;;  %860 = vmatprep.mubr.bf16.mxu0 %v178_v30  ;;  %v72_v49 = vrot.slane %v68_v47, 4  ;;  %v1522_v52 = vrot.slane %v231_v41, 2  ;;  %v1524_v53 = vrot.slane %v234_v42, 3 }
  0x59   :  { %v212_v37 = vsel %vm140_vm5, %v203_v24, %v211_v31  ;;  %861 = vmatmul.mubr.bf16.vlgmr.msra.gmra.mrb[0].mxu0 %v147_v25  ;;  %v194_v45 = vor.u32 %v193_v35, %v190_v34 }
  0x5a   :  { %909 = vmatprep.mubr.bf16.mxu1 %v212_v37  ;;  %1232 = vmatpush3.bf16.msra.mxu0 %v1329_v23  ;;  %v1527_v56 = vsel %vm73_vm2, 0, %v72_v49  ;;  %v1530_v57 = vsel %vm73_vm2, %v72_v49, 0  ;;  %v1343_v37 = vld [vmem:[#allocation4 + $0x1a0] sm:$0xff]  }
  0x5b   :  { %1233 = vmatprep.subr.bf16.mxu0 %v1330_v32  ;;  %v195_v50 = vsel %vm140_vm5, %v186_v44, %v194_v45  ;;  %v94_v58 = vshrl.u32 %v1527_v56, 16  ;;  %v96_v59 = vshll.u32 %v1527_v56, 16  ;;  %v100_v60 = vshll.u32 %v1530_v57, 16 }
  0x5c   :  { %910 = vmatmul.mubr.bf16.vlgmr.msra.gmra.mrb[0].mxu1 %v195_v50  ;;  %v104_v61 = vshrl.u32 %v1530_v57, 16  ;;  %v115_v62 = vrot.slane %v1527_v56, 1  ;;  %v1539_v63 = vrot.slane %v1530_v57, 1 }
  0x5d   :  { %1270 = vmatpush3.bf16.msra.mxu1 %v1496_v38  ;;  %v98_v0 = vrot.slane %v96_v59, 1  ;;  %v102_v1 = vrot.slane %v100_v60, 1  ;;  %v126_v2 = vrot.slane %v94_v58, 1  ;;  %v127_v3 = vrot.slane %v96_v59, 2  ;;  %v1338_v38 = vld [vmem:[#allocation4 + $0x118] sm:$0xff]  }
  0x5e   :  { %1234 = vmatpush3.bf16.msra.mxu0 %v1332_v43  ;;  %1271 = vmatprep.subr.bf16.mxu1 %v1334_v48  ;;  %v129_v4 = vrot.slane %v104_v61, 1  ;;  %v130_v5 = vrot.slane %v100_v60, 2  ;;  %v148_v6 = vrot.slane %v94_v58, 2  ;;  %v149_v7 = vrot.slane %v96_v59, 3 }
  0x5f   :  { %1235 = vmatprep.subr.bf16.mxu0 %v1333_v46  ;;  %v99_v9 = vor.u32 %v98_v0, %v94_v58  ;;  %v106_v10 = vor.u32 %v104_v61, %v102_v1  ;;  %v128_v11 = vor.u32 %v127_v3, %v126_v2  ;;  %v151_v12 = vrot.slane %v104_v61, 2  ;;  %v1346_v3 = vld [vmem:[#allocation4 + $0x1a8] sm:$0xff]  }
  0x60   :  { %v131_v14 = vor.u32 %v130_v5, %v129_v4  ;;  %v150_v15 = vor.u32 %v149_v7, %v148_v6  ;;  %v152_v16 = vrot.slane %v100_v60, 3  ;;  %v117_v17 = vsel %vm111_vm4, %v115_v62, %v1539_v63  ;;  %v1345_v62 = vld [vmem:[#allocation4 + $0x170] sm:$0xff]  }
  0x61   :  { %1272 = vmatpush3.bf16.msra.mxu1 %v1334_v48  ;;  %v103_v19 = vsel %vm80_vm1, %v99_v9, %v102_v1  ;;  %v273_v20 = vshrl.u32 %v106_v10, 16  ;;  %v276_v21 = vshll.u32 %v106_v10, 16  ;;  %v282_v22 = vshrl.u32 %v117_v17, 16  ;;  %v1347_v9 = vld [vmem:[#allocation4 + $0x130] sm:$0xff]  }
  0x62   :  { %1236 = vmatpush3.bf16.msra.mxu0 %v1335_v51  ;;  %1273 = vmatprep.subr.bf16.mxu1 %v1337_v55  ;;  %v265_v23 = vshrl.u32 %v103_v19, 16  ;;  %v268_v24 = vshll.u32 %v103_v19, 16  ;;  %v132_v25 = vsel %vm118_vm3, %v128_v11, %v131_v14  ;;  %v307_v26 = vshrl.u32 %v131_v14, 16 }
  0x63   :  { %1237 = vmatprep.subr.bf16.mxu0 %v1336_v54  ;;  %v275_v28 = vrot.slane %v273_v20, 2  ;;  %v278_v29 = vrot.slane %v276_v21, 3  ;;  %v299_v30 = vshrl.u32 %v132_v25, 16  ;;  %v302_v31 = vshll.u32 %v132_v25, 16 }
  0x64   :  { %v267_v32 = vrot.slane %v265_v23, 2  ;;  %v270_v33 = vrot.slane %v268_v24, 3  ;;  %v309_v34 = vrot.slane %v307_v26, 2  ;;  %v310_v35 = vshll.u32 %v131_v14, 16 }
  0x65   :  { %1274 = vmatpush3.bf16.msra.mxu1 %v1337_v55  ;;  %v279_v41 = vor.u32 %v278_v29, %v275_v28  ;;  %v301_v42 = vrot.slane %v299_v30, 2  ;;  %v304_v43 = vrot.slane %v302_v31, 3  ;;  %v1545_v44 = vor.u32 %v152_v16, %v151_v12  ;;  %v1344_v55 = vld [vmem:[#allocation4 + $0x128] sm:$0xff]   ;;  %v1348_v12 = vld [vmem:[#allocation4 + $0x178] sm:$0xff]   ;;  %v1349_v16 = vld [vmem:[#allocation4 + $0x1b0] sm:$0xff]  }
  0x66   :  { %1238 = vmatpush3.bf16.msra.mxu0 %v1338_v38  ;;  %1275 = vmatprep.subr.bf16.mxu1 %v1340_v13  ;;  %v271_v45 = vor.u32 %v270_v33, %v267_v32  ;;  %v312_v46 = vrot.slane %v310_v35, 3  ;;  %v284_v47 = vrot.slane %v282_v22, 2  ;;  %v285_v48 = vshll.u32 %v117_v17, 16  ;;  %v1351_v33 = vld [vmem:[#allocation4 + $0x1b8] sm:$0xff]  }
  0x67   :  { %1239 = vmatprep.subr.bf16.mxu0 %v1339_v8  ;;  %v305_v49 = vor.u32 %v304_v43, %v301_v42  ;;  %v154_v50 = vsel %vm140_vm5, %v150_v15, %v1545_v44  ;;  %v290_v51 = vshrl.u32 %v1539_v63, 16  ;;  %v293_v54 = vshll.u32 %v1539_v63, 16 }
  0x68   :  { %v280_v58 = vsel %vm140_vm5, %v271_v45, %v279_v41  ;;  %v313_v59 = vor.u32 %v312_v46, %v309_v34  ;;  %v333_v60 = vshrl.u32 %v154_v50, 16  ;;  %v336_v61 = vshll.u32 %v154_v50, 16 }
  0x69   :  { %1276 = vmatpush3.bf16.msra.mxu1 %v1340_v13  ;;  %868 = vmatprep.mubr.bf16.mxu0 %v280_v58  ;;  %v287_v0 = vrot.slane %v285_v48, 3  ;;  %v292_v1 = vrot.slane %v290_v51, 2  ;;  %v295_v2 = vrot.slane %v293_v54, 3  ;;  %v239_v38 = vshrl.u32 %v1514_v18, 16 }
  0x6a   :  { %1240 = vmatpush3.bf16.msra.mxu0 %v1341_v27  ;;  %1277 = vmatprep.subr.bf16.mxu1 %v1343_v37  ;;  %v314_v4 = vsel %vm140_vm5, %v305_v49, %v313_v59  ;;  %v1554_v5 = vrot.slane %v333_v60, 2  ;;  %v237_v63 = vor.u32 %v1524_v53, %v1522_v52  ;;  %v242_v6 = vshll.u32 %v1514_v18, 16 }
  0x6b   :  { %1241 = vmatprep.subr.bf16.mxu0 %v1342_v36  ;;  %869 = vmatmul.mubr.bf16.gmra.mrb[4].mxu0 %v154_v50  ;;  %v288_v7 = vor.u32 %v287_v0, %v284_v47  ;;  %v296_v8 = vor.u32 %v295_v2, %v292_v1  ;;  %v241_v10 = vrot.slane %v239_v38, 2  ;;  %v134_v11 = vrot.slane %v1499_v39, 2 }
  0x6c   :  { %917 = vmatprep.mubr.bf16.mxu1 %v314_v4  ;;  %v244_v13 = vrot.slane %v242_v6, 3  ;;  %v135_v14 = vrot.slane %v1502_v40, 2  ;;  %v156_v15 = vrot.slane %v1499_v39, 3  ;;  %v157_v52 = vrot.slane %v1502_v40, 3  ;;  %v1350_v39 = vld [vmem:[#allocation4 + $0x138] sm:$0xff]  }
  0x6d   :  { %1278 = vmatpush3.bf16.msra.mxu1 %v1343_v37  ;;  %v1563_v53 = vrot.slane %v336_v61, 3  ;;  %v297_v18 = vsel %vm140_vm5, %v288_v7, %v296_v8  ;;  %v159_v17 = vrot.slane %v1527_v56, 3  ;;  %v160_v19 = vrot.slane %v1530_v57, 3 }
  0x6e   :  { %1242 = vmatpush3.bf16.msra.mxu0 %v1344_v55  ;;  %1279 = vmatprep.subr.bf16.mxu1 %v1346_v3  ;;  %v245_v20 = vor.u32 %v244_v13, %v241_v10  ;;  %v136_v21 = vsel %vm133_vm6, %v134_v11, %v135_v14  ;;  %v222_v22 = vshrl.u32 %v135_v14, 16  ;;  %v225_v23 = vshll.u32 %v135_v14, 16 }
  0x6f   :  { %1243 = vmatprep.subr.bf16.mxu0 %v1345_v62  ;;  %918 = vmatmul.mubr.bf16.gmra.mrb[4].mxu1 %v297_v18  ;;  %v214_v24 = vshrl.u32 %v136_v21, 16  ;;  %v217_v40 = vshll.u32 %v136_v21, 16  ;;  %v158_v25 = vsel %vm155_vm7, %v156_v15, %v157_v52  ;;  %v256_v26 = vshrl.u32 %v157_v52, 16 }
  0x70   :  { %v246_v27 = vsel %vm140_vm5, %v237_v63, %v245_v20  ;;  %v224_v28 = vrot.slane %v222_v22, 2  ;;  %v227_v29 = vrot.slane %v225_v23, 3  ;;  %v248_v30 = vshrl.u32 %v158_v25, 16 }
  0x71   :  { %1280 = vmatpush3.bf16.msra.mxu1 %v1346_v3  ;;  %958 = vmatprep.mubr.bf16.mxu0 %v246_v27  ;;  %v216_v31 = vrot.slane %v214_v24, 2  ;;  %v219_v32 = vrot.slane %v217_v40, 3  ;;  %v251_v34 = vshll.u32 %v158_v25, 16  ;;  %v258_v35 = vrot.slane %v256_v26, 2 }
  0x72   :  { %1244 = vmatpush3.bf16.msra.mxu0 %v1347_v9  ;;  %1281 = vmatprep.subr.bf16.mxu1 %v1349_v16  ;;  %v228_v36 = vor.u32 %v227_v29, %v224_v28  ;;  %v250_v37 = vrot.slane %v248_v30, 2  ;;  %v259_v41 = vshll.u32 %v157_v52, 16  ;;  %v161_v42 = vsel %vm155_vm7, %v159_v17, %v160_v19 }
  0x73   :  { %1245 = vmatprep.subr.bf16.mxu0 %v1348_v12  ;;  %v220_v43 = vor.u32 %v219_v32, %v216_v31  ;;  %v253_v45 = vrot.slane %v251_v34, 3  ;;  %v350_v46 = vshrl.u32 %v161_v42, 16  ;;  %v353_v47 = vshll.u32 %v161_v42, 16 }
  0x74   :  { %v261_v48 = vrot.slane %v259_v41, 3  ;;  %v358_v49 = vshrl.u32 %v160_v19, 16  ;;  %v361_v50 = vshll.u32 %v160_v19, 16  ;;  %v341_v51 = vshrl.u32 %v1545_v44, 16 }
  0x75   :  { %1282 = vmatpush3.bf16.msra.mxu1 %v1349_v16  ;;  %v229_v54 = vsel %vm140_vm5, %v220_v43, %v228_v36  ;;  %v254_v55 = vor.u32 %v253_v45, %v250_v37  ;;  %v352_v58 = vrot.slane %v350_v46, 2  ;;  %v355_v59 = vrot.slane %v353_v47, 3 }
  0x76   :  { %1246 = vmatpush3.bf16.msra.mxu0 %v1350_v39  ;;  %1283 = vmatprep.subr.bf16.mxu1 %v1351_v33  ;;  %v262_v60 = vor.u32 %v261_v48, %v258_v35  ;;  %v360_v61 = vrot.slane %v358_v49, 2  ;;  %v363_v62 = vrot.slane %v361_v50, 3  ;;  %v343_v0 = vrot.slane %v341_v51, 2 }
  0x77   :  { %v356_v1 = vor.u32 %v355_v59, %v352_v58  ;;  %v344_v2 = vshll.u32 %v1545_v44, 16  ;;  %v137_v3 = vrot.slane %v1527_v56, 2  ;;  %v138_v38 = vrot.slane %v1530_v57, 2 }
  0x78   :  { %v263_v4 = vsel %vm140_vm5, %v254_v55, %v262_v60  ;;  %v364_v63 = vor.u32 %v363_v62, %v360_v61  ;;  %v339_v6 = vor.u32 %v1563_v53, %v1554_v5 }
  0x79   :  { %959 = vmatmul.mubr.bf16.vlgmr.msra.gmra.mrb[8].mxu0 %v229_v54  ;;  %1284 = vmatpush3.bf16.msra.mxu1 %v1351_v33  ;;  %v346_v7 = vrot.slane %v344_v2, 3  ;;  %v139_v8 = vsel %vm133_vm6, %v137_v3, %v138_v38  ;;  %v324_v9 = vshrl.u32 %v138_v38, 16  ;;  %v327_v10 = vshll.u32 %v138_v38, 16 }
  0x7a   :  { %1285 = vmatprep.mubr.bf16.mxu1 %v263_v4  ;;  %v365_v11 = vsel %vm140_vm5, %v356_v1, %v364_v63  ;;  %v316_v44 = vshrl.u32 %v139_v8, 16  ;;  %v319_v12 = vshll.u32 %v139_v8, 16 }
  0x7b   :  { %v347_v56 = vor.u32 %v346_v7, %v343_v0  ;;  %v326_v57 = vrot.slane %v324_v9, 2  ;;  %v329_v13 = vrot.slane %v327_v10, 3  ;;  %v1155_v0 = vld [vmem:[#allocation6] ss:$0 sm:$0xff] }
  0x7c   :  { %1286 = vmatmul.mubr.bf16.vlgmr.msra.gmra.mrb[8].mxu1 %v365_v11  ;;  %v318_v14 = vrot.slane %v316_v44, 2  ;;  %v321_v15 = vrot.slane %v319_v12, 3 }
  0x7d   :  { %v348_v52 = vsel %vm140_vm5, %v339_v6, %v347_v56  ;;  %v330_v18 = vor.u32 %v329_v13, %v326_v57 }
  0x7e   :  { %966 = vmatprep.mubr.bf16.mxu0 %v348_v52  ;;  %v322_v5 = vor.u32 %v321_v15, %v318_v14 }
  0x80   :  { %v331_v53 = vsel %vm140_vm5, %v322_v5, %v330_v18 }
  0x81   :  { %967 = vmatmul.mubr.bf16.gmra.mrb[12].mxu0 %v331_v53 }
 0x12c   :  { %v1191_v16 = vpop.f32.mrb[0].mxu0 }
 0x12d   :  { %v1192_v17 = vpop.f32.mrb[1].mxu0 }
 0x12e   :  { %v1193_v19 = vadd.f32 %v1192_v17, %v1191_v16  ;;  %v1194_v20 = vpop.f32.mrb[2].mxu0 }
 0x12f   :  { %v1195_v21 = vpop.f32.mrb[3].mxu0  ;;  %v1219_v22 = vpop.f32.mrb[0].mxu1 }
 0x130   :  { %v1196_v23 = vadd.f32 %v1195_v21, %v1194_v20  ;;  %v1220_v39 = vpop.f32.mrb[1].mxu1 }
 0x131   :  { %v1221_v24 = vadd.f32 %v1220_v39, %v1219_v22  ;;  %v1222_v40 = vpop.f32.mrb[2].mxu1 }
 0x132   :  { %v1223_v25 = vpop.f32.mrb[3].mxu1 }
 0x133   :  { %v912_v26 = vadd.f32 %v1221_v24, %v1193_v19  ;;  %v1224_v27 = vadd.f32 %v1223_v25, %v1222_v40 }
 0x135   :  { %v915_v28 = vadd.f32 %v1224_v27, %v1196_v23 }
 0x13e   :  { %v1197_v29 = vpop.f32.mrb[4].mxu0 }
 0x13f   :  { %v1198_v30 = vpop.f32.mrb[5].mxu0 }
 0x140   :  { %v1199_v31 = vadd.f32 %v1198_v30, %v1197_v29  ;;  %v1200_v32 = vpop.f32.mrb[6].mxu0 }
 0x141   :  { %v1201_v33 = vpop.f32.mrb[7].mxu0 }
 0x142   :  { %v1225_v34 = vpop.f32.mrb[4].mxu1  ;;  %v1202_v35 = vadd.f32 %v1201_v33, %v1200_v32 }
 0x143   :  { %v1226_v36 = vpop.f32.mrb[5].mxu1 }
 0x144   :  { %v1227_v37 = vadd.f32 %v1226_v36, %v1225_v34  ;;  %v1228_v41 = vpop.f32.mrb[6].mxu1 }
 0x145   :  { %v1229_v42 = vpop.f32.mrb[7].mxu1 }
 0x146   :  { %v920_v43 = vadd.f32 %v1227_v37, %v1199_v31  ;;  %v1230_v45 = vadd.f32 %v1229_v42, %v1228_v41 }
 0x148   :  { %v923_v46 = vadd.f32 %v1230_v45, %v1202_v35 }
 0x14c   :  { %v1247_v47 = vpop.f32.mrb[8].mxu0 }
 0x14d   :  { %v1248_v48 = vpop.f32.mrb[9].mxu0 }
 0x14e   :  { %v1249_v49 = vadd.f32 %v1248_v48, %v1247_v47  ;;  %v1250_v50 = vpop.f32.mrb[10].mxu0 }
 0x14f   :  { %v1251_v51 = vpop.f32.mrb[11].mxu0  ;;  %v1287_v58 = vpop.f32.mrb[8].mxu1 }
 0x150   :  { %v1252_v54 = vadd.f32 %v1251_v51, %v1250_v50  ;;  %v961_v55 = vadd.f32 %v1249_v49, %v912_v26  ;;  %v1009_v59 = vpop.f32.mrb[9].mxu1 }
 0x151   :  { %v1288_v62 = vpop.f32.mrb[10].mxu1 }
 0x152   :  { %v964_v60 = vadd.f32 %v1252_v54, %v915_v28  ;;  %v1010_v61 = vadd.f32 %v1009_v59, %v961_v55  ;;  %v1012_v1 = vpop.f32.mrb[11].mxu1 }
 0x154   :  { %v1013_v2 = vadd.f32 %v1012_v1, %v964_v60  ;;  %v1031_v3 = vadd.f32 %v1155_v0, %v1010_v61  ;;  %v1253_v4 = vpop.f32.mrb[12].mxu0 }
 0x155   :  { %v1254_v63 = vpop.f32.mrb[13].mxu0 }
 0x156   :  { %v1032_v38 = vadd.f32 %v1155_v0, %v1013_v2  ;;  %v1255_v8 = vadd.f32 %v1254_v63, %v1253_v4  ;;  %v1256_v9 = vpop.f32.mrb[14].mxu0 }
 0x157   :  { %v1257_v10 = vpop.f32.mrb[15].mxu0 }
 0x158   :  { %v1167_v6 = vpack.c.bf16 %v1032_v38, %v1031_v3  ;;  %v1055_v7 = vadd.f32 %v1032_v38, %v1031_v3  ;;  %v969_v11 = vadd.f32 %v1255_v8, %v920_v43  ;;  %v1258_v44 = vadd.f32 %v1257_v10, %v1256_v9 }
 0x15a   :  { %1168 = vst [vmem:[%s1599_s3] sm:$0xff] %v1167_v6   ;;  %v1018_v12 = vadd.f32 %v1287_v58, %v969_v11  ;;  %v972_v56 = vadd.f32 %v1258_v44, %v923_v46 }
 0x15c   :  { %v1033_v57 = vadd.f32 %v1155_v0, %v1018_v12  ;;  %v1021_v13 = vadd.f32 %v1288_v62, %v972_v56 }
 0x15e   :  { %v1056_v14 = vadd.f32 %v1055_v7, %v1033_v57  ;;  %v1034_v15 = vadd.f32 %v1155_v0, %v1021_v13 }
 0x160   :  { %v1172_v52 = vpack.c.bf16 %v1034_v15, %v1033_v57  ;;  %v1057_v18 = vadd.f32 %v1056_v14, %v1034_v15 }
 0x162   :  { %1174 = vst [vmem:[%s1599_s3 + $0x8] sm:$0xff] %v1172_v52   ;;  %v1058_v5 = vrot.slane %v1057_v18, 4 }
 0x164   :  { %v1059_v53 = vadd.f32 %v1058_v5, %v1057_v18 }
 0x166   :  { %v1060_v16 = vrot.slane %v1059_v53, 2 }
 0x168   :  { %v1061_v17 = vadd.f32 %v1060_v16, %v1059_v53 }
 0x16a   :  { %v1062_v19 = vrot.slane %v1061_v17, 1 }
 0x16c   :  { %v1063_v20 = vadd.f32 %v1062_v19, %v1061_v17 }
 0x16e   :  { %v1065_v21 = vmul.f32 0.03125, %v1063_v20 }
 0x170   :  { %v1066_v22 = vsub.f32 %v1031_v3, %v1065_v21  ;;  %v1067_v23 = vsub.f32 %v1032_v38, %v1065_v21  ;;  %v1068_v39 = vsub.f32 %v1033_v57, %v1065_v21  ;;  %v1069_v24 = vsub.f32 %v1034_v15, %v1065_v21  ;;  %1070 = vst [vmem:[%s1600_s4] sm:$0x1] %v1065_v21 }
 0x172   :  { %v1071_v40 = vmul.f32 %v1066_v22, %v1066_v22  ;;  %v1072_v25 = vmul.f32 %v1067_v23, %v1067_v23  ;;  %v1073_v26 = vmul.f32 %v1068_v39, %v1068_v39  ;;  %v1074_v28 = vmul.f32 %v1069_v24, %v1069_v24 }
 0x174   :  { %v1075_v27 = vadd.f32 %v1072_v25, %v1071_v40 }
 0x176   :  { %v1076_v29 = vadd.f32 %v1075_v27, %v1073_v26 }
 0x178   :  { %v1077_v30 = vadd.f32 %v1076_v29, %v1074_v28 }
 0x17a   :  { %v1078_v31 = vrot.slane %v1077_v30, 4 }
 0x17c   :  { %v1079_v32 = vadd.f32 %v1078_v31, %v1077_v30 }
 0x17e   :  { %v1080_v33 = vrot.slane %v1079_v32, 2 }
 0x180   :  { %v1081_v34 = vadd.f32 %v1080_v33, %v1079_v32 }
 0x182   :  { %v1082_v35 = vrot.slane %v1081_v34, 1 }
 0x184   :  { %v1083_v36 = vadd.f32 %v1082_v35, %v1081_v34 }
 0x186   :  { %1084 = vst [vmem:[%s1601_s5] sm:$0x1] %v1083_v36 }
 0x187   :  { %1097 = vsyncpa [#allocation3], 1 }
 0x188   :  { %1098 = vsyncpa [#allocation5], 1 }

// kernel: postnet_forward.3
= control target key start
LH: loop header
LB: loop body
LE: loop exit
PB: predicated region body
PF: predicated region fallthrough
CT: control target
= control target key end

     0   :  { %s12142_s0 = inlined_call_operand.vmem [shape: bf16[2,16,128], index: 0, kind: input, shape index: {}]   ;;  %s12143_s1 = inlined_call_operand.vmem [shape: f32[1,128], index: 1, kind: input, shape index: {}]   ;;  %s12144_s2 = inlined_call_operand.vmem [shape: f32[1,128], index: 2, kind: input, shape index: {}]   ;;  %s12145_s3 = inlined_call_operand.hbm [shape: bf16[640,128], index: 3, kind: input, shape index: {}]   ;;  %s12146_s4 = inlined_call_operand.vmem [shape: f32[1,128], index: 4, kind: input, shape index: {}]   ;;  %s12147_s5 = inlined_call_operand.hbm [shape: bf16[640,256], index: 5, kind: input, shape index: {}]   ;;  %s12148_s6 = inlined_call_operand.vmem [shape: f32[1,256], index: 6, kind: input, shape index: {}]   ;;  %s12149_s7 = inlined_call_operand.vmem [shape: bf16[128,256], index: 7, kind: input, shape index: {}]   ;;  %s12150_s8 = inlined_call_operand.hbm [shape: bf16[1280,256], index: 8, kind: input, shape index: {}]   ;;  %s12151_s9 = inlined_call_operand.vmem [shape: f32[1,256], index: 9, kind: input, shape index: {}]   ;;  %s12152_s10 = inlined_call_operand.hbm [shape: bf16[1280,256], index: 10, kind: input, shape index: {}]   ;;  %s12153_s11 = inlined_call_operand.vmem [shape: f32[1,256], index: 11, kind: input, shape index: {}]   ;;  %s12154_s12 = inlined_call_operand.hbm [shape: bf16[1280,256], index: 12, kind: input, shape index: {}]   ;;  %s12155_s13 = inlined_call_operand.vmem [shape: f32[1,256], index: 13, kind: input, shape index: {}]   ;;  %s12156_s14 = inlined_call_operand.hbm [shape: bf16[1280,256], index: 14, kind: input, shape index: {}]   ;;  %s12157_s15 = inlined_call_operand.vmem [shape: f32[1,256], index: 15, kind: input, shape index: {}]   ;;  %s12158_s16 = inlined_call_operand.vmem [shape: bf16[256,384], index: 16, kind: input, shape index: {}]   ;;  %s12159_s17 = inlined_call_operand.vmem [shape: f32[2,16,384], index: 17, kind: output, shape index: {}]  }
   0x1   :  { %12162 = sst [smem:[#allocation16_spill]] %s12142_s0 }
   0x2   :  { %12163 = sst [smem:[#allocation17_spill]] %s12143_s1 }
   0x3   :  { %12164 = sst [smem:[#allocation18_spill]] %s12159_s17 }
   0x4   :  { %22 = vsyncpa [#allocation3], 0 }
   0x5   :  { %23 = vsyncpa [#allocation5], 0 }
   0x6   :  { %24 = vsyncpa [#allocation8], 0 }
   0x7   :  { %25 = vsyncpa [#allocation11], 0  ;;  %s10611_s24 = smov [#allocation4]   ;;  %s10471_s28 = scalar_lea.hbm %s12147_s5, 10240 }
   0x8   :  { %s51_s25 = sshll.u32 %s10611_s24, 4  ;;  %p10472_p0 = scmp.ne.s32.totalorder %s12147_s5, %s10471_s28  ;;  %s52_s25 = int_to_ptr.vmem [resolvable:$true] %s51_s25 }
   0x9   :  { %p10475_p1 = scmp.lt.u32.totalorder %s10471_s28, %s12147_s5 }
   0xb   :  { %p10477_p2 = pnand %p10475_p1, %p10472_p0 }
   0xd   :  { %10480 = shalt.err (!%p10477_p2)
}
   0xe   :  { %s10481_s19 = scalar_lea.vmem %s52_s25, 10240  ;;  %p10486_p4 = scmp.lt.s32.totalorder %s52_s25, %s52_s25 }
   0xf   :  { %p10482_p3 = scmp.ne.s32.totalorder %s52_s25, %s10481_s19  ;;  %p10487_p5 = scmp.lt.s32.totalorder %s10481_s19, %s10481_s19 }
  0x11   :  { %p10488_p6 = por %p10487_p5, %p10486_p4 }
  0x13   :  { %p10489_p7 = pnand %p10488_p6, %p10482_p3 }
  0x15   :  { %10492 = shalt.err (!%p10489_p7)
}
  0x16   :  { %s10612_s1 = smov 128   ;;  %s10613_s20 = smov 8  }
  0x17   :  { %57 = dma.hbm_to_vmem [thread:$0]  %s12147_s5, 10240, %s52_s25, [#allocation5], %s10612_s1, %s10612_s1, %s10613_s20  }
  0x18   :  { %s10614_s23 = smov [#allocation7]   ;;  %s10615_s26 = smov [#allocation2]  }
  0x19   :  { %s81_s24 = sshll.u32 %s10614_s23, 4  ;;  %s37_s27 = sshll.u32 %s10615_s26, 4  ;;  %s82_s24 = int_to_ptr.vmem [resolvable:$true] %s81_s24  ;;  %s38_s27 = int_to_ptr.vmem [resolvable:$true] %s37_s27 }
  0x1a   :  { %s10493_s0 = scalar_lea.hbm %s12152_s10, 20480 }
  0x1b   :  { %p10494_p8 = scmp.ne.s32.totalorder %s12152_s10, %s10493_s0  ;;  %p10497_p9 = scmp.lt.u32.totalorder %s10493_s0, %s12152_s10 }
  0x1d   :  { %p10499_p10 = pnand %p10497_p9, %p10494_p8 }
  0x1f   :  { %10502 = shalt.err (!%p10499_p10)
}
  0x20   :  { %s10503_s5 = scalar_lea.vmem %s82_s24, 20480  ;;  %p10508_p12 = scmp.lt.s32.totalorder %s82_s24, %s82_s24 }
  0x21   :  { %p10504_p11 = scmp.ne.s32.totalorder %s82_s24, %s10503_s5  ;;  %p10509_p13 = scmp.lt.s32.totalorder %s10503_s5, %s10503_s5 }
  0x23   :  { %p10510_p0 = por %p10509_p13, %p10508_p12 }
  0x25   :  { %p10511_p1 = pnand %p10510_p0, %p10504_p11 }
  0x27   :  { %10514 = shalt.err (!%p10511_p1)
}
  0x28   :  { %87 = dma.hbm_to_vmem [thread:$0]  %s12152_s10, 20480, %s82_s24, [#allocation8], %s10612_s1, %s10612_s1, %s10613_s20  }
  0x29   :  { %s10515_s23 = scalar_lea.hbm %s12145_s3, 5120 }
  0x2a   :  { %p10516_p2 = scmp.ne.s32.totalorder %s12145_s3, %s10515_s23  ;;  %p10519_p3 = scmp.lt.u32.totalorder %s10515_s23, %s12145_s3 }
  0x2c   :  { %p10521_p4 = pnand %p10519_p3, %p10516_p2 }
  0x2e   :  { %10524 = shalt.err (!%p10521_p4)
}
  0x2f   :  { %s10525_s30 = scalar_lea.vmem %s38_s27, 5120  ;;  %p10530_p6 = scmp.lt.s32.totalorder %s38_s27, %s38_s27 }
  0x30   :  { %p10526_p5 = scmp.ne.s32.totalorder %s38_s27, %s10525_s30  ;;  %p10531_p7 = scmp.lt.s32.totalorder %s10525_s30, %s10525_s30 }
  0x32   :  { %p10532_p8 = por %p10531_p7, %p10530_p6 }
  0x34   :  { %p10533_p9 = pnand %p10532_p8, %p10526_p5 }
  0x36   :  { %10536 = shalt.err (!%p10533_p9)
}
  0x37   :  { %s10616_s10 = smov 64   ;;  %s10617_s24 = smov 4  }
  0x38   :  { %43 = dma.hbm_to_vmem [thread:$0]  %s12145_s3, 5120, %s38_s27, [#allocation3], %s10616_s10, %s10616_s10, %s10617_s24  }
  0x39   :  { %s10618_s5 = smov [#allocation6]   ;;  %s10619_s21 = smov [#allocation9]  }
  0x3a   :  { %s67_s25 = sshll.u32 %s10618_s5, 4  ;;  %s95_s22 = sshll.u32 %s10619_s21, 4  ;;  %s68_s25 = int_to_ptr.vmem [resolvable:$true] %s67_s25  ;;  %s96_s22 = int_to_ptr.vmem [resolvable:$true] %s95_s22 }
  0x3b   :  { %s10537_s26 = scalar_lea.hbm %s12150_s8, 20480 }
  0x3c   :  { %p10538_p10 = scmp.ne.s32.totalorder %s12150_s8, %s10537_s26  ;;  %p10541_p11 = scmp.lt.u32.totalorder %s10537_s26, %s12150_s8 }
  0x3e   :  { %p10543_p12 = pnand %p10541_p11, %p10538_p10 }
  0x40   :  { %10546 = shalt.err (!%p10543_p12)
}
  0x41   :  { %s10547_s3 = scalar_lea.vmem %s68_s25, 20480  ;;  %p10552_p0 = scmp.lt.s32.totalorder %s68_s25, %s68_s25 }
  0x42   :  { %p10548_p13 = scmp.ne.s32.totalorder %s68_s25, %s10547_s3  ;;  %p10553_p1 = scmp.lt.s32.totalorder %s10547_s3, %s10547_s3 }
  0x44   :  { %p10554_p2 = por %p10553_p1, %p10552_p0 }
  0x46   :  { %p10555_p3 = pnand %p10554_p2, %p10548_p13 }
  0x48   :  { %10558 = shalt.err (!%p10555_p3)
}
  0x49   :  { %73 = dma.hbm_to_vmem [thread:$0]  %s12150_s8, 20480, %s68_s25, [#allocation5], %s10612_s1, %s10612_s1, %s10613_s20  }
  0x4a   :  { %s10559_s19 = scalar_lea.hbm %s12154_s12, 20480 }
  0x4b   :  { %p10560_p4 = scmp.ne.s32.totalorder %s12154_s12, %s10559_s19  ;;  %p10563_p5 = scmp.lt.u32.totalorder %s10559_s19, %s12154_s12 }
  0x4d   :  { %p10565_p6 = pnand %p10563_p5, %p10560_p4 }
  0x4f   :  { %10568 = shalt.err (!%p10565_p6)
}
  0x50   :  { %s10569_s26 = scalar_lea.vmem %s96_s22, 20480  ;;  %p10574_p8 = scmp.lt.s32.totalorder %s96_s22, %s96_s22 }
  0x51   :  { %p10570_p7 = scmp.ne.s32.totalorder %s96_s22, %s10569_s26  ;;  %p10575_p9 = scmp.lt.s32.totalorder %s10569_s26, %s10569_s26 }
  0x53   :  { %p10576_p10 = por %p10575_p9, %p10574_p8 }
  0x55   :  { %p10577_p11 = pnand %p10576_p10, %p10570_p7 }
  0x57   :  { %10580 = shalt.err (!%p10577_p11)
}
  0x58   :  { %101 = dma.hbm_to_vmem [thread:$0]  %s12154_s12, 20480, %s96_s22, [#allocation8], %s10612_s1, %s10612_s1, %s10613_s20  }
  0x59   :  { %s10620_s28 = smov [#allocation10]   ;;  %s10581_s3 = scalar_lea.hbm %s12156_s14, 20480 }
  0x5a   :  { %s109_s29 = sshll.u32 %s10620_s28, 4  ;;  %p10582_p12 = scmp.ne.s32.totalorder %s12156_s14, %s10581_s3  ;;  %s110_s29 = int_to_ptr.vmem [resolvable:$true] %s109_s29 }
  0x5b   :  { %p10585_p13 = scmp.lt.u32.totalorder %s10581_s3, %s12156_s14 }
  0x5d   :  { %p10587_p0 = pnand %p10585_p13, %p10582_p12 }
  0x5f   :  { %10590 = shalt.err (!%p10587_p0)
}
  0x60   :  { %s10591_s19 = scalar_lea.vmem %s110_s29, 20480  ;;  %p10596_p2 = scmp.lt.s32.totalorder %s110_s29, %s110_s29 }
  0x61   :  { %p10592_p1 = scmp.ne.s32.totalorder %s110_s29, %s10591_s19  ;;  %p10597_p3 = scmp.lt.s32.totalorder %s10591_s19, %s10591_s19 }
  0x63   :  { %p10598_p4 = por %p10597_p3, %p10596_p2 }
  0x65   :  { %p10599_p5 = pnand %p10598_p4, %p10592_p1 }
  0x67   :  { %10602 = shalt.err (!%p10599_p5)
}
  0x68   :  { %115 = dma.hbm_to_vmem [thread:$0]  %s12156_s14, 20480, %s110_s29, [#allocation11], %s10612_s1, %s10612_s1, %s10613_s20  }
  0x69   :  { %10603 = dma.done.wait [#allocation3], 5120  }
  0x6a   :  { %10604 = vsyncadd [#allocation3], 4294962176 }
  0x6b   :  { %10605 = dma.done.wait [#allocation5], 30720  }
  0x6c   :  { %10606 = vsyncadd [#allocation5], 4294936576 }
  0x6d   :  { %10607 = dma.done.wait [#allocation8], 40960  }
  0x6e   :  { %10608 = vsyncadd [#allocation8], 4294926336 }
  0x6f   :  { %10609 = dma.done.wait [#allocation11], 20480  }
  0x70   :  { %10610 = vsyncadd [#allocation11], 4294946816  ;;  %v10621_v0 = vmov 0   ;;  %v9263_v1 = vld [vmem:[%s12149_s7 + $0x4] ss:$8 sps:$4 sm:$0xff]   ;;  %s12165_s18 = sld [smem:[#allocation16_spill]] }
  0x71   :  { %311 = vmatprep.mubr.bf16.mxu1 %v10621_v0  ;;  %v9265_v2 = vld [vmem:[%s12149_s7] ss:$8 sps:$4 sm:$0xff]   ;;  %279 = vmatprep.subr.bf16.mxu1 %v9263_v1  ;;  %v9266_v3 = vld [vmem:[%s12149_s7 + $0x14] ss:$8 sps:$4 sm:$0xff]   ;;  %v9268_v4 = vld [vmem:[%s12149_s7 + $0x10] ss:$8 sps:$4 sm:$0xff]  }
  0x72   :  { %280 = vmatpush1.bf16.msra.mxu1 %v9265_v2  ;;  %v9269_v5 = vld [vmem:[%s12149_s7 + $0x24] ss:$8 sps:$4 sm:$0xff]   ;;  %v9271_v6 = vld [vmem:[%s12149_s7 + $0x20] ss:$8 sps:$4 sm:$0xff]   ;;  %v9272_v7 = vld [vmem:[%s12149_s7 + $0x34] ss:$8 sps:$4 sm:$0xff]  }
  0x73   :  { %281 = vmatprep.subr.bf16.mxu1 %v9266_v3  ;;  %v9274_v8 = vld [vmem:[%s12149_s7 + $0x30] ss:$8 sps:$4 sm:$0xff]   ;;  %v9275_v10 = vld [vmem:[%s12149_s7 + $0x44] ss:$8 sps:$4 sm:$0xff]   ;;  %s12166_s21 = sld [smem:[#allocation17_spill]]  ;;  %vm350_vm4 = vcmask 1043456  }
  0x74   :  { %v10838_v14 = vld [vmem:[%s12144_s2] ss:$0 sm:$0xff]  ;;  %v9278_v22 = vld [vmem:[%s12149_s7 + $0x54] ss:$8 sps:$4 sm:$0xff]   ;;  %v9280_v23 = vld [vmem:[%s12149_s7 + $0x50] ss:$8 sps:$4 sm:$0xff]  }
  0x75   :  { %v9288_v17 = vld [vmem:[#allocation2 + $0xc0] sm:$0xff]   ;;  %v9292_v26 = vld [vmem:[#allocation2 + $0xc8] sm:$0xff]   ;;  %v9296_v36 = vld [vmem:[#allocation2 + $0xd0] sm:$0xff]   ;;  %vm358_vm5 = vsmask.f32 7424  ;;  %vm418_vm7 = vcmask 1044480  }
  0x76   :  { %282 = vmatpush1.bf16.msra.mxu1 %v9268_v4  ;;  %v8970_v9 = vld [vmem:[%s12165_s18] sm:$0xff]   ;;  %9006 = vmatprep.subr.bf16.mxu0 %v9288_v17  ;;  %v9294_v33 = vld [vmem:[#allocation2 + $0x88] sm:$0xff]   ;;  %v9284_v37 = vld [vmem:[%s12149_s7 + $0x74] ss:$8 sps:$4 sm:$0xff]   ;;  %vm396_vm6 = vsmask.f32 6400 }
  0x77   :  { %283 = vmatprep.subr.bf16.mxu1 %v9269_v5  ;;  %v8971_v11 = vunpack.c.l.bf16 %v8970_v9  ;;  %v8972_v12 = vunpack.c.h.bf16 %v8970_v9  ;;  %v9277_v18 = vld [vmem:[%s12149_s7 + $0x40] ss:$8 sps:$4 sm:$0xff]   ;;  %v9281_v27 = vld [vmem:[%s12149_s7 + $0x64] ss:$8 sps:$4 sm:$0xff]   ;;  %v9286_v39 = vld [vmem:[%s12149_s7 + $0x70] ss:$8 sps:$4 sm:$0xff]  }
  0x78   :  { %v9290_v21 = vld [vmem:[#allocation2 + $0x80] sm:$0xff]   ;;  %v9298_v40 = vld [vmem:[#allocation2 + $0x90] sm:$0xff]   ;;  %v9300_v42 = vld [vmem:[#allocation2 + $0xd8] sm:$0xff]   ;;  %vm389_vm10 = vcmask 1046528   ;;  %vm411_vm13 = vcmask 1045504   ;;  %s12167_s29 = sld [smem:[#allocation18_spill]] }
  0x79   :  { %v10833_v13 = vld [vmem:[%s12166_s21] ss:$0 sm:$0xff]  ;;  %9007 = vmatpush3.bf16.msra.mxu0 %v9290_v21  ;;  %v9302_v46 = vld [vmem:[#allocation2 + $0x98] sm:$0xff]   ;;  %v9291_v49 = vld [vmem:[#allocation2 + $0x48] sm:$0xff]  }
  0x7a   :  { %284 = vmatpush1.bf16.msra.mxu1 %v9271_v6  ;;  %v154_v15 = vmul.f32 %v8971_v11, %v10833_v13  ;;  %v155_v16 = vmul.f32 %v8972_v12, %v10833_v13  ;;  %9008 = vmatprep.subr.bf16.mxu0 %v9292_v26  ;;  %v9283_v31 = vld [vmem:[%s12149_s7 + $0x60] ss:$8 sps:$4 sm:$0xff]   ;;  %v9295_v61 = vld [vmem:[#allocation2 + $0x50] sm:$0xff]   ;;  %v9299_v6 = vld [vmem:[#allocation2 + $0x58] sm:$0xff]  }
  0x7b   :  { %285 = vmatprep.subr.bf16.mxu1 %v9272_v7  ;;  %v9287_v44 = vld [vmem:[#allocation2 + $0x40] sm:$0xff]   ;;  %v9293_v56 = vld [vmem:[#allocation2 + $0x8] sm:$0xff]   ;;  %v9297_v62 = vld [vmem:[#allocation2 + $0x10] sm:$0xff]  }
  0x7c   :  { %v165_v19 = vadd.f32 %v10838_v14, %v154_v15  ;;  %v166_v20 = vadd.f32 %v10838_v14, %v155_v16  ;;  %v9289_v45 = vld [vmem:[#allocation2] sm:$0xff]   ;;  %v9308_v58 = vld [vmem:[#allocation2 + $0xe8] sm:$0xff]   ;;  %v9301_v17 = vld [vmem:[#allocation2 + $0x18] sm:$0xff]  }
  0x7d   :  { %9009 = vmatpush3.bf16.msra.mxu0 %v9294_v33  ;;  %v9304_v50 = vld [vmem:[#allocation2 + $0xe0] sm:$0xff]   ;;  %v9310_v63 = vld [vmem:[#allocation2 + $0xa8] sm:$0xff]   ;;  %v9318_v33 = vld [vmem:[#allocation2 + $0xb8] sm:$0xff]  }
  0x7e   :  { %286 = vmatpush1.bf16.msra.mxu1 %v9274_v8  ;;  %vm169_vm0 = vcmp.ge.f32.partialorder %v165_v19, 0.0  ;;  %vm170_vm1 = vcmp.ge.f32.partialorder %v166_v20, 0.0  ;;  %v173_v24 = vmul.f32 0.2, %v165_v19  ;;  %v174_v25 = vmul.f32 0.2, %v166_v20  ;;  %9010 = vmatprep.subr.bf16.mxu0 %v9296_v36 }
  0x7f   :  { %287 = vmatprep.subr.bf16.mxu1 %v9275_v10  ;;  %v9306_v54 = vld [vmem:[#allocation2 + $0xa0] sm:$0xff]   ;;  %v8977_v1 = vld [vmem:[%s12165_s18 + $0x8] sm:$0xff]   ;;  %v9312_v10 = vld [vmem:[#allocation2 + $0xf0] sm:$0xff]  }
  0x80   :  { %v177_v28 = vsel %vm169_vm0, %v165_v19, %v173_v24  ;;  %v178_v29 = vsel %vm170_vm1, %v166_v20, %v174_v25  ;;  %v8975_v7 = vunpack.c.l.bf16 %v8977_v1  ;;  %v8976_v8 = vunpack.c.h.bf16 %v8977_v1  ;;  %v9303_v21 = vld [vmem:[#allocation2 + $0x60] sm:$0xff]   ;;  %v9316_v25 = vld [vmem:[#allocation2 + $0xf8] sm:$0xff]  }
  0x81   :  { %vm332_vm2 = vcmp.ge.f32.partialorder %v177_v28, 0.0  ;;  %vm333_vm3 = vcmp.ge.f32.partialorder %v178_v29, 0.0  ;;  %v336_v30 = vmul.f32 0.2, %v177_v28  ;;  %v337_v32 = vmul.f32 0.2, %v178_v29  ;;  %9011 = vmatpush3.bf16.msra.mxu0 %v9298_v40 }
  0x82   :  { %288 = vmatpush1.bf16.msra.mxu1 %v9277_v18  ;;  %9012 = vmatprep.subr.bf16.mxu0 %v9300_v42  ;;  %v181_v48 = vpack.c.bf16 %v178_v29, %v177_v28  ;;  %v156_v11 = vmul.f32 %v8975_v7, %v10833_v13  ;;  %v157_v12 = vmul.f32 %v8976_v8, %v10833_v13  ;;  %v9314_v18 = vld [vmem:[#allocation2 + $0xb0] sm:$0xff]  }
  0x83   :  { %289 = vmatprep.subr.bf16.mxu1 %v9278_v22  ;;  %v340_v34 = vsel %vm332_vm2, %v177_v28, %v336_v30  ;;  %v341_v35 = vsel %vm333_vm3, %v178_v29, %v337_v32 }
  0x84   :  { %v344_v38 = vpack.c.bf16 %v341_v35, %v340_v34  ;;  %v167_v22 = vadd.f32 %v10838_v14, %v156_v11 }
  0x85   :  { %9013 = vmatpush3.bf16.msra.mxu0 %v9302_v46 }
  0x86   :  { %290 = vmatpush1.bf16.msra.mxu1 %v9280_v23  ;;  %v348_v41 = vrot.slane %v344_v38, 4  ;;  %9014 = vmatprep.subr.bf16.mxu0 %v9304_v50  ;;  %v168_v23 = vadd.f32 %v10838_v14, %v157_v12  ;;  %vm171_vm8 = vcmp.ge.f32.partialorder %v167_v22, 0.0  ;;  %v175_v13 = vmul.f32 0.2, %v167_v22  ;;  %v9305_v14 = vld [vmem:[#allocation2 + $0x20] sm:$0xff]   ;;  %v9307_v38 = vld [vmem:[#allocation2 + $0x68] sm:$0xff]  }
  0x87   :  { %291 = vmatprep.subr.bf16.mxu1 %v9281_v27 }
  0x88   :  { %v10866_v43 = vsel %vm350_vm4, 0, %v348_v41  ;;  %v10869_v47 = vsel %vm350_vm4, %v348_v41, 0  ;;  %vm172_vm9 = vcmp.ge.f32.partialorder %v168_v23, 0.0  ;;  %v176_v27 = vmul.f32 0.2, %v168_v23 }
  0x89   :  { %v361_v51 = vshll.u32 %v10866_v43, 16  ;;  %v359_v52 = vshrl.u32 %v10866_v43, 16  ;;  %v365_v53 = vshll.u32 %v10869_v47, 16  ;;  %9015 = vmatpush3.bf16.msra.mxu0 %v9306_v54  ;;  %v369_v60 = vshrl.u32 %v10869_v47, 16  ;;  %v9313_v54 = vld [vmem:[#allocation2 + $0x30] sm:$0xff]  }
  0x8a   :  { %292 = vmatpush1.bf16.msra.mxu1 %v9283_v31  ;;  %9016 = vmatprep.subr.bf16.mxu0 %v9308_v58  ;;  %v390_v26 = vrot.slane %v10866_v43, 1  ;;  %v179_v31 = vsel %vm171_vm8, %v167_v22, %v175_v13  ;;  %v180_v32 = vsel %vm172_vm9, %v168_v23, %v176_v27  ;;  %v391_v35 = vrot.slane %v10869_v47, 1 }
  0x8b   :  { %293 = vmatprep.subr.bf16.mxu1 %v9284_v37  ;;  %v363_v55 = vrot.slane %v361_v51, 1  ;;  %v367_v57 = vrot.slane %v365_v53, 1  ;;  %v397_v4 = vrot.slane %v359_v52, 1  ;;  %v398_v5 = vrot.slane %v361_v51, 2  ;;  %v9311_v51 = vld [vmem:[#allocation2 + $0x70] sm:$0xff]  }
  0x8c   :  { %v400_v9 = vrot.slane %v369_v60, 1  ;;  %v401_v16 = vrot.slane %v365_v53, 2  ;;  %v182_v36 = vpack.c.bf16 %v180_v32, %v179_v31  ;;  %vm334_vm11 = vcmp.ge.f32.partialorder %v179_v31, 0.0 }
  0x8d   :  { %v364_v59 = vor.u32 %v363_v55, %v359_v52  ;;  %v371_v3 = vor.u32 %v369_v60, %v367_v57  ;;  %9017 = vmatpush3.bf16.msra.mxu0 %v9310_v63  ;;  %v399_v20 = vor.u32 %v398_v5, %v397_v4  ;;  %vm335_vm12 = vcmp.ge.f32.partialorder %v180_v32, 0.0  ;;  %v9315_v55 = vld [vmem:[#allocation2 + $0x78] sm:$0xff]  }
  0x8e   :  { %294 = vmatpush1.bf16.msra.mxu1 %v9286_v39  ;;  %9018 = vmatprep.subr.bf16.mxu0 %v9312_v10  ;;  %v402_v24 = vor.u32 %v401_v16, %v400_v9  ;;  %v338_v37 = vmul.f32 0.2, %v179_v31  ;;  %v339_v39 = vmul.f32 0.2, %v180_v32  ;;  %v392_v41 = vsel %vm389_vm10, %v390_v26, %v391_v35 }
  0x8f   :  { %8978 = vmatprep.subr.bf16.mxu1 %v9287_v44  ;;  %v368_v2 = vsel %vm358_vm5, %v364_v59, %v367_v57  ;;  %v423_v19 = vrot.slane %v371_v3, 3  ;;  %v426_v42 = vrot.slane %v391_v35, 3  ;;  %v420_v7 = vrot.slane %v10869_v47, 3 }
  0x90   :  { %v422_v15 = vrot.slane %v368_v2, 3  ;;  %v403_v29 = vsel %vm396_vm6, %v399_v20, %v402_v24  ;;  %v429_v30 = vrot.slane %v402_v24, 3  ;;  %v342_v44 = vsel %vm334_vm11, %v179_v31, %v338_v37  ;;  %v9319_v2 = vld [vmem:[#allocation2 + $0x100] sm:$0xff]  }
  0x91   :  { %312 = vmatmul.mubr.bf16.vlgmr.msra.gmra.mrb[0].mxu1 %v181_v48  ;;  %9019 = vmatpush3.bf16.msra.mxu0 %v9314_v18  ;;  %v428_v34 = vrot.slane %v403_v29, 3  ;;  %v343_v46 = vsel %vm335_vm12, %v180_v32, %v339_v39  ;;  %v9309_v48 = vld [vmem:[#allocation2 + $0x28] sm:$0xff]   ;;  %v413_v18 = vrot.slane %v10869_v47, 2  ;;  %v9321_v47 = vld [vmem:[#allocation2 + $0x110] sm:$0xff]   ;;  %v9323_v37 = vld [vmem:[#allocation2 + $0x120] sm:$0xff]  }
  0x92   :  { %8979 = vmatpush3.bf16.msra.mxu1 %v9289_v45  ;;  %321 = vmatprep.mubr.bf16.mxu1 %v10621_v0  ;;  %v424_v28 = vsel %vm418_vm7, %v422_v15, %v423_v19  ;;  %v425_v45 = vrot.slane %v392_v41, 3  ;;  %v9320_v19 = vld [vmem:[#allocation2 + $0x108] sm:$0xff]   ;;  %v9325_v39 = vld [vmem:[#allocation2 + $0x130] sm:$0xff]  }
  0x93   :  { %8980 = vmatprep.subr.bf16.mxu1 %v9291_v49  ;;  %9020 = vmatprep.subr.bf16.mxu0 %v9316_v25  ;;  %v430_v40 = vsel %vm418_vm7, %v428_v34, %v429_v30  ;;  %v345_v49 = vpack.c.bf16 %v343_v46, %v342_v44  ;;  %v9322_v34 = vld [vmem:[#allocation2 + $0x118] sm:$0xff]  }
  0x94   :  { %860 = vmatprep.mubr.bf16.mxu0 %v430_v40  ;;  %v427_v50 = vsel %vm418_vm7, %v425_v45, %v426_v42  ;;  %v9326_v42 = vld [vmem:[#allocation2 + $0x138] sm:$0xff]  }
  0x95   :  { %9021 = vmatpush3.bf16.msra.mxu0 %v9318_v33  ;;  %v349_v52 = vrot.slane %v345_v49, 4  ;;  %v432_v33 = vrot.slane %v413_v18, 3  ;;  %v9327_v49 = vld [vmem:[#allocation4] ss:$8 sps:$4 sm:$0xff]  }
  0x96   :  { %8981 = vmatpush3.bf16.msra.mxu1 %v9293_v56 }
  0x97   :  { %8982 = vmatprep.subr.bf16.mxu1 %v9295_v61  ;;  %v10892_v53 = vsel %vm350_vm4, 0, %v349_v52  ;;  %v10895_v56 = vsel %vm350_vm4, %v349_v52, 0  ;;  %v9317_v61 = vld [vmem:[#allocation2 + $0x38] sm:$0xff]  }
  0x98   :  { %861 = vmatmul.mubr.bf16.vlgmr.msra.gmra.mrb[0].mxu0 %v427_v50  ;;  %v372_v57 = vshrl.u32 %v10892_v53, 16  ;;  %v374_v58 = vshll.u32 %v10892_v53, 16  ;;  %v378_v59 = vshll.u32 %v10895_v56, 16  ;;  %v382_v60 = vshrl.u32 %v10895_v56, 16  ;;  %v9329_v50 = vld [vmem:[#allocation4 + $0x4] ss:$8 sps:$4 sm:$0xff]  }
  0x99   :  { %322 = vmatmul.mubr.bf16.gmra.mrb[4].mxu1 %v182_v36  ;;  %v393_v63 = vrot.slane %v10892_v53, 1  ;;  %v394_v1 = vrot.slane %v10895_v56, 1  ;;  %v435_v31 = vrot.slane %v10895_v56, 3  ;;  %v415_v40 = vrot.slane %v10892_v53, 2  ;;  %v9332_v52 = vld [vmem:[#allocation4 + $0x14] ss:$8 sps:$4 sm:$0xff]   ;;  %1537 = vmatprep.subr.bf16.mxu0 %v9329_v50 }
  0x9a   :  { %8983 = vmatpush3.bf16.msra.mxu1 %v9297_v62  ;;  %811 = vmatprep.mubr.bf16.mxu1 %v424_v28  ;;  %v419_v62 = vrot.slane %v10866_v43, 3  ;;  %v376_v3 = vrot.slane %v374_v58, 1  ;;  %v380_v4 = vrot.slane %v378_v59, 1  ;;  %v404_v5 = vrot.slane %v372_v57, 1 }
  0x9b   :  { %8984 = vmatprep.subr.bf16.mxu1 %v9299_v6  ;;  %v405_v6 = vrot.slane %v374_v58, 2  ;;  %v407_v8 = vrot.slane %v382_v60, 1  ;;  %v408_v9 = vrot.slane %v378_v59, 2  ;;  %v395_v10 = vsel %vm389_vm10, %v393_v63, %v394_v1  ;;  %1538 = vmatpush1.bf16.msra.mxu0 %v9327_v49  ;;  %v9339_v58 = vld [vmem:[#allocation4 + $0x40] ss:$8 sps:$4 sm:$0xff]  }
  0x9c   :  { %v377_v11 = vor.u32 %v376_v3, %v372_v57  ;;  %v384_v12 = vor.u32 %v382_v60, %v380_v4  ;;  %v440_v22 = vrot.slane %v395_v10, 3  ;;  %v441_v23 = vrot.slane %v394_v1, 3  ;;  %1539 = vmatprep.subr.bf16.mxu0 %v9332_v52  ;;  %v9341_v57 = vld [vmem:[#allocation4 + $0x44] ss:$8 sps:$4 sm:$0xff]   ;;  %v9344_v59 = vld [vmem:[#allocation4 + $0x54] ss:$8 sps:$4 sm:$0xff]  }
  0x9d   :  { %v406_v15 = vor.u32 %v405_v6, %v404_v5  ;;  %v409_v16 = vor.u32 %v408_v9, %v407_v8  ;;  %v421_v24 = vsel %vm418_vm7, %v419_v62, %v420_v7  ;;  %v416_v41 = vrot.slane %v10895_v56, 2  ;;  %v9338_v56 = vld [vmem:[#allocation4 + $0x34] ss:$8 sps:$4 sm:$0xff]   ;;  %v9342_v60 = vld [vmem:[#allocation4 + $0x50] ss:$8 sps:$4 sm:$0xff]  }
  0x9e   :  { %8985 = vmatpush3.bf16.msra.mxu1 %v9301_v17  ;;  %v412_v17 = vrot.slane %v10866_v43, 2  ;;  %v381_v20 = vsel %vm358_vm5, %v377_v11, %v380_v4  ;;  %v442_v30 = vsel %vm418_vm7, %v440_v22, %v441_v23  ;;  %v9345_v62 = vld [vmem:[#allocation4 + $0x60] ss:$8 sps:$4 sm:$0xff]   ;;  %v9350_v63 = vld [vmem:[#allocation4 + $0x74] ss:$8 sps:$4 sm:$0xff]  }
  0x9f   :  { %8986 = vmatprep.subr.bf16.mxu1 %v9303_v21  ;;  %v438_v21 = vrot.slane %v384_v12, 3  ;;  %v437_v25 = vrot.slane %v381_v20, 3  ;;  %v410_v26 = vsel %vm396_vm6, %v406_v15, %v409_v16  ;;  %v444_v13 = vrot.slane %v409_v16, 3  ;;  %v9348_v1 = vld [vmem:[#allocation4 + $0x70] ss:$8 sps:$4 sm:$0xff]  }
  0xa0   :  { %v443_v27 = vrot.slane %v410_v26, 3  ;;  %v414_v43 = vsel %vm411_vm13, %v412_v17, %v413_v18  ;;  %v417_v44 = vsel %vm411_vm13, %v415_v40, %v416_v41  ;;  %v447_v46 = vrot.slane %v416_v41, 3  ;;  %v9351_v3 = vld [vmem:[#allocation4 + $0x80] ss:$8 sps:$4 sm:$0xff]   ;;  %v9356_v4 = vld [vmem:[#allocation4 + $0x94] ss:$8 sps:$4 sm:$0xff]  }
  0xa1   :  { %v439_v28 = vsel %vm418_vm7, %v437_v25, %v438_v21  ;;  %v431_v32 = vrot.slane %v414_v43, 3  ;;  %v446_v45 = vrot.slane %v417_v44, 3  ;;  %v9354_v5 = vld [vmem:[#allocation4 + $0x90] ss:$8 sps:$4 sm:$0xff]   ;;  %v9359_v6 = vld [vmem:[#allocation4 + $0xa4] ss:$8 sps:$4 sm:$0xff]  }
  0xa2   :  { %8987 = vmatpush3.bf16.msra.mxu1 %v9305_v14  ;;  %v445_v29 = vsel %vm418_vm7, %v443_v27, %v444_v13  ;;  %v434_v14 = vrot.slane %v10892_v53, 3  ;;  %v9335_v53 = vld [vmem:[#allocation4 + $0x24] ss:$8 sps:$4 sm:$0xff]   ;;  %v9357_v7 = vld [vmem:[#allocation4 + $0xa0] ss:$8 sps:$4 sm:$0xff]  }
  0xa3   :  { %8988 = vmatprep.subr.bf16.mxu1 %v9307_v38  ;;  %868 = vmatprep.mubr.bf16.mxu0 %v445_v29  ;;  %v433_v36 = vsel %vm418_vm7, %v431_v32, %v432_v33  ;;  %v9324_v38 = vld [vmem:[#allocation2 + $0x128] sm:$0xff]   ;;  %v9362_v8 = vld [vmem:[#allocation4 + $0xb4] ss:$8 sps:$4 sm:$0xff]   ;;  %v9360_v9 = vld [vmem:[#allocation4 + $0xb0] ss:$8 sps:$4 sm:$0xff]  }
  0xa4   :  { %869 = vmatmul.mubr.bf16.gmra.mrb[4].mxu0 %v442_v30  ;;  %v436_v35 = vsel %vm418_vm7, %v434_v14, %v435_v31  ;;  %v9365_v10 = vld [vmem:[#allocation4 + $0xc4] ss:$8 sps:$4 sm:$0xff]   ;;  %v9363_v11 = vld [vmem:[#allocation4 + $0xc0] ss:$8 sps:$4 sm:$0xff]   ;;  %v9368_v12 = vld [vmem:[#allocation4 + $0xd4] ss:$8 sps:$4 sm:$0xff]  }
  0xa5   :  { %v9366_v15 = vld [vmem:[#allocation4 + $0xd0] ss:$8 sps:$4 sm:$0xff]   ;;  %v9369_v16 = vld [vmem:[#allocation4 + $0xe0] ss:$8 sps:$4 sm:$0xff]   ;;  %v9371_v17 = vld [vmem:[#allocation4 + $0xe4] ss:$8 sps:$4 sm:$0xff]  }
  0xa6   :  { %8989 = vmatpush3.bf16.msra.mxu1 %v9309_v48  ;;  %v448_v48 = vsel %vm418_vm7, %v446_v45, %v447_v46  ;;  %v9374_v18 = vld [vmem:[#allocation4 + $0xf4] ss:$8 sps:$4 sm:$0xff]   ;;  %v9377_v20 = vld [vmem:[#allocation4 + $0x104] ss:$8 sps:$4 sm:$0xff]  }
  0xa7   :  { %8990 = vmatprep.subr.bf16.mxu1 %v9311_v51  ;;  %v9330_v51 = vld [vmem:[#allocation4 + $0x10] ss:$8 sps:$4 sm:$0xff]  }
  0xa8   :  { %1540 = vmatpush1.bf16.msra.mxu0 %v9330_v51 }
  0xa9   :  { %1541 = vmatprep.subr.bf16.mxu0 %v9335_v53 }
  0xaa   :  { %8991 = vmatpush3.bf16.msra.mxu1 %v9313_v54  ;;  %v9333_v54 = vld [vmem:[#allocation4 + $0x20] ss:$8 sps:$4 sm:$0xff]  }
  0xab   :  { %8992 = vmatprep.subr.bf16.mxu1 %v9315_v55  ;;  %v9336_v55 = vld [vmem:[#allocation4 + $0x30] ss:$8 sps:$4 sm:$0xff]  }
  0xac   :  { %1542 = vmatpush1.bf16.msra.mxu0 %v9333_v54 }
  0xad   :  { %1543 = vmatprep.subr.bf16.mxu0 %v9338_v56 }
  0xae   :  { %8993 = vmatpush3.bf16.msra.mxu1 %v9317_v61  ;;  %v9347_v61 = vld [vmem:[#allocation4 + $0x64] ss:$8 sps:$4 sm:$0xff]  }
  0xaf   :  { %9072 = vmatprep.subr.bf16.mxu1 %v9319_v2 }
  0xb0   :  { %1544 = vmatpush1.bf16.msra.mxu0 %v9336_v55  ;;  %v8200_v55 = vld [vmem:[%s12146_s4] ss:$0 sm:$0xff] }
  0xb1   :  { %812 = vmatmul.mubr.bf16.vlgmr.msra.gmra.mrb[8].mxu1 %v421_v24  ;;  %1545 = vmatprep.subr.bf16.mxu0 %v9341_v57 }
  0xb2   :  { %9073 = vmatpush3.bf16.msra.mxu1 %v9319_v2  ;;  %819 = vmatprep.mubr.bf16.mxu1 %v439_v28  ;;  %v9353_v2 = vld [vmem:[#allocation4 + $0x84] ss:$8 sps:$4 sm:$0xff]  }
  0xb3   :  { %9074 = vmatprep.subr.bf16.mxu1 %v9320_v19 }
  0xb4   :  { %1546 = vmatpush1.bf16.msra.mxu0 %v9339_v58 }
  0xb5   :  { %1547 = vmatprep.subr.bf16.mxu0 %v9344_v59 }
  0xb6   :  { %9075 = vmatpush3.bf16.msra.mxu1 %v9320_v19  ;;  %v9372_v19 = vld [vmem:[#allocation4 + $0xf0] ss:$8 sps:$4 sm:$0xff]  }
  0xb7   :  { %9076 = vmatprep.subr.bf16.mxu1 %v9321_v47 }
  0xb8   :  { %1548 = vmatpush1.bf16.msra.mxu0 %v9342_v60 }
  0xb9   :  { %820 = vmatmul.mubr.bf16.gmra.mrb[12].mxu1 %v436_v35  ;;  %1549 = vmatprep.subr.bf16.mxu0 %v9347_v61 }
  0xba   :  { %9077 = vmatpush3.bf16.msra.mxu1 %v9321_v47  ;;  %9088 = vmatprep.mubr.bf16.mxu1 %v433_v36 }
  0xbb   :  { %9078 = vmatprep.subr.bf16.mxu1 %v9322_v34 }
  0xbc   :  { %1550 = vmatpush1.bf16.msra.mxu0 %v9345_v62 }
  0xbd   :  { %1551 = vmatprep.subr.bf16.mxu0 %v9350_v63 }
  0xbe   :  { %9079 = vmatpush3.bf16.msra.mxu1 %v9322_v34 }
  0xbf   :  { %9080 = vmatprep.subr.bf16.mxu1 %v9323_v37 }
  0xc0   :  { %1552 = vmatpush1.bf16.msra.mxu0 %v9348_v1  ;;  %v9447_v1 = vld [vmem:[#allocation6] ss:$8 sps:$4 sm:$0xff]  }
  0xc1   :  { %1553 = vmatprep.subr.bf16.mxu0 %v9353_v2  ;;  %v9449_v2 = vld [vmem:[#allocation6 + $0x4] ss:$8 sps:$4 sm:$0xff]  }
  0xc2   :  { %9081 = vmatpush3.bf16.msra.mxu1 %v9323_v37 }
  0xc3   :  { %9082 = vmatprep.subr.bf16.mxu1 %v9324_v38 }
  0xc4   :  { %1554 = vmatpush1.bf16.msra.mxu0 %v9351_v3 }
  0xc5   :  { %1555 = vmatprep.subr.bf16.mxu0 %v9356_v4 }
  0xc6   :  { %9083 = vmatpush3.bf16.msra.mxu1 %v9324_v38 }
  0xc7   :  { %9084 = vmatprep.subr.bf16.mxu1 %v9325_v39 }
  0xc8   :  { %1556 = vmatpush1.bf16.msra.mxu0 %v9354_v5  ;;  %v9452_v5 = vld [vmem:[#allocation6 + $0x14] ss:$8 sps:$4 sm:$0xff]  }
  0xc9   :  { %1557 = vmatprep.subr.bf16.mxu0 %v9359_v6 }
  0xca   :  { %9085 = vmatpush3.bf16.msra.mxu1 %v9325_v39 }
  0xcb   :  { %9086 = vmatprep.subr.bf16.mxu1 %v9326_v42 }
  0xcc   :  { %1558 = vmatpush1.bf16.msra.mxu0 %v9357_v7 }
  0xcd   :  { %1559 = vmatprep.subr.bf16.mxu0 %v9362_v8  ;;  %v9450_v8 = vld [vmem:[#allocation6 + $0x10] ss:$8 sps:$4 sm:$0xff]  }
  0xce   :  { %9087 = vmatpush3.bf16.msra.mxu1 %v9326_v42 }
  0xcf   :  { %2932 = vmatprep.subr.bf16.mxu1 %v9449_v2  ;;  %v9467_v2 = vld [vmem:[#allocation6 + $0x64] ss:$8 sps:$4 sm:$0xff]  }
  0xd0   :  { %1560 = vmatpush1.bf16.msra.mxu0 %v9360_v9 }
  0xd1   :  { %9089 = vmatmul.mubr.bf16.vlgmr.msra.gmra.mrb[16].mxu1 %v448_v48  ;;  %1561 = vmatprep.subr.bf16.mxu0 %v9365_v10 }
  0xd2   :  { %2933 = vmatpush1.bf16.msra.mxu1 %v9447_v1 }
  0xd3   :  { %2934 = vmatprep.subr.bf16.mxu1 %v9452_v5  ;;  %v9375_v5 = vld [vmem:[#allocation4 + $0x100] ss:$8 sps:$4 sm:$0xff]  }
  0xd4   :  { %1562 = vmatpush1.bf16.msra.mxu0 %v9363_v11  ;;  %v9455_v11 = vld [vmem:[#allocation6 + $0x24] ss:$8 sps:$4 sm:$0xff]  }
  0xd5   :  { %1563 = vmatprep.subr.bf16.mxu0 %v9368_v12 }
  0xd6   :  { %2935 = vmatpush1.bf16.msra.mxu1 %v9450_v8 }
  0xd7   :  { %2936 = vmatprep.subr.bf16.mxu1 %v9455_v11 }
  0xd8   :  { %1564 = vmatpush1.bf16.msra.mxu0 %v9366_v15 }
  0xd9   :  { %1565 = vmatprep.subr.bf16.mxu0 %v9371_v17 }
  0xdc   :  { %1566 = vmatpush1.bf16.msra.mxu0 %v9369_v16 }
  0xdd   :  { %1567 = vmatprep.subr.bf16.mxu0 %v9374_v18 }
  0xe0   :  { %1568 = vmatpush1.bf16.msra.mxu0 %v9372_v19 }
  0xe1   :  { %1590 = vmatprep.subr.bf16.mxu0 %v9377_v20 }
 0x164   :  { %v10923_v21 = vpop.f32.mrb[0].mxu1 }
 0x165   :  { %v10925_v22 = vpop.f32.mrb[1].mxu1 }
 0x166   :  { %v10927_v23 = vpop.f32.mrb[2].mxu1 }
 0x167   :  { %v10929_v24 = vpop.f32.mrb[3].mxu1 }
 0x16b   :  { %v9022_v28 = vpop.f32.mrb[0].mxu0 }
 0x16c   :  { %v10931_v25 = vpop.f32.mrb[4].mxu1  ;;  %v9023_v43 = vpop.f32.mrb[1].mxu0 }
 0x16d   :  { %v10933_v26 = vpop.f32.mrb[5].mxu1  ;;  %v9024_v47 = vadd.f32 %v9023_v43, %v9022_v28  ;;  %v9025_v29 = vpop.f32.mrb[2].mxu0  ;;  %v9453_v28 = vld [vmem:[#allocation6 + $0x20] ss:$8 sps:$4 sm:$0xff]  }
 0x16e   :  { %v10935_v13 = vpop.f32.mrb[6].mxu1  ;;  %v9026_v30 = vpop.f32.mrb[3].mxu0  ;;  %2937 = vmatpush1.bf16.msra.mxu1 %v9453_v28 }
 0x16f   :  { %v10937_v27 = vpop.f32.mrb[7].mxu1  ;;  %v9027_v14 = vadd.f32 %v9026_v30, %v9025_v29 }
 0x177   :  { %v9028_v36 = vpop.f32.mrb[4].mxu0 }
 0x178   :  { %v9029_v38 = vpop.f32.mrb[5].mxu0 }
 0x179   :  { %v9030_v40 = vadd.f32 %v9029_v38, %v9028_v36  ;;  %v9031_v41 = vpop.f32.mrb[6].mxu0 }
 0x17a   :  { %v9032_v42 = vpop.f32.mrb[7].mxu0 }
 0x17b   :  { %v9033_v45 = vadd.f32 %v9032_v42, %v9031_v41  ;;  %v9459_v42 = vld [vmem:[#allocation6 + $0x40] ss:$8 sps:$4 sm:$0xff]  }
 0x184   :  { %v8994_v31 = vpop.f32.mrb[8].mxu1 }
 0x185   :  { %v8995_v32 = vpop.f32.mrb[9].mxu1 }
 0x186   :  { %v8996_v33 = vadd.f32 %v8995_v32, %v8994_v31  ;;  %v8997_v34 = vpop.f32.mrb[10].mxu1  ;;  %v9461_v31 = vld [vmem:[#allocation6 + $0x44] ss:$8 sps:$4 sm:$0xff]  }
 0x187   :  { %v8998_v35 = vpop.f32.mrb[11].mxu1 }
 0x188   :  { %v8999_v37 = vadd.f32 %v8998_v35, %v8997_v34  ;;  %v863_v39 = vadd.f32 %v9024_v47, %v8996_v33  ;;  %v9458_v47 = vld [vmem:[#allocation6 + $0x34] ss:$8 sps:$4 sm:$0xff]  }
 0x189   :  { %2938 = vmatprep.subr.bf16.mxu1 %v9458_v47 }
 0x18a   :  { %v866_v44 = vadd.f32 %v9027_v14, %v8999_v37  ;;  %v9456_v14 = vld [vmem:[#allocation6 + $0x30] ss:$8 sps:$4 sm:$0xff]  }
 0x18b   :  { %2939 = vmatpush1.bf16.msra.mxu1 %v9456_v14 }
 0x18c   :  { %v9000_v46 = vpop.f32.mrb[12].mxu1  ;;  %2940 = vmatprep.subr.bf16.mxu1 %v9461_v31 }
 0x18d   :  { %v9001_v48 = vpop.f32.mrb[13].mxu1 }
 0x18e   :  { %v9002_v49 = vadd.f32 %v9001_v48, %v9000_v46  ;;  %v9003_v50 = vpop.f32.mrb[14].mxu1 }
 0x18f   :  { %v9004_v51 = vpop.f32.mrb[15].mxu1  ;;  %2941 = vmatpush1.bf16.msra.mxu1 %v9459_v42 }
 0x190   :  { %v9005_v52 = vadd.f32 %v9004_v51, %v9003_v50  ;;  %v871_v53 = vadd.f32 %v9030_v40, %v9002_v49  ;;  %v9464_v51 = vld [vmem:[#allocation6 + $0x54] ss:$8 sps:$4 sm:$0xff]  }
 0x191   :  { %2942 = vmatprep.subr.bf16.mxu1 %v9464_v51 }
 0x192   :  { %v874_v54 = vadd.f32 %v9033_v45, %v9005_v52 }
 0x1a4   :  { %v9090_v56 = vpop.f32.mrb[16].mxu1 }
 0x1a5   :  { %v920_v57 = vadd.f32 %v9090_v56, %v871_v53  ;;  %v911_v58 = vpop.f32.mrb[17].mxu1 }
 0x1a6   :  { %v912_v59 = vadd.f32 %v911_v58, %v863_v39  ;;  %v9091_v60 = vpop.f32.mrb[18].mxu1 }
 0x1a7   :  { %v935_v61 = vadd.f32 %v8200_v55, %v920_v57  ;;  %v923_v62 = vadd.f32 %v9091_v60, %v874_v54  ;;  %v914_v63 = vpop.f32.mrb[19].mxu1  ;;  %v9462_v60 = vld [vmem:[#allocation6 + $0x50] ss:$8 sps:$4 sm:$0xff]  }
 0x1a8   :  { %v933_v3 = vadd.f32 %v8200_v55, %v912_v59  ;;  %v915_v4 = vadd.f32 %v914_v63, %v866_v44  ;;  %2943 = vmatpush1.bf16.msra.mxu1 %v9462_v60 }
 0x1a9   :  { %v943_v6 = vmul.f32 0.2, %v935_v61  ;;  %v936_v7 = vadd.f32 %v8200_v55, %v923_v62  ;;  %vm939_vm14 = vcmp.ge.f32.partialorder %v935_v61, 0.0  ;;  %2944 = vmatprep.subr.bf16.mxu1 %v9467_v2 }
 0x1aa   :  { %v941_v9 = vmul.f32 0.2, %v933_v3  ;;  %v934_v10 = vadd.f32 %v8200_v55, %v915_v4  ;;  %vm937_vm15 = vcmp.ge.f32.partialorder %v933_v3, 0.0 }
 0x1ab   :  { %vm940_vm0 = vcmp.ge.f32.partialorder %v936_v7, 0.0  ;;  %v944_v12 = vmul.f32 0.2, %v936_v7  ;;  %v947_v16 = vsel %vm939_vm14, %v935_v61, %v943_v6 }
 0x1ac   :  { %vm938_vm1 = vcmp.ge.f32.partialorder %v934_v10, 0.0  ;;  %v942_v15 = vmul.f32 0.2, %v934_v10  ;;  %v945_v18 = vsel %vm937_vm15, %v933_v3, %v941_v9 }
 0x1ad   :  { %v948_v17 = vsel %vm940_vm0, %v936_v7, %v944_v12 }
 0x1ae   :  { %v950_v19 = vpack.c.bf16 %v948_v17, %v947_v16  ;;  %v946_v20 = vsel %vm938_vm1, %v934_v10, %v942_v15  ;;  %v9380_v10 = vld [vmem:[#allocation4 + $0x114] ss:$8 sps:$4 sm:$0xff]  }
 0x1af   :  { %v949_v43 = vpack.c.bf16 %v946_v20, %v945_v18 }
 0x1b0   :  { %v954_v29 = vrot.slane %v950_v19, 4  ;;  %v9465_v19 = vld [vmem:[#allocation6 + $0x60] ss:$8 sps:$4 sm:$0xff]  }
 0x1b1   :  { %v953_v30 = vrot.slane %v949_v43, 4  ;;  %2945 = vmatpush1.bf16.msra.mxu1 %v9465_v19  ;;  %v9390_v19 = vld [vmem:[#allocation4 + $0x150] ss:$8 sps:$4 sm:$0xff]  }
 0x1b2   :  { %v10943_v32 = vsel %vm350_vm4, 0, %v954_v29  ;;  %v10946_v33 = vsel %vm350_vm4, %v954_v29, 0  ;;  %v9470_v29 = vld [vmem:[#allocation6 + $0x74] ss:$8 sps:$4 sm:$0xff]  }
 0x1b3   :  { %v10949_v34 = vsel %vm350_vm4, 0, %v953_v30  ;;  %v10952_v35 = vsel %vm350_vm4, %v953_v30, 0  ;;  %v974_v36 = vshrl.u32 %v10943_v32, 16  ;;  %v976_v37 = vshll.u32 %v10943_v32, 16  ;;  %v9378_v30 = vld [vmem:[#allocation4 + $0x110] ss:$8 sps:$4 sm:$0xff]   ;;  %2946 = vmatprep.subr.bf16.mxu1 %v9470_v29 }
 0x1b4   :  { %v961_v38 = vshrl.u32 %v10949_v34, 16  ;;  %v963_v39 = vshll.u32 %v10949_v34, 16  ;;  %v967_v40 = vshll.u32 %v10952_v35, 16  ;;  %v971_v41 = vshrl.u32 %v10952_v35, 16  ;;  %v9401_v29 = vld [vmem:[#allocation4 + $0x184] ss:$8 sps:$4 sm:$0xff]  }
 0x1b5   :  { %v1017_v44 = vrot.slane %v10949_v34, 3  ;;  %v1018_v45 = vrot.slane %v10952_v35, 3  ;;  %v978_v46 = vrot.slane %v976_v37, 1  ;;  %v980_v48 = vshll.u32 %v10946_v33, 16 }
 0x1b6   :  { %v965_v49 = vrot.slane %v963_v39, 1  ;;  %v969_v50 = vrot.slane %v967_v40, 1  ;;  %v984_v54 = vshrl.u32 %v10946_v33, 16  ;;  %v1032_v55 = vrot.slane %v10943_v32, 3 }
 0x1b7   :  { %v979_v52 = vor.u32 %v978_v46, %v974_v36  ;;  %v982_v53 = vrot.slane %v980_v48, 1  ;;  %v997_v58 = vrot.slane %v961_v38, 1  ;;  %v998_v59 = vrot.slane %v963_v39, 2 }
 0x1b8   :  { %v966_v56 = vor.u32 %v965_v49, %v961_v38  ;;  %v973_v57 = vor.u32 %v971_v41, %v969_v50  ;;  %v1019_v61 = vsel %vm418_vm7, %v1017_v44, %v1018_v45  ;;  %v1000_v1 = vrot.slane %v971_v41, 1  ;;  %v9468_v49 = vld [vmem:[#allocation6 + $0x70] ss:$8 sps:$4 sm:$0xff]  }
 0x1b9   :  { %v983_v62 = vsel %vm358_vm5, %v979_v52, %v982_v53  ;;  %v986_v63 = vor.u32 %v984_v54, %v982_v53  ;;  %v999_v7 = vor.u32 %v998_v59, %v997_v58  ;;  %v1001_v11 = vrot.slane %v967_v40, 2  ;;  %2947 = vmatpush1.bf16.msra.mxu1 %v9468_v49  ;;  %v9420_v49 = vld [vmem:[#allocation4 + $0x1f0] ss:$8 sps:$4 sm:$0xff]  }
 0x1ba   :  { %v970_v3 = vsel %vm358_vm5, %v966_v56, %v969_v50  ;;  %v1021_v4 = vrot.slane %v973_v57, 3  ;;  %v1035_v6 = vrot.slane %v983_v62, 3  ;;  %v991_v12 = vrot.slane %v10949_v34, 1  ;;  %v9381_v56 = vld [vmem:[#allocation4 + $0x120] ss:$8 sps:$4 sm:$0xff]  }
 0x1bb   :  { %v1020_v8 = vrot.slane %v970_v3, 3  ;;  %v1036_v9 = vrot.slane %v986_v63, 3  ;;  %v992_v15 = vrot.slane %v10952_v35, 1  ;;  %v1004_v16 = vrot.slane %v974_v36, 1  ;;  %v9471_v3 = vld [vmem:[#allocation6 + $0x80] ss:$8 sps:$4 sm:$0xff]  }
 0x1bc   :  { %v1005_v17 = vrot.slane %v976_v37, 2  ;;  %v1007_v18 = vrot.slane %v984_v54, 1  ;;  %v1033_v28 = vrot.slane %v10946_v33, 3  ;;  %v1002_v43 = vor.u32 %v1001_v11, %v1000_v1  ;;  %v9383_v37 = vld [vmem:[#allocation4 + $0x124] ss:$8 sps:$4 sm:$0xff]  }
 0x1bd   :  { %v1022_v20 = vsel %vm418_vm7, %v1020_v8, %v1021_v4  ;;  %v1008_v47 = vrot.slane %v980_v48, 2  ;;  %v993_v14 = vsel %vm389_vm10, %v991_v12, %v992_v15  ;;  %v1024_v31 = vrot.slane %v992_v15, 3  ;;  %v9473_v54 = vld [vmem:[#allocation6 + $0x84] ss:$8 sps:$4 sm:$0xff]  }
 0x1be   :  { %1569 = vmatprep.mubr.bf16.mxu0 %v1022_v20  ;;  %v1006_v38 = vor.u32 %v1005_v17, %v1004_v16  ;;  %v994_v39 = vrot.slane %v10943_v32, 1  ;;  %v1037_v36 = vsel %vm418_vm7, %v1035_v6, %v1036_v9  ;;  %v1003_v40 = vsel %vm396_vm6, %v999_v7, %v1002_v43  ;;  %v9476_v7 = vld [vmem:[#allocation6 + $0x94] ss:$8 sps:$4 sm:$0xff]   ;;  %v9389_v12 = vld [vmem:[#allocation4 + $0x144] ss:$8 sps:$4 sm:$0xff]   ;;  %2948 = vmatprep.subr.bf16.mxu1 %v9473_v54 }
 0x1bf   :  { %1570 = vmatmul.mubr.bf16.vlgmr.msra.gmra.mrb[8].mxu0 %v1019_v61  ;;  %v1023_v41 = vrot.slane %v993_v14, 3  ;;  %v1009_v42 = vor.u32 %v1008_v47, %v1007_v18  ;;  %v1027_v44 = vrot.slane %v1002_v43, 3  ;;  %v995_v45 = vrot.slane %v10946_v33, 1  ;;  %v9474_v16 = vld [vmem:[#allocation6 + $0x90] ss:$8 sps:$4 sm:$0xff]   ;;  %2949 = vmatpush1.bf16.msra.mxu1 %v9471_v3 }
 0x1c0   :  { %1591 = vmatpush1.bf16.msra.mxu0 %v9375_v5  ;;  %1579 = vmatprep.mubr.bf16.mxu0 %v1037_v36  ;;  %v1011_v46 = vrot.slane %v10949_v34, 2  ;;  %v1012_v48 = vrot.slane %v10952_v35, 2  ;;  %v1014_v53 = vrot.slane %v10943_v32, 2  ;;  %v1026_v57 = vrot.slane %v1003_v40, 3  ;;  %v9386_v34 = vld [vmem:[#allocation4 + $0x134] ss:$8 sps:$4 sm:$0xff]  }
 0x1c1   :  { %1592 = vmatprep.subr.bf16.mxu0 %v9380_v10  ;;  %v10980_v50 = vsel %vm418_vm7, %v1023_v41, %v1024_v31  ;;  %v1010_v51 = vsel %vm396_vm6, %v1006_v38, %v1009_v42  ;;  %v1042_v52 = vrot.slane %v1009_v42, 3  ;;  %v996_v59 = vsel %vm389_vm10, %v994_v39, %v995_v45  ;;  %v9479_v32 = vld [vmem:[#allocation6 + $0xa4] ss:$8 sps:$4 sm:$0xff]   ;;  %v9392_v17 = vld [vmem:[#allocation4 + $0x154] ss:$8 sps:$4 sm:$0xff]   ;;  %2950 = vmatprep.subr.bf16.mxu1 %v9476_v7 }
 0x1c2   :  { %v1041_v58 = vrot.slane %v1010_v51, 3  ;;  %v1039_v60 = vrot.slane %v995_v45, 3  ;;  %v1038_v35 = vrot.slane %v996_v59, 3  ;;  %v1013_v61 = vsel %vm411_vm13, %v1011_v46, %v1012_v48  ;;  %v9477_v18 = vld [vmem:[#allocation6 + $0xa0] ss:$8 sps:$4 sm:$0xff]  }
 0x1c3   :  { %v1030_v62 = vrot.slane %v1012_v48, 3  ;;  %v1015_v63 = vrot.slane %v10946_v33, 2  ;;  %v1029_v2 = vrot.slane %v1013_v61, 3  ;;  %v1034_v8 = vsel %vm418_vm7, %v1032_v55, %v1033_v28  ;;  %v9384_v33 = vld [vmem:[#allocation4 + $0x130] ss:$8 sps:$4 sm:$0xff]   ;;  %2951 = vmatpush1.bf16.msra.mxu1 %v9474_v16 }
 0x1c4   :  { %1593 = vmatpush1.bf16.msra.mxu0 %v9378_v30  ;;  %v10988_v1 = vsel %vm418_vm7, %v1041_v58, %v1042_v52  ;;  %v10991_v4 = vsel %vm418_vm7, %v1038_v35, %v1039_v60  ;;  %v1028_v11 = vsel %vm418_vm7, %v1026_v57, %v1027_v44  ;;  %v9387_v55 = vld [vmem:[#allocation4 + $0x140] ss:$8 sps:$4 sm:$0xff]   ;;  %v9395_v20 = vld [vmem:[#allocation4 + $0x164] ss:$8 sps:$4 sm:$0xff]   ;;  %2952 = vmatprep.subr.bf16.mxu1 %v9479_v32  ;;  %v9398_v43 = vld [vmem:[#allocation4 + $0x174] ss:$8 sps:$4 sm:$0xff]  }
 0x1c5   :  { %1594 = vmatprep.subr.bf16.mxu0 %v9383_v37  ;;  %v1016_v5 = vsel %vm411_vm13, %v1014_v53, %v1015_v63  ;;  %v1045_v6 = vrot.slane %v1015_v63, 3  ;;  %v10998_v9 = vsel %vm418_vm7, %v1029_v2, %v1030_v62  ;;  %v9393_v28 = vld [vmem:[#allocation4 + $0x160] ss:$8 sps:$4 sm:$0xff]   ;;  %v9396_v47 = vld [vmem:[#allocation4 + $0x170] ss:$8 sps:$4 sm:$0xff]  }
 0x1c6   :  { %v1044_v10 = vrot.slane %v1016_v5, 3  ;;  %v9399_v30 = vld [vmem:[#allocation4 + $0x180] ss:$8 sps:$4 sm:$0xff]   ;;  %v9404_v14 = vld [vmem:[#allocation4 + $0x194] ss:$8 sps:$4 sm:$0xff]  }
 0x1c7   :  { %1580 = vmatmul.mubr.bf16.gmra.mrb[12].mxu0 %v1034_v8  ;;  %2953 = vmatpush1.bf16.msra.mxu1 %v9477_v18  ;;  %v9402_v31 = vld [vmem:[#allocation4 + $0x190] ss:$8 sps:$4 sm:$0xff]   ;;  %v9407_v38 = vld [vmem:[#allocation4 + $0x1a4] ss:$8 sps:$4 sm:$0xff]   ;;  %v9405_v39 = vld [vmem:[#allocation4 + $0x1a0] ss:$8 sps:$4 sm:$0xff]  }
 0x1c8   :  { %1595 = vmatpush1.bf16.msra.mxu0 %v9381_v56  ;;  %1622 = vmatprep.mubr.bf16.mxu0 %v1028_v11  ;;  %v11002_v15 = vsel %vm418_vm7, %v1044_v10, %v1045_v6  ;;  %v9410_v36 = vld [vmem:[#allocation4 + $0x1b4] ss:$8 sps:$4 sm:$0xff]   ;;  %v9408_v37 = vld [vmem:[#allocation4 + $0x1b0] ss:$8 sps:$4 sm:$0xff]   ;;  %v9413_v40 = vld [vmem:[#allocation4 + $0x1c4] ss:$8 sps:$4 sm:$0xff]   ;;  %v1698_v11 = vlaneseq }
 0x1c9   :  { %1596 = vmatprep.subr.bf16.mxu0 %v9386_v34  ;;  %v9411_v41 = vld [vmem:[#allocation4 + $0x1c0] ss:$8 sps:$4 sm:$0xff]   ;;  %v9416_v42 = vld [vmem:[#allocation4 + $0x1d4] ss:$8 sps:$4 sm:$0xff]   ;;  %v9414_v44 = vld [vmem:[#allocation4 + $0x1d0] ss:$8 sps:$4 sm:$0xff]  }
 0x1ca   :  { %v9419_v45 = vld [vmem:[#allocation4 + $0x1e4] ss:$8 sps:$4 sm:$0xff]   ;;  %v9417_v46 = vld [vmem:[#allocation4 + $0x1e0] ss:$8 sps:$4 sm:$0xff]   ;;  %v9422_v48 = vld [vmem:[#allocation4 + $0x1f4] ss:$8 sps:$4 sm:$0xff]  }
 0x1cb   :  { %v9425_v51 = vld [vmem:[#allocation4 + $0x204] ss:$8 sps:$4 sm:$0xff]   ;;  %v9423_v52 = vld [vmem:[#allocation4 + $0x200] ss:$8 sps:$4 sm:$0xff]   ;;  %v9428_v53 = vld [vmem:[#allocation4 + $0x214] ss:$8 sps:$4 sm:$0xff]  }
 0x1cc   :  { %1597 = vmatpush1.bf16.msra.mxu0 %v9384_v33  ;;  %v9426_v54 = vld [vmem:[#allocation4 + $0x210] ss:$8 sps:$4 sm:$0xff]   ;;  %v9431_v56 = vld [vmem:[#allocation4 + $0x224] ss:$8 sps:$4 sm:$0xff]   ;;  %v9429_v57 = vld [vmem:[#allocation4 + $0x220] ss:$8 sps:$4 sm:$0xff]  }
 0x1cd   :  { %1598 = vmatprep.subr.bf16.mxu0 %v9389_v12  ;;  %v9434_v58 = vld [vmem:[#allocation4 + $0x234] ss:$8 sps:$4 sm:$0xff]   ;;  %v9432_v59 = vld [vmem:[#allocation4 + $0x230] ss:$8 sps:$4 sm:$0xff]   ;;  %v9437_v60 = vld [vmem:[#allocation4 + $0x244] ss:$8 sps:$4 sm:$0xff]  }
 0x1ce   :  { %v9440_v34 = vld [vmem:[#allocation4 + $0x254] ss:$8 sps:$4 sm:$0xff]   ;;  %v9438_v35 = vld [vmem:[#allocation4 + $0x250] ss:$8 sps:$4 sm:$0xff]   ;;  %v9443_v61 = vld [vmem:[#allocation4 + $0x264] ss:$8 sps:$4 sm:$0xff]  }
 0x1cf   :  { %v9441_v62 = vld [vmem:[#allocation4 + $0x260] ss:$8 sps:$4 sm:$0xff]   ;;  %v9446_v63 = vld [vmem:[#allocation4 + $0x274] ss:$8 sps:$4 sm:$0xff]   ;;  %v9480_v2 = vld [vmem:[#allocation6 + $0xb0] ss:$8 sps:$4 sm:$0xff]  }
 0x1d0   :  { %1599 = vmatpush1.bf16.msra.mxu0 %v9387_v55  ;;  %v9482_v3 = vld [vmem:[#allocation6 + $0xb4] ss:$8 sps:$4 sm:$0xff]   ;;  %v9485_v5 = vld [vmem:[#allocation6 + $0xc4] ss:$8 sps:$4 sm:$0xff]   ;;  %v9486_v6 = vld [vmem:[#allocation6 + $0xd0] ss:$8 sps:$4 sm:$0xff]  }
 0x1d1   :  { %1600 = vmatprep.subr.bf16.mxu0 %v9392_v17  ;;  %2954 = vmatprep.subr.bf16.mxu1 %v9482_v3  ;;  %v9488_v7 = vld [vmem:[#allocation6 + $0xd4] ss:$8 sps:$4 sm:$0xff]   ;;  %v9489_v8 = vld [vmem:[#allocation6 + $0xe0] ss:$8 sps:$4 sm:$0xff]   ;;  %v9491_v33 = vld [vmem:[#allocation6 + $0xe4] ss:$8 sps:$4 sm:$0xff]  }
 0x1d2   :  { %2955 = vmatpush1.bf16.msra.mxu1 %v9480_v2  ;;  %v9494_v10 = vld [vmem:[#allocation6 + $0xf4] ss:$8 sps:$4 sm:$0xff]   ;;  %v1699_v12 = vshrl.u32 %v1698_v11, 7  ;;  %v1696_v16 = vld [vmem:[%s12148_s6] sm:$0x3] }
 0x1d3   :  { %2956 = vmatprep.subr.bf16.mxu1 %v9485_v5 }
 0x1d4   :  { %1601 = vmatpush1.bf16.msra.mxu0 %v9390_v19  ;;  %v11016_v32 = vsub.s32 1, %v1699_v12 }
 0x1d5   :  { %1602 = vmatprep.subr.bf16.mxu0 %v9395_v20 }
 0x1d6   :  { %v1705_v18 = vrot.slane %v1696_v16, %v11016_v32 }
 0x1d8   :  { %1603 = vmatpush1.bf16.msra.mxu0 %v9393_v28 }
 0x1d9   :  { %1604 = vmatprep.subr.bf16.mxu0 %v9398_v43 }
 0x1dc   :  { %1605 = vmatpush1.bf16.msra.mxu0 %v9396_v47 }
 0x1dd   :  { %1606 = vmatprep.subr.bf16.mxu0 %v9401_v29 }
 0x1e0   :  { %1607 = vmatpush1.bf16.msra.mxu0 %v9399_v30 }
 0x1e1   :  { %1608 = vmatprep.subr.bf16.mxu0 %v9404_v14 }
 0x1e4   :  { %1609 = vmatpush1.bf16.msra.mxu0 %v9402_v31 }
 0x1e5   :  { %1610 = vmatprep.subr.bf16.mxu0 %v9407_v38 }
 0x1e8   :  { %1611 = vmatpush1.bf16.msra.mxu0 %v9405_v39 }
 0x1e9   :  { %1612 = vmatprep.subr.bf16.mxu0 %v9410_v36 }
 0x1ec   :  { %1613 = vmatpush1.bf16.msra.mxu0 %v9408_v37 }
 0x1ed   :  { %1614 = vmatprep.subr.bf16.mxu0 %v9413_v40 }
 0x1f0   :  { %1615 = vmatpush1.bf16.msra.mxu0 %v9411_v41 }
 0x1f1   :  { %1616 = vmatprep.subr.bf16.mxu0 %v9416_v42 }
 0x1f4   :  { %1617 = vmatpush1.bf16.msra.mxu0 %v9414_v44 }
 0x1f5   :  { %1618 = vmatprep.subr.bf16.mxu0 %v9419_v45 }
 0x1f8   :  { %1619 = vmatpush1.bf16.msra.mxu0 %v9417_v46 }
 0x1f9   :  { %1620 = vmatprep.subr.bf16.mxu0 %v9422_v48 }
 0x1fc   :  { %1621 = vmatpush1.bf16.msra.mxu0 %v9420_v49 }
 0x1fd   :  { %1643 = vmatprep.subr.bf16.mxu0 %v9425_v51 }
 0x1ff   :  { %1623 = vmatmul.mubr.bf16.vlgmr.msra.gmra.mrb[8].mxu0 %v10980_v50  ;;  %v9435_v50 = vld [vmem:[#allocation4 + $0x240] ss:$8 sps:$4 sm:$0xff]  }
 0x200   :  { %1632 = vmatprep.mubr.bf16.mxu0 %v10988_v1  ;;  %1644 = vmatpush1.bf16.msra.mxu0 %v9423_v52  ;;  %v9444_v1 = vld [vmem:[#allocation4 + $0x270] ss:$8 sps:$4 sm:$0xff]  }
 0x201   :  { %1645 = vmatprep.subr.bf16.mxu0 %v9428_v53 }
 0x204   :  { %1646 = vmatpush1.bf16.msra.mxu0 %v9426_v54 }
 0x205   :  { %1647 = vmatprep.subr.bf16.mxu0 %v9431_v56 }
 0x207   :  { %1633 = vmatmul.mubr.bf16.gmra.mrb[12].mxu0 %v10991_v4  ;;  %v9483_v4 = vld [vmem:[#allocation6 + $0xc0] ss:$8 sps:$4 sm:$0xff]  }
 0x208   :  { %1648 = vmatpush1.bf16.msra.mxu0 %v9429_v57  ;;  %1675 = vmatprep.mubr.bf16.mxu0 %v10621_v0 }
 0x209   :  { %1649 = vmatprep.subr.bf16.mxu0 %v9434_v58  ;;  %2957 = vmatpush1.bf16.msra.mxu1 %v9483_v4 }
 0x20a   :  { %2958 = vmatprep.subr.bf16.mxu1 %v9488_v7 }
 0x20c   :  { %1650 = vmatpush1.bf16.msra.mxu0 %v9432_v59 }
 0x20d   :  { %1651 = vmatprep.subr.bf16.mxu0 %v9437_v60  ;;  %2959 = vmatpush1.bf16.msra.mxu1 %v9486_v6 }
 0x20e   :  { %2960 = vmatprep.subr.bf16.mxu1 %v9491_v33 }
 0x210   :  { %1652 = vmatpush1.bf16.msra.mxu0 %v9435_v50 }
 0x211   :  { %1653 = vmatprep.subr.bf16.mxu0 %v9440_v34  ;;  %2961 = vmatpush1.bf16.msra.mxu1 %v9489_v8 }
 0x212   :  { %2962 = vmatprep.subr.bf16.mxu1 %v9494_v10 }
 0x214   :  { %1654 = vmatpush1.bf16.msra.mxu0 %v9438_v35 }
 0x215   :  { %1655 = vmatprep.subr.bf16.mxu0 %v9443_v61 }
 0x218   :  { %1656 = vmatpush1.bf16.msra.mxu0 %v9441_v62 }
 0x219   :  { %1657 = vmatprep.subr.bf16.mxu0 %v9446_v63 }
 0x21c   :  { %1658 = vmatpush1.bf16.msra.mxu0 %v9444_v1 }
 0x21f   :  { %1676 = vmatmul.mubr.bf16.vlgmr.msra.gmra.mrb[8].mxu0 %v10998_v9  ;;  %v9497_v9 = vld [vmem:[#allocation6 + $0x104] ss:$8 sps:$4 sm:$0xff]  }
 0x220   :  { %1685 = vmatprep.mubr.bf16.mxu0 %v10621_v0  ;;  %v9492_v0 = vld [vmem:[#allocation6 + $0xf0] ss:$8 sps:$4 sm:$0xff]  }
 0x221   :  { %2963 = vmatpush1.bf16.msra.mxu1 %v9492_v0 }
 0x222   :  { %2985 = vmatprep.subr.bf16.mxu1 %v9497_v9 }
 0x227   :  { %1686 = vmatmul.mubr.bf16.gmra.mrb[12].mxu0 %v11002_v15  ;;  %v11011_v15 = vsub.s32 0, %v1699_v12 }
 0x229   :  { %v1701_v55 = vrot.slane %v1696_v16, %v11011_v15  ;;  %v9495_v16 = vld [vmem:[#allocation6 + $0x100] ss:$8 sps:$4 sm:$0xff]  }
 0x2f2   :  { %v1677_v17 = vpop.f32.mrb[8].mxu0 }
 0x2f3   :  { %v9092_v19 = vadd.f32 %v1677_v17, %v10923_v21  ;;  %v1679_v20 = vpop.f32.mrb[9].mxu0 }
 0x2f4   :  { %v9094_v28 = vadd.f32 %v1679_v20, %v10925_v22  ;;  %v1681_v43 = vpop.f32.mrb[10].mxu0  ;;  %v9500_v20 = vld [vmem:[#allocation6 + $0x114] ss:$8 sps:$4 sm:$0xff]  }
 0x2f5   :  { %v9093_v47 = vadd.f32 %v9092_v19, %v1701_v55  ;;  %v9096_v29 = vadd.f32 %v1681_v43, %v10927_v23  ;;  %v1683_v30 = vpop.f32.mrb[11].mxu0 }
 0x2f6   :  { %v9095_v14 = vadd.f32 %v9094_v28, %v1705_v18  ;;  %v9098_v31 = vadd.f32 %v1683_v30, %v10929_v24 }
 0x2f7   :  { %v11024_v38 = vmul.f32 0.70710677, %v9093_v47  ;;  %v9097_v39 = vadd.f32 %v9096_v29, %v1701_v55 }
 0x2f8   :  { %v11026_v36 = vmul.f32 0.70710677, %v9095_v14  ;;  %v9099_v37 = vadd.f32 %v9098_v31, %v1705_v18 }
 0x2f9   :  { %vm1732_vm2 = vcmp.ge.f32.partialorder %v11024_v38, 0.0  ;;  %v1740_v21 = vmul.f32 0.2, %v11024_v38  ;;  %v11030_v40 = vmul.f32 0.70710677, %v9097_v39 }
 0x2fa   :  { %vm1733_vm3 = vcmp.ge.f32.partialorder %v11026_v36, 0.0  ;;  %v1741_v22 = vmul.f32 0.2, %v11026_v36  ;;  %v11034_v23 = vmul.f32 0.70710677, %v9099_v37  ;;  %v1687_v41 = vpop.f32.mrb[12].mxu0 }
 0x2fb   :  { %vm1734_vm8 = vcmp.ge.f32.partialorder %v11030_v40, 0.0  ;;  %v1742_v24 = vmul.f32 0.2, %v11030_v40  ;;  %v9100_v42 = vadd.f32 %v1687_v41, %v10931_v25  ;;  %v1689_v44 = vpop.f32.mrb[13].mxu0  ;;  %v1748_v45 = vsel %vm1732_vm2, %v11024_v38, %v1740_v21  ;;  %v9498_v39 = vld [vmem:[#allocation6 + $0x110] ss:$8 sps:$4 sm:$0xff]  }
 0x2fc   :  { %vm1735_vm9 = vcmp.ge.f32.partialorder %v11034_v23, 0.0  ;;  %v1743_v46 = vmul.f32 0.2, %v11034_v23  ;;  %v9102_v48 = vadd.f32 %v1689_v44, %v10933_v26  ;;  %v1691_v49 = vpop.f32.mrb[14].mxu0  ;;  %v1749_v51 = vsel %vm1733_vm3, %v11026_v36, %v1741_v22  ;;  %v9503_v44 = vld [vmem:[#allocation6 + $0x124] ss:$8 sps:$4 sm:$0xff]  }
 0x2fd   :  { %v1750_v52 = vsel %vm1734_vm8, %v11030_v40, %v1742_v24  ;;  %v9101_v53 = vadd.f32 %v9100_v42, %v1701_v55  ;;  %v9104_v54 = vadd.f32 %v1691_v49, %v10935_v13  ;;  %v1693_v56 = vpop.f32.mrb[15].mxu0 }
 0x2fe   :  { %v1756_v57 = vpack.c.bf16 %v1750_v52, %v1748_v45  ;;  %v1751_v25 = vsel %vm1735_vm9, %v11034_v23, %v1743_v46  ;;  %v9103_v58 = vadd.f32 %v9102_v48, %v1705_v18  ;;  %v9106_v59 = vadd.f32 %v1693_v56, %v10937_v27 }
 0x2ff   :  { %v1757_v60 = vpack.c.bf16 %v1751_v25, %v1749_v51  ;;  %v11048_v50 = vmul.f32 0.70710677, %v9101_v53  ;;  %v9105_v34 = vadd.f32 %v9104_v54, %v1701_v55  ;;  %v9501_v54 = vld [vmem:[#allocation6 + $0x120] ss:$8 sps:$4 sm:$0xff]  }
 0x300   :  { %v1764_v26 = vrot.slane %v1756_v57, 4  ;;  %v11050_v35 = vmul.f32 0.70710677, %v9103_v58  ;;  %v9107_v61 = vadd.f32 %v9106_v59, %v1705_v18  ;;  %v9506_v58 = vld [vmem:[#allocation6 + $0x134] ss:$8 sps:$4 sm:$0xff]  }
 0x301   :  { %v1765_v62 = vrot.slane %v1757_v60, 4  ;;  %vm1736_vm11 = vcmp.ge.f32.partialorder %v11048_v50, 0.0  ;;  %v1744_v13 = vmul.f32 0.2, %v11048_v50  ;;  %v11054_v63 = vmul.f32 0.70710677, %v9105_v34 }
 0x302   :  { %vm1737_vm12 = vcmp.ge.f32.partialorder %v11050_v35, 0.0  ;;  %v1745_v1 = vmul.f32 0.2, %v11050_v35  ;;  %v11058_v27 = vmul.f32 0.70710677, %v9107_v61  ;;  %v11061_v2 = vsel %vm350_vm4, 0, %v1764_v26 }
 0x303   :  { %v1752_v3 = vsel %vm1736_vm11, %v11048_v50, %v1744_v13  ;;  %vm1738_vm14 = vcmp.ge.f32.partialorder %v11054_v63, 0.0  ;;  %v1746_v4 = vmul.f32 0.2, %v11054_v63  ;;  %v11067_v5 = vsel %vm350_vm4, 0, %v1765_v62  ;;  %v9504_v34 = vld [vmem:[#allocation6 + $0x130] ss:$8 sps:$4 sm:$0xff]  }
 0x304   :  { %v1753_v6 = vsel %vm1737_vm12, %v11050_v35, %v1745_v1  ;;  %vm1739_vm15 = vcmp.ge.f32.partialorder %v11058_v27, 0.0  ;;  %v1747_v7 = vmul.f32 0.2, %v11058_v27  ;;  %v11073_v8 = vsel %vm350_vm4, %v1765_v62, 0 }
 0x305   :  { %v1754_v33 = vsel %vm1738_vm14, %v11054_v63, %v1746_v4  ;;  %v1895_v10 = vrot.slane %v11067_v5, 3  ;;  %v1896_v0 = vrot.slane %v11073_v8, 3  ;;  %v11079_v9 = vsel %vm350_vm4, %v1764_v26, 0  ;;  %v9509_v26 = vld [vmem:[#allocation6 + $0x144] ss:$8 sps:$4 sm:$0xff]  }
 0x306   :  { %v1758_v11 = vpack.c.bf16 %v1754_v33, %v1752_v3  ;;  %v1755_v12 = vsel %vm1739_vm15, %v11058_v27, %v1747_v7  ;;  %v1892_v55 = vrot.slane %v11061_v2, 3  ;;  %v1893_v17 = vrot.slane %v11079_v9, 3 }
 0x307   :  { %v1759_v18 = vpack.c.bf16 %v1755_v12, %v1753_v6  ;;  %v1897_v19 = vsel %vm418_vm7, %v1895_v10, %v1896_v0  ;;  %v1792_v28 = vshll.u32 %v11067_v5, 16  ;;  %v1796_v29 = vshll.u32 %v11073_v8, 16  ;;  %v9507_v10 = vld [vmem:[#allocation6 + $0x140] ss:$8 sps:$4 sm:$0xff]  }
 0x308   :  { %v1766_v43 = vrot.slane %v1758_v11, 4  ;;  %2964 = vmatprep.mubr.bf16.mxu1 %v1897_v19  ;;  %v1894_v47 = vsel %vm418_vm7, %v1892_v55, %v1893_v17  ;;  %v1790_v14 = vshrl.u32 %v11067_v5, 16  ;;  %v1803_v41 = vshrl.u32 %v11073_v8, 16  ;;  %v9512_v55 = vld [vmem:[#allocation6 + $0x154] ss:$8 sps:$4 sm:$0xff]  }
 0x309   :  { %v1767_v30 = vrot.slane %v1759_v18, 4  ;;  %2965 = vmatmul.mubr.bf16.vlgmr.msra.gmra.mrb[20].mxu1 %v1894_v47  ;;  %v1794_v31 = vrot.slane %v1792_v28, 1  ;;  %v1798_v22 = vrot.slane %v1796_v29, 1  ;;  %v1843_v61 = vrot.slane %v11067_v5, 1 }
 0x30a   :  { %2986 = vmatpush1.bf16.msra.mxu1 %v9495_v16  ;;  %v11092_v37 = vsel %vm350_vm4, 0, %v1766_v43  ;;  %v11095_v21 = vsel %vm350_vm4, %v1766_v43, 0  ;;  %v1844_v62 = vrot.slane %v11073_v8, 1  ;;  %v1780_v13 = vshrl.u32 %v11061_v2, 16 }
 0x30b   :  { %2987 = vmatprep.subr.bf16.mxu1 %v9500_v20  ;;  %v11101_v24 = vsel %vm350_vm4, 0, %v1767_v30  ;;  %v11104_v42 = vsel %vm350_vm4, %v1767_v30, 0  ;;  %v1922_v45 = vrot.slane %v11092_v37, 3  ;;  %v1923_v46 = vrot.slane %v11095_v21, 3 }
 0x30c   :  { %v1925_v48 = vrot.slane %v11101_v24, 3  ;;  %v1926_v49 = vrot.slane %v11104_v42, 3  ;;  %v1795_v51 = vor.u32 %v1794_v31, %v1790_v14  ;;  %v1805_v52 = vor.u32 %v1803_v41, %v1798_v22 }
 0x30d   :  { %v1924_v59 = vsel %vm418_vm7, %v1922_v45, %v1923_v46  ;;  %v1782_v1 = vshll.u32 %v11061_v2, 16  ;;  %v1786_v3 = vshll.u32 %v11079_v9, 16  ;;  %v1800_v4 = vshrl.u32 %v11079_v9, 16  ;;  %v9510_v46 = vld [vmem:[#allocation6 + $0x150] ss:$8 sps:$4 sm:$0xff]  }
 0x30e   :  { %2988 = vmatpush1.bf16.msra.mxu1 %v9498_v39  ;;  %v1927_v53 = vsel %vm418_vm7, %v1925_v48, %v1926_v49  ;;  %v1799_v56 = vsel %vm358_vm5, %v1795_v51, %v1798_v22  ;;  %v1902_v57 = vrot.slane %v1805_v52, 3  ;;  %v1845_v6 = vsel %vm389_vm10, %v1843_v61, %v1844_v62 }
 0x30f   :  { %2974 = vmatprep.mubr.bf16.mxu1 %v1927_v53  ;;  %2989 = vmatprep.subr.bf16.mxu1 %v9503_v44  ;;  %v1901_v25 = vrot.slane %v1799_v56, 3  ;;  %v1908_v7 = vrot.slane %v1844_v62, 3  ;;  %v1840_v33 = vrot.slane %v11061_v2, 1  ;;  %v1816_v0 = vshrl.u32 %v11101_v24, 16  ;;  %v9515_v53 = vld [vmem:[#allocation6 + $0x164] ss:$8 sps:$4 sm:$0xff]  }
 0x310   :  { %v1818_v11 = vshll.u32 %v11101_v24, 16  ;;  %v1822_v12 = vshll.u32 %v11104_v42, 16  ;;  %v1829_v16 = vshrl.u32 %v11104_v42, 16  ;;  %v1806_v17 = vshrl.u32 %v11092_v37, 16 }
 0x311   :  { %2975 = vmatmul.mubr.bf16.gmra.mrb[24].mxu1 %v1924_v59  ;;  %v1903_v60 = vsel %vm418_vm7, %v1901_v25, %v1902_v57  ;;  %v1907_v18 = vrot.slane %v1845_v6, 3  ;;  %v1841_v19 = vrot.slane %v11079_v9, 1  ;;  %v1849_v20 = vrot.slane %v11101_v24, 1  ;;  %v9513_v6 = vld [vmem:[#allocation6 + $0x160] ss:$8 sps:$4 sm:$0xff]  }
 0x312   :  { %2990 = vmatpush1.bf16.msra.mxu1 %v9501_v54  ;;  %3017 = vmatprep.mubr.bf16.mxu1 %v1903_v60  ;;  %v1808_v43 = vshll.u32 %v11092_v37, 16  ;;  %v1812_v47 = vshll.u32 %v11095_v21, 16  ;;  %v1850_v30 = vrot.slane %v11104_v42, 1  ;;  %v1846_v31 = vrot.slane %v11092_v37, 1 }
 0x313   :  { %2991 = vmatprep.subr.bf16.mxu1 %v9506_v58  ;;  %v11138_v39 = vsel %vm418_vm7, %v1907_v18, %v1908_v7  ;;  %v1842_v22 = vsel %vm389_vm10, %v1840_v33, %v1841_v19  ;;  %v1905_v44 = vrot.slane %v1841_v19, 3  ;;  %v1847_v45 = vrot.slane %v11095_v21, 1 }
 0x314   :  { %v1826_v48 = vshrl.u32 %v11095_v21, 16  ;;  %v1904_v49 = vrot.slane %v1842_v22, 3  ;;  %v1851_v51 = vsel %vm389_vm10, %v1849_v20, %v1850_v30  ;;  %v1938_v52 = vrot.slane %v1850_v30, 3 }
 0x315   :  { %v1937_v54 = vrot.slane %v1851_v51, 3  ;;  %v1848_v56 = vsel %vm389_vm10, %v1846_v31, %v1847_v45  ;;  %v1935_v57 = vrot.slane %v1847_v45, 3  ;;  %v1859_v25 = vrot.slane %v1790_v14, 1  ;;  %v9516_v51 = vld [vmem:[#allocation6 + $0x170] ss:$8 sps:$4 sm:$0xff]  }
 0x316   :  { %2992 = vmatpush1.bf16.msra.mxu1 %v9504_v34  ;;  %v11148_v58 = vsel %vm418_vm7, %v1904_v49, %v1905_v44  ;;  %v1934_v59 = vrot.slane %v1848_v56, 3  ;;  %v1860_v60 = vrot.slane %v1792_v28, 2  ;;  %v1862_v34 = vrot.slane %v1803_v41, 1 }
 0x317   :  { %2993 = vmatprep.subr.bf16.mxu1 %v9509_v26  ;;  %v11155_v26 = vsel %vm418_vm7, %v1937_v54, %v1938_v52  ;;  %v1863_v61 = vrot.slane %v1796_v29, 2  ;;  %v1852_v62 = vrot.slane %v1780_v13, 1  ;;  %v1853_v14 = vrot.slane %v1782_v1, 2  ;;  %v9518_v29 = vld [vmem:[#allocation6 + $0x174] ss:$8 sps:$4 sm:$0xff]  }
 0x318   :  { %v11164_v7 = vsel %vm418_vm7, %v1934_v59, %v1935_v57  ;;  %v1861_v28 = vor.u32 %v1860_v60, %v1859_v25  ;;  %v1855_v41 = vrot.slane %v1800_v4, 1  ;;  %v1856_v33 = vrot.slane %v1786_v3, 2  ;;  %v9521_v57 = vld [vmem:[#allocation6 + $0x184] ss:$8 sps:$4 sm:$0xff]  }
 0x319   :  { %v1873_v18 = vrot.slane %v1816_v0, 1  ;;  %v1874_v19 = vrot.slane %v1818_v11, 2  ;;  %v1876_v30 = vrot.slane %v1829_v16, 1  ;;  %v1877_v31 = vrot.slane %v1822_v12, 2 }
 0x31a   :  { %2994 = vmatpush1.bf16.msra.mxu1 %v9507_v10  ;;  %v1864_v10 = vor.u32 %v1863_v61, %v1862_v34  ;;  %v1857_v20 = vor.u32 %v1856_v33, %v1855_v41  ;;  %v1866_v22 = vrot.slane %v1806_v17, 1  ;;  %v1867_v49 = vrot.slane %v1808_v43, 2 }
 0x31b   :  { %2995 = vmatprep.subr.bf16.mxu1 %v9512_v55  ;;  %v1854_v55 = vor.u32 %v1853_v14, %v1852_v62  ;;  %v1878_v56 = vor.u32 %v1877_v31, %v1876_v30  ;;  %v1869_v60 = vrot.slane %v1826_v48, 1  ;;  %v1870_v34 = vrot.slane %v1812_v47, 2 }
 0x31c   :  { %v1865_v44 = vsel %vm396_vm6, %v1861_v28, %v1864_v10  ;;  %v1914_v45 = vrot.slane %v1864_v10, 3  ;;  %v1911_v54 = vrot.slane %v1857_v20, 3  ;;  %v1868_v59 = vor.u32 %v1867_v49, %v1866_v22  ;;  %v9519_v10 = vld [vmem:[#allocation6 + $0x180] ss:$8 sps:$4 sm:$0xff]  }
 0x31d   :  { %v1913_v52 = vrot.slane %v1865_v44, 3  ;;  %v1944_v14 = vrot.slane %v1878_v56, 3  ;;  %v1871_v33 = vor.u32 %v1870_v34, %v1869_v60 }
 0x31e   :  { %2996 = vmatpush1.bf16.msra.mxu1 %v9510_v46  ;;  %v1875_v46 = vor.u32 %v1874_v19, %v1873_v18  ;;  %v1881_v18 = vrot.slane %v11079_v9, 2  ;;  %v9524_v19 = vld [vmem:[#allocation6 + $0x194] ss:$8 sps:$4 sm:$0xff]   ;;  %v1814_v9 = vrot.slane %v1812_v47, 1  ;;  %v9546_v47 = vld [vmem:[#allocation6 + $0x210] ss:$8 sps:$4 sm:$0xff]  }
 0x31f   :  { %2997 = vmatprep.subr.bf16.mxu1 %v9515_v53  ;;  %v1858_v53 = vsel %vm396_vm6, %v1854_v55, %v1857_v20  ;;  %v11189_v61 = vsel %vm418_vm7, %v1913_v52, %v1914_v45  ;;  %v1880_v55 = vrot.slane %v11061_v2, 2  ;;  %v1941_v30 = vrot.slane %v1871_v33, 3 }
 0x320   :  { %v1910_v25 = vrot.slane %v1858_v53, 3  ;;  %v1879_v62 = vsel %vm396_vm6, %v1875_v46, %v1878_v56  ;;  %v1917_v49 = vrot.slane %v1881_v18, 3  ;;  %v1890_v52 = vrot.slane %v11104_v42, 2  ;;  %v9522_v53 = vld [vmem:[#allocation6 + $0x190] ss:$8 sps:$4 sm:$0xff]  }
 0x321   :  { %v1943_v41 = vrot.slane %v1879_v62, 3  ;;  %v1810_v2 = vrot.slane %v1808_v43, 1  ;;  %v9548_v43 = vld [vmem:[#allocation6 + $0x214] ss:$8 sps:$4 sm:$0xff]  }
 0x322   :  { %2998 = vmatpush1.bf16.msra.mxu1 %v9513_v6  ;;  %v1883_v6 = vrot.slane %v11067_v5, 2  ;;  %v11194_v28 = vsel %vm418_vm7, %v1910_v25, %v1911_v54  ;;  %v1872_v5 = vsel %vm396_vm6, %v1868_v59, %v1871_v33  ;;  %v1887_v25 = vrot.slane %v11095_v21, 2  ;;  %v9527_v59 = vld [vmem:[#allocation6 + $0x1a4] ss:$8 sps:$4 sm:$0xff]   ;;  %v9552_v21 = vld [vmem:[#allocation6 + $0x230] ss:$8 sps:$4 sm:$0xff]  }
 0x323   :  { %2999 = vmatprep.subr.bf16.mxu1 %v9518_v29  ;;  %v1884_v29 = vrot.slane %v11073_v8, 2  ;;  %v11200_v20 = vsel %vm418_vm7, %v1943_v41, %v1944_v14  ;;  %v1940_v22 = vrot.slane %v1872_v5, 3  ;;  %v1882_v8 = vsel %vm411_vm13, %v1880_v55, %v1881_v18  ;;  %v9530_v55 = vld [vmem:[#allocation6 + $0x1b4] ss:$8 sps:$4 sm:$0xff]   ;;  %v9533_v5 = vld [vmem:[#allocation6 + $0x1c4] ss:$8 sps:$4 sm:$0xff]  }
 0x324   :  { %v1916_v46 = vrot.slane %v1882_v8, 3  ;;  %v1950_v62 = vrot.slane %v1890_v52, 3  ;;  %v1947_v41 = vrot.slane %v1887_v25, 3  ;;  %v9539_v8 = vld [vmem:[#allocation6 + $0x1e4] ss:$8 sps:$4 sm:$0xff]   ;;  %v1811_v42 = vor.u32 %v1810_v2, %v1806_v17 }
 0x325   :  { %v1885_v31 = vsel %vm411_vm13, %v1883_v6, %v1884_v29  ;;  %v1920_v45 = vrot.slane %v1884_v29, 3  ;;  %v11208_v54 = vsel %vm418_vm7, %v1940_v22, %v1941_v30  ;;  %v9525_v29 = vld [vmem:[#allocation6 + $0x1a0] ss:$8 sps:$4 sm:$0xff]   ;;  %v1784_v22 = vrot.slane %v1782_v1, 1  ;;  %v9582_v2 = vld [vmem:[#allocation6 + $0x2d0] ss:$8 sps:$4 sm:$0xff]  }
 0x326   :  { %3000 = vmatpush1.bf16.msra.mxu1 %v9516_v51  ;;  %v1919_v44 = vrot.slane %v1885_v31, 3  ;;  %v1889_v51 = vrot.slane %v11101_v24, 2  ;;  %v11216_v60 = vsel %vm418_vm7, %v1916_v46, %v1917_v49  ;;  %v9531_v30 = vld [vmem:[#allocation6 + $0x1c0] ss:$8 sps:$4 sm:$0xff]   ;;  %v9536_v31 = vld [vmem:[#allocation6 + $0x1d4] ss:$8 sps:$4 sm:$0xff]  }
 0x327   :  { %3001 = vmatprep.subr.bf16.mxu1 %v9521_v57  ;;  %v1886_v57 = vrot.slane %v11092_v37, 2  ;;  %v1788_v46 = vrot.slane %v1786_v3, 1  ;;  %v1785_v49 = vor.u32 %v1784_v22, %v1780_v13  ;;  %v9540_v13 = vld [vmem:[#allocation6 + $0x1f0] ss:$8 sps:$4 sm:$0xff]   ;;  %v9545_v24 = vld [vmem:[#allocation6 + $0x204] ss:$8 sps:$4 sm:$0xff]  }
 0x328   :  { %v11211_v56 = vsel %vm418_vm7, %v1919_v44, %v1920_v45  ;;  %v1891_v34 = vsel %vm411_vm13, %v1889_v51, %v1890_v52  ;;  %v9534_v44 = vld [vmem:[#allocation6 + $0x1d0] ss:$8 sps:$4 sm:$0xff]   ;;  %v1820_v45 = vrot.slane %v1818_v11, 1  ;;  %v1824_v51 = vrot.slane %v1822_v12, 1  ;;  %v9537_v52 = vld [vmem:[#allocation6 + $0x1e0] ss:$8 sps:$4 sm:$0xff]  }
 0x329   :  { %v1949_v14 = vrot.slane %v1891_v34, 3  ;;  %v1888_v6 = vsel %vm411_vm13, %v1886_v57, %v1887_v25  ;;  %v1802_v11 = vor.u32 %v1800_v4, %v1788_v46  ;;  %v1789_v57 = vsel %vm358_vm5, %v1785_v49, %v1788_v46  ;;  %v9551_v37 = vld [vmem:[#allocation6 + $0x224] ss:$8 sps:$4 sm:$0xff]   ;;  %v9561_v22 = vld [vmem:[#allocation6 + $0x260] ss:$8 sps:$4 sm:$0xff]  }
 0x32a   :  { %3002 = vmatpush1.bf16.msra.mxu1 %v9519_v10  ;;  %v1946_v33 = vrot.slane %v1888_v6, 3  ;;  %v1821_v1 = vor.u32 %v1820_v45, %v1816_v0  ;;  %v1831_v3 = vor.u32 %v1829_v16, %v1824_v51  ;;  %v1898_v0 = vrot.slane %v1789_v57, 3  ;;  %v9543_v16 = vld [vmem:[#allocation6 + $0x200] ss:$8 sps:$4 sm:$0xff]   ;;  %v9564_v45 = vld [vmem:[#allocation6 + $0x270] ss:$8 sps:$4 sm:$0xff]  }
 0x32b   :  { %3003 = vmatprep.subr.bf16.mxu1 %v9524_v19  ;;  %v11221_v10 = vsel %vm418_vm7, %v1949_v14, %v1950_v62  ;;  %v9528_v19 = vld [vmem:[#allocation6 + $0x1b0] ss:$8 sps:$4 sm:$0xff]   ;;  %v1899_v25 = vrot.slane %v1802_v11, 3  ;;  %v1828_v62 = vor.u32 %v1826_v48, %v1814_v9  ;;  %v1815_v6 = vsel %vm358_vm5, %v1811_v42, %v1814_v9  ;;  %v9557_v48 = vld [vmem:[#allocation6 + $0x244] ss:$8 sps:$4 sm:$0xff]  }
 0x32c   :  { %v11224_v18 = vsel %vm418_vm7, %v1946_v33, %v1947_v41  ;;  %v1825_v12 = vsel %vm358_vm5, %v1821_v1, %v1824_v51  ;;  %v1928_v17 = vrot.slane %v1815_v6, 3  ;;  %v9549_v33 = vld [vmem:[#allocation6 + $0x220] ss:$8 sps:$4 sm:$0xff]   ;;  %v9572_v46 = vld [vmem:[#allocation6 + $0x294] ss:$8 sps:$4 sm:$0xff]  }
 0x32d   :  { %v1931_v4 = vrot.slane %v1825_v12, 3  ;;  %v1900_v34 = vsel %vm418_vm7, %v1898_v0, %v1899_v25  ;;  %v1929_v41 = vrot.slane %v1828_v62, 3  ;;  %v9570_v49 = vld [vmem:[#allocation6 + $0x290] ss:$8 sps:$4 sm:$0xff]   ;;  %v9575_v51 = vld [vmem:[#allocation6 + $0x2a4] ss:$8 sps:$4 sm:$0xff]  }
 0x32e   :  { %3004 = vmatpush1.bf16.msra.mxu1 %v9522_v53  ;;  %v9542_v53 = vld [vmem:[#allocation6 + $0x1f4] ss:$8 sps:$4 sm:$0xff]   ;;  %v9581_v11 = vld [vmem:[#allocation6 + $0x2c4] ss:$8 sps:$4 sm:$0xff]   ;;  %v9579_v57 = vld [vmem:[#allocation6 + $0x2c0] ss:$8 sps:$4 sm:$0xff]  }
 0x32f   :  { %3005 = vmatprep.subr.bf16.mxu1 %v9527_v59  ;;  %v1932_v59 = vrot.slane %v1831_v3, 3  ;;  %v9578_v1 = vld [vmem:[#allocation6 + $0x2b4] ss:$8 sps:$4 sm:$0xff]   ;;  %v9585_v12 = vld [vmem:[#allocation6 + $0x2e0] ss:$8 sps:$4 sm:$0xff]  }
 0x330   :  { %v9584_v3 = vld [vmem:[#allocation6 + $0x2d4] ss:$8 sps:$4 sm:$0xff]   ;;  %v9588_v0 = vld [vmem:[#allocation6 + $0x2f0] ss:$8 sps:$4 sm:$0xff]   ;;  %v9593_v25 = vld [vmem:[#allocation6 + $0x304] ss:$8 sps:$4 sm:$0xff]  }
 0x331   :  { %v1933_v14 = vsel %vm418_vm7, %v1931_v4, %v1932_v59  ;;  %v9591_v9 = vld [vmem:[#allocation6 + $0x300] ss:$8 sps:$4 sm:$0xff]   ;;  %v9596_v4 = vld [vmem:[#allocation6 + $0x314] ss:$8 sps:$4 sm:$0xff]   ;;  %v9594_v59 = vld [vmem:[#allocation6 + $0x310] ss:$8 sps:$4 sm:$0xff]  }
 0x332   :  { %3006 = vmatpush1.bf16.msra.mxu1 %v9525_v29  ;;  %v9554_v29 = vld [vmem:[#allocation6 + $0x234] ss:$8 sps:$4 sm:$0xff]   ;;  %v9599_v42 = vld [vmem:[#allocation6 + $0x324] ss:$8 sps:$4 sm:$0xff]  }
 0x333   :  { %3007 = vmatprep.subr.bf16.mxu1 %v9530_v55  ;;  %v1930_v55 = vsel %vm418_vm7, %v1928_v17, %v1929_v41  ;;  %v9689_v62 = vld [vmem:[#allocation7 + $0x4] ss:$8 sps:$4 sm:$0xff]   ;;  %v9692_v6 = vld [vmem:[#allocation7 + $0x14] ss:$8 sps:$4 sm:$0xff]  }
 0x334   :  { %4417 = vmatprep.subr.bf16.mxu0 %v9689_v62  ;;  %v9608_v17 = vld [vmem:[#allocation6 + $0x354] ss:$8 sps:$4 sm:$0xff]   ;;  %v9636_v62 = vld [vmem:[#allocation6 + $0x3f0] ss:$8 sps:$4 sm:$0xff]  }
 0x335   :  { %v9698_v41 = vld [vmem:[#allocation7 + $0x34] ss:$8 sps:$4 sm:$0xff]  }
 0x336   :  { %3008 = vmatpush1.bf16.msra.mxu1 %v9528_v19  ;;  %v9555_v19 = vld [vmem:[#allocation6 + $0x240] ss:$8 sps:$4 sm:$0xff]  }
 0x337   :  { %3009 = vmatprep.subr.bf16.mxu1 %v9533_v5  ;;  %v9560_v5 = vld [vmem:[#allocation6 + $0x254] ss:$8 sps:$4 sm:$0xff]  }
 0x33a   :  { %3010 = vmatpush1.bf16.msra.mxu1 %v9531_v30  ;;  %v9558_v30 = vld [vmem:[#allocation6 + $0x250] ss:$8 sps:$4 sm:$0xff]  }
 0x33b   :  { %3011 = vmatprep.subr.bf16.mxu1 %v9536_v31  ;;  %v9563_v31 = vld [vmem:[#allocation6 + $0x264] ss:$8 sps:$4 sm:$0xff]  }
 0x33e   :  { %3012 = vmatpush1.bf16.msra.mxu1 %v9534_v44  ;;  %v9566_v44 = vld [vmem:[#allocation6 + $0x274] ss:$8 sps:$4 sm:$0xff]  }
 0x33f   :  { %3013 = vmatprep.subr.bf16.mxu1 %v9539_v8  ;;  %v9569_v8 = vld [vmem:[#allocation6 + $0x284] ss:$8 sps:$4 sm:$0xff]  }
 0x342   :  { %3014 = vmatpush1.bf16.msra.mxu1 %v9537_v52  ;;  %v9573_v52 = vld [vmem:[#allocation6 + $0x2a0] ss:$8 sps:$4 sm:$0xff]  }
 0x343   :  { %3015 = vmatprep.subr.bf16.mxu1 %v9542_v53  ;;  %v9576_v53 = vld [vmem:[#allocation6 + $0x2b0] ss:$8 sps:$4 sm:$0xff]  }
 0x346   :  { %3016 = vmatpush1.bf16.msra.mxu1 %v9540_v13  ;;  %v9587_v13 = vld [vmem:[#allocation6 + $0x2e4] ss:$8 sps:$4 sm:$0xff]  }
 0x347   :  { %3038 = vmatprep.subr.bf16.mxu1 %v9545_v24  ;;  %v9590_v24 = vld [vmem:[#allocation6 + $0x2f4] ss:$8 sps:$4 sm:$0xff]  }
 0x349   :  { %3018 = vmatmul.mubr.bf16.vlgmr.msra.gmra.mrb[20].mxu1 %v1900_v34  ;;  %v9687_v34 = vld [vmem:[#allocation7] ss:$8 sps:$4 sm:$0xff]  }
 0x34a   :  { %3027 = vmatprep.mubr.bf16.mxu1 %v1933_v14  ;;  %3039 = vmatpush1.bf16.msra.mxu1 %v9543_v16  ;;  %v9597_v16 = vld [vmem:[#allocation6 + $0x320] ss:$8 sps:$4 sm:$0xff]   ;;  %v9600_v14 = vld [vmem:[#allocation6 + $0x330] ss:$8 sps:$4 sm:$0xff]  }
 0x34b   :  { %3040 = vmatprep.subr.bf16.mxu1 %v9548_v43  ;;  %v9602_v43 = vld [vmem:[#allocation6 + $0x334] ss:$8 sps:$4 sm:$0xff]   ;;  %4418 = vmatpush1.bf16.msra.mxu0 %v9687_v34 }
 0x34c   :  { %4419 = vmatprep.subr.bf16.mxu0 %v9692_v6  ;;  %v9638_v34 = vld [vmem:[#allocation6 + $0x3f4] ss:$8 sps:$4 sm:$0xff]   ;;  %v9639_v6 = vld [vmem:[#allocation6 + $0x400] ss:$8 sps:$4 sm:$0xff]  }
 0x34e   :  { %3041 = vmatpush1.bf16.msra.mxu1 %v9546_v47  ;;  %v9695_v47 = vld [vmem:[#allocation7 + $0x24] ss:$8 sps:$4 sm:$0xff]  }
 0x34f   :  { %3042 = vmatprep.subr.bf16.mxu1 %v9551_v37  ;;  %v9603_v37 = vld [vmem:[#allocation6 + $0x340] ss:$8 sps:$4 sm:$0xff]  }
 0x351   :  { %3028 = vmatmul.mubr.bf16.gmra.mrb[24].mxu1 %v1930_v55  ;;  %v9701_v55 = vld [vmem:[#allocation7 + $0x44] ss:$8 sps:$4 sm:$0xff]  }
 0x352   :  { %3043 = vmatpush1.bf16.msra.mxu1 %v9549_v33  ;;  %3070 = vmatprep.mubr.bf16.mxu1 %v11138_v39  ;;  %v9567_v39 = vld [vmem:[#allocation6 + $0x280] ss:$8 sps:$4 sm:$0xff]   ;;  %v9606_v33 = vld [vmem:[#allocation6 + $0x350] ss:$8 sps:$4 sm:$0xff]  }
 0x353   :  { %3044 = vmatprep.subr.bf16.mxu1 %v9554_v29  ;;  %v9696_v29 = vld [vmem:[#allocation7 + $0x30] ss:$8 sps:$4 sm:$0xff]  }
 0x356   :  { %3045 = vmatpush1.bf16.msra.mxu1 %v9552_v21  ;;  %v9609_v21 = vld [vmem:[#allocation6 + $0x360] ss:$8 sps:$4 sm:$0xff]  }
 0x357   :  { %3046 = vmatprep.subr.bf16.mxu1 %v9557_v48  ;;  %v9614_v48 = vld [vmem:[#allocation6 + $0x374] ss:$8 sps:$4 sm:$0xff]  }
 0x35a   :  { %3047 = vmatpush1.bf16.msra.mxu1 %v9555_v19  ;;  %v9699_v19 = vld [vmem:[#allocation7 + $0x40] ss:$8 sps:$4 sm:$0xff]  }
 0x35b   :  { %3048 = vmatprep.subr.bf16.mxu1 %v9560_v5  ;;  %v9704_v5 = vld [vmem:[#allocation7 + $0x54] ss:$8 sps:$4 sm:$0xff]  }
 0x35e   :  { %3049 = vmatpush1.bf16.msra.mxu1 %v9558_v30  ;;  %v9612_v30 = vld [vmem:[#allocation6 + $0x370] ss:$8 sps:$4 sm:$0xff]  }
 0x35f   :  { %3050 = vmatprep.subr.bf16.mxu1 %v9563_v31  ;;  %v9617_v31 = vld [vmem:[#allocation6 + $0x384] ss:$8 sps:$4 sm:$0xff]  }
 0x362   :  { %3051 = vmatpush1.bf16.msra.mxu1 %v9561_v22  ;;  %v9702_v22 = vld [vmem:[#allocation7 + $0x50] ss:$8 sps:$4 sm:$0xff]  }
 0x363   :  { %3052 = vmatprep.subr.bf16.mxu1 %v9566_v44  ;;  %v9707_v44 = vld [vmem:[#allocation7 + $0x64] ss:$8 sps:$4 sm:$0xff]  }
 0x366   :  { %3053 = vmatpush1.bf16.msra.mxu1 %v9564_v45  ;;  %v9615_v45 = vld [vmem:[#allocation6 + $0x380] ss:$8 sps:$4 sm:$0xff]  }
 0x367   :  { %3054 = vmatprep.subr.bf16.mxu1 %v9569_v8  ;;  %v9620_v8 = vld [vmem:[#allocation6 + $0x394] ss:$8 sps:$4 sm:$0xff]  }
 0x36a   :  { %3055 = vmatpush1.bf16.msra.mxu1 %v9567_v39  ;;  %v9705_v39 = vld [vmem:[#allocation7 + $0x60] ss:$8 sps:$4 sm:$0xff]  }
 0x36b   :  { %3056 = vmatprep.subr.bf16.mxu1 %v9572_v46  ;;  %v9710_v46 = vld [vmem:[#allocation7 + $0x74] ss:$8 sps:$4 sm:$0xff]  }
 0x36e   :  { %3057 = vmatpush1.bf16.msra.mxu1 %v9570_v49  ;;  %v9618_v49 = vld [vmem:[#allocation6 + $0x390] ss:$8 sps:$4 sm:$0xff]  }
 0x36f   :  { %3058 = vmatprep.subr.bf16.mxu1 %v9575_v51  ;;  %v9623_v51 = vld [vmem:[#allocation6 + $0x3a4] ss:$8 sps:$4 sm:$0xff]  }
 0x372   :  { %3059 = vmatpush1.bf16.msra.mxu1 %v9573_v52  ;;  %v9708_v52 = vld [vmem:[#allocation7 + $0x70] ss:$8 sps:$4 sm:$0xff]  }
 0x373   :  { %3060 = vmatprep.subr.bf16.mxu1 %v9578_v1  ;;  %v9713_v1 = vld [vmem:[#allocation7 + $0x84] ss:$8 sps:$4 sm:$0xff]  }
 0x376   :  { %3061 = vmatpush1.bf16.msra.mxu1 %v9576_v53  ;;  %v9621_v53 = vld [vmem:[#allocation6 + $0x3a0] ss:$8 sps:$4 sm:$0xff]  }
 0x377   :  { %3062 = vmatprep.subr.bf16.mxu1 %v9581_v11  ;;  %v9626_v11 = vld [vmem:[#allocation6 + $0x3b4] ss:$8 sps:$4 sm:$0xff]  }
 0x37a   :  { %3063 = vmatpush1.bf16.msra.mxu1 %v9579_v57  ;;  %v9711_v57 = vld [vmem:[#allocation7 + $0x80] ss:$8 sps:$4 sm:$0xff]  }
 0x37b   :  { %3064 = vmatprep.subr.bf16.mxu1 %v9584_v3  ;;  %v9716_v3 = vld [vmem:[#allocation7 + $0x94] ss:$8 sps:$4 sm:$0xff]  }
 0x37e   :  { %3065 = vmatpush1.bf16.msra.mxu1 %v9582_v2  ;;  %v9624_v2 = vld [vmem:[#allocation6 + $0x3b0] ss:$8 sps:$4 sm:$0xff]  }
 0x37f   :  { %3066 = vmatprep.subr.bf16.mxu1 %v9587_v13  ;;  %v9629_v13 = vld [vmem:[#allocation6 + $0x3c4] ss:$8 sps:$4 sm:$0xff]  }
 0x382   :  { %3067 = vmatpush1.bf16.msra.mxu1 %v9585_v12  ;;  %v9714_v12 = vld [vmem:[#allocation7 + $0x90] ss:$8 sps:$4 sm:$0xff]  }
 0x383   :  { %3068 = vmatprep.subr.bf16.mxu1 %v9590_v24  ;;  %v9719_v24 = vld [vmem:[#allocation7 + $0xa4] ss:$8 sps:$4 sm:$0xff]  }
 0x386   :  { %3069 = vmatpush1.bf16.msra.mxu1 %v9588_v0  ;;  %v9627_v0 = vld [vmem:[#allocation6 + $0x3c0] ss:$8 sps:$4 sm:$0xff]  }
 0x387   :  { %3091 = vmatprep.subr.bf16.mxu1 %v9593_v25  ;;  %v9632_v25 = vld [vmem:[#allocation6 + $0x3d4] ss:$8 sps:$4 sm:$0xff]  }
 0x389   :  { %3071 = vmatmul.mubr.bf16.vlgmr.msra.gmra.mrb[20].mxu1 %v11148_v58  ;;  %v9605_v58 = vld [vmem:[#allocation6 + $0x344] ss:$8 sps:$4 sm:$0xff]  }
 0x38a   :  { %3080 = vmatprep.mubr.bf16.mxu1 %v11155_v26  ;;  %3092 = vmatpush1.bf16.msra.mxu1 %v9591_v9  ;;  %v9690_v26 = vld [vmem:[#allocation7 + $0x10] ss:$8 sps:$4 sm:$0xff]   ;;  %v9717_v9 = vld [vmem:[#allocation7 + $0xa0] ss:$8 sps:$4 sm:$0xff]  }
 0x38b   :  { %3093 = vmatprep.subr.bf16.mxu1 %v9596_v4  ;;  %4420 = vmatpush1.bf16.msra.mxu0 %v9690_v26  ;;  %v9722_v4 = vld [vmem:[#allocation7 + $0xb4] ss:$8 sps:$4 sm:$0xff]   ;;  %v9642_v26 = vld [vmem:[#allocation6 + $0x410] ss:$8 sps:$4 sm:$0xff]  }
 0x38c   :  { %4421 = vmatprep.subr.bf16.mxu0 %v9695_v47  ;;  %v9647_v47 = vld [vmem:[#allocation6 + $0x424] ss:$8 sps:$4 sm:$0xff]  }
 0x38e   :  { %3094 = vmatpush1.bf16.msra.mxu1 %v9594_v59  ;;  %v9630_v59 = vld [vmem:[#allocation6 + $0x3d0] ss:$8 sps:$4 sm:$0xff]  }
 0x38f   :  { %3095 = vmatprep.subr.bf16.mxu1 %v9599_v42  ;;  %v9635_v42 = vld [vmem:[#allocation6 + $0x3e4] ss:$8 sps:$4 sm:$0xff]  }
 0x391   :  { %3081 = vmatmul.mubr.bf16.gmra.mrb[24].mxu1 %v11164_v7  ;;  %v9693_v7 = vld [vmem:[#allocation7 + $0x20] ss:$8 sps:$4 sm:$0xff]  }
 0x392   :  { %3096 = vmatpush1.bf16.msra.mxu1 %v9597_v16  ;;  %3123 = vmatprep.mubr.bf16.mxu1 %v11189_v61  ;;  %v9611_v61 = vld [vmem:[#allocation6 + $0x364] ss:$8 sps:$4 sm:$0xff]   ;;  %v9720_v16 = vld [vmem:[#allocation7 + $0xb0] ss:$8 sps:$4 sm:$0xff]  }
 0x393   :  { %3097 = vmatprep.subr.bf16.mxu1 %v9602_v43  ;;  %4422 = vmatpush1.bf16.msra.mxu0 %v9693_v7  ;;  %v9633_v43 = vld [vmem:[#allocation6 + $0x3e0] ss:$8 sps:$4 sm:$0xff]   ;;  %v9648_v7 = vld [vmem:[#allocation6 + $0x430] ss:$8 sps:$4 sm:$0xff]  }
 0x394   :  { %4423 = vmatprep.subr.bf16.mxu0 %v9698_v41  ;;  %v9653_v41 = vld [vmem:[#allocation6 + $0x444] ss:$8 sps:$4 sm:$0xff]  }
 0x396   :  { %3098 = vmatpush1.bf16.msra.mxu1 %v9600_v14  ;;  %v9641_v14 = vld [vmem:[#allocation6 + $0x404] ss:$8 sps:$4 sm:$0xff]  }
 0x397   :  { %3099 = vmatprep.subr.bf16.mxu1 %v9605_v58  ;;  %4424 = vmatpush1.bf16.msra.mxu0 %v9696_v29  ;;  %v9644_v58 = vld [vmem:[#allocation6 + $0x414] ss:$8 sps:$4 sm:$0xff]   ;;  %v9657_v29 = vld [vmem:[#allocation6 + $0x460] ss:$8 sps:$4 sm:$0xff]  }
 0x398   :  { %4425 = vmatprep.subr.bf16.mxu0 %v9701_v55  ;;  %v9662_v55 = vld [vmem:[#allocation6 + $0x474] ss:$8 sps:$4 sm:$0xff]  }
 0x39a   :  { %3100 = vmatpush1.bf16.msra.mxu1 %v9603_v37  ;;  %v9645_v37 = vld [vmem:[#allocation6 + $0x420] ss:$8 sps:$4 sm:$0xff]  }
 0x39b   :  { %3101 = vmatprep.subr.bf16.mxu1 %v9608_v17  ;;  %4426 = vmatpush1.bf16.msra.mxu0 %v9699_v19  ;;  %v9650_v17 = vld [vmem:[#allocation6 + $0x434] ss:$8 sps:$4 sm:$0xff]   ;;  %v9666_v19 = vld [vmem:[#allocation6 + $0x490] ss:$8 sps:$4 sm:$0xff]  }
 0x39c   :  { %4427 = vmatprep.subr.bf16.mxu0 %v9704_v5  ;;  %v9671_v5 = vld [vmem:[#allocation6 + $0x4a4] ss:$8 sps:$4 sm:$0xff]  }
 0x39e   :  { %3102 = vmatpush1.bf16.msra.mxu1 %v9606_v33  ;;  %v9654_v33 = vld [vmem:[#allocation6 + $0x450] ss:$8 sps:$4 sm:$0xff]  }
 0x39f   :  { %3103 = vmatprep.subr.bf16.mxu1 %v9611_v61  ;;  %4428 = vmatpush1.bf16.msra.mxu0 %v9702_v22  ;;  %v9659_v61 = vld [vmem:[#allocation6 + $0x464] ss:$8 sps:$4 sm:$0xff]   ;;  %v9672_v22 = vld [vmem:[#allocation6 + $0x4b0] ss:$8 sps:$4 sm:$0xff]  }
 0x3a0   :  { %4429 = vmatprep.subr.bf16.mxu0 %v9707_v44  ;;  %v9677_v44 = vld [vmem:[#allocation6 + $0x4c4] ss:$8 sps:$4 sm:$0xff]  }
 0x3a2   :  { %3104 = vmatpush1.bf16.msra.mxu1 %v9609_v21  ;;  %v9665_v21 = vld [vmem:[#allocation6 + $0x484] ss:$8 sps:$4 sm:$0xff]  }
 0x3a3   :  { %3105 = vmatprep.subr.bf16.mxu1 %v9614_v48  ;;  %4430 = vmatpush1.bf16.msra.mxu0 %v9705_v39  ;;  %v9668_v48 = vld [vmem:[#allocation6 + $0x494] ss:$8 sps:$4 sm:$0xff]   ;;  %v9678_v39 = vld [vmem:[#allocation6 + $0x4d0] ss:$8 sps:$4 sm:$0xff]  }
 0x3a4   :  { %4431 = vmatprep.subr.bf16.mxu0 %v9710_v46  ;;  %v9683_v46 = vld [vmem:[#allocation6 + $0x4e4] ss:$8 sps:$4 sm:$0xff]  }
 0x3a6   :  { %3106 = vmatpush1.bf16.msra.mxu1 %v9612_v30  ;;  %v9669_v30 = vld [vmem:[#allocation6 + $0x4a0] ss:$8 sps:$4 sm:$0xff]  }
 0x3a7   :  { %3107 = vmatprep.subr.bf16.mxu1 %v9617_v31  ;;  %4432 = vmatpush1.bf16.msra.mxu0 %v9708_v52  ;;  %v9674_v31 = vld [vmem:[#allocation6 + $0x4b4] ss:$8 sps:$4 sm:$0xff]   ;;  %v9684_v52 = vld [vmem:[#allocation6 + $0x4f0] ss:$8 sps:$4 sm:$0xff]  }
 0x3a8   :  { %4433 = vmatprep.subr.bf16.mxu0 %v9713_v1  ;;  %v9723_v1 = vld [vmem:[#allocation7 + $0xc0] ss:$8 sps:$4 sm:$0xff]  }
 0x3aa   :  { %3108 = vmatpush1.bf16.msra.mxu1 %v9615_v45  ;;  %v9675_v45 = vld [vmem:[#allocation6 + $0x4c0] ss:$8 sps:$4 sm:$0xff]  }
 0x3ab   :  { %3109 = vmatprep.subr.bf16.mxu1 %v9620_v8  ;;  %4434 = vmatpush1.bf16.msra.mxu0 %v9711_v57  ;;  %v9680_v8 = vld [vmem:[#allocation6 + $0x4d4] ss:$8 sps:$4 sm:$0xff]  }
 0x3ac   :  { %4435 = vmatprep.subr.bf16.mxu0 %v9716_v3  ;;  %v9728_v57 = vld [vmem:[#allocation7 + $0xd4] ss:$8 sps:$4 sm:$0xff]   ;;  %v9731_v3 = vld [vmem:[#allocation7 + $0xe4] ss:$8 sps:$4 sm:$0xff]  }
 0x3ae   :  { %3110 = vmatpush1.bf16.msra.mxu1 %v9618_v49  ;;  %v9681_v49 = vld [vmem:[#allocation6 + $0x4e0] ss:$8 sps:$4 sm:$0xff]  }
 0x3af   :  { %3111 = vmatprep.subr.bf16.mxu1 %v9623_v51  ;;  %4436 = vmatpush1.bf16.msra.mxu0 %v9714_v12  ;;  %v9686_v51 = vld [vmem:[#allocation6 + $0x4f4] ss:$8 sps:$4 sm:$0xff]  }
 0x3b0   :  { %4437 = vmatprep.subr.bf16.mxu0 %v9719_v24  ;;  %v9734_v12 = vld [vmem:[#allocation7 + $0xf4] ss:$8 sps:$4 sm:$0xff]   ;;  %v9737_v24 = vld [vmem:[#allocation7 + $0x104] ss:$8 sps:$4 sm:$0xff]  }
 0x3b2   :  { %3112 = vmatpush1.bf16.msra.mxu1 %v9621_v53  ;;  %v9725_v53 = vld [vmem:[#allocation7 + $0xc4] ss:$8 sps:$4 sm:$0xff]  }
 0x3b3   :  { %3113 = vmatprep.subr.bf16.mxu1 %v9626_v11  ;;  %4438 = vmatpush1.bf16.msra.mxu0 %v9717_v9  ;;  %v9726_v11 = vld [vmem:[#allocation7 + $0xd0] ss:$8 sps:$4 sm:$0xff]  }
 0x3b4   :  { %4439 = vmatprep.subr.bf16.mxu0 %v9722_v4 }
 0x3b6   :  { %3114 = vmatpush1.bf16.msra.mxu1 %v9624_v2  ;;  %v9729_v2 = vld [vmem:[#allocation7 + $0xe0] ss:$8 sps:$4 sm:$0xff]  }
 0x3b7   :  { %3115 = vmatprep.subr.bf16.mxu1 %v9629_v13  ;;  %4440 = vmatpush1.bf16.msra.mxu0 %v9720_v16  ;;  %v9732_v13 = vld [vmem:[#allocation7 + $0xf0] ss:$8 sps:$4 sm:$0xff]  }
 0x3b8   :  { %4441 = vmatprep.subr.bf16.mxu0 %v9725_v53 }
 0x3ba   :  { %3116 = vmatpush1.bf16.msra.mxu1 %v9627_v0 }
 0x3bb   :  { %3117 = vmatprep.subr.bf16.mxu1 %v9632_v25  ;;  %4442 = vmatpush1.bf16.msra.mxu0 %v9723_v1 }
 0x3bc   :  { %4443 = vmatprep.subr.bf16.mxu0 %v9728_v57 }
 0x3be   :  { %3118 = vmatpush1.bf16.msra.mxu1 %v9630_v59 }
 0x3bf   :  { %3119 = vmatprep.subr.bf16.mxu1 %v9635_v42  ;;  %4444 = vmatpush1.bf16.msra.mxu0 %v9726_v11  ;;  %v9735_v11 = vld [vmem:[#allocation7 + $0x100] ss:$8 sps:$4 sm:$0xff]  }
 0x3c0   :  { %4445 = vmatprep.subr.bf16.mxu0 %v9731_v3 }
 0x3c2   :  { %3120 = vmatpush1.bf16.msra.mxu1 %v9633_v43 }
 0x3c3   :  { %3121 = vmatprep.subr.bf16.mxu1 %v9638_v34  ;;  %4446 = vmatpush1.bf16.msra.mxu0 %v9729_v2 }
 0x3c4   :  { %4447 = vmatprep.subr.bf16.mxu0 %v9734_v12 }
 0x3c6   :  { %3122 = vmatpush1.bf16.msra.mxu1 %v9636_v62 }
 0x3c7   :  { %3144 = vmatprep.subr.bf16.mxu1 %v9641_v14  ;;  %4448 = vmatpush1.bf16.msra.mxu0 %v9732_v13  ;;  %v9740_v13 = vld [vmem:[#allocation7 + $0x114] ss:$8 sps:$4 sm:$0xff]  }
 0x3c8   :  { %4470 = vmatprep.subr.bf16.mxu0 %v9737_v24 }
 0x3c9   :  { %3124 = vmatmul.mubr.bf16.vlgmr.msra.gmra.mrb[20].mxu1 %v11194_v28  ;;  %v9651_v28 = vld [vmem:[#allocation6 + $0x440] ss:$8 sps:$4 sm:$0xff]  }
 0x3ca   :  { %3133 = vmatprep.mubr.bf16.mxu1 %v11200_v20  ;;  %3145 = vmatpush1.bf16.msra.mxu1 %v9639_v6  ;;  %v9656_v20 = vld [vmem:[#allocation6 + $0x454] ss:$8 sps:$4 sm:$0xff]  }
 0x3cb   :  { %3146 = vmatprep.subr.bf16.mxu1 %v9644_v58 }
 0x3ce   :  { %3147 = vmatpush1.bf16.msra.mxu1 %v9642_v26 }
 0x3cf   :  { %3148 = vmatprep.subr.bf16.mxu1 %v9647_v47 }
 0x3d1   :  { %3134 = vmatmul.mubr.bf16.gmra.mrb[24].mxu1 %v11208_v54  ;;  %v9660_v54 = vld [vmem:[#allocation6 + $0x470] ss:$8 sps:$4 sm:$0xff]  }
 0x3d2   :  { %3149 = vmatpush1.bf16.msra.mxu1 %v9645_v37  ;;  %3176 = vmatprep.mubr.bf16.mxu1 %v11211_v56  ;;  %v9663_v56 = vld [vmem:[#allocation6 + $0x480] ss:$8 sps:$4 sm:$0xff]  }
 0x3d3   :  { %3150 = vmatprep.subr.bf16.mxu1 %v9650_v17 }
 0x3d6   :  { %3151 = vmatpush1.bf16.msra.mxu1 %v9648_v7 }
 0x3d7   :  { %3152 = vmatprep.subr.bf16.mxu1 %v9653_v41 }
 0x3da   :  { %3153 = vmatpush1.bf16.msra.mxu1 %v9651_v28 }
 0x3db   :  { %3154 = vmatprep.subr.bf16.mxu1 %v9656_v20 }
 0x3de   :  { %3155 = vmatpush1.bf16.msra.mxu1 %v9654_v33 }
 0x3df   :  { %3156 = vmatprep.subr.bf16.mxu1 %v9659_v61 }
 0x3e2   :  { %3157 = vmatpush1.bf16.msra.mxu1 %v9657_v29 }
 0x3e3   :  { %3158 = vmatprep.subr.bf16.mxu1 %v9662_v55 }
 0x3e6   :  { %3159 = vmatpush1.bf16.msra.mxu1 %v9660_v54 }
 0x3e7   :  { %3160 = vmatprep.subr.bf16.mxu1 %v9665_v21 }
 0x3ea   :  { %3161 = vmatpush1.bf16.msra.mxu1 %v9663_v56 }
 0x3eb   :  { %3162 = vmatprep.subr.bf16.mxu1 %v9668_v48 }
 0x3ee   :  { %3163 = vmatpush1.bf16.msra.mxu1 %v9666_v19 }
 0x3ef   :  { %3164 = vmatprep.subr.bf16.mxu1 %v9671_v5 }
 0x3f2   :  { %3165 = vmatpush1.bf16.msra.mxu1 %v9669_v30 }
 0x3f3   :  { %3166 = vmatprep.subr.bf16.mxu1 %v9674_v31 }
 0x3f6   :  { %3167 = vmatpush1.bf16.msra.mxu1 %v9672_v22 }
 0x3f7   :  { %3168 = vmatprep.subr.bf16.mxu1 %v9677_v44 }
 0x3fa   :  { %3169 = vmatpush1.bf16.msra.mxu1 %v9675_v45 }
 0x3fb   :  { %3170 = vmatprep.subr.bf16.mxu1 %v9680_v8 }
 0x3fe   :  { %3171 = vmatpush1.bf16.msra.mxu1 %v9678_v39 }
 0x3ff   :  { %3172 = vmatprep.subr.bf16.mxu1 %v9683_v46 }
 0x402   :  { %3173 = vmatpush1.bf16.msra.mxu1 %v9681_v49 }
 0x403   :  { %3174 = vmatprep.subr.bf16.mxu1 %v9686_v51 }
 0x406   :  { %3175 = vmatpush1.bf16.msra.mxu1 %v9684_v52 }
 0x409   :  { %3177 = vmatmul.mubr.bf16.vlgmr.msra.gmra.mrb[20].mxu1 %v11216_v60  ;;  %v3197_v60 = vld [vmem:[%s12151_s9] sm:$0x3] }
 0x40a   :  { %3186 = vmatprep.mubr.bf16.mxu1 %v11221_v10  ;;  %v3202_v10 = vrot.slane %v3197_v60, %v11011_v15 }
 0x411   :  { %3187 = vmatmul.mubr.bf16.gmra.mrb[24].mxu1 %v11224_v18  ;;  %v3206_v18 = vrot.slane %v3197_v60, %v11016_v32 }
 0x4dc   :  { %v3178_v0 = vpop.f32.mrb[20].mxu1 }
 0x4dd   :  { %v3209_v25 = vadd.f32 %v3202_v10, %v3178_v0  ;;  %v3180_v9 = vpop.f32.mrb[21].mxu1 }
 0x4de   :  { %v3210_v4 = vadd.f32 %v3206_v18, %v3180_v9  ;;  %v3182_v59 = vpop.f32.mrb[22].mxu1 }
 0x4df   :  { %v3225_v42 = vmul.f32 0.2, %v3209_v25  ;;  %v3211_v16 = vadd.f32 %v3202_v10, %v3182_v59  ;;  %v3184_v43 = vpop.f32.mrb[23].mxu1  ;;  %vm3217_vm0 = vcmp.ge.f32.partialorder %v3209_v25, 0.0 }
 0x4e0   :  { %v3226_v34 = vmul.f32 0.2, %v3210_v4  ;;  %v3212_v62 = vadd.f32 %v3206_v18, %v3184_v43  ;;  %vm3218_vm1 = vcmp.ge.f32.partialorder %v3210_v4, 0.0 }
 0x4e1   :  { %vm3219_vm2 = vcmp.ge.f32.partialorder %v3211_v16, 0.0  ;;  %v3227_v14 = vmul.f32 0.2, %v3211_v16  ;;  %v3233_v58 = vsel %vm3217_vm0, %v3209_v25, %v3225_v42 }
 0x4e2   :  { %vm3220_vm3 = vcmp.ge.f32.partialorder %v3212_v62, 0.0  ;;  %v3228_v6 = vmul.f32 0.2, %v3212_v62  ;;  %v3234_v47 = vsel %vm3218_vm1, %v3210_v4, %v3226_v34  ;;  %v9738_v4 = vld [vmem:[#allocation7 + $0x110] ss:$8 sps:$4 sm:$0xff]  }
 0x4e3   :  { %v3235_v26 = vsel %vm3219_vm2, %v3211_v16, %v3227_v14  ;;  %v9743_v34 = vld [vmem:[#allocation7 + $0x124] ss:$8 sps:$4 sm:$0xff]  }
 0x4e4   :  { %v3241_v37 = vpack.c.bf16 %v3235_v26, %v3233_v58  ;;  %v3236_v17 = vsel %vm3220_vm3, %v3212_v62, %v3228_v6  ;;  %v3188_v7 = vpop.f32.mrb[24].mxu1 }
 0x4e5   :  { %v3242_v41 = vpack.c.bf16 %v3236_v17, %v3234_v47  ;;  %v3213_v28 = vadd.f32 %v3202_v10, %v3188_v7  ;;  %v3190_v20 = vpop.f32.mrb[25].mxu1 }
 0x4e6   :  { %v3249_v33 = vrot.slane %v3241_v37, 4  ;;  %v3192_v61 = vpop.f32.mrb[26].mxu1  ;;  %v3214_v54 = vadd.f32 %v3206_v18, %v3190_v20 }
 0x4e7   :  { %v3250_v29 = vrot.slane %v3242_v41, 4  ;;  %v3229_v55 = vmul.f32 0.2, %v3213_v28  ;;  %v3194_v21 = vpop.f32.mrb[27].mxu1  ;;  %vm3221_vm8 = vcmp.ge.f32.partialorder %v3213_v28, 0.0  ;;  %v3215_v56 = vadd.f32 %v3202_v10, %v3192_v61 }
 0x4e8   :  { %v11274_v48 = vsel %vm350_vm4, 0, %v3249_v33  ;;  %v11277_v19 = vsel %vm350_vm4, %v3249_v33, 0  ;;  %vm3222_vm9 = vcmp.ge.f32.partialorder %v3214_v54, 0.0  ;;  %v3230_v44 = vmul.f32 0.2, %v3214_v54 }
 0x4e9   :  { %v11280_v5 = vsel %vm350_vm4, 0, %v3250_v29  ;;  %v11283_v30 = vsel %vm350_vm4, %v3250_v29, 0  ;;  %v3237_v22 = vsel %vm3221_vm8, %v3213_v28, %v3229_v55  ;;  %vm3223_vm11 = vcmp.ge.f32.partialorder %v3215_v56, 0.0  ;;  %v9741_v41 = vld [vmem:[#allocation7 + $0x120] ss:$8 sps:$4 sm:$0xff]  }
 0x4ea   :  { %v3277_v31 = vshll.u32 %v11280_v5, 16  ;;  %v3231_v45 = vmul.f32 0.2, %v3215_v56  ;;  %v3216_v8 = vadd.f32 %v3206_v18, %v3194_v21  ;;  %v3380_v39 = vrot.slane %v11280_v5, 3 }
 0x4eb   :  { %v3381_v46 = vrot.slane %v11283_v30, 3  ;;  %v3377_v49 = vrot.slane %v11274_v48, 3  ;;  %v3378_v51 = vrot.slane %v11277_v19, 3  ;;  %v3275_v52 = vshrl.u32 %v11280_v5, 16 }
 0x4ec   :  { %v3239_v1 = vsel %vm3223_vm11, %v3215_v56, %v3231_v45  ;;  %vm3224_vm12 = vcmp.ge.f32.partialorder %v3216_v8, 0.0  ;;  %v3232_v53 = vmul.f32 0.2, %v3216_v8  ;;  %v3279_v57 = vrot.slane %v3277_v31, 1 }
 0x4ed   :  { %v3243_v3 = vpack.c.bf16 %v3239_v1, %v3237_v22  ;;  %v3382_v2 = vsel %vm418_vm7, %v3380_v39, %v3381_v46  ;;  %v3281_v12 = vshll.u32 %v11283_v30, 16  ;;  %v3238_v24 = vsel %vm3222_vm9, %v3214_v54, %v3230_v44  ;;  %v9746_v54 = vld [vmem:[#allocation7 + $0x134] ss:$8 sps:$4 sm:$0xff]   ;;  %v9749_v1 = vld [vmem:[#allocation7 + $0x144] ss:$8 sps:$4 sm:$0xff]  }
 0x4ee   :  { %v3240_v60 = vsel %vm3224_vm12, %v3216_v8, %v3232_v53  ;;  %4449 = vmatprep.mubr.bf16.mxu0 %v3382_v2  ;;  %v3379_v10 = vsel %vm418_vm7, %v3377_v49, %v3378_v51  ;;  %v3280_v18 = vor.u32 %v3279_v57, %v3275_v52  ;;  %v3288_v59 = vshrl.u32 %v11283_v30, 16  ;;  %v9744_v8 = vld [vmem:[#allocation7 + $0x130] ss:$8 sps:$4 sm:$0xff]  }
 0x4ef   :  { %v3251_v0 = vrot.slane %v3243_v3, 4  ;;  %v3244_v25 = vpack.c.bf16 %v3240_v60, %v3238_v24  ;;  %4450 = vmatmul.mubr.bf16.vlgmr.msra.gmra.mrb[16].mxu0 %v3379_v10  ;;  %v3283_v9 = vrot.slane %v3281_v12, 1  ;;  %v3328_v20 = vrot.slane %v11280_v5, 1 }
 0x4f0   :  { %4471 = vmatpush1.bf16.msra.mxu0 %v9735_v11  ;;  %v3329_v33 = vrot.slane %v11283_v30, 1  ;;  %v3265_v61 = vshrl.u32 %v11274_v48, 16  ;;  %v3267_v29 = vshll.u32 %v11274_v48, 16  ;;  %v3325_v21 = vrot.slane %v11274_v48, 1 }
 0x4f1   :  { %v11303_v42 = vsel %vm350_vm4, 0, %v3251_v0  ;;  %v11306_v16 = vsel %vm350_vm4, %v3251_v0, 0  ;;  %v3252_v43 = vrot.slane %v3244_v25, 4  ;;  %4472 = vmatprep.subr.bf16.mxu0 %v9740_v13  ;;  %v3284_v62 = vsel %vm358_vm5, %v3280_v18, %v3283_v9  ;;  %v9747_v0 = vld [vmem:[#allocation7 + $0x140] ss:$8 sps:$4 sm:$0xff]  }
 0x4f2   :  { %v3290_v14 = vor.u32 %v3288_v59, %v3283_v9  ;;  %v3407_v26 = vrot.slane %v11303_v42, 3  ;;  %v3408_v47 = vrot.slane %v11306_v16, 3  ;;  %v3386_v7 = vrot.slane %v3284_v62, 3 }
 0x4f3   :  { %v11312_v6 = vsel %vm350_vm4, 0, %v3252_v43  ;;  %v11315_v58 = vsel %vm350_vm4, %v3252_v43, 0  ;;  %v3326_v22 = vrot.slane %v11277_v19, 1  ;;  %v3365_v45 = vrot.slane %v11274_v48, 2 }
 0x4f4   :  { %4473 = vmatpush1.bf16.msra.mxu0 %v9738_v4  ;;  %v3410_v37 = vrot.slane %v11312_v6, 3  ;;  %v3411_v17 = vrot.slane %v11315_v58, 3  ;;  %v3387_v28 = vrot.slane %v3290_v14, 3  ;;  %v3409_v56 = vsel %vm418_vm7, %v3407_v26, %v3408_v47 }
 0x4f5   :  { %4474 = vmatprep.subr.bf16.mxu0 %v9743_v34  ;;  %v3330_v39 = vsel %vm389_vm10, %v3328_v20, %v3329_v33  ;;  %v3393_v46 = vrot.slane %v3329_v33, 3  ;;  %v11334_v49 = vrot.slane %v3265_v61, 1  ;;  %v11338_v51 = vrot.slane %v3267_v29, 2  ;;  %v9752_v34 = vld [vmem:[#allocation7 + $0x154] ss:$8 sps:$4 sm:$0xff]  }
 0x4f6   :  { %v3412_v55 = vsel %vm418_vm7, %v3410_v37, %v3411_v17  ;;  %v3388_v44 = vsel %vm418_vm7, %v3386_v7, %v3387_v28  ;;  %v3271_v53 = vshll.u32 %v11277_v19, 16  ;;  %v3285_v11 = vshrl.u32 %v11277_v19, 16 }
 0x4f7   :  { %4459 = vmatprep.mubr.bf16.mxu0 %v3412_v55  ;;  %v3293_v57 = vshll.u32 %v11303_v42, 16  ;;  %v3392_v3 = vrot.slane %v3330_v39, 3  ;;  %v3327_v2 = vsel %vm389_vm10, %v3325_v21, %v3326_v22  ;;  %v3390_v13 = vrot.slane %v3326_v22, 3 }
 0x4f8   :  { %4460 = vmatmul.mubr.bf16.gmra.mrb[20].mxu0 %v3409_v56  ;;  %v3303_v24 = vshll.u32 %v11312_v6, 16  ;;  %v3301_v60 = vshrl.u32 %v11312_v6, 16  ;;  %v3307_v10 = vshll.u32 %v11315_v58, 16  ;;  %v3389_v18 = vrot.slane %v3327_v2, 3 }
 0x4f9   :  { %4475 = vmatpush1.bf16.msra.mxu0 %v9741_v41  ;;  %4502 = vmatprep.mubr.bf16.mxu0 %v3388_v44  ;;  %v3314_v25 = vshrl.u32 %v11315_v58, 16  ;;  %v11349_v9 = vsel %vm418_vm7, %v3392_v3, %v3393_v46  ;;  %v3334_v4 = vrot.slane %v11312_v6, 1  ;;  %v3335_v43 = vrot.slane %v11315_v58, 1  ;;  %v9755_v44 = vld [vmem:[#allocation7 + $0x164] ss:$8 sps:$4 sm:$0xff]  }
 0x4fa   :  { %4476 = vmatprep.subr.bf16.mxu0 %v9746_v54  ;;  %v3291_v62 = vshrl.u32 %v11303_v42, 16  ;;  %v3297_v14 = vshll.u32 %v11306_v16, 16  ;;  %v11356_v26 = vsel %vm418_vm7, %v3389_v18, %v3390_v13  ;;  %v3331_v47 = vrot.slane %v11303_v42, 1  ;;  %v9750_v54 = vld [vmem:[#allocation7 + $0x150] ss:$8 sps:$4 sm:$0xff]  }
 0x4fb   :  { %v3336_v37 = vsel %vm389_vm10, %v3334_v4, %v3335_v43  ;;  %v3423_v17 = vrot.slane %v3335_v43, 3  ;;  %v3332_v7 = vrot.slane %v11306_v16, 1  ;;  %v3344_v41 = vrot.slane %v3275_v52, 1  ;;  %v9753_v18 = vld [vmem:[#allocation7 + $0x160] ss:$8 sps:$4 sm:$0xff]  }
 0x4fc   :  { %v3311_v28 = vshrl.u32 %v11306_v16, 16  ;;  %v3422_v20 = vrot.slane %v3336_v37, 3  ;;  %v3345_v33 = vrot.slane %v3277_v31, 2  ;;  %v3347_v55 = vrot.slane %v3288_v59, 1 }
 0x4fd   :  { %4477 = vmatpush1.bf16.msra.mxu0 %v9744_v8  ;;  %v3333_v21 = vsel %vm389_vm10, %v3331_v47, %v3332_v7  ;;  %v3420_v56 = vrot.slane %v3332_v7, 3  ;;  %v3348_v22 = vrot.slane %v3281_v12, 2  ;;  %v3339_v52 = vor.u32 %v11338_v51, %v11334_v49  ;;  %v9758_v47 = vld [vmem:[#allocation7 + $0x174] ss:$8 sps:$4 sm:$0xff]  }
 0x4fe   :  { %4478 = vmatprep.subr.bf16.mxu0 %v9749_v1  ;;  %v11374_v8 = vsel %vm418_vm7, %v3422_v20, %v3423_v17  ;;  %v3419_v31 = vrot.slane %v3333_v21, 3  ;;  %v3346_v39 = vor.u32 %v3345_v33, %v3344_v41  ;;  %v3340_v59 = vrot.slane %v3285_v11, 1 }
 0x4ff   :  { %v3349_v46 = vor.u32 %v3348_v22, %v3347_v55  ;;  %v3341_v1 = vrot.slane %v3271_v53, 2  ;;  %v3358_v12 = vrot.slane %v3301_v60, 1  ;;  %v3359_v49 = vrot.slane %v3303_v24, 2 }
 0x500   :  { %v11385_v51 = vsel %vm418_vm7, %v3419_v31, %v3420_v56  ;;  %v3361_v3 = vrot.slane %v3314_v25, 1  ;;  %v3362_v2 = vrot.slane %v3307_v10, 2  ;;  %v3351_v13 = vrot.slane %v3291_v62, 1  ;;  %v9756_v31 = vld [vmem:[#allocation7 + $0x170] ss:$8 sps:$4 sm:$0xff]  }
 0x501   :  { %4479 = vmatpush1.bf16.msra.mxu0 %v9747_v0  ;;  %v3350_v0 = vsel %vm396_vm6, %v3346_v39, %v3349_v46  ;;  %v3399_v4 = vrot.slane %v3349_v46, 3  ;;  %v3342_v43 = vor.u32 %v3341_v1, %v3340_v59  ;;  %v3352_v7 = vrot.slane %v3293_v57, 2  ;;  %v9761_v1 = vld [vmem:[#allocation7 + $0x184] ss:$8 sps:$4 sm:$0xff]  }
 0x502   :  { %4480 = vmatprep.subr.bf16.mxu0 %v9752_v34  ;;  %v3360_v34 = vor.u32 %v3359_v49, %v3358_v12  ;;  %v3398_v37 = vrot.slane %v3350_v0, 3  ;;  %v3363_v17 = vor.u32 %v3362_v2, %v3361_v3  ;;  %v3354_v41 = vrot.slane %v3311_v28, 1 }
 0x503   :  { %v3343_v20 = vsel %vm396_vm6, %v3339_v52, %v3342_v43  ;;  %v3396_v33 = vrot.slane %v3342_v43, 3  ;;  %v3355_v55 = vrot.slane %v3297_v14, 2  ;;  %v3353_v59 = vor.u32 %v3352_v7, %v3351_v13 }
 0x504   :  { %v11403_v21 = vsel %vm418_vm7, %v3398_v37, %v3399_v4  ;;  %v3395_v56 = vrot.slane %v3343_v20, 3  ;;  %v3364_v22 = vsel %vm396_vm6, %v3360_v34, %v3363_v17  ;;  %v3369_v52 = vrot.slane %v11283_v30, 2 }
 0x505   :  { %4481 = vmatpush1.bf16.msra.mxu0 %v9750_v54  ;;  %v3368_v54 = vrot.slane %v11280_v5, 2  ;;  %v3428_v39 = vrot.slane %v3364_v22, 3  ;;  %v3356_v46 = vor.u32 %v3355_v55, %v3354_v41  ;;  %v3366_v5 = vrot.slane %v11277_v19, 2  ;;  %v9764_v41 = vld [vmem:[#allocation7 + $0x194] ss:$8 sps:$4 sm:$0xff]  }
 0x506   :  { %4482 = vmatprep.subr.bf16.mxu0 %v9755_v44  ;;  %v3429_v44 = vrot.slane %v3363_v17, 3  ;;  %v11408_v12 = vsel %vm418_vm7, %v3395_v56, %v3396_v33  ;;  %v3374_v49 = vrot.slane %v11312_v6, 2  ;;  %v3375_v3 = vrot.slane %v11315_v58, 2  ;;  %v9785_v6 = vld [vmem:[#allocation7 + $0x204] ss:$8 sps:$4 sm:$0xff]  }
 0x507   :  { %v3426_v13 = vrot.slane %v3356_v46, 3  ;;  %v3370_v0 = vsel %vm411_vm13, %v3368_v54, %v3369_v52  ;;  %v3405_v43 = vrot.slane %v3369_v52, 3  ;;  %v3367_v34 = vsel %vm411_vm13, %v3365_v45, %v3366_v5 }
 0x508   :  { %v11414_v2 = vsel %vm418_vm7, %v3428_v39, %v3429_v44  ;;  %v3404_v4 = vrot.slane %v3370_v0, 3  ;;  %v3401_v37 = vrot.slane %v3367_v34, 3  ;;  %v3402_v17 = vrot.slane %v3366_v5, 3  ;;  %v9765_v5 = vld [vmem:[#allocation7 + $0x1a0] ss:$8 sps:$4 sm:$0xff]  }
 0x509   :  { %4483 = vmatpush1.bf16.msra.mxu0 %v9753_v18  ;;  %v3357_v18 = vsel %vm396_vm6, %v3353_v59, %v3356_v46  ;;  %v3376_v7 = vsel %vm411_vm13, %v3374_v49, %v3375_v3  ;;  %v3435_v54 = vrot.slane %v3375_v3, 3  ;;  %v3371_v45 = vrot.slane %v11303_v42, 2  ;;  %v9767_v46 = vld [vmem:[#allocation7 + $0x1a4] ss:$8 sps:$4 sm:$0xff]   ;;  %v9770_v49 = vld [vmem:[#allocation7 + $0x1b4] ss:$8 sps:$4 sm:$0xff]  }
 0x50a   :  { %4484 = vmatprep.subr.bf16.mxu0 %v9758_v47  ;;  %v3425_v30 = vrot.slane %v3357_v18, 3  ;;  %v9759_v47 = vld [vmem:[#allocation7 + $0x180] ss:$8 sps:$4 sm:$0xff]   ;;  %v11426_v33 = vsel %vm418_vm7, %v3404_v4, %v3405_v43  ;;  %v3434_v55 = vrot.slane %v3376_v7, 3  ;;  %v11429_v56 = vsel %vm418_vm7, %v3401_v37, %v3402_v17  ;;  %v9768_v3 = vld [vmem:[#allocation7 + $0x1b0] ss:$8 sps:$4 sm:$0xff]  }
 0x50b   :  { %v3372_v22 = vrot.slane %v11306_v16, 2  ;;  %v9773_v18 = vld [vmem:[#allocation7 + $0x1c4] ss:$8 sps:$4 sm:$0xff]   ;;  %v9776_v0 = vld [vmem:[#allocation7 + $0x1d4] ss:$8 sps:$4 sm:$0xff]   ;;  %v3305_v43 = vrot.slane %v3303_v24, 1 }
 0x50c   :  { %v11423_v20 = vsel %vm418_vm7, %v3425_v30, %v3426_v13  ;;  %v11434_v44 = vsel %vm418_vm7, %v3434_v55, %v3435_v54  ;;  %v9771_v13 = vld [vmem:[#allocation7 + $0x1c0] ss:$8 sps:$4 sm:$0xff]   ;;  %v3269_v30 = vrot.slane %v3267_v29, 1  ;;  %v9774_v4 = vld [vmem:[#allocation7 + $0x1d0] ss:$8 sps:$4 sm:$0xff]   ;;  %v3309_v17 = vrot.slane %v3307_v10, 1 }
 0x50d   :  { %4485 = vmatpush1.bf16.msra.mxu0 %v9756_v31  ;;  %v9762_v31 = vld [vmem:[#allocation7 + $0x190] ss:$8 sps:$4 sm:$0xff]   ;;  %v3373_v39 = vsel %vm411_vm13, %v3371_v45, %v3372_v22  ;;  %v3432_v59 = vrot.slane %v3372_v22, 3  ;;  %v9779_v34 = vld [vmem:[#allocation7 + $0x1e4] ss:$8 sps:$4 sm:$0xff]   ;;  %v3306_v29 = vor.u32 %v3305_v43, %v3301_v60  ;;  %v3295_v48 = vrot.slane %v3293_v57, 1 }
 0x50e   :  { %4486 = vmatprep.subr.bf16.mxu0 %v9761_v1  ;;  %v3431_v52 = vrot.slane %v3373_v39, 3  ;;  %v3270_v37 = vor.u32 %v3269_v30, %v3265_v61  ;;  %v9777_v7 = vld [vmem:[#allocation7 + $0x1e0] ss:$8 sps:$4 sm:$0xff]   ;;  %v9780_v61 = vld [vmem:[#allocation7 + $0x1f0] ss:$8 sps:$4 sm:$0xff]   ;;  %v3299_v19 = vrot.slane %v3297_v14, 1 }
 0x50f   :  { %v3310_v10 = vsel %vm358_vm5, %v3306_v29, %v3309_v17  ;;  %v3296_v58 = vor.u32 %v3295_v48, %v3291_v62  ;;  %v9788_v57 = vld [vmem:[#allocation7 + $0x214] ss:$8 sps:$4 sm:$0xff]   ;;  %v9786_v14 = vld [vmem:[#allocation7 + $0x210] ss:$8 sps:$4 sm:$0xff]   ;;  %v9791_v42 = vld [vmem:[#allocation7 + $0x224] ss:$8 sps:$4 sm:$0xff]  }
 0x510   :  { %v11438_v1 = vsel %vm418_vm7, %v3431_v52, %v3432_v59  ;;  %v9789_v52 = vld [vmem:[#allocation7 + $0x220] ss:$8 sps:$4 sm:$0xff]   ;;  %v9792_v16 = vld [vmem:[#allocation7 + $0x230] ss:$8 sps:$4 sm:$0xff]   ;;  %v9818_v29 = vld [vmem:[#allocation7 + $0x2b4] ss:$8 sps:$4 sm:$0xff]  }
 0x511   :  { %4487 = vmatpush1.bf16.msra.mxu0 %v9759_v47  ;;  %v3273_v47 = vrot.slane %v3271_v53, 1  ;;  %v3316_v53 = vor.u32 %v3314_v25, %v3309_v17  ;;  %v9783_v25 = vld [vmem:[#allocation7 + $0x200] ss:$8 sps:$4 sm:$0xff]   ;;  %v3300_v59 = vsel %vm358_vm5, %v3296_v58, %v3299_v19  ;;  %v9804_v43 = vld [vmem:[#allocation7 + $0x270] ss:$8 sps:$4 sm:$0xff]  }
 0x512   :  { %4488 = vmatprep.subr.bf16.mxu0 %v9764_v41  ;;  %v9782_v41 = vld [vmem:[#allocation7 + $0x1f4] ss:$8 sps:$4 sm:$0xff]   ;;  %v3413_v62 = vrot.slane %v3300_v59, 3  ;;  %v9801_v30 = vld [vmem:[#allocation7 + $0x260] ss:$8 sps:$4 sm:$0xff]  }
 0x513   :  { %v3287_v24 = vor.u32 %v3285_v11, %v3273_v47  ;;  %v3274_v55 = vsel %vm358_vm5, %v3270_v37, %v3273_v47  ;;  %v3416_v11 = vrot.slane %v3310_v10, 3  ;;  %v3417_v45 = vrot.slane %v3316_v53, 3  ;;  %v9812_v47 = vld [vmem:[#allocation7 + $0x294] ss:$8 sps:$4 sm:$0xff]   ;;  %v9810_v37 = vld [vmem:[#allocation7 + $0x290] ss:$8 sps:$4 sm:$0xff]  }
 0x514   :  { %v3383_v60 = vrot.slane %v3274_v55, 3  ;;  %v9815_v17 = vld [vmem:[#allocation7 + $0x2a4] ss:$8 sps:$4 sm:$0xff]   ;;  %v9819_v55 = vld [vmem:[#allocation7 + $0x2c0] ss:$8 sps:$4 sm:$0xff]  }
 0x515   :  { %4489 = vmatpush1.bf16.msra.mxu0 %v9762_v31  ;;  %v3384_v54 = vrot.slane %v3287_v24, 3  ;;  %v3313_v31 = vor.u32 %v3311_v28, %v3299_v19  ;;  %v3418_v39 = vsel %vm418_vm7, %v3416_v11, %v3417_v45  ;;  %v9797_v28 = vld [vmem:[#allocation7 + $0x244] ss:$8 sps:$4 sm:$0xff]   ;;  %v9824_v53 = vld [vmem:[#allocation7 + $0x2d4] ss:$8 sps:$4 sm:$0xff]  }
 0x516   :  { %4490 = vmatprep.subr.bf16.mxu0 %v9767_v46  ;;  %v9821_v24 = vld [vmem:[#allocation7 + $0x2c4] ss:$8 sps:$4 sm:$0xff]   ;;  %v9822_v48 = vld [vmem:[#allocation7 + $0x2d0] ss:$8 sps:$4 sm:$0xff]   ;;  %v9825_v10 = vld [vmem:[#allocation7 + $0x2e0] ss:$8 sps:$4 sm:$0xff]  }
 0x517   :  { %v3385_v22 = vsel %vm418_vm7, %v3383_v60, %v3384_v54  ;;  %v3414_v46 = vrot.slane %v3313_v31, 3  ;;  %v9828_v60 = vld [vmem:[#allocation7 + $0x2f0] ss:$8 sps:$4 sm:$0xff]   ;;  %v9833_v54 = vld [vmem:[#allocation7 + $0x304] ss:$8 sps:$4 sm:$0xff]  }
 0x518   :  { %v9831_v19 = vld [vmem:[#allocation7 + $0x300] ss:$8 sps:$4 sm:$0xff]   ;;  %v9836_v11 = vld [vmem:[#allocation7 + $0x314] ss:$8 sps:$4 sm:$0xff]   ;;  %v9834_v45 = vld [vmem:[#allocation7 + $0x310] ss:$8 sps:$4 sm:$0xff]  }
 0x519   :  { %4491 = vmatpush1.bf16.msra.mxu0 %v9765_v5  ;;  %v9794_v5 = vld [vmem:[#allocation7 + $0x234] ss:$8 sps:$4 sm:$0xff]   ;;  %v9839_v58 = vld [vmem:[#allocation7 + $0x324] ss:$8 sps:$4 sm:$0xff]  }
 0x51a   :  { %4492 = vmatprep.subr.bf16.mxu0 %v9770_v49  ;;  %v3415_v49 = vsel %vm418_vm7, %v3413_v62, %v3414_v46  ;;  %v9929_v31 = vld [vmem:[#allocation9 + $0x4] ss:$8 sps:$4 sm:$0xff]   ;;  %v9932_v59 = vld [vmem:[#allocation9 + $0x14] ss:$8 sps:$4 sm:$0xff]  }
 0x51b   :  { %5918 = vmatprep.subr.bf16.mxu1 %v9929_v31  ;;  %v9848_v62 = vld [vmem:[#allocation7 + $0x354] ss:$8 sps:$4 sm:$0xff]   ;;  %v9879_v31 = vld [vmem:[#allocation7 + $0x400] ss:$8 sps:$4 sm:$0xff]  }
 0x51c   :  { %v9938_v46 = vld [vmem:[#allocation9 + $0x34] ss:$8 sps:$4 sm:$0xff]  }
 0x51d   :  { %4493 = vmatpush1.bf16.msra.mxu0 %v9768_v3  ;;  %v9795_v3 = vld [vmem:[#allocation7 + $0x240] ss:$8 sps:$4 sm:$0xff]  }
 0x51e   :  { %4494 = vmatprep.subr.bf16.mxu0 %v9773_v18  ;;  %v9800_v18 = vld [vmem:[#allocation7 + $0x254] ss:$8 sps:$4 sm:$0xff]  }
 0x521   :  { %4495 = vmatpush1.bf16.msra.mxu0 %v9771_v13  ;;  %v9798_v13 = vld [vmem:[#allocation7 + $0x250] ss:$8 sps:$4 sm:$0xff]  }
 0x522   :  { %4496 = vmatprep.subr.bf16.mxu0 %v9776_v0  ;;  %v9803_v0 = vld [vmem:[#allocation7 + $0x264] ss:$8 sps:$4 sm:$0xff]  }
 0x525   :  { %4497 = vmatpush1.bf16.msra.mxu0 %v9774_v4  ;;  %v9806_v4 = vld [vmem:[#allocation7 + $0x274] ss:$8 sps:$4 sm:$0xff]  }
 0x526   :  { %4498 = vmatprep.subr.bf16.mxu0 %v9779_v34  ;;  %v9809_v34 = vld [vmem:[#allocation7 + $0x284] ss:$8 sps:$4 sm:$0xff]  }
 0x529   :  { %4499 = vmatpush1.bf16.msra.mxu0 %v9777_v7  ;;  %v9813_v7 = vld [vmem:[#allocation7 + $0x2a0] ss:$8 sps:$4 sm:$0xff]  }
 0x52a   :  { %4500 = vmatprep.subr.bf16.mxu0 %v9782_v41  ;;  %v9816_v41 = vld [vmem:[#allocation7 + $0x2b0] ss:$8 sps:$4 sm:$0xff]  }
 0x52d   :  { %4501 = vmatpush1.bf16.msra.mxu0 %v9780_v61  ;;  %v9827_v61 = vld [vmem:[#allocation7 + $0x2e4] ss:$8 sps:$4 sm:$0xff]  }
 0x52e   :  { %4523 = vmatprep.subr.bf16.mxu0 %v9785_v6  ;;  %v9830_v6 = vld [vmem:[#allocation7 + $0x2f4] ss:$8 sps:$4 sm:$0xff]  }
 0x530   :  { %4503 = vmatmul.mubr.bf16.vlgmr.msra.gmra.mrb[16].mxu0 %v3385_v22  ;;  %v9927_v22 = vld [vmem:[#allocation9] ss:$8 sps:$4 sm:$0xff]  }
 0x531   :  { %4512 = vmatprep.mubr.bf16.mxu0 %v3418_v39  ;;  %4524 = vmatpush1.bf16.msra.mxu0 %v9783_v25  ;;  %v9837_v25 = vld [vmem:[#allocation7 + $0x320] ss:$8 sps:$4 sm:$0xff]   ;;  %v9840_v39 = vld [vmem:[#allocation7 + $0x330] ss:$8 sps:$4 sm:$0xff]  }
 0x532   :  { %4525 = vmatprep.subr.bf16.mxu0 %v9788_v57  ;;  %v9842_v57 = vld [vmem:[#allocation7 + $0x334] ss:$8 sps:$4 sm:$0xff]   ;;  %5919 = vmatpush1.bf16.msra.mxu1 %v9927_v22  ;;  %v9881_v22 = vld [vmem:[#allocation7 + $0x404] ss:$8 sps:$4 sm:$0xff]  }
 0x533   :  { %5920 = vmatprep.subr.bf16.mxu1 %v9932_v59  ;;  %v9882_v59 = vld [vmem:[#allocation7 + $0x410] ss:$8 sps:$4 sm:$0xff]  }
 0x535   :  { %4526 = vmatpush1.bf16.msra.mxu0 %v9786_v14  ;;  %v9935_v14 = vld [vmem:[#allocation9 + $0x24] ss:$8 sps:$4 sm:$0xff]  }
 0x536   :  { %4527 = vmatprep.subr.bf16.mxu0 %v9791_v42  ;;  %v9843_v42 = vld [vmem:[#allocation7 + $0x340] ss:$8 sps:$4 sm:$0xff]  }
 0x538   :  { %4513 = vmatmul.mubr.bf16.gmra.mrb[20].mxu0 %v3415_v49  ;;  %v9941_v49 = vld [vmem:[#allocation9 + $0x44] ss:$8 sps:$4 sm:$0xff]  }
 0x539   :  { %4528 = vmatpush1.bf16.msra.mxu0 %v9789_v52  ;;  %4555 = vmatprep.mubr.bf16.mxu0 %v11349_v9  ;;  %v9807_v9 = vld [vmem:[#allocation7 + $0x280] ss:$8 sps:$4 sm:$0xff]   ;;  %v9846_v52 = vld [vmem:[#allocation7 + $0x350] ss:$8 sps:$4 sm:$0xff]  }
 0x53a   :  { %4529 = vmatprep.subr.bf16.mxu0 %v9794_v5  ;;  %v9936_v5 = vld [vmem:[#allocation9 + $0x30] ss:$8 sps:$4 sm:$0xff]  }
 0x53d   :  { %4530 = vmatpush1.bf16.msra.mxu0 %v9792_v16  ;;  %v9849_v16 = vld [vmem:[#allocation7 + $0x360] ss:$8 sps:$4 sm:$0xff]  }
 0x53e   :  { %4531 = vmatprep.subr.bf16.mxu0 %v9797_v28  ;;  %v9854_v28 = vld [vmem:[#allocation7 + $0x374] ss:$8 sps:$4 sm:$0xff]  }
 0x541   :  { %4532 = vmatpush1.bf16.msra.mxu0 %v9795_v3  ;;  %v9939_v3 = vld [vmem:[#allocation9 + $0x40] ss:$8 sps:$4 sm:$0xff]  }
 0x542   :  { %4533 = vmatprep.subr.bf16.mxu0 %v9800_v18  ;;  %v9944_v18 = vld [vmem:[#allocation9 + $0x54] ss:$8 sps:$4 sm:$0xff]  }
 0x545   :  { %4534 = vmatpush1.bf16.msra.mxu0 %v9798_v13  ;;  %v9852_v13 = vld [vmem:[#allocation7 + $0x370] ss:$8 sps:$4 sm:$0xff]  }
 0x546   :  { %4535 = vmatprep.subr.bf16.mxu0 %v9803_v0  ;;  %v9857_v0 = vld [vmem:[#allocation7 + $0x384] ss:$8 sps:$4 sm:$0xff]  }
 0x549   :  { %4536 = vmatpush1.bf16.msra.mxu0 %v9801_v30  ;;  %v9942_v30 = vld [vmem:[#allocation9 + $0x50] ss:$8 sps:$4 sm:$0xff]  }
 0x54a   :  { %4537 = vmatprep.subr.bf16.mxu0 %v9806_v4  ;;  %v9947_v4 = vld [vmem:[#allocation9 + $0x64] ss:$8 sps:$4 sm:$0xff]  }
 0x54d   :  { %4538 = vmatpush1.bf16.msra.mxu0 %v9804_v43  ;;  %v9855_v43 = vld [vmem:[#allocation7 + $0x380] ss:$8 sps:$4 sm:$0xff]  }
 0x54e   :  { %4539 = vmatprep.subr.bf16.mxu0 %v9809_v34  ;;  %v9860_v34 = vld [vmem:[#allocation7 + $0x394] ss:$8 sps:$4 sm:$0xff]  }
 0x551   :  { %4540 = vmatpush1.bf16.msra.mxu0 %v9807_v9  ;;  %v9945_v9 = vld [vmem:[#allocation9 + $0x60] ss:$8 sps:$4 sm:$0xff]  }
 0x552   :  { %4541 = vmatprep.subr.bf16.mxu0 %v9812_v47  ;;  %v9950_v47 = vld [vmem:[#allocation9 + $0x74] ss:$8 sps:$4 sm:$0xff]  }
 0x555   :  { %4542 = vmatpush1.bf16.msra.mxu0 %v9810_v37  ;;  %v9858_v37 = vld [vmem:[#allocation7 + $0x390] ss:$8 sps:$4 sm:$0xff]  }
 0x556   :  { %4543 = vmatprep.subr.bf16.mxu0 %v9815_v17  ;;  %v9863_v17 = vld [vmem:[#allocation7 + $0x3a4] ss:$8 sps:$4 sm:$0xff]  }
 0x559   :  { %4544 = vmatpush1.bf16.msra.mxu0 %v9813_v7  ;;  %v9948_v7 = vld [vmem:[#allocation9 + $0x70] ss:$8 sps:$4 sm:$0xff]  }
 0x55a   :  { %4545 = vmatprep.subr.bf16.mxu0 %v9818_v29  ;;  %v9953_v29 = vld [vmem:[#allocation9 + $0x84] ss:$8 sps:$4 sm:$0xff]  }
 0x55d   :  { %4546 = vmatpush1.bf16.msra.mxu0 %v9816_v41  ;;  %v9861_v41 = vld [vmem:[#allocation7 + $0x3a0] ss:$8 sps:$4 sm:$0xff]  }
 0x55e   :  { %4547 = vmatprep.subr.bf16.mxu0 %v9821_v24  ;;  %v9866_v24 = vld [vmem:[#allocation7 + $0x3b4] ss:$8 sps:$4 sm:$0xff]  }
 0x561   :  { %4548 = vmatpush1.bf16.msra.mxu0 %v9819_v55  ;;  %v9951_v55 = vld [vmem:[#allocation9 + $0x80] ss:$8 sps:$4 sm:$0xff]  }
 0x562   :  { %4549 = vmatprep.subr.bf16.mxu0 %v9824_v53  ;;  %v9956_v53 = vld [vmem:[#allocation9 + $0x94] ss:$8 sps:$4 sm:$0xff]  }
 0x565   :  { %4550 = vmatpush1.bf16.msra.mxu0 %v9822_v48  ;;  %v9864_v48 = vld [vmem:[#allocation7 + $0x3b0] ss:$8 sps:$4 sm:$0xff]  }
 0x566   :  { %4551 = vmatprep.subr.bf16.mxu0 %v9827_v61  ;;  %v9869_v61 = vld [vmem:[#allocation7 + $0x3c4] ss:$8 sps:$4 sm:$0xff]  }
 0x569   :  { %4552 = vmatpush1.bf16.msra.mxu0 %v9825_v10  ;;  %v9954_v10 = vld [vmem:[#allocation9 + $0x90] ss:$8 sps:$4 sm:$0xff]  }
 0x56a   :  { %4553 = vmatprep.subr.bf16.mxu0 %v9830_v6  ;;  %v9959_v6 = vld [vmem:[#allocation9 + $0xa4] ss:$8 sps:$4 sm:$0xff]  }
 0x56d   :  { %4554 = vmatpush1.bf16.msra.mxu0 %v9828_v60  ;;  %v9867_v60 = vld [vmem:[#allocation7 + $0x3c0] ss:$8 sps:$4 sm:$0xff]  }
 0x56e   :  { %4576 = vmatprep.subr.bf16.mxu0 %v9833_v54  ;;  %v9872_v54 = vld [vmem:[#allocation7 + $0x3d4] ss:$8 sps:$4 sm:$0xff]  }
 0x570   :  { %4556 = vmatmul.mubr.bf16.vlgmr.msra.gmra.mrb[16].mxu0 %v11356_v26  ;;  %v9845_v26 = vld [vmem:[#allocation7 + $0x344] ss:$8 sps:$4 sm:$0xff]  }
 0x571   :  { %4565 = vmatprep.mubr.bf16.mxu0 %v11374_v8  ;;  %4577 = vmatpush1.bf16.msra.mxu0 %v9831_v19  ;;  %v9930_v8 = vld [vmem:[#allocation9 + $0x10] ss:$8 sps:$4 sm:$0xff]   ;;  %v9957_v19 = vld [vmem:[#allocation9 + $0xa0] ss:$8 sps:$4 sm:$0xff]  }
 0x572   :  { %4578 = vmatprep.subr.bf16.mxu0 %v9836_v11  ;;  %5921 = vmatpush1.bf16.msra.mxu1 %v9930_v8  ;;  %v9870_v11 = vld [vmem:[#allocation7 + $0x3d0] ss:$8 sps:$4 sm:$0xff]   ;;  %v9885_v8 = vld [vmem:[#allocation7 + $0x420] ss:$8 sps:$4 sm:$0xff]  }
 0x573   :  { %5922 = vmatprep.subr.bf16.mxu1 %v9935_v14  ;;  %v9890_v14 = vld [vmem:[#allocation7 + $0x434] ss:$8 sps:$4 sm:$0xff]  }
 0x575   :  { %4579 = vmatpush1.bf16.msra.mxu0 %v9834_v45  ;;  %v9875_v45 = vld [vmem:[#allocation7 + $0x3e4] ss:$8 sps:$4 sm:$0xff]  }
 0x576   :  { %4580 = vmatprep.subr.bf16.mxu0 %v9839_v58  ;;  %v9873_v58 = vld [vmem:[#allocation7 + $0x3e0] ss:$8 sps:$4 sm:$0xff]  }
 0x578   :  { %4566 = vmatmul.mubr.bf16.gmra.mrb[20].mxu0 %v11385_v51  ;;  %v9933_v51 = vld [vmem:[#allocation9 + $0x20] ss:$8 sps:$4 sm:$0xff]  }
 0x579   :  { %4581 = vmatpush1.bf16.msra.mxu0 %v9837_v25  ;;  %4608 = vmatprep.mubr.bf16.mxu0 %v11403_v21  ;;  %v9851_v21 = vld [vmem:[#allocation7 + $0x364] ss:$8 sps:$4 sm:$0xff]   ;;  %v9878_v25 = vld [vmem:[#allocation7 + $0x3f4] ss:$8 sps:$4 sm:$0xff]  }
 0x57a   :  { %4582 = vmatprep.subr.bf16.mxu0 %v9842_v57  ;;  %5923 = vmatpush1.bf16.msra.mxu1 %v9933_v51  ;;  %v9876_v57 = vld [vmem:[#allocation7 + $0x3f0] ss:$8 sps:$4 sm:$0xff]  }
 0x57b   :  { %5924 = vmatprep.subr.bf16.mxu1 %v9938_v46  ;;  %v9894_v51 = vld [vmem:[#allocation7 + $0x450] ss:$8 sps:$4 sm:$0xff]   ;;  %v9899_v46 = vld [vmem:[#allocation7 + $0x464] ss:$8 sps:$4 sm:$0xff]  }
 0x57d   :  { %4583 = vmatpush1.bf16.msra.mxu0 %v9840_v39  ;;  %v9884_v39 = vld [vmem:[#allocation7 + $0x414] ss:$8 sps:$4 sm:$0xff]  }
 0x57e   :  { %4584 = vmatprep.subr.bf16.mxu0 %v9845_v26  ;;  %5925 = vmatpush1.bf16.msra.mxu1 %v9936_v5  ;;  %v9887_v26 = vld [vmem:[#allocation7 + $0x424] ss:$8 sps:$4 sm:$0xff]  }
 0x57f   :  { %5926 = vmatprep.subr.bf16.mxu1 %v9941_v49  ;;  %v9905_v5 = vld [vmem:[#allocation7 + $0x484] ss:$8 sps:$4 sm:$0xff]   ;;  %v9908_v49 = vld [vmem:[#allocation7 + $0x494] ss:$8 sps:$4 sm:$0xff]  }
 0x581   :  { %4585 = vmatpush1.bf16.msra.mxu0 %v9843_v42  ;;  %v9888_v42 = vld [vmem:[#allocation7 + $0x430] ss:$8 sps:$4 sm:$0xff]  }
 0x582   :  { %4586 = vmatprep.subr.bf16.mxu0 %v9848_v62  ;;  %5927 = vmatpush1.bf16.msra.mxu1 %v9939_v3  ;;  %v9893_v62 = vld [vmem:[#allocation7 + $0x444] ss:$8 sps:$4 sm:$0xff]   ;;  %v9909_v3 = vld [vmem:[#allocation7 + $0x4a0] ss:$8 sps:$4 sm:$0xff]  }
 0x583   :  { %5928 = vmatprep.subr.bf16.mxu1 %v9944_v18  ;;  %v9914_v18 = vld [vmem:[#allocation7 + $0x4b4] ss:$8 sps:$4 sm:$0xff]  }
 0x585   :  { %4587 = vmatpush1.bf16.msra.mxu0 %v9846_v52  ;;  %v9897_v52 = vld [vmem:[#allocation7 + $0x460] ss:$8 sps:$4 sm:$0xff]  }
 0x586   :  { %4588 = vmatprep.subr.bf16.mxu0 %v9851_v21  ;;  %5929 = vmatpush1.bf16.msra.mxu1 %v9942_v30  ;;  %v9902_v21 = vld [vmem:[#allocation7 + $0x474] ss:$8 sps:$4 sm:$0xff]   ;;  %v9915_v30 = vld [vmem:[#allocation7 + $0x4c0] ss:$8 sps:$4 sm:$0xff]  }
 0x587   :  { %5930 = vmatprep.subr.bf16.mxu1 %v9947_v4  ;;  %v9920_v4 = vld [vmem:[#allocation7 + $0x4d4] ss:$8 sps:$4 sm:$0xff]  }
 0x589   :  { %4589 = vmatpush1.bf16.msra.mxu0 %v9849_v16  ;;  %v9906_v16 = vld [vmem:[#allocation7 + $0x490] ss:$8 sps:$4 sm:$0xff]  }
 0x58a   :  { %4590 = vmatprep.subr.bf16.mxu0 %v9854_v28  ;;  %5931 = vmatpush1.bf16.msra.mxu1 %v9945_v9  ;;  %v9911_v28 = vld [vmem:[#allocation7 + $0x4a4] ss:$8 sps:$4 sm:$0xff]   ;;  %v9921_v9 = vld [vmem:[#allocation7 + $0x4e0] ss:$8 sps:$4 sm:$0xff]  }
 0x58b   :  { %5932 = vmatprep.subr.bf16.mxu1 %v9950_v47  ;;  %v9926_v47 = vld [vmem:[#allocation7 + $0x4f4] ss:$8 sps:$4 sm:$0xff]  }
 0x58d   :  { %4591 = vmatpush1.bf16.msra.mxu0 %v9852_v13  ;;  %v9912_v13 = vld [vmem:[#allocation7 + $0x4b0] ss:$8 sps:$4 sm:$0xff]  }
 0x58e   :  { %4592 = vmatprep.subr.bf16.mxu0 %v9857_v0  ;;  %5933 = vmatpush1.bf16.msra.mxu1 %v9948_v7  ;;  %v9917_v0 = vld [vmem:[#allocation7 + $0x4c4] ss:$8 sps:$4 sm:$0xff]   ;;  %v9962_v7 = vld [vmem:[#allocation9 + $0xb4] ss:$8 sps:$4 sm:$0xff]  }
 0x58f   :  { %5934 = vmatprep.subr.bf16.mxu1 %v9953_v29  ;;  %v9963_v29 = vld [vmem:[#allocation9 + $0xc0] ss:$8 sps:$4 sm:$0xff]  }
 0x591   :  { %4593 = vmatpush1.bf16.msra.mxu0 %v9855_v43  ;;  %v9918_v43 = vld [vmem:[#allocation7 + $0x4d0] ss:$8 sps:$4 sm:$0xff]  }
 0x592   :  { %4594 = vmatprep.subr.bf16.mxu0 %v9860_v34  ;;  %5935 = vmatpush1.bf16.msra.mxu1 %v9951_v55  ;;  %v9923_v34 = vld [vmem:[#allocation7 + $0x4e4] ss:$8 sps:$4 sm:$0xff]   ;;  %v9966_v55 = vld [vmem:[#allocation9 + $0xd0] ss:$8 sps:$4 sm:$0xff]  }
 0x593   :  { %5936 = vmatprep.subr.bf16.mxu1 %v9956_v53  ;;  %v9969_v53 = vld [vmem:[#allocation9 + $0xe0] ss:$8 sps:$4 sm:$0xff]  }
 0x595   :  { %4595 = vmatpush1.bf16.msra.mxu0 %v9858_v37  ;;  %v9924_v37 = vld [vmem:[#allocation7 + $0x4f0] ss:$8 sps:$4 sm:$0xff]  }
 0x596   :  { %4596 = vmatprep.subr.bf16.mxu0 %v9863_v17  ;;  %5937 = vmatpush1.bf16.msra.mxu1 %v9954_v10  ;;  %v9960_v17 = vld [vmem:[#allocation9 + $0xb0] ss:$8 sps:$4 sm:$0xff]  }
 0x597   :  { %5938 = vmatprep.subr.bf16.mxu1 %v9959_v6 }
 0x599   :  { %4597 = vmatpush1.bf16.msra.mxu0 %v9861_v41  ;;  %v9965_v41 = vld [vmem:[#allocation9 + $0xc4] ss:$8 sps:$4 sm:$0xff]  }
 0x59a   :  { %4598 = vmatprep.subr.bf16.mxu0 %v9866_v24  ;;  %5939 = vmatpush1.bf16.msra.mxu1 %v9957_v19  ;;  %v9968_v24 = vld [vmem:[#allocation9 + $0xd4] ss:$8 sps:$4 sm:$0xff]  }
 0x59b   :  { %5940 = vmatprep.subr.bf16.mxu1 %v9962_v7 }
 0x59d   :  { %4599 = vmatpush1.bf16.msra.mxu0 %v9864_v48  ;;  %v9971_v48 = vld [vmem:[#allocation9 + $0xe4] ss:$8 sps:$4 sm:$0xff]  }
 0x59e   :  { %4600 = vmatprep.subr.bf16.mxu0 %v9869_v61  ;;  %5941 = vmatpush1.bf16.msra.mxu1 %v9960_v17  ;;  %v9974_v61 = vld [vmem:[#allocation9 + $0xf4] ss:$8 sps:$4 sm:$0xff]  }
 0x59f   :  { %5942 = vmatprep.subr.bf16.mxu1 %v9965_v41 }
 0x5a1   :  { %4601 = vmatpush1.bf16.msra.mxu0 %v9867_v60 }
 0x5a2   :  { %4602 = vmatprep.subr.bf16.mxu0 %v9872_v54  ;;  %5943 = vmatpush1.bf16.msra.mxu1 %v9963_v29 }
 0x5a3   :  { %5944 = vmatprep.subr.bf16.mxu1 %v9968_v24 }
 0x5a5   :  { %4603 = vmatpush1.bf16.msra.mxu0 %v9870_v11 }
 0x5a6   :  { %4604 = vmatprep.subr.bf16.mxu0 %v9875_v45  ;;  %5945 = vmatpush1.bf16.msra.mxu1 %v9966_v55 }
 0x5a7   :  { %5946 = vmatprep.subr.bf16.mxu1 %v9971_v48 }
 0x5a9   :  { %4605 = vmatpush1.bf16.msra.mxu0 %v9873_v58 }
 0x5aa   :  { %4606 = vmatprep.subr.bf16.mxu0 %v9878_v25  ;;  %5947 = vmatpush1.bf16.msra.mxu1 %v9969_v53 }
 0x5ab   :  { %5948 = vmatprep.subr.bf16.mxu1 %v9974_v61 }
 0x5ad   :  { %4607 = vmatpush1.bf16.msra.mxu0 %v9876_v57 }
 0x5ae   :  { %4629 = vmatprep.subr.bf16.mxu0 %v9881_v22 }
 0x5b0   :  { %4609 = vmatmul.mubr.bf16.vlgmr.msra.gmra.mrb[16].mxu0 %v11408_v12  ;;  %v9891_v12 = vld [vmem:[#allocation7 + $0x440] ss:$8 sps:$4 sm:$0xff]  }
 0x5b1   :  { %4618 = vmatprep.mubr.bf16.mxu0 %v11414_v2  ;;  %4630 = vmatpush1.bf16.msra.mxu0 %v9879_v31  ;;  %v9896_v2 = vld [vmem:[#allocation7 + $0x454] ss:$8 sps:$4 sm:$0xff]  }
 0x5b2   :  { %4631 = vmatprep.subr.bf16.mxu0 %v9884_v39 }
 0x5b5   :  { %4632 = vmatpush1.bf16.msra.mxu0 %v9882_v59 }
 0x5b6   :  { %4633 = vmatprep.subr.bf16.mxu0 %v9887_v26 }
 0x5b8   :  { %4619 = vmatmul.mubr.bf16.gmra.mrb[20].mxu0 %v11423_v20  ;;  %v9900_v20 = vld [vmem:[#allocation7 + $0x470] ss:$8 sps:$4 sm:$0xff]  }
 0x5b9   :  { %4634 = vmatpush1.bf16.msra.mxu0 %v9885_v8  ;;  %4661 = vmatprep.mubr.bf16.mxu0 %v11426_v33  ;;  %v9903_v33 = vld [vmem:[#allocation7 + $0x480] ss:$8 sps:$4 sm:$0xff]  }
 0x5ba   :  { %4635 = vmatprep.subr.bf16.mxu0 %v9890_v14 }
 0x5bd   :  { %4636 = vmatpush1.bf16.msra.mxu0 %v9888_v42 }
 0x5be   :  { %4637 = vmatprep.subr.bf16.mxu0 %v9893_v62 }
 0x5c1   :  { %4638 = vmatpush1.bf16.msra.mxu0 %v9891_v12 }
 0x5c2   :  { %4639 = vmatprep.subr.bf16.mxu0 %v9896_v2 }
 0x5c5   :  { %4640 = vmatpush1.bf16.msra.mxu0 %v9894_v51 }
 0x5c6   :  { %4641 = vmatprep.subr.bf16.mxu0 %v9899_v46 }
 0x5c9   :  { %4642 = vmatpush1.bf16.msra.mxu0 %v9897_v52 }
 0x5ca   :  { %4643 = vmatprep.subr.bf16.mxu0 %v9902_v21 }
 0x5cd   :  { %4644 = vmatpush1.bf16.msra.mxu0 %v9900_v20 }
 0x5ce   :  { %4645 = vmatprep.subr.bf16.mxu0 %v9905_v5 }
 0x5d1   :  { %4646 = vmatpush1.bf16.msra.mxu0 %v9903_v33 }
 0x5d2   :  { %4647 = vmatprep.subr.bf16.mxu0 %v9908_v49 }
 0x5d5   :  { %4648 = vmatpush1.bf16.msra.mxu0 %v9906_v16 }
 0x5d6   :  { %4649 = vmatprep.subr.bf16.mxu0 %v9911_v28 }
 0x5d9   :  { %4650 = vmatpush1.bf16.msra.mxu0 %v9909_v3 }
 0x5da   :  { %4651 = vmatprep.subr.bf16.mxu0 %v9914_v18 }
 0x5dd   :  { %4652 = vmatpush1.bf16.msra.mxu0 %v9912_v13 }
 0x5de   :  { %4653 = vmatprep.subr.bf16.mxu0 %v9917_v0 }
 0x5e1   :  { %4654 = vmatpush1.bf16.msra.mxu0 %v9915_v30 }
 0x5e2   :  { %4655 = vmatprep.subr.bf16.mxu0 %v9920_v4 }
 0x5e5   :  { %4656 = vmatpush1.bf16.msra.mxu0 %v9918_v43 }
 0x5e6   :  { %4657 = vmatprep.subr.bf16.mxu0 %v9923_v34 }
 0x5e9   :  { %4658 = vmatpush1.bf16.msra.mxu0 %v9921_v9 }
 0x5ea   :  { %4659 = vmatprep.subr.bf16.mxu0 %v9926_v47 }
 0x5ed   :  { %4660 = vmatpush1.bf16.msra.mxu0 %v9924_v37 }
 0x5f0   :  { %4662 = vmatmul.mubr.bf16.vlgmr.msra.gmra.mrb[16].mxu0 %v11429_v56  ;;  %v9972_v56 = vld [vmem:[#allocation9 + $0xf0] ss:$8 sps:$4 sm:$0xff]  }
 0x5f1   :  { %4671 = vmatprep.mubr.bf16.mxu0 %v11434_v44  ;;  %v9977_v44 = vld [vmem:[#allocation9 + $0x104] ss:$8 sps:$4 sm:$0xff]   ;;  %5949 = vmatpush1.bf16.msra.mxu1 %v9972_v56 }
 0x5f2   :  { %5971 = vmatprep.subr.bf16.mxu1 %v9977_v44 }
 0x5f8   :  { %4672 = vmatmul.mubr.bf16.gmra.mrb[20].mxu0 %v11438_v1  ;;  %v4682_v1 = vld [vmem:[%s12153_s11] sm:$0x3] }
 0x5f9   :  { %v4687_v10 = vrot.slane %v4682_v1, %v11011_v15  ;;  %v4691_v6 = vrot.slane %v4682_v1, %v11016_v32 }
 0x6c3   :  { %v4663_v60 = vpop.f32.mrb[16].mxu0 }
 0x6c4   :  { %v4694_v54 = vadd.f32 %v4687_v10, %v4663_v60  ;;  %v4665_v19 = vpop.f32.mrb[17].mxu0 }
 0x6c5   :  { %v4695_v11 = vadd.f32 %v4691_v6, %v4665_v19  ;;  %v4667_v45 = vpop.f32.mrb[18].mxu0 }
 0x6c6   :  { %v4702_v58 = vadd.f32 %v4694_v54, %v11024_v38  ;;  %v4696_v25 = vadd.f32 %v4687_v10, %v4667_v45  ;;  %v4669_v57 = vpop.f32.mrb[19].mxu0 }
 0x6c7   :  { %v4703_v22 = vadd.f32 %v4695_v11, %v11026_v36  ;;  %v4697_v31 = vadd.f32 %v4691_v6, %v4669_v57 }
 0x6c8   :  { %v11489_v39 = vmul.f32 0.70710677, %v4702_v58  ;;  %v4704_v59 = vadd.f32 %v4696_v25, %v11030_v40  ;;  %v9980_v58 = vld [vmem:[#allocation9 + $0x114] ss:$8 sps:$4 sm:$0xff]  }
 0x6c9   :  { %v11492_v26 = vmul.f32 0.70710677, %v4703_v22  ;;  %v4705_v8 = vadd.f32 %v4697_v31, %v11034_v23 }
 0x6ca   :  { %vm4718_vm14 = vcmp.ge.f32.partialorder %v11489_v39, 0.0  ;;  %v4726_v14 = vmul.f32 0.2, %v11489_v39  ;;  %v11497_v42 = vmul.f32 0.70710677, %v4704_v59 }
 0x6cb   :  { %vm4719_vm15 = vcmp.ge.f32.partialorder %v11492_v26, 0.0  ;;  %v4727_v38 = vmul.f32 0.2, %v11492_v26  ;;  %v11501_v36 = vmul.f32 0.70710677, %v4705_v8  ;;  %v4673_v62 = vpop.f32.mrb[20].mxu0 }
 0x6cc   :  { %vm4720_vm0 = vcmp.ge.f32.partialorder %v11497_v42, 0.0  ;;  %v4728_v40 = vmul.f32 0.2, %v11497_v42  ;;  %v4698_v12 = vadd.f32 %v4687_v10, %v4673_v62  ;;  %v4675_v2 = vpop.f32.mrb[21].mxu0  ;;  %v4734_v23 = vsel %vm4718_vm14, %v11489_v39, %v4726_v14  ;;  %v9978_v62 = vld [vmem:[#allocation9 + $0x110] ss:$8 sps:$4 sm:$0xff]  }
 0x6cd   :  { %vm4721_vm1 = vcmp.ge.f32.partialorder %v11501_v36, 0.0  ;;  %v4729_v51 = vmul.f32 0.2, %v11501_v36  ;;  %v4699_v46 = vadd.f32 %v4691_v6, %v4675_v2  ;;  %v4677_v52 = vpop.f32.mrb[22].mxu0  ;;  %v4735_v21 = vsel %vm4719_vm15, %v11492_v26, %v4727_v38 }
 0x6ce   :  { %v4736_v20 = vsel %vm4720_vm0, %v11497_v42, %v4728_v40  ;;  %v4706_v5 = vadd.f32 %v4698_v12, %v11048_v50  ;;  %v4700_v33 = vadd.f32 %v4687_v10, %v4677_v52  ;;  %v4679_v49 = vpop.f32.mrb[23].mxu0 }
 0x6cf   :  { %v4742_v16 = vpack.c.bf16 %v4736_v20, %v4734_v23  ;;  %v4737_v28 = vsel %vm4721_vm1, %v11501_v36, %v4729_v51  ;;  %v4707_v3 = vadd.f32 %v4699_v46, %v11050_v35  ;;  %v4701_v18 = vadd.f32 %v4691_v6, %v4679_v49  ;;  %v9975_v6 = vld [vmem:[#allocation9 + $0x100] ss:$8 sps:$4 sm:$0xff]   ;;  %v9983_v51 = vld [vmem:[#allocation9 + $0x124] ss:$8 sps:$4 sm:$0xff]  }
 0x6d0   :  { %v4743_v13 = vpack.c.bf16 %v4737_v28, %v4735_v21  ;;  %v11513_v0 = vmul.f32 0.70710677, %v4706_v5  ;;  %v4708_v30 = vadd.f32 %v4700_v33, %v11054_v63  ;;  %v9981_v28 = vld [vmem:[#allocation9 + $0x120] ss:$8 sps:$4 sm:$0xff]  }
 0x6d1   :  { %v4750_v4 = vrot.slane %v4742_v16, 4  ;;  %v11516_v43 = vmul.f32 0.70710677, %v4707_v3  ;;  %v4709_v34 = vadd.f32 %v4701_v18, %v11058_v27  ;;  %v9986_v3 = vld [vmem:[#allocation9 + $0x134] ss:$8 sps:$4 sm:$0xff]  }
 0x6d2   :  { %v4751_v9 = vrot.slane %v4743_v13, 4  ;;  %vm4722_vm2 = vcmp.ge.f32.partialorder %v11513_v0, 0.0  ;;  %v4730_v50 = vmul.f32 0.2, %v11513_v0  ;;  %v11521_v47 = vmul.f32 0.70710677, %v4708_v30 }
 0x6d3   :  { %v11524_v35 = vsel %vm350_vm4, 0, %v4750_v4  ;;  %v11527_v37 = vsel %vm350_vm4, %v4750_v4, 0  ;;  %v4731_v63 = vmul.f32 0.2, %v11516_v43  ;;  %vm4723_vm3 = vcmp.ge.f32.partialorder %v11516_v43, 0.0 }
 0x6d4   :  { %vm4724_vm8 = vcmp.ge.f32.partialorder %v11521_v47, 0.0  ;;  %v4732_v27 = vmul.f32 0.2, %v11521_v47  ;;  %v11533_v17 = vmul.f32 0.70710677, %v4709_v34  ;;  %v4738_v7 = vsel %vm4722_vm2, %v11513_v0, %v4730_v50 }
 0x6d5   :  { %v11537_v29 = vsel %vm350_vm4, 0, %v4751_v9  ;;  %v11540_v41 = vsel %vm350_vm4, %v4751_v9, 0  ;;  %v4878_v24 = vrot.slane %v11524_v35, 3  ;;  %v4879_v44 = vrot.slane %v11527_v37, 3  ;;  %v9984_v30 = vld [vmem:[#allocation9 + $0x130] ss:$8 sps:$4 sm:$0xff]  }
 0x6d6   :  { %v4740_v55 = vsel %vm4724_vm8, %v11521_v47, %v4732_v27  ;;  %vm4725_vm9 = vcmp.ge.f32.partialorder %v11533_v17, 0.0  ;;  %v4733_v53 = vmul.f32 0.2, %v11533_v17  ;;  %v4881_v48 = vrot.slane %v11537_v29, 3  ;;  %v9989_v9 = vld [vmem:[#allocation9 + $0x144] ss:$8 sps:$4 sm:$0xff]  }
 0x6d7   :  { %v4744_v61 = vpack.c.bf16 %v4740_v55, %v4738_v7  ;;  %v4882_v56 = vrot.slane %v11540_v41, 3  ;;  %v4739_v1 = vsel %vm4723_vm3, %v11516_v43, %v4731_v63  ;;  %v4778_v60 = vshll.u32 %v11537_v29, 16 }
 0x6d8   :  { %v4741_v10 = vsel %vm4725_vm9, %v11533_v17, %v4733_v53  ;;  %v4782_v54 = vshll.u32 %v11540_v41, 16  ;;  %v4776_v25 = vshrl.u32 %v11537_v29, 16  ;;  %v4880_v57 = vsel %vm418_vm7, %v4878_v24, %v4879_v44 }
 0x6d9   :  { %v4752_v19 = vrot.slane %v4744_v61, 4  ;;  %v4745_v11 = vpack.c.bf16 %v4741_v10, %v4739_v1  ;;  %v4883_v45 = vsel %vm418_vm7, %v4881_v48, %v4882_v56  ;;  %v4780_v22 = vrot.slane %v4778_v60, 1  ;;  %v9987_v1 = vld [vmem:[#allocation9 + $0x140] ss:$8 sps:$4 sm:$0xff]  }
 0x6da   :  { %5950 = vmatprep.mubr.bf16.mxu1 %v4883_v45  ;;  %v4784_v31 = vrot.slane %v4782_v54, 1  ;;  %v4789_v59 = vshrl.u32 %v11540_v41, 16  ;;  %v4829_v4 = vrot.slane %v11537_v29, 1  ;;  %v4830_v34 = vrot.slane %v11540_v41, 1  ;;  %v9992_v45 = vld [vmem:[#allocation9 + $0x154] ss:$8 sps:$4 sm:$0xff]  }
 0x6db   :  { %v4753_v8 = vrot.slane %v4745_v11, 4  ;;  %5951 = vmatmul.mubr.bf16.vlgmr.msra.gmra.mrb[28].mxu1 %v4880_v57  ;;  %v11562_v14 = vsel %vm350_vm4, 0, %v4752_v19  ;;  %v11565_v38 = vsel %vm350_vm4, %v4752_v19, 0  ;;  %v4781_v40 = vor.u32 %v4780_v22, %v4776_v25 }
 0x6dc   :  { %5972 = vmatpush1.bf16.msra.mxu1 %v9975_v6  ;;  %v4791_v12 = vor.u32 %v4789_v59, %v4784_v31  ;;  %v4908_v46 = vrot.slane %v11562_v14, 3  ;;  %v4909_v20 = vrot.slane %v11565_v38, 3  ;;  %v4766_v50 = vshrl.u32 %v11524_v35, 16 }
 0x6dd   :  { %5973 = vmatprep.subr.bf16.mxu1 %v9980_v58  ;;  %v11572_v2 = vsel %vm350_vm4, 0, %v4753_v8  ;;  %v11575_v23 = vsel %vm350_vm4, %v4753_v8, 0  ;;  %v4785_v5 = vsel %vm358_vm5, %v4781_v40, %v4784_v31  ;;  %v4768_v63 = vshll.u32 %v11524_v35, 16 }
 0x6de   :  { %v4911_v52 = vrot.slane %v11572_v2, 3  ;;  %v4912_v21 = vrot.slane %v11575_v23, 3  ;;  %v4887_v33 = vrot.slane %v4785_v5, 3  ;;  %v4888_v49 = vrot.slane %v4791_v12, 3 }
 0x6df   :  { %v4910_v18 = vsel %vm418_vm7, %v4908_v46, %v4909_v20  ;;  %v4772_v27 = vshll.u32 %v11527_v37, 16  ;;  %v4786_v7 = vshrl.u32 %v11527_v37, 16  ;;  %v4831_v24 = vsel %vm389_vm10, %v4829_v4, %v4830_v34  ;;  %v9990_v20 = vld [vmem:[#allocation9 + $0x150] ss:$8 sps:$4 sm:$0xff]  }
 0x6e0   :  { %5974 = vmatpush1.bf16.msra.mxu1 %v9978_v62  ;;  %v4913_v16 = vsel %vm418_vm7, %v4911_v52, %v4912_v21  ;;  %v4889_v13 = vsel %vm418_vm7, %v4887_v33, %v4888_v49  ;;  %v4894_v55 = vrot.slane %v4830_v34, 3  ;;  %v4826_v53 = vrot.slane %v11524_v35, 1 }
 0x6e1   :  { %5960 = vmatprep.mubr.bf16.mxu1 %v4913_v16  ;;  %5975 = vmatprep.subr.bf16.mxu1 %v9983_v51  ;;  %v4802_v48 = vshrl.u32 %v11572_v2, 16  ;;  %v4804_v61 = vshll.u32 %v11572_v2, 16  ;;  %v4808_v56 = vshll.u32 %v11575_v23, 16  ;;  %v4893_v44 = vrot.slane %v4831_v24, 3 }
 0x6e2   :  { %v4815_v10 = vshrl.u32 %v11575_v23, 16  ;;  %v4827_v6 = vrot.slane %v11527_v37, 1  ;;  %v4835_v19 = vrot.slane %v11572_v2, 1  ;;  %v4836_v11 = vrot.slane %v11575_v23, 1 }
 0x6e3   :  { %5961 = vmatmul.mubr.bf16.gmra.mrb[32].mxu1 %v4910_v18  ;;  %v4792_v58 = vshrl.u32 %v11562_v14, 16  ;;  %v4794_v57 = vshll.u32 %v11562_v14, 16  ;;  %v11603_v22 = vsel %vm418_vm7, %v4893_v44, %v4894_v55  ;;  %v4832_v31 = vrot.slane %v11562_v14, 1 }
 0x6e4   :  { %5976 = vmatpush1.bf16.msra.mxu1 %v9981_v28  ;;  %6003 = vmatprep.mubr.bf16.mxu1 %v4889_v13  ;;  %v4798_v8 = vshll.u32 %v11565_v38, 16  ;;  %v4828_v62 = vsel %vm389_vm10, %v4826_v53, %v4827_v6  ;;  %v4891_v40 = vrot.slane %v4827_v6, 3  ;;  %v4837_v12 = vsel %vm389_vm10, %v4835_v19, %v4836_v11  ;;  %v9995_v28 = vld [vmem:[#allocation9 + $0x164] ss:$8 sps:$4 sm:$0xff]   ;;  %v9993_v53 = vld [vmem:[#allocation9 + $0x160] ss:$8 sps:$4 sm:$0xff]  }
 0x6e5   :  { %5977 = vmatprep.subr.bf16.mxu1 %v9986_v3  ;;  %v4890_v51 = vrot.slane %v4828_v62, 3  ;;  %v4923_v46 = vrot.slane %v4837_v12, 3  ;;  %v4924_v52 = vrot.slane %v4836_v11, 3  ;;  %v4833_v21 = vrot.slane %v11565_v38, 1  ;;  %v9998_v19 = vld [vmem:[#allocation9 + $0x174] ss:$8 sps:$4 sm:$0xff]  }
 0x6e6   :  { %v4812_v5 = vshrl.u32 %v11565_v38, 16  ;;  %v4845_v33 = vrot.slane %v4776_v25, 1  ;;  %v4846_v49 = vrot.slane %v4778_v60, 2  ;;  %v4848_v16 = vrot.slane %v4789_v59, 1 }
 0x6e7   :  { %v11618_v3 = vsel %vm418_vm7, %v4890_v51, %v4891_v40  ;;  %v11621_v18 = vsel %vm418_vm7, %v4923_v46, %v4924_v52  ;;  %v4834_v13 = vsel %vm389_vm10, %v4832_v31, %v4833_v21  ;;  %v4849_v25 = vrot.slane %v4782_v54, 2 }
 0x6e8   :  { %5978 = vmatpush1.bf16.msra.mxu1 %v9984_v30  ;;  %v4921_v30 = vrot.slane %v4833_v21, 3  ;;  %v4920_v4 = vrot.slane %v4834_v13, 3  ;;  %v4847_v34 = vor.u32 %v4846_v49, %v4845_v33  ;;  %v4838_v60 = vrot.slane %v4766_v50, 1  ;;  %v9996_v49 = vld [vmem:[#allocation9 + $0x170] ss:$8 sps:$4 sm:$0xff]  }
 0x6e9   :  { %5979 = vmatprep.subr.bf16.mxu1 %v9989_v9  ;;  %v4839_v59 = vrot.slane %v4768_v63, 2  ;;  %v4841_v9 = vrot.slane %v4786_v7, 1  ;;  %v4842_v24 = vrot.slane %v4772_v27, 2  ;;  %v4859_v55 = vrot.slane %v4802_v48, 1 }
 0x6ea   :  { %v11637_v44 = vsel %vm418_vm7, %v4920_v4, %v4921_v30  ;;  %v4850_v54 = vor.u32 %v4849_v25, %v4848_v16  ;;  %v4862_v6 = vrot.slane %v4815_v10, 1  ;;  %v4863_v31 = vrot.slane %v4808_v56, 2  ;;  %v10001_v30 = vld [vmem:[#allocation9 + $0x184] ss:$8 sps:$4 sm:$0xff]  }
 0x6eb   :  { %v4840_v11 = vor.u32 %v4839_v59, %v4838_v60  ;;  %v4852_v62 = vrot.slane %v4792_v58, 1  ;;  %v4853_v46 = vrot.slane %v4794_v57, 2  ;;  %v4855_v13 = vrot.slane %v4812_v5, 1 }
 0x6ec   :  { %5980 = vmatpush1.bf16.msra.mxu1 %v9987_v1  ;;  %v4860_v1 = vrot.slane %v4804_v61, 2  ;;  %v4851_v40 = vsel %vm396_vm6, %v4847_v34, %v4850_v54  ;;  %v4900_v12 = vrot.slane %v4850_v54, 3  ;;  %v4864_v33 = vor.u32 %v4863_v31, %v4862_v6 }
 0x6ed   :  { %5981 = vmatprep.subr.bf16.mxu1 %v9992_v45  ;;  %v4843_v45 = vor.u32 %v4842_v24, %v4841_v9  ;;  %v4899_v52 = vrot.slane %v4851_v40, 3  ;;  %v4856_v60 = vrot.slane %v4798_v8, 2  ;;  %v4869_v24 = vrot.slane %v11537_v29, 2  ;;  %v10004_v29 = vld [vmem:[#allocation9 + $0x194] ss:$8 sps:$4 sm:$0xff]  }
 0x6ee   :  { %v4861_v51 = vor.u32 %v4860_v1, %v4859_v55  ;;  %v4930_v25 = vrot.slane %v4864_v33, 3  ;;  %v4870_v55 = vrot.slane %v11540_v41, 2  ;;  %v4866_v54 = vrot.slane %v11524_v35, 2 }
 0x6ef   :  { %v4844_v21 = vsel %vm396_vm6, %v4840_v11, %v4843_v45  ;;  %v11654_v4 = vsel %vm418_vm7, %v4899_v52, %v4900_v12  ;;  %v4867_v1 = vrot.slane %v11527_v37, 2  ;;  %v4875_v6 = vrot.slane %v11572_v2, 2  ;;  %v10025_v2 = vld [vmem:[#allocation9 + $0x204] ss:$8 sps:$4 sm:$0xff]  }
 0x6f0   :  { %5982 = vmatpush1.bf16.msra.mxu1 %v9990_v20  ;;  %v4897_v20 = vrot.slane %v4843_v45, 3  ;;  %v4896_v16 = vrot.slane %v4844_v21, 3  ;;  %v4865_v34 = vsel %vm396_vm6, %v4861_v51, %v4864_v33  ;;  %v4871_v45 = vsel %vm411_vm13, %v4869_v24, %v4870_v55 }
 0x6f1   :  { %5983 = vmatprep.subr.bf16.mxu1 %v9995_v28  ;;  %v4854_v28 = vor.u32 %v4853_v46, %v4852_v62  ;;  %v4929_v9 = vrot.slane %v4865_v34, 3  ;;  %v4906_v31 = vrot.slane %v4870_v55, 3  ;;  %v4876_v62 = vrot.slane %v11575_v23, 2 }
 0x6f2   :  { %v11660_v59 = vsel %vm418_vm7, %v4896_v16, %v4897_v20  ;;  %v4905_v12 = vrot.slane %v4871_v45, 3  ;;  %v4868_v51 = vsel %vm411_vm13, %v4866_v54, %v4867_v1  ;;  %v4903_v21 = vrot.slane %v4867_v1, 3  ;;  %v10005_v54 = vld [vmem:[#allocation9 + $0x1a0] ss:$8 sps:$4 sm:$0xff]   ;;  %v10010_v1 = vld [vmem:[#allocation9 + $0x1b4] ss:$8 sps:$4 sm:$0xff]  }
 0x6f3   :  { %v11668_v11 = vsel %vm418_vm7, %v4929_v9, %v4930_v25  ;;  %v4902_v52 = vrot.slane %v4868_v51, 3  ;;  %v4877_v20 = vsel %vm411_vm13, %v4875_v6, %v4876_v62  ;;  %v4936_v16 = vrot.slane %v4876_v62, 3  ;;  %v10013_v45 = vld [vmem:[#allocation9 + $0x1c4] ss:$8 sps:$4 sm:$0xff]   ;;  %v10016_v62 = vld [vmem:[#allocation9 + $0x1d4] ss:$8 sps:$4 sm:$0xff]  }
 0x6f4   :  { %5984 = vmatpush1.bf16.msra.mxu1 %v9993_v53  ;;  %v4857_v53 = vor.u32 %v4856_v60, %v4855_v13  ;;  %v11676_v33 = vsel %vm418_vm7, %v4905_v12, %v4906_v31  ;;  %v4872_v13 = vrot.slane %v11562_v14, 2  ;;  %v4873_v25 = vrot.slane %v11565_v38, 2  ;;  %v10007_v60 = vld [vmem:[#allocation9 + $0x1a4] ss:$8 sps:$4 sm:$0xff]   ;;  %v10011_v31 = vld [vmem:[#allocation9 + $0x1c0] ss:$8 sps:$4 sm:$0xff]  }
 0x6f5   :  { %5985 = vmatprep.subr.bf16.mxu1 %v9998_v19  ;;  %v9999_v19 = vld [vmem:[#allocation9 + $0x180] ss:$8 sps:$4 sm:$0xff]   ;;  %v11683_v34 = vsel %vm418_vm7, %v4902_v52, %v4903_v21  ;;  %v10019_v12 = vld [vmem:[#allocation9 + $0x1e4] ss:$8 sps:$4 sm:$0xff]   ;;  %v4774_v51 = vrot.slane %v4772_v27, 1  ;;  %v4810_v52 = vrot.slane %v4808_v56, 1 }
 0x6f6   :  { %v4858_v41 = vsel %vm396_vm6, %v4854_v28, %v4857_v53  ;;  %v4927_v40 = vrot.slane %v4857_v53, 3  ;;  %v4874_v24 = vsel %vm411_vm13, %v4872_v13, %v4873_v25  ;;  %v4933_v55 = vrot.slane %v4873_v25, 3  ;;  %v10017_v21 = vld [vmem:[#allocation9 + $0x1e0] ss:$8 sps:$4 sm:$0xff]   ;;  %v10031_v14 = vld [vmem:[#allocation9 + $0x224] ss:$8 sps:$4 sm:$0xff]  }
 0x6f7   :  { %v4926_v46 = vrot.slane %v4858_v41, 3  ;;  %v4932_v53 = vrot.slane %v4874_v24, 3  ;;  %v10014_v41 = vld [vmem:[#allocation9 + $0x1d0] ss:$8 sps:$4 sm:$0xff]   ;;  %v4817_v27 = vor.u32 %v4815_v10, %v4810_v52  ;;  %v4796_v35 = vrot.slane %v4794_v57, 1 }
 0x6f8   :  { %5986 = vmatpush1.bf16.msra.mxu1 %v9996_v49  ;;  %v4935_v49 = vrot.slane %v4877_v20, 3  ;;  %v10022_v20 = vld [vmem:[#allocation9 + $0x1f4] ss:$8 sps:$4 sm:$0xff]   ;;  %v4800_v37 = vrot.slane %v4798_v8, 1  ;;  %v10023_v10 = vld [vmem:[#allocation9 + $0x200] ss:$8 sps:$4 sm:$0xff]  }
 0x6f9   :  { %5987 = vmatprep.subr.bf16.mxu1 %v10001_v30  ;;  %v10002_v30 = vld [vmem:[#allocation9 + $0x190] ss:$8 sps:$4 sm:$0xff]   ;;  %v11680_v28 = vsel %vm418_vm7, %v4926_v46, %v4927_v40  ;;  %v11691_v6 = vsel %vm418_vm7, %v4932_v53, %v4933_v55  ;;  %v4806_v40 = vrot.slane %v4804_v61, 1  ;;  %v4788_v61 = vor.u32 %v4786_v7, %v4774_v51  ;;  %v10028_v57 = vld [vmem:[#allocation9 + $0x214] ss:$8 sps:$4 sm:$0xff]  }
 0x6fa   :  { %v11687_v9 = vsel %vm418_vm7, %v4935_v49, %v4936_v16  ;;  %v4918_v13 = vrot.slane %v4817_v27, 3  ;;  %v4797_v23 = vor.u32 %v4796_v35, %v4792_v58  ;;  %v4814_v25 = vor.u32 %v4812_v5, %v4800_v37  ;;  %v10026_v8 = vld [vmem:[#allocation9 + $0x210] ss:$8 sps:$4 sm:$0xff]   ;;  %v10029_v53 = vld [vmem:[#allocation9 + $0x220] ss:$8 sps:$4 sm:$0xff]  }
 0x6fb   :  { %v4885_v16 = vrot.slane %v4788_v61, 3  ;;  %v10032_v38 = vld [vmem:[#allocation9 + $0x230] ss:$8 sps:$4 sm:$0xff]   ;;  %v10037_v5 = vld [vmem:[#allocation9 + $0x244] ss:$8 sps:$4 sm:$0xff]  }
 0x6fc   :  { %5988 = vmatpush1.bf16.msra.mxu1 %v9999_v19  ;;  %v10008_v19 = vld [vmem:[#allocation9 + $0x1b0] ss:$8 sps:$4 sm:$0xff]   ;;  %v4801_v24 = vsel %vm358_vm5, %v4797_v23, %v4800_v37  ;;  %v4915_v55 = vrot.slane %v4814_v25, 3  ;;  %v10061_v61 = vld [vmem:[#allocation9 + $0x2c4] ss:$8 sps:$4 sm:$0xff]  }
 0x6fd   :  { %5989 = vmatprep.subr.bf16.mxu1 %v10004_v29  ;;  %v4770_v29 = vrot.slane %v4768_v63, 1  ;;  %v4807_v63 = vor.u32 %v4806_v40, %v4802_v48  ;;  %v4914_v58 = vrot.slane %v4801_v24, 3  ;;  %v10044_v40 = vld [vmem:[#allocation9 + $0x270] ss:$8 sps:$4 sm:$0xff]   ;;  %v10064_v27 = vld [vmem:[#allocation9 + $0x2d4] ss:$8 sps:$4 sm:$0xff]  }
 0x6fe   :  { %v10062_v35 = vld [vmem:[#allocation9 + $0x2d0] ss:$8 sps:$4 sm:$0xff]   ;;  %v10071_v37 = vld [vmem:[#allocation9 + $0x300] ss:$8 sps:$4 sm:$0xff]   ;;  %v10079_v23 = vld [vmem:[#allocation9 + $0x324] ss:$8 sps:$4 sm:$0xff]  }
 0x6ff   :  { %v4771_v46 = vor.u32 %v4770_v29, %v4766_v50  ;;  %v10020_v50 = vld [vmem:[#allocation9 + $0x1f0] ss:$8 sps:$4 sm:$0xff]   ;;  %v4811_v56 = vsel %vm358_vm5, %v4807_v63, %v4810_v52  ;;  %v10041_v29 = vld [vmem:[#allocation9 + $0x260] ss:$8 sps:$4 sm:$0xff]   ;;  %v10055_v52 = vld [vmem:[#allocation9 + $0x2a4] ss:$8 sps:$4 sm:$0xff]  }
 0x700   :  { %5990 = vmatpush1.bf16.msra.mxu1 %v10002_v30  ;;  %v4917_v7 = vrot.slane %v4811_v56, 3  ;;  %v10058_v63 = vld [vmem:[#allocation9 + $0x2b4] ss:$8 sps:$4 sm:$0xff]   ;;  %v10065_v56 = vld [vmem:[#allocation9 + $0x2e0] ss:$8 sps:$4 sm:$0xff]  }
 0x701   :  { %5991 = vmatprep.subr.bf16.mxu1 %v10007_v60  ;;  %v4775_v49 = vsel %vm358_vm5, %v4771_v46, %v4774_v51  ;;  %v10052_v51 = vld [vmem:[#allocation9 + $0x294] ss:$8 sps:$4 sm:$0xff]   ;;  %v10050_v46 = vld [vmem:[#allocation9 + $0x290] ss:$8 sps:$4 sm:$0xff]   ;;  %v10169_v25 = vld [vmem:[#allocation10 + $0x4] ss:$8 sps:$4 sm:$0xff]  }
 0x702   :  { %v4884_v48 = vrot.slane %v4775_v49, 3  ;;  %v4919_v60 = vsel %vm418_vm7, %v4917_v7, %v4918_v13  ;;  %v10059_v49 = vld [vmem:[#allocation9 + $0x2c0] ss:$8 sps:$4 sm:$0xff]   ;;  %v10076_v7 = vld [vmem:[#allocation9 + $0x314] ss:$8 sps:$4 sm:$0xff]   ;;  %7403 = vmatprep.subr.bf16.mxu0 %v10169_v25 }
 0x703   :  { %v10074_v13 = vld [vmem:[#allocation9 + $0x310] ss:$8 sps:$4 sm:$0xff]   ;;  %v10172_v24 = vld [vmem:[#allocation10 + $0x14] ss:$8 sps:$4 sm:$0xff]  }
 0x704   :  { %5992 = vmatpush1.bf16.msra.mxu1 %v10005_v54  ;;  %v4886_v30 = vsel %vm418_vm7, %v4884_v48, %v4885_v16  ;;  %v10034_v54 = vld [vmem:[#allocation9 + $0x234] ss:$8 sps:$4 sm:$0xff]   ;;  %v10068_v48 = vld [vmem:[#allocation9 + $0x2f0] ss:$8 sps:$4 sm:$0xff]   ;;  %v10073_v16 = vld [vmem:[#allocation9 + $0x304] ss:$8 sps:$4 sm:$0xff]  }
 0x705   :  { %5993 = vmatprep.subr.bf16.mxu1 %v10010_v1  ;;  %v4916_v1 = vsel %vm418_vm7, %v4914_v58, %v4915_v55  ;;  %v10088_v58 = vld [vmem:[#allocation9 + $0x354] ss:$8 sps:$4 sm:$0xff]   ;;  %v10116_v25 = vld [vmem:[#allocation9 + $0x3f0] ss:$8 sps:$4 sm:$0xff]  }
 0x706   :  { %v10178_v55 = vld [vmem:[#allocation10 + $0x34] ss:$8 sps:$4 sm:$0xff]  }
 0x708   :  { %5994 = vmatpush1.bf16.msra.mxu1 %v10008_v19  ;;  %v10035_v19 = vld [vmem:[#allocation9 + $0x240] ss:$8 sps:$4 sm:$0xff]  }
 0x709   :  { %5995 = vmatprep.subr.bf16.mxu1 %v10013_v45  ;;  %v10040_v45 = vld [vmem:[#allocation9 + $0x254] ss:$8 sps:$4 sm:$0xff]  }
 0x70c   :  { %5996 = vmatpush1.bf16.msra.mxu1 %v10011_v31  ;;  %v10038_v31 = vld [vmem:[#allocation9 + $0x250] ss:$8 sps:$4 sm:$0xff]  }
 0x70d   :  { %5997 = vmatprep.subr.bf16.mxu1 %v10016_v62  ;;  %v10043_v62 = vld [vmem:[#allocation9 + $0x264] ss:$8 sps:$4 sm:$0xff]  }
 0x710   :  { %5998 = vmatpush1.bf16.msra.mxu1 %v10014_v41  ;;  %v10046_v41 = vld [vmem:[#allocation9 + $0x274] ss:$8 sps:$4 sm:$0xff]  }
 0x711   :  { %5999 = vmatprep.subr.bf16.mxu1 %v10019_v12  ;;  %v10049_v12 = vld [vmem:[#allocation9 + $0x284] ss:$8 sps:$4 sm:$0xff]  }
 0x714   :  { %6000 = vmatpush1.bf16.msra.mxu1 %v10017_v21  ;;  %v10053_v21 = vld [vmem:[#allocation9 + $0x2a0] ss:$8 sps:$4 sm:$0xff]  }
 0x715   :  { %6001 = vmatprep.subr.bf16.mxu1 %v10022_v20  ;;  %v10056_v20 = vld [vmem:[#allocation9 + $0x2b0] ss:$8 sps:$4 sm:$0xff]  }
 0x718   :  { %6002 = vmatpush1.bf16.msra.mxu1 %v10020_v50  ;;  %v10067_v50 = vld [vmem:[#allocation9 + $0x2e4] ss:$8 sps:$4 sm:$0xff]  }
 0x719   :  { %6024 = vmatprep.subr.bf16.mxu1 %v10025_v2  ;;  %v10070_v2 = vld [vmem:[#allocation9 + $0x2f4] ss:$8 sps:$4 sm:$0xff]  }
 0x71b   :  { %6004 = vmatmul.mubr.bf16.vlgmr.msra.gmra.mrb[28].mxu1 %v4886_v30  ;;  %v10167_v30 = vld [vmem:[#allocation10] ss:$8 sps:$4 sm:$0xff]  }
 0x71c   :  { %6013 = vmatprep.mubr.bf16.mxu1 %v4919_v60  ;;  %6025 = vmatpush1.bf16.msra.mxu1 %v10023_v10  ;;  %v10077_v10 = vld [vmem:[#allocation9 + $0x320] ss:$8 sps:$4 sm:$0xff]   ;;  %v10080_v60 = vld [vmem:[#allocation9 + $0x330] ss:$8 sps:$4 sm:$0xff]  }
 0x71d   :  { %6026 = vmatprep.subr.bf16.mxu1 %v10028_v57  ;;  %v10082_v57 = vld [vmem:[#allocation9 + $0x334] ss:$8 sps:$4 sm:$0xff]   ;;  %7404 = vmatpush1.bf16.msra.mxu0 %v10167_v30 }
 0x71e   :  { %7405 = vmatprep.subr.bf16.mxu0 %v10172_v24  ;;  %v10118_v30 = vld [vmem:[#allocation9 + $0x3f4] ss:$8 sps:$4 sm:$0xff]   ;;  %v10119_v24 = vld [vmem:[#allocation9 + $0x400] ss:$8 sps:$4 sm:$0xff]  }
 0x720   :  { %6027 = vmatpush1.bf16.msra.mxu1 %v10026_v8  ;;  %v10175_v8 = vld [vmem:[#allocation10 + $0x24] ss:$8 sps:$4 sm:$0xff]  }
 0x721   :  { %6028 = vmatprep.subr.bf16.mxu1 %v10031_v14  ;;  %v10083_v14 = vld [vmem:[#allocation9 + $0x340] ss:$8 sps:$4 sm:$0xff]  }
 0x723   :  { %6014 = vmatmul.mubr.bf16.gmra.mrb[32].mxu1 %v4916_v1  ;;  %v10181_v1 = vld [vmem:[#allocation10 + $0x44] ss:$8 sps:$4 sm:$0xff]  }
 0x724   :  { %6029 = vmatpush1.bf16.msra.mxu1 %v10029_v53  ;;  %6056 = vmatprep.mubr.bf16.mxu1 %v11603_v22  ;;  %v10047_v22 = vld [vmem:[#allocation9 + $0x280] ss:$8 sps:$4 sm:$0xff]   ;;  %v10086_v53 = vld [vmem:[#allocation9 + $0x350] ss:$8 sps:$4 sm:$0xff]  }
 0x725   :  { %6030 = vmatprep.subr.bf16.mxu1 %v10034_v54  ;;  %v10176_v54 = vld [vmem:[#allocation10 + $0x30] ss:$8 sps:$4 sm:$0xff]  }
 0x728   :  { %6031 = vmatpush1.bf16.msra.mxu1 %v10032_v38  ;;  %v10089_v38 = vld [vmem:[#allocation9 + $0x360] ss:$8 sps:$4 sm:$0xff]  }
 0x729   :  { %6032 = vmatprep.subr.bf16.mxu1 %v10037_v5  ;;  %v10094_v5 = vld [vmem:[#allocation9 + $0x374] ss:$8 sps:$4 sm:$0xff]  }
 0x72c   :  { %6033 = vmatpush1.bf16.msra.mxu1 %v10035_v19  ;;  %v10179_v19 = vld [vmem:[#allocation10 + $0x40] ss:$8 sps:$4 sm:$0xff]  }
 0x72d   :  { %6034 = vmatprep.subr.bf16.mxu1 %v10040_v45  ;;  %v10184_v45 = vld [vmem:[#allocation10 + $0x54] ss:$8 sps:$4 sm:$0xff]  }
 0x730   :  { %6035 = vmatpush1.bf16.msra.mxu1 %v10038_v31  ;;  %v10092_v31 = vld [vmem:[#allocation9 + $0x370] ss:$8 sps:$4 sm:$0xff]  }
 0x731   :  { %6036 = vmatprep.subr.bf16.mxu1 %v10043_v62  ;;  %v10097_v62 = vld [vmem:[#allocation9 + $0x384] ss:$8 sps:$4 sm:$0xff]  }
 0x734   :  { %6037 = vmatpush1.bf16.msra.mxu1 %v10041_v29  ;;  %v10182_v29 = vld [vmem:[#allocation10 + $0x50] ss:$8 sps:$4 sm:$0xff]  }
 0x735   :  { %6038 = vmatprep.subr.bf16.mxu1 %v10046_v41  ;;  %v10187_v41 = vld [vmem:[#allocation10 + $0x64] ss:$8 sps:$4 sm:$0xff]  }
 0x738   :  { %6039 = vmatpush1.bf16.msra.mxu1 %v10044_v40  ;;  %v10095_v40 = vld [vmem:[#allocation9 + $0x380] ss:$8 sps:$4 sm:$0xff]  }
 0x739   :  { %6040 = vmatprep.subr.bf16.mxu1 %v10049_v12  ;;  %v10100_v12 = vld [vmem:[#allocation9 + $0x394] ss:$8 sps:$4 sm:$0xff]  }
 0x73c   :  { %6041 = vmatpush1.bf16.msra.mxu1 %v10047_v22  ;;  %v10185_v22 = vld [vmem:[#allocation10 + $0x60] ss:$8 sps:$4 sm:$0xff]  }
 0x73d   :  { %6042 = vmatprep.subr.bf16.mxu1 %v10052_v51  ;;  %v10190_v51 = vld [vmem:[#allocation10 + $0x74] ss:$8 sps:$4 sm:$0xff]  }
 0x740   :  { %6043 = vmatpush1.bf16.msra.mxu1 %v10050_v46  ;;  %v10098_v46 = vld [vmem:[#allocation9 + $0x390] ss:$8 sps:$4 sm:$0xff]  }
 0x741   :  { %6044 = vmatprep.subr.bf16.mxu1 %v10055_v52  ;;  %v10103_v52 = vld [vmem:[#allocation9 + $0x3a4] ss:$8 sps:$4 sm:$0xff]  }
 0x744   :  { %6045 = vmatpush1.bf16.msra.mxu1 %v10053_v21  ;;  %v10188_v21 = vld [vmem:[#allocation10 + $0x70] ss:$8 sps:$4 sm:$0xff]  }
 0x745   :  { %6046 = vmatprep.subr.bf16.mxu1 %v10058_v63  ;;  %v10193_v63 = vld [vmem:[#allocation10 + $0x84] ss:$8 sps:$4 sm:$0xff]  }
 0x748   :  { %6047 = vmatpush1.bf16.msra.mxu1 %v10056_v20  ;;  %v10101_v20 = vld [vmem:[#allocation9 + $0x3a0] ss:$8 sps:$4 sm:$0xff]  }
 0x749   :  { %6048 = vmatprep.subr.bf16.mxu1 %v10061_v61  ;;  %v10106_v61 = vld [vmem:[#allocation9 + $0x3b4] ss:$8 sps:$4 sm:$0xff]  }
 0x74c   :  { %6049 = vmatpush1.bf16.msra.mxu1 %v10059_v49  ;;  %v10191_v49 = vld [vmem:[#allocation10 + $0x80] ss:$8 sps:$4 sm:$0xff]  }
 0x74d   :  { %6050 = vmatprep.subr.bf16.mxu1 %v10064_v27  ;;  %v10196_v27 = vld [vmem:[#allocation10 + $0x94] ss:$8 sps:$4 sm:$0xff]  }
 0x750   :  { %6051 = vmatpush1.bf16.msra.mxu1 %v10062_v35  ;;  %v10104_v35 = vld [vmem:[#allocation9 + $0x3b0] ss:$8 sps:$4 sm:$0xff]  }
 0x751   :  { %6052 = vmatprep.subr.bf16.mxu1 %v10067_v50  ;;  %v10109_v50 = vld [vmem:[#allocation9 + $0x3c4] ss:$8 sps:$4 sm:$0xff]  }
 0x754   :  { %6053 = vmatpush1.bf16.msra.mxu1 %v10065_v56  ;;  %v10194_v56 = vld [vmem:[#allocation10 + $0x90] ss:$8 sps:$4 sm:$0xff]  }
 0x755   :  { %6054 = vmatprep.subr.bf16.mxu1 %v10070_v2  ;;  %v10199_v2 = vld [vmem:[#allocation10 + $0xa4] ss:$8 sps:$4 sm:$0xff]  }
 0x758   :  { %6055 = vmatpush1.bf16.msra.mxu1 %v10068_v48  ;;  %v10107_v48 = vld [vmem:[#allocation9 + $0x3c0] ss:$8 sps:$4 sm:$0xff]  }
 0x759   :  { %6077 = vmatprep.subr.bf16.mxu1 %v10073_v16  ;;  %v10112_v16 = vld [vmem:[#allocation9 + $0x3d4] ss:$8 sps:$4 sm:$0xff]  }
 0x75b   :  { %6057 = vmatmul.mubr.bf16.vlgmr.msra.gmra.mrb[28].mxu1 %v11618_v3  ;;  %v10085_v3 = vld [vmem:[#allocation9 + $0x344] ss:$8 sps:$4 sm:$0xff]  }
 0x75c   :  { %6066 = vmatprep.mubr.bf16.mxu1 %v11621_v18  ;;  %6078 = vmatpush1.bf16.msra.mxu1 %v10071_v37  ;;  %v10170_v18 = vld [vmem:[#allocation10 + $0x10] ss:$8 sps:$4 sm:$0xff]   ;;  %v10197_v37 = vld [vmem:[#allocation10 + $0xa0] ss:$8 sps:$4 sm:$0xff]  }
 0x75d   :  { %6079 = vmatprep.subr.bf16.mxu1 %v10076_v7  ;;  %7406 = vmatpush1.bf16.msra.mxu0 %v10170_v18  ;;  %v10202_v7 = vld [vmem:[#allocation10 + $0xb4] ss:$8 sps:$4 sm:$0xff]   ;;  %v10122_v18 = vld [vmem:[#allocation9 + $0x410] ss:$8 sps:$4 sm:$0xff]  }
 0x75e   :  { %7407 = vmatprep.subr.bf16.mxu0 %v10175_v8  ;;  %v10127_v8 = vld [vmem:[#allocation9 + $0x424] ss:$8 sps:$4 sm:$0xff]  }
 0x760   :  { %6080 = vmatpush1.bf16.msra.mxu1 %v10074_v13  ;;  %v10110_v13 = vld [vmem:[#allocation9 + $0x3d0] ss:$8 sps:$4 sm:$0xff]  }
 0x761   :  { %6081 = vmatprep.subr.bf16.mxu1 %v10079_v23  ;;  %v10115_v23 = vld [vmem:[#allocation9 + $0x3e4] ss:$8 sps:$4 sm:$0xff]  }
 0x763   :  { %6067 = vmatmul.mubr.bf16.gmra.mrb[32].mxu1 %v11637_v44  ;;  %v10173_v44 = vld [vmem:[#allocation10 + $0x20] ss:$8 sps:$4 sm:$0xff]  }
 0x764   :  { %6082 = vmatpush1.bf16.msra.mxu1 %v10077_v10  ;;  %6109 = vmatprep.mubr.bf16.mxu1 %v11654_v4  ;;  %v10091_v4 = vld [vmem:[#allocation9 + $0x364] ss:$8 sps:$4 sm:$0xff]   ;;  %v10200_v10 = vld [vmem:[#allocation10 + $0xb0] ss:$8 sps:$4 sm:$0xff]  }
 0x765   :  { %6083 = vmatprep.subr.bf16.mxu1 %v10082_v57  ;;  %7408 = vmatpush1.bf16.msra.mxu0 %v10173_v44  ;;  %v10113_v57 = vld [vmem:[#allocation9 + $0x3e0] ss:$8 sps:$4 sm:$0xff]   ;;  %v10128_v44 = vld [vmem:[#allocation9 + $0x430] ss:$8 sps:$4 sm:$0xff]  }
 0x766   :  { %7409 = vmatprep.subr.bf16.mxu0 %v10178_v55  ;;  %v10133_v55 = vld [vmem:[#allocation9 + $0x444] ss:$8 sps:$4 sm:$0xff]  }
 0x768   :  { %6084 = vmatpush1.bf16.msra.mxu1 %v10080_v60  ;;  %v10121_v60 = vld [vmem:[#allocation9 + $0x404] ss:$8 sps:$4 sm:$0xff]  }
 0x769   :  { %6085 = vmatprep.subr.bf16.mxu1 %v10085_v3  ;;  %7410 = vmatpush1.bf16.msra.mxu0 %v10176_v54  ;;  %v10124_v3 = vld [vmem:[#allocation9 + $0x414] ss:$8 sps:$4 sm:$0xff]   ;;  %v10137_v54 = vld [vmem:[#allocation9 + $0x460] ss:$8 sps:$4 sm:$0xff]  }
 0x76a   :  { %7411 = vmatprep.subr.bf16.mxu0 %v10181_v1  ;;  %v10142_v1 = vld [vmem:[#allocation9 + $0x474] ss:$8 sps:$4 sm:$0xff]  }
 0x76c   :  { %6086 = vmatpush1.bf16.msra.mxu1 %v10083_v14  ;;  %v10125_v14 = vld [vmem:[#allocation9 + $0x420] ss:$8 sps:$4 sm:$0xff]  }
 0x76d   :  { %6087 = vmatprep.subr.bf16.mxu1 %v10088_v58  ;;  %7412 = vmatpush1.bf16.msra.mxu0 %v10179_v19  ;;  %v10130_v58 = vld [vmem:[#allocation9 + $0x434] ss:$8 sps:$4 sm:$0xff]   ;;  %v10146_v19 = vld [vmem:[#allocation9 + $0x490] ss:$8 sps:$4 sm:$0xff]  }
 0x76e   :  { %7413 = vmatprep.subr.bf16.mxu0 %v10184_v45  ;;  %v10151_v45 = vld [vmem:[#allocation9 + $0x4a4] ss:$8 sps:$4 sm:$0xff]  }
 0x770   :  { %6088 = vmatpush1.bf16.msra.mxu1 %v10086_v53  ;;  %v10134_v53 = vld [vmem:[#allocation9 + $0x450] ss:$8 sps:$4 sm:$0xff]  }
 0x771   :  { %6089 = vmatprep.subr.bf16.mxu1 %v10091_v4  ;;  %7414 = vmatpush1.bf16.msra.mxu0 %v10182_v29  ;;  %v10139_v4 = vld [vmem:[#allocation9 + $0x464] ss:$8 sps:$4 sm:$0xff]   ;;  %v10152_v29 = vld [vmem:[#allocation9 + $0x4b0] ss:$8 sps:$4 sm:$0xff]  }
 0x772   :  { %7415 = vmatprep.subr.bf16.mxu0 %v10187_v41  ;;  %v10157_v41 = vld [vmem:[#allocation9 + $0x4c4] ss:$8 sps:$4 sm:$0xff]  }
 0x774   :  { %6090 = vmatpush1.bf16.msra.mxu1 %v10089_v38  ;;  %v10145_v38 = vld [vmem:[#allocation9 + $0x484] ss:$8 sps:$4 sm:$0xff]  }
 0x775   :  { %6091 = vmatprep.subr.bf16.mxu1 %v10094_v5  ;;  %7416 = vmatpush1.bf16.msra.mxu0 %v10185_v22  ;;  %v10148_v5 = vld [vmem:[#allocation9 + $0x494] ss:$8 sps:$4 sm:$0xff]   ;;  %v10158_v22 = vld [vmem:[#allocation9 + $0x4d0] ss:$8 sps:$4 sm:$0xff]  }
 0x776   :  { %7417 = vmatprep.subr.bf16.mxu0 %v10190_v51  ;;  %v10163_v51 = vld [vmem:[#allocation9 + $0x4e4] ss:$8 sps:$4 sm:$0xff]  }
 0x778   :  { %6092 = vmatpush1.bf16.msra.mxu1 %v10092_v31  ;;  %v10149_v31 = vld [vmem:[#allocation9 + $0x4a0] ss:$8 sps:$4 sm:$0xff]  }
 0x779   :  { %6093 = vmatprep.subr.bf16.mxu1 %v10097_v62  ;;  %7418 = vmatpush1.bf16.msra.mxu0 %v10188_v21  ;;  %v10154_v62 = vld [vmem:[#allocation9 + $0x4b4] ss:$8 sps:$4 sm:$0xff]   ;;  %v10164_v21 = vld [vmem:[#allocation9 + $0x4f0] ss:$8 sps:$4 sm:$0xff]  }
 0x77a   :  { %7419 = vmatprep.subr.bf16.mxu0 %v10193_v63  ;;  %v10203_v63 = vld [vmem:[#allocation10 + $0xc0] ss:$8 sps:$4 sm:$0xff]  }
 0x77c   :  { %6094 = vmatpush1.bf16.msra.mxu1 %v10095_v40  ;;  %v10155_v40 = vld [vmem:[#allocation9 + $0x4c0] ss:$8 sps:$4 sm:$0xff]  }
 0x77d   :  { %6095 = vmatprep.subr.bf16.mxu1 %v10100_v12  ;;  %7420 = vmatpush1.bf16.msra.mxu0 %v10191_v49  ;;  %v10160_v12 = vld [vmem:[#allocation9 + $0x4d4] ss:$8 sps:$4 sm:$0xff]  }
 0x77e   :  { %7421 = vmatprep.subr.bf16.mxu0 %v10196_v27  ;;  %v10208_v49 = vld [vmem:[#allocation10 + $0xd4] ss:$8 sps:$4 sm:$0xff]   ;;  %v10211_v27 = vld [vmem:[#allocation10 + $0xe4] ss:$8 sps:$4 sm:$0xff]  }
 0x780   :  { %6096 = vmatpush1.bf16.msra.mxu1 %v10098_v46  ;;  %v10161_v46 = vld [vmem:[#allocation9 + $0x4e0] ss:$8 sps:$4 sm:$0xff]  }
 0x781   :  { %6097 = vmatprep.subr.bf16.mxu1 %v10103_v52  ;;  %7422 = vmatpush1.bf16.msra.mxu0 %v10194_v56  ;;  %v10166_v52 = vld [vmem:[#allocation9 + $0x4f4] ss:$8 sps:$4 sm:$0xff]  }
 0x782   :  { %7423 = vmatprep.subr.bf16.mxu0 %v10199_v2  ;;  %v10214_v56 = vld [vmem:[#allocation10 + $0xf4] ss:$8 sps:$4 sm:$0xff]   ;;  %v10217_v2 = vld [vmem:[#allocation10 + $0x104] ss:$8 sps:$4 sm:$0xff]  }
 0x784   :  { %6098 = vmatpush1.bf16.msra.mxu1 %v10101_v20  ;;  %v10205_v20 = vld [vmem:[#allocation10 + $0xc4] ss:$8 sps:$4 sm:$0xff]  }
 0x785   :  { %6099 = vmatprep.subr.bf16.mxu1 %v10106_v61  ;;  %7424 = vmatpush1.bf16.msra.mxu0 %v10197_v37  ;;  %v10206_v61 = vld [vmem:[#allocation10 + $0xd0] ss:$8 sps:$4 sm:$0xff]  }
 0x786   :  { %7425 = vmatprep.subr.bf16.mxu0 %v10202_v7 }
 0x788   :  { %6100 = vmatpush1.bf16.msra.mxu1 %v10104_v35  ;;  %v10209_v35 = vld [vmem:[#allocation10 + $0xe0] ss:$8 sps:$4 sm:$0xff]  }
 0x789   :  { %6101 = vmatprep.subr.bf16.mxu1 %v10109_v50  ;;  %7426 = vmatpush1.bf16.msra.mxu0 %v10200_v10  ;;  %v10212_v50 = vld [vmem:[#allocation10 + $0xf0] ss:$8 sps:$4 sm:$0xff]  }
 0x78a   :  { %7427 = vmatprep.subr.bf16.mxu0 %v10205_v20 }
 0x78c   :  { %6102 = vmatpush1.bf16.msra.mxu1 %v10107_v48 }
 0x78d   :  { %6103 = vmatprep.subr.bf16.mxu1 %v10112_v16  ;;  %7428 = vmatpush1.bf16.msra.mxu0 %v10203_v63 }
 0x78e   :  { %7429 = vmatprep.subr.bf16.mxu0 %v10208_v49 }
 0x790   :  { %6104 = vmatpush1.bf16.msra.mxu1 %v10110_v13 }
 0x791   :  { %6105 = vmatprep.subr.bf16.mxu1 %v10115_v23  ;;  %7430 = vmatpush1.bf16.msra.mxu0 %v10206_v61  ;;  %v10215_v61 = vld [vmem:[#allocation10 + $0x100] ss:$8 sps:$4 sm:$0xff]  }
 0x792   :  { %7431 = vmatprep.subr.bf16.mxu0 %v10211_v27 }
 0x794   :  { %6106 = vmatpush1.bf16.msra.mxu1 %v10113_v57 }
 0x795   :  { %6107 = vmatprep.subr.bf16.mxu1 %v10118_v30  ;;  %7432 = vmatpush1.bf16.msra.mxu0 %v10209_v35 }
 0x796   :  { %7433 = vmatprep.subr.bf16.mxu0 %v10214_v56 }
 0x798   :  { %6108 = vmatpush1.bf16.msra.mxu1 %v10116_v25 }
 0x799   :  { %6130 = vmatprep.subr.bf16.mxu1 %v10121_v60  ;;  %7434 = vmatpush1.bf16.msra.mxu0 %v10212_v50  ;;  %v10220_v50 = vld [vmem:[#allocation10 + $0x114] ss:$8 sps:$4 sm:$0xff]  }
 0x79a   :  { %7456 = vmatprep.subr.bf16.mxu0 %v10217_v2 }
 0x79b   :  { %6110 = vmatmul.mubr.bf16.vlgmr.msra.gmra.mrb[28].mxu1 %v11660_v59  ;;  %v10131_v59 = vld [vmem:[#allocation9 + $0x440] ss:$8 sps:$4 sm:$0xff]  }
 0x79c   :  { %6119 = vmatprep.mubr.bf16.mxu1 %v11668_v11  ;;  %6131 = vmatpush1.bf16.msra.mxu1 %v10119_v24  ;;  %v10136_v11 = vld [vmem:[#allocation9 + $0x454] ss:$8 sps:$4 sm:$0xff]  }
 0x79d   :  { %6132 = vmatprep.subr.bf16.mxu1 %v10124_v3 }
 0x7a0   :  { %6133 = vmatpush1.bf16.msra.mxu1 %v10122_v18 }
 0x7a1   :  { %6134 = vmatprep.subr.bf16.mxu1 %v10127_v8 }
 0x7a3   :  { %6120 = vmatmul.mubr.bf16.gmra.mrb[32].mxu1 %v11680_v28  ;;  %v10140_v28 = vld [vmem:[#allocation9 + $0x470] ss:$8 sps:$4 sm:$0xff]  }
 0x7a4   :  { %6135 = vmatpush1.bf16.msra.mxu1 %v10125_v14  ;;  %6162 = vmatprep.mubr.bf16.mxu1 %v11676_v33  ;;  %v10143_v33 = vld [vmem:[#allocation9 + $0x480] ss:$8 sps:$4 sm:$0xff]  }
 0x7a5   :  { %6136 = vmatprep.subr.bf16.mxu1 %v10130_v58 }
 0x7a8   :  { %6137 = vmatpush1.bf16.msra.mxu1 %v10128_v44 }
 0x7a9   :  { %6138 = vmatprep.subr.bf16.mxu1 %v10133_v55 }
 0x7ac   :  { %6139 = vmatpush1.bf16.msra.mxu1 %v10131_v59 }
 0x7ad   :  { %6140 = vmatprep.subr.bf16.mxu1 %v10136_v11 }
 0x7b0   :  { %6141 = vmatpush1.bf16.msra.mxu1 %v10134_v53 }
 0x7b1   :  { %6142 = vmatprep.subr.bf16.mxu1 %v10139_v4 }
 0x7b4   :  { %6143 = vmatpush1.bf16.msra.mxu1 %v10137_v54 }
 0x7b5   :  { %6144 = vmatprep.subr.bf16.mxu1 %v10142_v1 }
 0x7b8   :  { %6145 = vmatpush1.bf16.msra.mxu1 %v10140_v28 }
 0x7b9   :  { %6146 = vmatprep.subr.bf16.mxu1 %v10145_v38 }
 0x7bc   :  { %6147 = vmatpush1.bf16.msra.mxu1 %v10143_v33 }
 0x7bd   :  { %6148 = vmatprep.subr.bf16.mxu1 %v10148_v5 }
 0x7c0   :  { %6149 = vmatpush1.bf16.msra.mxu1 %v10146_v19 }
 0x7c1   :  { %6150 = vmatprep.subr.bf16.mxu1 %v10151_v45 }
 0x7c4   :  { %6151 = vmatpush1.bf16.msra.mxu1 %v10149_v31 }
 0x7c5   :  { %6152 = vmatprep.subr.bf16.mxu1 %v10154_v62 }
 0x7c8   :  { %6153 = vmatpush1.bf16.msra.mxu1 %v10152_v29 }
 0x7c9   :  { %6154 = vmatprep.subr.bf16.mxu1 %v10157_v41 }
 0x7cc   :  { %6155 = vmatpush1.bf16.msra.mxu1 %v10155_v40 }
 0x7cd   :  { %6156 = vmatprep.subr.bf16.mxu1 %v10160_v12 }
 0x7d0   :  { %6157 = vmatpush1.bf16.msra.mxu1 %v10158_v22 }
 0x7d1   :  { %6158 = vmatprep.subr.bf16.mxu1 %v10163_v51 }
 0x7d4   :  { %6159 = vmatpush1.bf16.msra.mxu1 %v10161_v46 }
 0x7d5   :  { %6160 = vmatprep.subr.bf16.mxu1 %v10166_v52 }
 0x7d8   :  { %6161 = vmatpush1.bf16.msra.mxu1 %v10164_v21 }
 0x7db   :  { %6163 = vmatmul.mubr.bf16.vlgmr.msra.gmra.mrb[28].mxu1 %v11683_v34  ;;  %v6183_v34 = vld [vmem:[%s12155_s13] sm:$0x3] }
 0x7dc   :  { %6172 = vmatprep.mubr.bf16.mxu1 %v11687_v9  ;;  %v6188_v9 = vrot.slane %v6183_v34, %v11011_v15 }
 0x7e3   :  { %6173 = vmatmul.mubr.bf16.gmra.mrb[32].mxu1 %v11691_v6  ;;  %v6192_v6 = vrot.slane %v6183_v34, %v11016_v32 }
 0x8ae   :  { %v6164_v48 = vpop.f32.mrb[28].mxu1 }
 0x8af   :  { %v6195_v16 = vadd.f32 %v6188_v9, %v6164_v48  ;;  %v6166_v37 = vpop.f32.mrb[29].mxu1 }
 0x8b0   :  { %v6196_v7 = vadd.f32 %v6192_v6, %v6166_v37  ;;  %v6168_v13 = vpop.f32.mrb[30].mxu1 }
 0x8b1   :  { %v6211_v23 = vmul.f32 0.2, %v6195_v16  ;;  %v6197_v10 = vadd.f32 %v6188_v9, %v6168_v13  ;;  %v6170_v57 = vpop.f32.mrb[31].mxu1  ;;  %vm6203_vm11 = vcmp.ge.f32.partialorder %v6195_v16, 0.0 }
 0x8b2   :  { %v6212_v30 = vmul.f32 0.2, %v6196_v7  ;;  %v6198_v25 = vadd.f32 %v6192_v6, %v6170_v57  ;;  %vm6204_vm12 = vcmp.ge.f32.partialorder %v6196_v7, 0.0 }
 0x8b3   :  { %vm6205_vm14 = vcmp.ge.f32.partialorder %v6197_v10, 0.0  ;;  %v6213_v60 = vmul.f32 0.2, %v6197_v10  ;;  %v6219_v3 = vsel %vm6203_vm11, %v6195_v16, %v6211_v23 }
 0x8b4   :  { %vm6206_vm15 = vcmp.ge.f32.partialorder %v6198_v25, 0.0  ;;  %v6214_v24 = vmul.f32 0.2, %v6198_v25  ;;  %v6220_v8 = vsel %vm6204_vm12, %v6196_v7, %v6212_v30  ;;  %v10218_v7 = vld [vmem:[#allocation10 + $0x110] ss:$8 sps:$4 sm:$0xff]  }
 0x8b5   :  { %v6221_v18 = vsel %vm6205_vm14, %v6197_v10, %v6213_v60  ;;  %v10223_v30 = vld [vmem:[#allocation10 + $0x124] ss:$8 sps:$4 sm:$0xff]  }
 0x8b6   :  { %v6227_v14 = vpack.c.bf16 %v6221_v18, %v6219_v3  ;;  %v6222_v58 = vsel %vm6206_vm15, %v6198_v25, %v6214_v24  ;;  %v6174_v44 = vpop.f32.mrb[32].mxu1 }
 0x8b7   :  { %v6228_v55 = vpack.c.bf16 %v6222_v58, %v6220_v8  ;;  %v6199_v59 = vadd.f32 %v6188_v9, %v6174_v44  ;;  %v6176_v11 = vpop.f32.mrb[33].mxu1 }
 0x8b8   :  { %v6235_v53 = vrot.slane %v6227_v14, 4  ;;  %v6178_v4 = vpop.f32.mrb[34].mxu1  ;;  %v6200_v28 = vadd.f32 %v6192_v6, %v6176_v11 }
 0x8b9   :  { %v6236_v54 = vrot.slane %v6228_v55, 4  ;;  %v6215_v1 = vmul.f32 0.2, %v6199_v59  ;;  %v6180_v38 = vpop.f32.mrb[35].mxu1  ;;  %vm6207_vm0 = vcmp.ge.f32.partialorder %v6199_v59, 0.0  ;;  %v6201_v33 = vadd.f32 %v6188_v9, %v6178_v4 }
 0x8ba   :  { %v11741_v5 = vsel %vm350_vm4, 0, %v6235_v53  ;;  %v11744_v19 = vsel %vm350_vm4, %v6235_v53, 0  ;;  %vm6208_vm1 = vcmp.ge.f32.partialorder %v6200_v28, 0.0  ;;  %v6216_v41 = vmul.f32 0.2, %v6200_v28 }
 0x8bb   :  { %v11747_v45 = vsel %vm350_vm4, 0, %v6236_v54  ;;  %v11750_v31 = vsel %vm350_vm4, %v6236_v54, 0  ;;  %v6223_v29 = vsel %vm6207_vm0, %v6199_v59, %v6215_v1  ;;  %vm6209_vm2 = vcmp.ge.f32.partialorder %v6201_v33, 0.0  ;;  %v10221_v55 = vld [vmem:[#allocation10 + $0x120] ss:$8 sps:$4 sm:$0xff]  }
 0x8bc   :  { %v6263_v62 = vshll.u32 %v11747_v45, 16  ;;  %v6217_v40 = vmul.f32 0.2, %v6201_v33  ;;  %v6202_v12 = vadd.f32 %v6192_v6, %v6180_v38  ;;  %v6366_v22 = vrot.slane %v11747_v45, 3 }
 0x8bd   :  { %v6367_v51 = vrot.slane %v11750_v31, 3  ;;  %v6363_v46 = vrot.slane %v11741_v5, 3  ;;  %v6364_v52 = vrot.slane %v11744_v19, 3  ;;  %v6261_v21 = vshrl.u32 %v11747_v45, 16 }
 0x8be   :  { %v6225_v63 = vsel %vm6209_vm2, %v6201_v33, %v6217_v40  ;;  %vm6210_vm3 = vcmp.ge.f32.partialorder %v6202_v12, 0.0  ;;  %v6218_v20 = vmul.f32 0.2, %v6202_v12  ;;  %v6265_v49 = vrot.slane %v6263_v62, 1 }
 0x8bf   :  { %v6229_v27 = vpack.c.bf16 %v6225_v63, %v6223_v29  ;;  %v6368_v35 = vsel %vm418_vm7, %v6366_v22, %v6367_v51  ;;  %v6267_v56 = vshll.u32 %v11750_v31, 16  ;;  %v6224_v2 = vsel %vm6208_vm1, %v6200_v28, %v6216_v41  ;;  %v10226_v28 = vld [vmem:[#allocation10 + $0x134] ss:$8 sps:$4 sm:$0xff]   ;;  %v10229_v63 = vld [vmem:[#allocation10 + $0x144] ss:$8 sps:$4 sm:$0xff]  }
 0x8c0   :  { %v6226_v34 = vsel %vm6210_vm3, %v6202_v12, %v6218_v20  ;;  %7435 = vmatprep.mubr.bf16.mxu0 %v6368_v35  ;;  %v6365_v9 = vsel %vm418_vm7, %v6363_v46, %v6364_v52  ;;  %v6266_v6 = vor.u32 %v6265_v49, %v6261_v21  ;;  %v6274_v13 = vshrl.u32 %v11750_v31, 16  ;;  %v10224_v12 = vld [vmem:[#allocation10 + $0x130] ss:$8 sps:$4 sm:$0xff]  }
 0x8c1   :  { %v6237_v48 = vrot.slane %v6229_v27, 4  ;;  %v6230_v16 = vpack.c.bf16 %v6226_v34, %v6224_v2  ;;  %7436 = vmatmul.mubr.bf16.vlgmr.msra.gmra.mrb[24].mxu0 %v6365_v9  ;;  %v6269_v37 = vrot.slane %v6267_v56, 1  ;;  %v6314_v11 = vrot.slane %v11747_v45, 1 }
 0x8c2   :  { %7457 = vmatpush1.bf16.msra.mxu0 %v10215_v61  ;;  %v6315_v53 = vrot.slane %v11750_v31, 1  ;;  %v6251_v4 = vshrl.u32 %v11741_v5, 16  ;;  %v6253_v54 = vshll.u32 %v11741_v5, 16  ;;  %v6311_v38 = vrot.slane %v11741_v5, 1 }
 0x8c3   :  { %v11770_v23 = vsel %vm350_vm4, 0, %v6237_v48  ;;  %v11773_v10 = vsel %vm350_vm4, %v6237_v48, 0  ;;  %v6238_v57 = vrot.slane %v6230_v16, 4  ;;  %7458 = vmatprep.subr.bf16.mxu0 %v10220_v50  ;;  %v6270_v25 = vsel %vm358_vm5, %v6266_v6, %v6269_v37  ;;  %v10227_v48 = vld [vmem:[#allocation10 + $0x140] ss:$8 sps:$4 sm:$0xff]  }
 0x8c4   :  { %v6276_v60 = vor.u32 %v6274_v13, %v6269_v37  ;;  %v6393_v18 = vrot.slane %v11770_v23, 3  ;;  %v6394_v8 = vrot.slane %v11773_v10, 3  ;;  %v6372_v44 = vrot.slane %v6270_v25, 3 }
 0x8c5   :  { %v11779_v24 = vsel %vm350_vm4, 0, %v6238_v57  ;;  %v11782_v3 = vsel %vm350_vm4, %v6238_v57, 0  ;;  %v6312_v29 = vrot.slane %v11744_v19, 1  ;;  %v6351_v40 = vrot.slane %v11741_v5, 2 }
 0x8c6   :  { %7459 = vmatpush1.bf16.msra.mxu0 %v10218_v7  ;;  %v6396_v14 = vrot.slane %v11779_v24, 3  ;;  %v6397_v58 = vrot.slane %v11782_v3, 3  ;;  %v6373_v59 = vrot.slane %v6276_v60, 3  ;;  %v6395_v33 = vsel %vm418_vm7, %v6393_v18, %v6394_v8 }
 0x8c7   :  { %7460 = vmatprep.subr.bf16.mxu0 %v10223_v30  ;;  %v6316_v22 = vsel %vm389_vm10, %v6314_v11, %v6315_v53  ;;  %v6379_v51 = vrot.slane %v6315_v53, 3  ;;  %v11801_v46 = vrot.slane %v6251_v4, 1  ;;  %v11805_v52 = vrot.slane %v6253_v54, 2  ;;  %v10232_v30 = vld [vmem:[#allocation10 + $0x154] ss:$8 sps:$4 sm:$0xff]  }
 0x8c8   :  { %v6398_v1 = vsel %vm418_vm7, %v6396_v14, %v6397_v58  ;;  %v6374_v41 = vsel %vm418_vm7, %v6372_v44, %v6373_v59  ;;  %v6257_v20 = vshll.u32 %v11744_v19, 16  ;;  %v6271_v61 = vshrl.u32 %v11744_v19, 16 }
 0x8c9   :  { %7445 = vmatprep.mubr.bf16.mxu0 %v6398_v1  ;;  %v6279_v49 = vshll.u32 %v11770_v23, 16  ;;  %v6378_v27 = vrot.slane %v6316_v22, 3  ;;  %v6313_v35 = vsel %vm389_vm10, %v6311_v38, %v6312_v29  ;;  %v6376_v50 = vrot.slane %v6312_v29, 3 }
 0x8ca   :  { %7446 = vmatmul.mubr.bf16.gmra.mrb[28].mxu0 %v6395_v33  ;;  %v6289_v2 = vshll.u32 %v11779_v24, 16  ;;  %v6287_v34 = vshrl.u32 %v11779_v24, 16  ;;  %v6293_v9 = vshll.u32 %v11782_v3, 16  ;;  %v6375_v6 = vrot.slane %v6313_v35, 3 }
 0x8cb   :  { %7461 = vmatpush1.bf16.msra.mxu0 %v10221_v55  ;;  %7488 = vmatprep.mubr.bf16.mxu0 %v6374_v41  ;;  %v6300_v16 = vshrl.u32 %v11782_v3, 16  ;;  %v11816_v37 = vsel %vm418_vm7, %v6378_v27, %v6379_v51  ;;  %v6320_v7 = vrot.slane %v11779_v24, 1  ;;  %v6321_v57 = vrot.slane %v11782_v3, 1  ;;  %v10235_v41 = vld [vmem:[#allocation10 + $0x164] ss:$8 sps:$4 sm:$0xff]  }
 0x8cc   :  { %7462 = vmatprep.subr.bf16.mxu0 %v10226_v28  ;;  %v6277_v25 = vshrl.u32 %v11770_v23, 16  ;;  %v6283_v60 = vshll.u32 %v11773_v10, 16  ;;  %v11823_v18 = vsel %vm418_vm7, %v6375_v6, %v6376_v50  ;;  %v6317_v8 = vrot.slane %v11770_v23, 1  ;;  %v10230_v28 = vld [vmem:[#allocation10 + $0x150] ss:$8 sps:$4 sm:$0xff]  }
 0x8cd   :  { %v6322_v14 = vsel %vm389_vm10, %v6320_v7, %v6321_v57  ;;  %v6409_v58 = vrot.slane %v6321_v57, 3  ;;  %v6318_v44 = vrot.slane %v11773_v10, 1  ;;  %v6330_v55 = vrot.slane %v6261_v21, 1  ;;  %v10233_v6 = vld [vmem:[#allocation10 + $0x160] ss:$8 sps:$4 sm:$0xff]  }
 0x8ce   :  { %v6297_v59 = vshrl.u32 %v11773_v10, 16  ;;  %v6408_v11 = vrot.slane %v6322_v14, 3  ;;  %v6331_v53 = vrot.slane %v6263_v62, 2  ;;  %v6333_v1 = vrot.slane %v6274_v13, 1 }
 0x8cf   :  { %7463 = vmatpush1.bf16.msra.mxu0 %v10224_v12  ;;  %v6319_v38 = vsel %vm389_vm10, %v6317_v8, %v6318_v44  ;;  %v6406_v33 = vrot.slane %v6318_v44, 3  ;;  %v6334_v29 = vrot.slane %v6267_v56, 2  ;;  %v6325_v21 = vor.u32 %v11805_v52, %v11801_v46  ;;  %v10238_v8 = vld [vmem:[#allocation10 + $0x174] ss:$8 sps:$4 sm:$0xff]  }
 0x8d0   :  { %7464 = vmatprep.subr.bf16.mxu0 %v10229_v63  ;;  %v11841_v12 = vsel %vm418_vm7, %v6408_v11, %v6409_v58  ;;  %v6405_v62 = vrot.slane %v6319_v38, 3  ;;  %v6332_v22 = vor.u32 %v6331_v53, %v6330_v55  ;;  %v6326_v13 = vrot.slane %v6271_v61, 1 }
 0x8d1   :  { %v6335_v51 = vor.u32 %v6334_v29, %v6333_v1  ;;  %v6327_v63 = vrot.slane %v6257_v20, 2  ;;  %v6344_v56 = vrot.slane %v6287_v34, 1  ;;  %v6345_v46 = vrot.slane %v6289_v2, 2 }
 0x8d2   :  { %v11852_v52 = vsel %vm418_vm7, %v6405_v62, %v6406_v33  ;;  %v6347_v27 = vrot.slane %v6300_v16, 1  ;;  %v6348_v35 = vrot.slane %v6293_v9, 2  ;;  %v6337_v50 = vrot.slane %v6277_v25, 1  ;;  %v10236_v62 = vld [vmem:[#allocation10 + $0x170] ss:$8 sps:$4 sm:$0xff]  }
 0x8d3   :  { %7465 = vmatpush1.bf16.msra.mxu0 %v10227_v48  ;;  %v6336_v48 = vsel %vm396_vm6, %v6332_v22, %v6335_v51  ;;  %v6385_v7 = vrot.slane %v6335_v51, 3  ;;  %v6328_v57 = vor.u32 %v6327_v63, %v6326_v13  ;;  %v6338_v44 = vrot.slane %v6279_v49, 2  ;;  %v10241_v63 = vld [vmem:[#allocation10 + $0x184] ss:$8 sps:$4 sm:$0xff]  }
 0x8d4   :  { %7466 = vmatprep.subr.bf16.mxu0 %v10232_v30  ;;  %v6346_v30 = vor.u32 %v6345_v46, %v6344_v56  ;;  %v6384_v14 = vrot.slane %v6336_v48, 3  ;;  %v6349_v58 = vor.u32 %v6348_v35, %v6347_v27  ;;  %v6340_v55 = vrot.slane %v6297_v59, 1 }
 0x8d5   :  { %v6329_v11 = vsel %vm396_vm6, %v6325_v21, %v6328_v57  ;;  %v6382_v53 = vrot.slane %v6328_v57, 3  ;;  %v6341_v1 = vrot.slane %v6283_v60, 2  ;;  %v6339_v13 = vor.u32 %v6338_v44, %v6337_v50 }
 0x8d6   :  { %v11870_v38 = vsel %vm418_vm7, %v6384_v14, %v6385_v7  ;;  %v6381_v33 = vrot.slane %v6329_v11, 3  ;;  %v6350_v29 = vsel %vm396_vm6, %v6346_v30, %v6349_v58  ;;  %v6355_v21 = vrot.slane %v11750_v31, 2 }
 0x8d7   :  { %7467 = vmatpush1.bf16.msra.mxu0 %v10230_v28  ;;  %v6354_v28 = vrot.slane %v11747_v45, 2  ;;  %v6414_v22 = vrot.slane %v6350_v29, 3  ;;  %v6342_v51 = vor.u32 %v6341_v1, %v6340_v55  ;;  %v6352_v45 = vrot.slane %v11744_v19, 2  ;;  %v10244_v55 = vld [vmem:[#allocation10 + $0x194] ss:$8 sps:$4 sm:$0xff]  }
 0x8d8   :  { %7468 = vmatprep.subr.bf16.mxu0 %v10235_v41  ;;  %v6415_v41 = vrot.slane %v6349_v58, 3  ;;  %v11875_v56 = vsel %vm418_vm7, %v6381_v33, %v6382_v53  ;;  %v6360_v46 = vrot.slane %v11779_v24, 2  ;;  %v6361_v27 = vrot.slane %v11782_v3, 2  ;;  %v10265_v24 = vld [vmem:[#allocation10 + $0x204] ss:$8 sps:$4 sm:$0xff]  }
 0x8d9   :  { %v6412_v50 = vrot.slane %v6342_v51, 3  ;;  %v6356_v48 = vsel %vm411_vm13, %v6354_v28, %v6355_v21  ;;  %v6391_v57 = vrot.slane %v6355_v21, 3  ;;  %v6353_v30 = vsel %vm411_vm13, %v6351_v40, %v6352_v45 }
 0x8da   :  { %v11881_v35 = vsel %vm418_vm7, %v6414_v22, %v6415_v41  ;;  %v6390_v7 = vrot.slane %v6356_v48, 3  ;;  %v6387_v14 = vrot.slane %v6353_v30, 3  ;;  %v6388_v58 = vrot.slane %v6352_v45, 3  ;;  %v10245_v45 = vld [vmem:[#allocation10 + $0x1a0] ss:$8 sps:$4 sm:$0xff]  }
 0x8db   :  { %7469 = vmatpush1.bf16.msra.mxu0 %v10233_v6  ;;  %v6343_v6 = vsel %vm396_vm6, %v6339_v13, %v6342_v51  ;;  %v6362_v44 = vsel %vm411_vm13, %v6360_v46, %v6361_v27  ;;  %v6421_v28 = vrot.slane %v6361_v27, 3  ;;  %v6357_v40 = vrot.slane %v11770_v23, 2  ;;  %v10247_v51 = vld [vmem:[#allocation10 + $0x1a4] ss:$8 sps:$4 sm:$0xff]   ;;  %v10250_v46 = vld [vmem:[#allocation10 + $0x1b4] ss:$8 sps:$4 sm:$0xff]  }
 0x8dc   :  { %7470 = vmatprep.subr.bf16.mxu0 %v10238_v8  ;;  %v6411_v31 = vrot.slane %v6343_v6, 3  ;;  %v10239_v8 = vld [vmem:[#allocation10 + $0x180] ss:$8 sps:$4 sm:$0xff]   ;;  %v11893_v53 = vsel %vm418_vm7, %v6390_v7, %v6391_v57  ;;  %v6420_v1 = vrot.slane %v6362_v44, 3  ;;  %v11896_v33 = vsel %vm418_vm7, %v6387_v14, %v6388_v58  ;;  %v10248_v27 = vld [vmem:[#allocation10 + $0x1b0] ss:$8 sps:$4 sm:$0xff]  }
 0x8dd   :  { %v6358_v29 = vrot.slane %v11773_v10, 2  ;;  %v10253_v6 = vld [vmem:[#allocation10 + $0x1c4] ss:$8 sps:$4 sm:$0xff]   ;;  %v10256_v48 = vld [vmem:[#allocation10 + $0x1d4] ss:$8 sps:$4 sm:$0xff]   ;;  %v6291_v57 = vrot.slane %v6289_v2, 1 }
 0x8de   :  { %v11890_v11 = vsel %vm418_vm7, %v6411_v31, %v6412_v50  ;;  %v11901_v41 = vsel %vm418_vm7, %v6420_v1, %v6421_v28  ;;  %v10251_v50 = vld [vmem:[#allocation10 + $0x1c0] ss:$8 sps:$4 sm:$0xff]   ;;  %v6255_v31 = vrot.slane %v6253_v54, 1  ;;  %v10254_v7 = vld [vmem:[#allocation10 + $0x1d0] ss:$8 sps:$4 sm:$0xff]   ;;  %v6295_v58 = vrot.slane %v6293_v9, 1 }
 0x8df   :  { %7471 = vmatpush1.bf16.msra.mxu0 %v10236_v62  ;;  %v10242_v62 = vld [vmem:[#allocation10 + $0x190] ss:$8 sps:$4 sm:$0xff]   ;;  %v6359_v22 = vsel %vm411_vm13, %v6357_v40, %v6358_v29  ;;  %v6418_v13 = vrot.slane %v6358_v29, 3  ;;  %v10259_v30 = vld [vmem:[#allocation10 + $0x1e4] ss:$8 sps:$4 sm:$0xff]   ;;  %v6292_v54 = vor.u32 %v6291_v57, %v6287_v34  ;;  %v6281_v5 = vrot.slane %v6279_v49, 1 }
 0x8e0   :  { %7472 = vmatprep.subr.bf16.mxu0 %v10241_v63  ;;  %v6417_v21 = vrot.slane %v6359_v22, 3  ;;  %v6256_v14 = vor.u32 %v6255_v31, %v6251_v4  ;;  %v10257_v44 = vld [vmem:[#allocation10 + $0x1e0] ss:$8 sps:$4 sm:$0xff]   ;;  %v10260_v4 = vld [vmem:[#allocation10 + $0x1f0] ss:$8 sps:$4 sm:$0xff]   ;;  %v6285_v19 = vrot.slane %v6283_v60, 1 }
 0x8e1   :  { %v6296_v9 = vsel %vm358_vm5, %v6292_v54, %v6295_v58  ;;  %v6282_v3 = vor.u32 %v6281_v5, %v6277_v25  ;;  %v10268_v49 = vld [vmem:[#allocation10 + $0x214] ss:$8 sps:$4 sm:$0xff]   ;;  %v10266_v60 = vld [vmem:[#allocation10 + $0x210] ss:$8 sps:$4 sm:$0xff]   ;;  %v10271_v23 = vld [vmem:[#allocation10 + $0x224] ss:$8 sps:$4 sm:$0xff]  }
 0x8e2   :  { %v11905_v63 = vsel %vm418_vm7, %v6417_v21, %v6418_v13  ;;  %v10269_v21 = vld [vmem:[#allocation10 + $0x220] ss:$8 sps:$4 sm:$0xff]   ;;  %v10272_v10 = vld [vmem:[#allocation10 + $0x230] ss:$8 sps:$4 sm:$0xff]   ;;  %v10298_v54 = vld [vmem:[#allocation10 + $0x2b4] ss:$8 sps:$4 sm:$0xff]  }
 0x8e3   :  { %7473 = vmatpush1.bf16.msra.mxu0 %v10239_v8  ;;  %v6259_v8 = vrot.slane %v6257_v20, 1  ;;  %v6302_v20 = vor.u32 %v6300_v16, %v6295_v58  ;;  %v10263_v16 = vld [vmem:[#allocation10 + $0x200] ss:$8 sps:$4 sm:$0xff]   ;;  %v6286_v13 = vsel %vm358_vm5, %v6282_v3, %v6285_v19  ;;  %v10284_v57 = vld [vmem:[#allocation10 + $0x270] ss:$8 sps:$4 sm:$0xff]  }
 0x8e4   :  { %7474 = vmatprep.subr.bf16.mxu0 %v10244_v55  ;;  %v10262_v55 = vld [vmem:[#allocation10 + $0x1f4] ss:$8 sps:$4 sm:$0xff]   ;;  %v6399_v25 = vrot.slane %v6286_v13, 3  ;;  %v10281_v31 = vld [vmem:[#allocation10 + $0x260] ss:$8 sps:$4 sm:$0xff]  }
 0x8e5   :  { %v6273_v2 = vor.u32 %v6271_v61, %v6259_v8  ;;  %v6260_v1 = vsel %vm358_vm5, %v6256_v14, %v6259_v8  ;;  %v6402_v61 = vrot.slane %v6296_v9, 3  ;;  %v6403_v40 = vrot.slane %v6302_v20, 3  ;;  %v10292_v8 = vld [vmem:[#allocation10 + $0x294] ss:$8 sps:$4 sm:$0xff]   ;;  %v10290_v14 = vld [vmem:[#allocation10 + $0x290] ss:$8 sps:$4 sm:$0xff]  }
 0x8e6   :  { %v6369_v34 = vrot.slane %v6260_v1, 3  ;;  %v10295_v58 = vld [vmem:[#allocation10 + $0x2a4] ss:$8 sps:$4 sm:$0xff]   ;;  %v10299_v1 = vld [vmem:[#allocation10 + $0x2c0] ss:$8 sps:$4 sm:$0xff]  }
 0x8e7   :  { %7475 = vmatpush1.bf16.msra.mxu0 %v10242_v62  ;;  %v6370_v28 = vrot.slane %v6273_v2, 3  ;;  %v6299_v62 = vor.u32 %v6297_v59, %v6285_v19  ;;  %v6404_v22 = vsel %vm418_vm7, %v6402_v61, %v6403_v40  ;;  %v10277_v59 = vld [vmem:[#allocation10 + $0x244] ss:$8 sps:$4 sm:$0xff]   ;;  %v10304_v20 = vld [vmem:[#allocation10 + $0x2d4] ss:$8 sps:$4 sm:$0xff]  }
 0x8e8   :  { %7476 = vmatprep.subr.bf16.mxu0 %v10247_v51  ;;  %v10301_v2 = vld [vmem:[#allocation10 + $0x2c4] ss:$8 sps:$4 sm:$0xff]   ;;  %v10302_v5 = vld [vmem:[#allocation10 + $0x2d0] ss:$8 sps:$4 sm:$0xff]   ;;  %v10305_v9 = vld [vmem:[#allocation10 + $0x2e0] ss:$8 sps:$4 sm:$0xff]  }
 0x8e9   :  { %v6371_v29 = vsel %vm418_vm7, %v6369_v34, %v6370_v28  ;;  %v6400_v51 = vrot.slane %v6299_v62, 3  ;;  %v10308_v34 = vld [vmem:[#allocation10 + $0x2f0] ss:$8 sps:$4 sm:$0xff]   ;;  %v10313_v28 = vld [vmem:[#allocation10 + $0x304] ss:$8 sps:$4 sm:$0xff]  }
 0x8ea   :  { %v10311_v19 = vld [vmem:[#allocation10 + $0x300] ss:$8 sps:$4 sm:$0xff]   ;;  %v10316_v61 = vld [vmem:[#allocation10 + $0x314] ss:$8 sps:$4 sm:$0xff]   ;;  %v10314_v40 = vld [vmem:[#allocation10 + $0x310] ss:$8 sps:$4 sm:$0xff]  }
 0x8eb   :  { %7477 = vmatpush1.bf16.msra.mxu0 %v10245_v45  ;;  %v10274_v45 = vld [vmem:[#allocation10 + $0x234] ss:$8 sps:$4 sm:$0xff]   ;;  %v10319_v3 = vld [vmem:[#allocation10 + $0x324] ss:$8 sps:$4 sm:$0xff]  }
 0x8ec   :  { %7478 = vmatprep.subr.bf16.mxu0 %v10250_v46  ;;  %v6401_v46 = vsel %vm418_vm7, %v6399_v25, %v6400_v51  ;;  %v10412_v62 = vld [vmem:[%s12158_s16 + $0x1c] ss:$12 sps:$4 sm:$0xff]   ;;  %v10415_v13 = vld [vmem:[%s12158_s16 + $0x34] ss:$12 sps:$4 sm:$0xff]   ;;  %v10418_v25 = vld [vmem:[%s12158_s16 + $0x4c] ss:$12 sps:$4 sm:$0xff]  }
 0x8ed   :  { %v10326_v51 = vld [vmem:[#allocation10 + $0x350] ss:$8 sps:$4 sm:$0xff]  }
 0x8ef   :  { %7479 = vmatpush1.bf16.msra.mxu0 %v10248_v27  ;;  %v10275_v27 = vld [vmem:[#allocation10 + $0x240] ss:$8 sps:$4 sm:$0xff]  }
 0x8f0   :  { %7480 = vmatprep.subr.bf16.mxu0 %v10253_v6  ;;  %v10280_v6 = vld [vmem:[#allocation10 + $0x254] ss:$8 sps:$4 sm:$0xff]  }
 0x8f3   :  { %7481 = vmatpush1.bf16.msra.mxu0 %v10251_v50  ;;  %v10278_v50 = vld [vmem:[#allocation10 + $0x250] ss:$8 sps:$4 sm:$0xff]  }
 0x8f4   :  { %7482 = vmatprep.subr.bf16.mxu0 %v10256_v48  ;;  %v10283_v48 = vld [vmem:[#allocation10 + $0x264] ss:$8 sps:$4 sm:$0xff]  }
 0x8f7   :  { %7483 = vmatpush1.bf16.msra.mxu0 %v10254_v7  ;;  %v10286_v7 = vld [vmem:[#allocation10 + $0x274] ss:$8 sps:$4 sm:$0xff]  }
 0x8f8   :  { %7484 = vmatprep.subr.bf16.mxu0 %v10259_v30  ;;  %v10289_v30 = vld [vmem:[#allocation10 + $0x284] ss:$8 sps:$4 sm:$0xff]  }
 0x8fb   :  { %7485 = vmatpush1.bf16.msra.mxu0 %v10257_v44  ;;  %v10293_v44 = vld [vmem:[#allocation10 + $0x2a0] ss:$8 sps:$4 sm:$0xff]  }
 0x8fc   :  { %7486 = vmatprep.subr.bf16.mxu0 %v10262_v55  ;;  %v10296_v55 = vld [vmem:[#allocation10 + $0x2b0] ss:$8 sps:$4 sm:$0xff]  }
 0x8ff   :  { %7487 = vmatpush1.bf16.msra.mxu0 %v10260_v4  ;;  %v10307_v4 = vld [vmem:[#allocation10 + $0x2e4] ss:$8 sps:$4 sm:$0xff]  }
 0x900   :  { %7509 = vmatprep.subr.bf16.mxu0 %v10265_v24  ;;  %v10310_v24 = vld [vmem:[#allocation10 + $0x2f4] ss:$8 sps:$4 sm:$0xff]  }
 0x902   :  { %7489 = vmatmul.mubr.bf16.vlgmr.msra.gmra.mrb[24].mxu0 %v6371_v29  ;;  %v10407_v29 = vld [vmem:[%s12158_s16] ss:$12 sps:$4 sm:$0xff]  }
 0x903   :  { %7498 = vmatprep.mubr.bf16.mxu0 %v6404_v22  ;;  %7510 = vmatpush1.bf16.msra.mxu0 %v10263_v16  ;;  %v10317_v16 = vld [vmem:[#allocation10 + $0x320] ss:$8 sps:$4 sm:$0xff]   ;;  %v10325_v22 = vld [vmem:[#allocation10 + $0x344] ss:$8 sps:$4 sm:$0xff]  }
 0x904   :  { %7511 = vmatprep.subr.bf16.mxu0 %v10268_v49  ;;  %v10322_v49 = vld [vmem:[#allocation10 + $0x334] ss:$8 sps:$4 sm:$0xff]  }
 0x907   :  { %7512 = vmatpush1.bf16.msra.mxu0 %v10266_v60  ;;  %v10328_v60 = vld [vmem:[#allocation10 + $0x354] ss:$8 sps:$4 sm:$0xff]  }
 0x908   :  { %7513 = vmatprep.subr.bf16.mxu0 %v10271_v23  ;;  %v10413_v23 = vld [vmem:[%s12158_s16 + $0x30] ss:$12 sps:$4 sm:$0xff]  }
 0x90a   :  { %7499 = vmatmul.mubr.bf16.gmra.mrb[28].mxu0 %v6401_v46  ;;  %v10421_v46 = vld [vmem:[%s12158_s16 + $0x64] ss:$12 sps:$4 sm:$0xff]  }
 0x90b   :  { %7514 = vmatpush1.bf16.msra.mxu0 %v10269_v21  ;;  %7541 = vmatprep.mubr.bf16.mxu0 %v11816_v37  ;;  %v10287_v37 = vld [vmem:[#allocation10 + $0x280] ss:$8 sps:$4 sm:$0xff]   ;;  %v10331_v21 = vld [vmem:[#allocation10 + $0x364] ss:$8 sps:$4 sm:$0xff]  }
 0x90c   :  { %7515 = vmatprep.subr.bf16.mxu0 %v10274_v45  ;;  %v10416_v45 = vld [vmem:[%s12158_s16 + $0x48] ss:$12 sps:$4 sm:$0xff]  }
 0x90f   :  { %7516 = vmatpush1.bf16.msra.mxu0 %v10272_v10  ;;  %v10329_v10 = vld [vmem:[#allocation10 + $0x360] ss:$8 sps:$4 sm:$0xff]  }
 0x910   :  { %7517 = vmatprep.subr.bf16.mxu0 %v10277_v59  ;;  %v10334_v59 = vld [vmem:[#allocation10 + $0x374] ss:$8 sps:$4 sm:$0xff]  }
 0x913   :  { %7518 = vmatpush1.bf16.msra.mxu0 %v10275_v27  ;;  %v10419_v27 = vld [vmem:[%s12158_s16 + $0x60] ss:$12 sps:$4 sm:$0xff]  }
 0x914   :  { %7519 = vmatprep.subr.bf16.mxu0 %v10280_v6  ;;  %v10424_v6 = vld [vmem:[%s12158_s16 + $0x7c] ss:$12 sps:$4 sm:$0xff]  }
 0x917   :  { %7520 = vmatpush1.bf16.msra.mxu0 %v10278_v50  ;;  %v10332_v50 = vld [vmem:[#allocation10 + $0x370] ss:$8 sps:$4 sm:$0xff]  }
 0x918   :  { %7521 = vmatprep.subr.bf16.mxu0 %v10283_v48  ;;  %v10337_v48 = vld [vmem:[#allocation10 + $0x384] ss:$8 sps:$4 sm:$0xff]  }
 0x91b   :  { %7522 = vmatpush1.bf16.msra.mxu0 %v10281_v31  ;;  %v10422_v31 = vld [vmem:[%s12158_s16 + $0x78] ss:$12 sps:$4 sm:$0xff]  }
 0x91c   :  { %7523 = vmatprep.subr.bf16.mxu0 %v10286_v7  ;;  %v10427_v7 = vld [vmem:[%s12158_s16 + $0x94] ss:$12 sps:$4 sm:$0xff]  }
 0x91f   :  { %7524 = vmatpush1.bf16.msra.mxu0 %v10284_v57  ;;  %v10335_v57 = vld [vmem:[#allocation10 + $0x380] ss:$8 sps:$4 sm:$0xff]  }
 0x920   :  { %7525 = vmatprep.subr.bf16.mxu0 %v10289_v30  ;;  %v10340_v30 = vld [vmem:[#allocation10 + $0x394] ss:$8 sps:$4 sm:$0xff]  }
 0x923   :  { %7526 = vmatpush1.bf16.msra.mxu0 %v10287_v37  ;;  %v10425_v37 = vld [vmem:[%s12158_s16 + $0x90] ss:$12 sps:$4 sm:$0xff]  }
 0x924   :  { %7527 = vmatprep.subr.bf16.mxu0 %v10292_v8  ;;  %v10430_v8 = vld [vmem:[%s12158_s16 + $0xac] ss:$12 sps:$4 sm:$0xff]  }
 0x927   :  { %7528 = vmatpush1.bf16.msra.mxu0 %v10290_v14  ;;  %v10338_v14 = vld [vmem:[#allocation10 + $0x390] ss:$8 sps:$4 sm:$0xff]  }
 0x928   :  { %7529 = vmatprep.subr.bf16.mxu0 %v10295_v58  ;;  %v10343_v58 = vld [vmem:[#allocation10 + $0x3a4] ss:$8 sps:$4 sm:$0xff]  }
 0x92b   :  { %7530 = vmatpush1.bf16.msra.mxu0 %v10293_v44  ;;  %v10428_v44 = vld [vmem:[%s12158_s16 + $0xa8] ss:$12 sps:$4 sm:$0xff]  }
 0x92c   :  { %7531 = vmatprep.subr.bf16.mxu0 %v10298_v54  ;;  %v10433_v54 = vld [vmem:[%s12158_s16 + $0xc4] ss:$12 sps:$4 sm:$0xff]  }
 0x92f   :  { %7532 = vmatpush1.bf16.msra.mxu0 %v10296_v55  ;;  %v10341_v55 = vld [vmem:[#allocation10 + $0x3a0] ss:$8 sps:$4 sm:$0xff]  }
 0x930   :  { %7533 = vmatprep.subr.bf16.mxu0 %v10301_v2  ;;  %v10346_v2 = vld [vmem:[#allocation10 + $0x3b4] ss:$8 sps:$4 sm:$0xff]  }
 0x933   :  { %7534 = vmatpush1.bf16.msra.mxu0 %v10299_v1  ;;  %v10431_v1 = vld [vmem:[%s12158_s16 + $0xc0] ss:$12 sps:$4 sm:$0xff]  }
 0x934   :  { %7535 = vmatprep.subr.bf16.mxu0 %v10304_v20  ;;  %v10436_v20 = vld [vmem:[%s12158_s16 + $0xdc] ss:$12 sps:$4 sm:$0xff]  }
 0x937   :  { %7536 = vmatpush1.bf16.msra.mxu0 %v10302_v5  ;;  %v10344_v5 = vld [vmem:[#allocation10 + $0x3b0] ss:$8 sps:$4 sm:$0xff]  }
 0x938   :  { %7537 = vmatprep.subr.bf16.mxu0 %v10307_v4  ;;  %v10349_v4 = vld [vmem:[#allocation10 + $0x3c4] ss:$8 sps:$4 sm:$0xff]  }
 0x93b   :  { %7538 = vmatpush1.bf16.msra.mxu0 %v10305_v9  ;;  %v10434_v9 = vld [vmem:[%s12158_s16 + $0xd8] ss:$12 sps:$4 sm:$0xff]  }
 0x93c   :  { %7539 = vmatprep.subr.bf16.mxu0 %v10310_v24  ;;  %v10439_v24 = vld [vmem:[%s12158_s16 + $0xf4] ss:$12 sps:$4 sm:$0xff]  }
 0x93f   :  { %7540 = vmatpush1.bf16.msra.mxu0 %v10308_v34  ;;  %v10347_v34 = vld [vmem:[#allocation10 + $0x3c0] ss:$8 sps:$4 sm:$0xff]  }
 0x940   :  { %7562 = vmatprep.subr.bf16.mxu0 %v10313_v28  ;;  %v10352_v28 = vld [vmem:[#allocation10 + $0x3d4] ss:$8 sps:$4 sm:$0xff]  }
 0x942   :  { %7542 = vmatmul.mubr.bf16.vlgmr.msra.gmra.mrb[24].mxu0 %v11823_v18  ;;  %v10409_v18 = vld [vmem:[%s12158_s16 + $0x4] ss:$12 sps:$4 sm:$0xff]  }
 0x943   :  { %7551 = vmatprep.mubr.bf16.mxu0 %v11841_v12  ;;  %7563 = vmatpush1.bf16.msra.mxu0 %v10311_v19  ;;  %v10320_v12 = vld [vmem:[#allocation10 + $0x330] ss:$8 sps:$4 sm:$0xff]  }
 0x944   :  { %7564 = vmatprep.subr.bf16.mxu0 %v10316_v61  ;;  %8020 = vmatprep.subr.bf16.mxu1 %v10409_v18  ;;  %v10437_v19 = vld [vmem:[%s12158_s16 + $0xf0] ss:$12 sps:$4 sm:$0xff]   ;;  %v10442_v61 = vld [vmem:[%s12158_s16 + $0x10c] ss:$12 sps:$4 sm:$0xff]  }
 0x945   :  { %8021 = vmatpush1.bf16.msra.mxu1 %v10407_v29  ;;  %v10353_v29 = vld [vmem:[#allocation10 + $0x3e0] ss:$8 sps:$4 sm:$0xff]   ;;  %v10358_v18 = vld [vmem:[#allocation10 + $0x3f4] ss:$8 sps:$4 sm:$0xff]  }
 0x946   :  { %8022 = vmatprep.subr.bf16.mxu1 %v10412_v62  ;;  %v10448_v62 = vld [vmem:[%s12158_s16 + $0x13c] ss:$12 sps:$4 sm:$0xff]  }
 0x947   :  { %7565 = vmatpush1.bf16.msra.mxu0 %v10314_v40  ;;  %v10350_v40 = vld [vmem:[#allocation10 + $0x3d0] ss:$8 sps:$4 sm:$0xff]  }
 0x948   :  { %7566 = vmatprep.subr.bf16.mxu0 %v10319_v3  ;;  %v10355_v3 = vld [vmem:[#allocation10 + $0x3e4] ss:$8 sps:$4 sm:$0xff]  }
 0x94a   :  { %7552 = vmatmul.mubr.bf16.gmra.mrb[28].mxu0 %v11852_v52  ;;  %v10410_v52 = vld [vmem:[%s12158_s16 + $0x18] ss:$12 sps:$4 sm:$0xff]  }
 0x94b   :  { %7567 = vmatpush1.bf16.msra.mxu0 %v10317_v16  ;;  %7594 = vmatprep.mubr.bf16.mxu0 %v11870_v38  ;;  %v10323_v38 = vld [vmem:[#allocation10 + $0x340] ss:$8 sps:$4 sm:$0xff]  }
 0x94c   :  { %7568 = vmatprep.subr.bf16.mxu0 %v10322_v49  ;;  %8023 = vmatpush1.bf16.msra.mxu1 %v10410_v52  ;;  %v10440_v16 = vld [vmem:[%s12158_s16 + $0x108] ss:$12 sps:$4 sm:$0xff]   ;;  %v10445_v49 = vld [vmem:[%s12158_s16 + $0x124] ss:$12 sps:$4 sm:$0xff]  }
 0x94d   :  { %8024 = vmatprep.subr.bf16.mxu1 %v10415_v13  ;;  %v10361_v52 = vld [vmem:[#allocation10 + $0x404] ss:$8 sps:$4 sm:$0xff]  }
 0x94e   :  { %v10446_v13 = vld [vmem:[%s12158_s16 + $0x138] ss:$12 sps:$4 sm:$0xff]  }
 0x94f   :  { %7569 = vmatpush1.bf16.msra.mxu0 %v10320_v12  ;;  %v10443_v12 = vld [vmem:[%s12158_s16 + $0x120] ss:$12 sps:$4 sm:$0xff]  }
 0x950   :  { %7570 = vmatprep.subr.bf16.mxu0 %v10325_v22  ;;  %8025 = vmatpush1.bf16.msra.mxu1 %v10413_v23  ;;  %v10356_v22 = vld [vmem:[#allocation10 + $0x3f0] ss:$8 sps:$4 sm:$0xff]  }
 0x951   :  { %8026 = vmatprep.subr.bf16.mxu1 %v10418_v25  ;;  %v10362_v23 = vld [vmem:[#allocation10 + $0x410] ss:$8 sps:$4 sm:$0xff]   ;;  %v10367_v25 = vld [vmem:[#allocation10 + $0x424] ss:$8 sps:$4 sm:$0xff]  }
 0x953   :  { %7571 = vmatpush1.bf16.msra.mxu0 %v10323_v38  ;;  %v10359_v38 = vld [vmem:[#allocation10 + $0x400] ss:$8 sps:$4 sm:$0xff]  }
 0x954   :  { %7572 = vmatprep.subr.bf16.mxu0 %v10328_v60  ;;  %8027 = vmatpush1.bf16.msra.mxu1 %v10416_v45  ;;  %v10364_v60 = vld [vmem:[#allocation10 + $0x414] ss:$8 sps:$4 sm:$0xff]   ;;  %v10368_v45 = vld [vmem:[#allocation10 + $0x430] ss:$8 sps:$4 sm:$0xff]  }
 0x955   :  { %8028 = vmatprep.subr.bf16.mxu1 %v10421_v46  ;;  %v10373_v46 = vld [vmem:[#allocation10 + $0x444] ss:$8 sps:$4 sm:$0xff]  }
 0x957   :  { %7573 = vmatpush1.bf16.msra.mxu0 %v10326_v51  ;;  %v10365_v51 = vld [vmem:[#allocation10 + $0x420] ss:$8 sps:$4 sm:$0xff]  }
 0x958   :  { %7574 = vmatprep.subr.bf16.mxu0 %v10331_v21  ;;  %8029 = vmatpush1.bf16.msra.mxu1 %v10419_v27  ;;  %v10370_v21 = vld [vmem:[#allocation10 + $0x434] ss:$8 sps:$4 sm:$0xff]   ;;  %v10377_v27 = vld [vmem:[#allocation10 + $0x460] ss:$8 sps:$4 sm:$0xff]  }
 0x959   :  { %8030 = vmatprep.subr.bf16.mxu1 %v10424_v6  ;;  %v10382_v6 = vld [vmem:[#allocation10 + $0x474] ss:$8 sps:$4 sm:$0xff]  }
 0x95b   :  { %7575 = vmatpush1.bf16.msra.mxu0 %v10329_v10  ;;  %v10374_v10 = vld [vmem:[#allocation10 + $0x450] ss:$8 sps:$4 sm:$0xff]  }
 0x95c   :  { %7576 = vmatprep.subr.bf16.mxu0 %v10334_v59  ;;  %8031 = vmatpush1.bf16.msra.mxu1 %v10422_v31  ;;  %v10379_v59 = vld [vmem:[#allocation10 + $0x464] ss:$8 sps:$4 sm:$0xff]   ;;  %v10386_v31 = vld [vmem:[#allocation10 + $0x490] ss:$8 sps:$4 sm:$0xff]  }
 0x95d   :  { %8032 = vmatprep.subr.bf16.mxu1 %v10427_v7  ;;  %v10391_v7 = vld [vmem:[#allocation10 + $0x4a4] ss:$8 sps:$4 sm:$0xff]  }
 0x95f   :  { %7577 = vmatpush1.bf16.msra.mxu0 %v10332_v50  ;;  %v10385_v50 = vld [vmem:[#allocation10 + $0x484] ss:$8 sps:$4 sm:$0xff]  }
 0x960   :  { %7578 = vmatprep.subr.bf16.mxu0 %v10337_v48  ;;  %8033 = vmatpush1.bf16.msra.mxu1 %v10425_v37  ;;  %v10388_v48 = vld [vmem:[#allocation10 + $0x494] ss:$8 sps:$4 sm:$0xff]   ;;  %v10392_v37 = vld [vmem:[#allocation10 + $0x4b0] ss:$8 sps:$4 sm:$0xff]  }
 0x961   :  { %8034 = vmatprep.subr.bf16.mxu1 %v10430_v8  ;;  %v10397_v8 = vld [vmem:[#allocation10 + $0x4c4] ss:$8 sps:$4 sm:$0xff]  }
 0x963   :  { %7579 = vmatpush1.bf16.msra.mxu0 %v10335_v57  ;;  %v10389_v57 = vld [vmem:[#allocation10 + $0x4a0] ss:$8 sps:$4 sm:$0xff]  }
 0x964   :  { %7580 = vmatprep.subr.bf16.mxu0 %v10340_v30  ;;  %8035 = vmatpush1.bf16.msra.mxu1 %v10428_v44  ;;  %v10394_v30 = vld [vmem:[#allocation10 + $0x4b4] ss:$8 sps:$4 sm:$0xff]   ;;  %v10398_v44 = vld [vmem:[#allocation10 + $0x4d0] ss:$8 sps:$4 sm:$0xff]  }
 0x965   :  { %8036 = vmatprep.subr.bf16.mxu1 %v10433_v54  ;;  %v10403_v54 = vld [vmem:[#allocation10 + $0x4e4] ss:$8 sps:$4 sm:$0xff]  }
 0x967   :  { %7581 = vmatpush1.bf16.msra.mxu0 %v10338_v14  ;;  %v10395_v14 = vld [vmem:[#allocation10 + $0x4c0] ss:$8 sps:$4 sm:$0xff]  }
 0x968   :  { %7582 = vmatprep.subr.bf16.mxu0 %v10343_v58  ;;  %8037 = vmatpush1.bf16.msra.mxu1 %v10431_v1  ;;  %v10400_v58 = vld [vmem:[#allocation10 + $0x4d4] ss:$8 sps:$4 sm:$0xff]   ;;  %v10404_v1 = vld [vmem:[#allocation10 + $0x4f0] ss:$8 sps:$4 sm:$0xff]  }
 0x969   :  { %8038 = vmatprep.subr.bf16.mxu1 %v10436_v20  ;;  %v10449_v20 = vld [vmem:[%s12158_s16 + $0x150] ss:$12 sps:$4 sm:$0xff]  }
 0x96b   :  { %7583 = vmatpush1.bf16.msra.mxu0 %v10341_v55  ;;  %v10401_v55 = vld [vmem:[#allocation10 + $0x4e0] ss:$8 sps:$4 sm:$0xff]  }
 0x96c   :  { %7584 = vmatprep.subr.bf16.mxu0 %v10346_v2  ;;  %8039 = vmatpush1.bf16.msra.mxu1 %v10434_v9  ;;  %v10406_v2 = vld [vmem:[#allocation10 + $0x4f4] ss:$8 sps:$4 sm:$0xff]  }
 0x96d   :  { %8040 = vmatprep.subr.bf16.mxu1 %v10439_v24 }
 0x96f   :  { %7585 = vmatpush1.bf16.msra.mxu0 %v10344_v5  ;;  %v10451_v5 = vld [vmem:[%s12158_s16 + $0x154] ss:$12 sps:$4 sm:$0xff]  }
 0x970   :  { %7586 = vmatprep.subr.bf16.mxu0 %v10349_v4  ;;  %8041 = vmatpush1.bf16.msra.mxu1 %v10437_v19  ;;  %v10454_v4 = vld [vmem:[%s12158_s16 + $0x16c] ss:$12 sps:$4 sm:$0xff]  }
 0x971   :  { %8042 = vmatprep.subr.bf16.mxu1 %v10442_v61 }
 0x973   :  { %7587 = vmatpush1.bf16.msra.mxu0 %v10347_v34 }
 0x974   :  { %7588 = vmatprep.subr.bf16.mxu0 %v10352_v28  ;;  %8043 = vmatpush1.bf16.msra.mxu1 %v10440_v16 }
 0x975   :  { %8044 = vmatprep.subr.bf16.mxu1 %v10445_v49 }
 0x977   :  { %7589 = vmatpush1.bf16.msra.mxu0 %v10350_v40 }
 0x978   :  { %7590 = vmatprep.subr.bf16.mxu0 %v10355_v3  ;;  %8045 = vmatpush1.bf16.msra.mxu1 %v10443_v12 }
 0x979   :  { %8046 = vmatprep.subr.bf16.mxu1 %v10448_v62 }
 0x97b   :  { %7591 = vmatpush1.bf16.msra.mxu0 %v10353_v29 }
 0x97c   :  { %7592 = vmatprep.subr.bf16.mxu0 %v10358_v18  ;;  %8047 = vmatpush1.bf16.msra.mxu1 %v10446_v13 }
 0x97d   :  { %8048 = vmatprep.subr.bf16.mxu1 %v10451_v5 }
 0x97f   :  { %7593 = vmatpush1.bf16.msra.mxu0 %v10356_v22 }
 0x980   :  { %7615 = vmatprep.subr.bf16.mxu0 %v10361_v52  ;;  %8049 = vmatpush1.bf16.msra.mxu1 %v10449_v20 }
 0x981   :  { %8050 = vmatprep.subr.bf16.mxu1 %v10454_v4 }
 0x982   :  { %7595 = vmatmul.mubr.bf16.vlgmr.msra.gmra.mrb[24].mxu0 %v11875_v56  ;;  %v10371_v56 = vld [vmem:[#allocation10 + $0x440] ss:$8 sps:$4 sm:$0xff]  }
 0x983   :  { %7604 = vmatprep.mubr.bf16.mxu0 %v11881_v35  ;;  %7616 = vmatpush1.bf16.msra.mxu0 %v10359_v38  ;;  %v10376_v35 = vld [vmem:[#allocation10 + $0x454] ss:$8 sps:$4 sm:$0xff]  }
 0x984   :  { %7617 = vmatprep.subr.bf16.mxu0 %v10364_v60  ;;  %v10457_v60 = vld [vmem:[%s12158_s16 + $0xe0] ss:$12 sps:$4 sm:$0xff]  }
 0x987   :  { %7618 = vmatpush1.bf16.msra.mxu0 %v10362_v23 }
 0x988   :  { %7619 = vmatprep.subr.bf16.mxu0 %v10367_v25  ;;  %v10458_v25 = vld [vmem:[%s12158_s16 + $0x20] ss:$12 sps:$4 sm:$0xff]  }
 0x98a   :  { %7605 = vmatmul.mubr.bf16.gmra.mrb[28].mxu0 %v11890_v11  ;;  %v10380_v11 = vld [vmem:[#allocation10 + $0x470] ss:$8 sps:$4 sm:$0xff]  }
 0x98b   :  { %7620 = vmatpush1.bf16.msra.mxu0 %v10365_v51  ;;  %7647 = vmatprep.mubr.bf16.mxu0 %v11893_v53  ;;  %v10383_v53 = vld [vmem:[#allocation10 + $0x480] ss:$8 sps:$4 sm:$0xff]  }
 0x98c   :  { %7621 = vmatprep.subr.bf16.mxu0 %v10370_v21 }
 0x98f   :  { %7622 = vmatpush1.bf16.msra.mxu0 %v10368_v45  ;;  %v10459_v45 = vld [vmem:[%s12158_s16 + $0xf8] ss:$12 sps:$4 sm:$0xff]  }
 0x990   :  { %7623 = vmatprep.subr.bf16.mxu0 %v10373_v46 }
 0x993   :  { %7624 = vmatpush1.bf16.msra.mxu0 %v10371_v56 }
 0x994   :  { %7625 = vmatprep.subr.bf16.mxu0 %v10376_v35 }
 0x997   :  { %7626 = vmatpush1.bf16.msra.mxu0 %v10374_v10 }
 0x998   :  { %7627 = vmatprep.subr.bf16.mxu0 %v10379_v59  ;;  %v10460_v59 = vld [vmem:[%s12158_s16 + $0x38] ss:$12 sps:$4 sm:$0xff]  }
 0x99b   :  { %7628 = vmatpush1.bf16.msra.mxu0 %v10377_v27  ;;  %v10465_v27 = vld [vmem:[%s12158_s16 + $0x140] ss:$12 sps:$4 sm:$0xff]  }
 0x99c   :  { %7629 = vmatprep.subr.bf16.mxu0 %v10382_v6  ;;  %v10466_v6 = vld [vmem:[%s12158_s16 + $0x80] ss:$12 sps:$4 sm:$0xff]  }
 0x99f   :  { %7630 = vmatpush1.bf16.msra.mxu0 %v10380_v11  ;;  %v10467_v11 = vld [vmem:[%s12158_s16 + $0x158] ss:$12 sps:$4 sm:$0xff]  }
 0x9a0   :  { %7631 = vmatprep.subr.bf16.mxu0 %v10385_v50  ;;  %v10468_v50 = vld [vmem:[%s12158_s16 + $0x98] ss:$12 sps:$4 sm:$0xff]  }
 0x9a3   :  { %7632 = vmatpush1.bf16.msra.mxu0 %v10383_v53  ;;  %v10469_v53 = vld [vmem:[%s12158_s16 + $0x170] ss:$12 sps:$4 sm:$0xff]  }
 0x9a4   :  { %7633 = vmatprep.subr.bf16.mxu0 %v10388_v48  ;;  %v10470_v48 = vld [vmem:[%s12158_s16 + $0xb0] ss:$12 sps:$4 sm:$0xff]  }
 0x9a7   :  { %7634 = vmatpush1.bf16.msra.mxu0 %v10386_v31 }
 0x9a8   :  { %7635 = vmatprep.subr.bf16.mxu0 %v10391_v7 }
 0x9ab   :  { %7636 = vmatpush1.bf16.msra.mxu0 %v10389_v57 }
 0x9ac   :  { %7637 = vmatprep.subr.bf16.mxu0 %v10394_v30 }
 0x9af   :  { %7638 = vmatpush1.bf16.msra.mxu0 %v10392_v37 }
 0x9b0   :  { %7639 = vmatprep.subr.bf16.mxu0 %v10397_v8 }
 0x9b3   :  { %7640 = vmatpush1.bf16.msra.mxu0 %v10395_v14 }
 0x9b4   :  { %7641 = vmatprep.subr.bf16.mxu0 %v10400_v58 }
 0x9b7   :  { %7642 = vmatpush1.bf16.msra.mxu0 %v10398_v44 }
 0x9b8   :  { %7643 = vmatprep.subr.bf16.mxu0 %v10403_v54 }
 0x9bb   :  { %7644 = vmatpush1.bf16.msra.mxu0 %v10401_v55 }
 0x9bc   :  { %7645 = vmatprep.subr.bf16.mxu0 %v10406_v2 }
 0x9bf   :  { %7646 = vmatpush1.bf16.msra.mxu0 %v10404_v1 }
 0x9c2   :  { %7648 = vmatmul.mubr.bf16.vlgmr.msra.gmra.mrb[24].mxu0 %v11896_v33  ;;  %v10452_v33 = vld [vmem:[%s12158_s16 + $0x168] ss:$12 sps:$4 sm:$0xff]  }
 0x9c3   :  { %7657 = vmatprep.mubr.bf16.mxu0 %v11901_v41  ;;  %v10455_v41 = vld [vmem:[%s12158_s16 + $0xc8] ss:$12 sps:$4 sm:$0xff]   ;;  %8051 = vmatpush1.bf16.msra.mxu1 %v10452_v33 }
 0x9c4   :  { %9044 = vmatprep.subr.bf16.mxu1 %v10455_v41 }
 0x9ca   :  { %7658 = vmatmul.mubr.bf16.gmra.mrb[28].mxu0 %v11905_v63  ;;  %v7668_v63 = vld [vmem:[%s12157_s15] sm:$0x3] }
 0x9cb   :  { %v7673_v9 = vrot.slane %v7668_v63, %v11011_v15  ;;  %v7677_v24 = vrot.slane %v7668_v63, %v11016_v32  ;;  %v10456_v32 = vld [vmem:[%s12158_s16 + $0x8] ss:$12 sps:$4 sm:$0xff]  }
 0xa95   :  { %v7649_v34 = vpop.f32.mrb[24].mxu0 }
 0xa96   :  { %v7680_v28 = vadd.f32 %v7673_v9, %v7649_v34  ;;  %v7651_v19 = vpop.f32.mrb[25].mxu0 }
 0xa97   :  { %v7681_v61 = vadd.f32 %v7677_v24, %v7651_v19  ;;  %v7653_v40 = vpop.f32.mrb[26].mxu0 }
 0xa98   :  { %v7682_v3 = vadd.f32 %v7673_v9, %v7653_v40  ;;  %v7655_v16 = vpop.f32.mrb[27].mxu0  ;;  %v7688_v29 = vadd.f32 %v7680_v28, %v11489_v39 }
 0xa99   :  { %v7683_v49 = vadd.f32 %v7677_v24, %v7655_v16  ;;  %v7689_v12 = vadd.f32 %v7681_v61, %v11492_v26 }
 0xa9a   :  { %v7690_v18 = vadd.f32 %v7682_v3, %v11497_v42 }
 0xa9b   :  { %v7691_v62 = vadd.f32 %v7683_v49, %v11501_v36 }
 0xa9c   :  { %v7696_v22 = vpack.c.bf16 %v7690_v18, %v7688_v29 }
 0xa9d   :  { %v7659_v15 = vpop.f32.mrb[28].mxu0  ;;  %v7697_v52 = vpack.c.bf16 %v7691_v62, %v7689_v12 }
 0xa9e   :  { %v7684_v13 = vadd.f32 %v7673_v9, %v7659_v15  ;;  %v7661_v38 = vpop.f32.mrb[29].mxu0 }
 0xa9f   :  { %v7685_v39 = vadd.f32 %v7677_v24, %v7661_v38  ;;  %v7663_v23 = vpop.f32.mrb[30].mxu0  ;;  %8052 = vmatprep.mubr.bf16.mxu1 %v7697_v52 }
 0xaa0   :  { %v7686_v42 = vadd.f32 %v7673_v9, %v7663_v23  ;;  %v7665_v26 = vpop.f32.mrb[31].mxu0  ;;  %8053 = vmatmul.mubr.bf16.vlgmr.msra.gmra.mrb[36].mxu1 %v7696_v22  ;;  %v7692_v51 = vadd.f32 %v7684_v13, %v11513_v0  ;;  %v10461_v0 = vld [vmem:[%s12158_s16 + $0x110] ss:$12 sps:$4 sm:$0xff]  }
 0xaa1   :  { %v7687_v36 = vadd.f32 %v7677_v24, %v7665_v26  ;;  %9045 = vmatpush3.bf16.msra.mxu1 %v10456_v32  ;;  %v7693_v46 = vadd.f32 %v7685_v39, %v11516_v43  ;;  %v10462_v43 = vld [vmem:[%s12158_s16 + $0x50] ss:$12 sps:$4 sm:$0xff]  }
 0xaa2   :  { %v7694_v21 = vadd.f32 %v7686_v42, %v11521_v47  ;;  %9046 = vmatprep.subr.bf16.mxu1 %v10457_v60  ;;  %v10463_v47 = vld [vmem:[%s12158_s16 + $0x128] ss:$12 sps:$4 sm:$0xff]  }
 0xaa3   :  { %v7695_v56 = vadd.f32 %v7687_v36, %v11533_v17  ;;  %v10464_v17 = vld [vmem:[%s12158_s16 + $0x68] ss:$12 sps:$4 sm:$0xff]  }
 0xaa4   :  { %v7698_v35 = vpack.c.bf16 %v7694_v21, %v7692_v51 }
 0xaa5   :  { %9047 = vmatpush3.bf16.msra.mxu1 %v10458_v25  ;;  %v7699_v10 = vpack.c.bf16 %v7695_v56, %v7693_v46 }
 0xaa6   :  { %9048 = vmatprep.subr.bf16.mxu1 %v10459_v45 }
 0xaa7   :  { %8062 = vmatprep.mubr.bf16.mxu1 %v7699_v10 }
 0xaa8   :  { %8063 = vmatmul.mubr.bf16.gmra.mrb[40].mxu1 %v7698_v35 }
 0xaa9   :  { %9049 = vmatpush3.bf16.msra.mxu1 %v10460_v59  ;;  %8105 = vmatprep.mubr.bf16.mxu1 %v7697_v52 }
 0xaaa   :  { %9050 = vmatprep.subr.bf16.mxu1 %v10461_v0 }
 0xaad   :  { %9051 = vmatpush3.bf16.msra.mxu1 %v10462_v43 }
 0xaae   :  { %9052 = vmatprep.subr.bf16.mxu1 %v10463_v47 }
 0xab1   :  { %9053 = vmatpush3.bf16.msra.mxu1 %v10464_v17 }
 0xab2   :  { %9054 = vmatprep.subr.bf16.mxu1 %v10465_v27 }
 0xab5   :  { %9055 = vmatpush3.bf16.msra.mxu1 %v10466_v6 }
 0xab6   :  { %9056 = vmatprep.subr.bf16.mxu1 %v10467_v11 }
 0xab9   :  { %9057 = vmatpush3.bf16.msra.mxu1 %v10468_v50 }
 0xaba   :  { %9058 = vmatprep.subr.bf16.mxu1 %v10469_v53 }
 0xabd   :  { %9059 = vmatpush3.bf16.msra.mxu1 %v10470_v48 }
 0xac0   :  { %8106 = vmatmul.mubr.bf16.vlgmr.msra.gmra.mrb[44].mxu1 %v7696_v22 }
 0xac1   :  { %8113 = vmatprep.mubr.bf16.mxu1 %v7699_v10 }
 0xac8   :  { %8114 = vmatmul.mubr.bf16.gmra.mrb[48].mxu1 %v7698_v35 }
 0xb73   :  { %v8054_v31 = vpop.f32.mrb[36].mxu1 }
 0xb74   :  { %8122 = vst [vmem:[%s12167_s29] sm:$0xff] %v8054_v31  ;;  %v8056_v7 = vpop.f32.mrb[37].mxu1 }
 0xb75   :  { %8123 = vst [vmem:[%s12167_s29 + $0x8] sm:$0xff] %v8056_v7  ;;  %v8058_v57 = vpop.f32.mrb[38].mxu1 }
 0xb76   :  { %8125 = vst [vmem:[%s12167_s29 + $0x18] sm:$0xff] %v8058_v57  ;;  %v8060_v30 = vpop.f32.mrb[39].mxu1 }
 0xb77   :  { %8126 = vst [vmem:[%s12167_s29 + $0x20] sm:$0xff] %v8060_v30 }
 0xb7b   :  { %v8064_v37 = vpop.f32.mrb[40].mxu1 }
 0xb7c   :  { %8128 = vst [vmem:[%s12167_s29 + $0x30] sm:$0xff] %v8064_v37  ;;  %v8066_v8 = vpop.f32.mrb[41].mxu1 }
 0xb7d   :  { %8129 = vst [vmem:[%s12167_s29 + $0x38] sm:$0xff] %v8066_v8  ;;  %v8068_v14 = vpop.f32.mrb[42].mxu1 }
 0xb7e   :  { %8131 = vst [vmem:[%s12167_s29 + $0x48] sm:$0xff] %v8068_v14  ;;  %v8070_v58 = vpop.f32.mrb[43].mxu1 }
 0xb7f   :  { %8132 = vst [vmem:[%s12167_s29 + $0x50] sm:$0xff] %v8070_v58 }
 0xb93   :  { %v9060_v44 = vpop.f32.mrb[44].mxu1 }
 0xb94   :  { %v9061_v54 = vpop.f32.mrb[45].mxu1 }
 0xb95   :  { %v9062_v55 = vadd.f32 %v9061_v54, %v9060_v44  ;;  %v9063_v2 = vpop.f32.mrb[46].mxu1 }
 0xb96   :  { %v9064_v1 = vpop.f32.mrb[47].mxu1 }
 0xb97   :  { %8124 = vst [vmem:[%s12167_s29 + $0x10] sm:$0xff] %v9062_v55  ;;  %v9065_v20 = vadd.f32 %v9064_v1, %v9063_v2 }
 0xb99   :  { %8127 = vst [vmem:[%s12167_s29 + $0x28] sm:$0xff] %v9065_v20 }
 0xb9b   :  { %v9066_v5 = vpop.f32.mrb[48].mxu1 }
 0xb9c   :  { %v9067_v4 = vpop.f32.mrb[49].mxu1 }
 0xb9d   :  { %v9068_v33 = vadd.f32 %v9067_v4, %v9066_v5  ;;  %v9069_v41 = vpop.f32.mrb[50].mxu1 }
 0xb9e   :  { %v9070_v63 = vpop.f32.mrb[51].mxu1 }
 0xb9f   :  { %8130 = vst [vmem:[%s12167_s29 + $0x40] sm:$0xff] %v9068_v33  ;;  %v9071_v9 = vadd.f32 %v9070_v63, %v9069_v41 }
 0xba1   :  { %8133 = vst [vmem:[%s12167_s29 + $0x58] sm:$0xff] %v9071_v9 }
 0xba2   :  { %8138 = vsyncpa [#allocation3], 1 }
 0xba3   :  { %8139 = vsyncpa [#allocation5], 1 }
 0xba4   :  { %8140 = vsyncpa [#allocation8], 1 }
 0xba5   :  { %8141 = vsyncpa [#allocation11], 1 }

</bundles_post_ra>
